<compile_context>
chip_gen: v7x
topology: tpu7x:2x2x1
jax: 0.10.0
libtpu: 0.0.40
codegen_flags: <defaults>
</compile_context>

<pallas_src>
import functools

import jax
import jax.numpy as jnp
from jax import lax
from jax.experimental import pallas as pl
from jax.experimental.pallas import tpu as pltpu

_MX = jnp.bfloat16          # matmul-operand dtype (f32 accumulation on the MXU)


def _round_up(n, m):
    return (n + m - 1) // m * m


# --------------------------------------------------------------------------------------
# Kernel
# --------------------------------------------------------------------------------------
def _cot_kernel(H, W, Bb, ksize,
                x_ref, y_ref,
                wp_ref, tp_ref, wk_ref, tk_ref,
                we1a_ref, we1b_ref, te1_ref, we2_ref, be2_ref,
                grp_ref, grpT_ref, gng_ref, gnb_ref,
                we3_ref, be3_ref, wc_ref, tc_ref, wla_ref, wlb_ref, tl_ref,
                wse1_ref, bse1_ref, wse20_ref, bse20_ref, wse21_ref, bse21_ref,
                o_ref, ypad_ref):
    HW = H * W
    M = Bb * HW                        # batch block flattened into the GEMM M dimension
    C = x_ref.shape[-1]
    Cmidp = we2_ref.shape[-1]          # lane-padded embed-mid width
    KK = ksize * ksize
    pad = ksize // 2
    f32 = jnp.float32

    def mxdot(a, w):                   # bf16 operands, f32 accumulation on the MXU
        return jnp.dot(a.astype(_MX), w, preferred_element_type=f32)

    def fdot(a, w):                    # tiny / accuracy-sensitive matmuls stay f32
        return jnp.dot(a, w, preferred_element_type=f32)

    # ---- FCUUp (expand_block): conv_project(1x1) + BN(eps=1e-6) folded + ReLU.
    #      nearest upsample is the identity for dw_stride == 1.  y arrives bf16.
    y0 = jnp.maximum(mxdot(y_ref[...].reshape(M, C), wp_ref[...]) + tp_ref[...], 0.0)

    # ---- key_embed: kxk grouped conv (groups=4, no bias) as ksize^2 statically-offset
    #      window reads of a zero-padded spatial scratch (no rolls, no iota masks),
    #      block-diagonal weights, BN folded, ReLU.
    ypad_ref[...] = jnp.zeros(ypad_ref.shape, ypad_ref.dtype)      # pad ring := 0
    ypad_ref[:, pad:pad + H, pad:pad + W, :] = y0.reshape(Bb, H, W, C)
    acc = jnp.zeros((M, C), f32)
    for dy in range(ksize):
        for dx in range(ksize):
            # TODO(synk): on v6e/v7x pair taps into K=256 GEMMs (needs a K-concat); kept
            # as 9 independent K=C GEMMs to avoid re-introducing concat materialization.
            tap = ypad_ref[:, dy:dy + H, dx:dx + W, :].reshape(M, C)
            acc = acc + mxdot(tap, wk_ref[dy * ksize + dx])
    y_r = jnp.maximum(acc + tk_ref[...], 0.0)

    # ---- embed branch: split-K GEMMs on [y_r, x] (no (M,2C) concat), BN3 folded + ReLU
    e1 = jnp.maximum(mxdot(y_r, we1a_ref[...])
                     + mxdot(x_ref[...].reshape(M, C), we1b_ref[...])
                     + te1_ref[...], 0.0)
    e2 = mxdot(e1, we2_ref[...]) + be2_ref[...]          # (M, Cmidp); padded lanes are 0

    # ---- GroupNorm (dim//8 groups), batched over the whole Bb block:
    #      one (Bb,HW,Cmidp) reduction + tiny indicator GEMMs (no per-sample loop).
    inv_cnt = 1.0 / float(HW * KK)
    e2b = e2.reshape(Bb, HW, Cmidp)
    csum = jnp.sum(e2b, axis=1)                          # (Bb, Cmidp)
    csq = jnp.sum(e2b * e2b, axis=1)
    gmean = fdot(csum, grp_ref[...]) * inv_cnt           # (Bb, G)
    gex2 = fdot(csq, grp_ref[...]) * inv_cnt
    grstd = lax.rsqrt(gex2 - gmean * gmean + 1e-5)       # one-pass E[x^2]-mean^2 (doc'd)
    mean_c = fdot(gmean, grpT_ref[...]).reshape(Bb, 1, Cmidp)
    rstd_c = fdot(grstd, grpT_ref[...]).reshape(Bb, 1, Cmidp)
    e2n = ((e2b - mean_c) * rstd_c * gng_ref[...] + gnb_ref[...]).reshape(M, Cmidp)

    w_emb = mxdot(e2n, we3_ref[...]) + be3_ref[...]      # embed output "w"   (M, C)

    # ---- conv1x1 branch on y_r (+BN folded)
    k1 = mxdot(y_r, wc_ref[...]) + tc_ref[...]

    # ---- local_conv on [w, k]: split-K GEMMs (no concat), bn folded, ReLU
    kk = jnp.maximum(mxdot(w_emb, wla_ref[...]) + mxdot(k1, wlb_ref[...])
                     + tl_ref[...], 0.0)

    # ---- SE / radix-2 softmax attention, batched over the Bb block, single store.
    inv_hw = 1.0 / float(HW)
    x_b = x_ref[...]                                     # (Bb, HW, C) f32
    kk_b = kk.reshape(Bb, HW, C)
    gap = jnp.sum(x_b + kk_b, axis=1) * inv_hw           # (Bb, C)
    s1 = jnp.maximum(fdot(gap, wse1_ref[...]) + bse1_ref[...], 0.0)
    z0 = fdot(s1, wse20_ref[...]) + bse20_ref[...]       # radix 0 -> x
    z1 = fdot(s1, wse21_ref[...]) + bse21_ref[...]       # radix 1 -> k
    zm = jnp.maximum(z0, z1)
    p0 = jnp.exp(z0 - zm)
    p1 = jnp.exp(z1 - zm)
    inv = pl.reciprocal(p0 + p1, approx=True)            # EUP slot
    a0 = (p0 * inv).reshape(Bb, 1, C)
    a1 = (p1 * inv).reshape(Bb, 1, C)
    o_ref[...] = (x_b * a0 + kk_b * a1).astype(o_ref.dtype)


# --------------------------------------------------------------------------------------
# Wrapper: fold BNs, split/pad weights, build block-diagonal grouped-conv weights
# --------------------------------------------------------------------------------------
def _pack_params(p, C, ksize):
    KK = ksize * ksize
    Cg = C // 4
    G = C // 8
    C2 = C // 2
    Cmid = G * KK
    C2p = _round_up(C2, 128)       # lane-pad narrow intermediates to multiples of 128
    Cmidp = _round_up(Cmid, 128)
    f32 = jnp.float32

    def fold(pre, eps=1e-5):
        s = p[pre + "_g"] / jnp.sqrt(p[pre + "_v"] + eps)
        t = p[pre + "_b"] - p[pre + "_m"] * s
        return s, t

    s1, t1 = fold("bn1", 1e-6)
    s2, t2 = fold("bn2")
    s3, t3 = fold("bn3")
    s4, t4 = fold("bn4")
    s5, t5 = fold("bn5")
    s6, t6 = fold("bn6")

    row = lambda v: v[None, :].astype(f32)

    def padc(a, n):                # zero-pad the last (lane) dim to width n
        return jnp.pad(a, [(0, 0)] * (a.ndim - 1) + [(0, n - a.shape[-1])])

    wp = (p["conv_p_w"] * s1[None, :]).astype(_MX)
    tp = row(p["conv_p_b"] * s1 + t1)

    # key_embed grouped conv -> block-diagonal (C, C) weight per tap.
    # TODO(synk): for production C (Cg >= 128) switch to per-group (Cg, Cg) GEMMs to
    # avoid spending 75% of MXU flops on zeros; dense form is fine at C=128 demo scale.
    wk = jnp.zeros((KK, C, C), f32)
    for g in range(4):
        blk = p["key_w"][g].reshape(KK, Cg, Cg)
        wk = wk.at[:, g * Cg:(g + 1) * Cg, g * Cg:(g + 1) * Cg].set(blk)
    wk = (wk * s2[None, None, :]).astype(_MX)
    tk = row(t2)

    we1 = p["emb1_w"] * s3[None, :]                       # (2C, C2) -> split + lane-pad
    we1a = padc(we1[:C], C2p).astype(_MX)                 # y_r half
    we1b = padc(we1[C:], C2p).astype(_MX)                 # x half
    te1 = padc(row(t3), C2p)

    we2 = jnp.zeros((C2p, Cmidp), f32).at[:C2, :Cmid].set(p["emb2_w"]).astype(_MX)
    be2 = padc(row(p["emb2_b"]), Cmidp)

    grp = jnp.zeros((Cmidp, G), f32).at[:Cmid, :].set(
        (jnp.arange(Cmid)[:, None] // KK == jnp.arange(G)[None, :]).astype(f32))
    grpT = grp.T
    gng = padc(row(p["gn_g"]), Cmidp)
    gnb = padc(row(p["gn_b"]), Cmidp)

    we3 = jnp.zeros((Cmidp, C), f32).at[:Cmid, :].set(p["emb3_w"]).astype(_MX)
    be3 = row(p["emb3_b"])

    wc = (p["c1x1_w"] * s4[None, :]).astype(_MX)
    tc = row(t4)

    wl = p["local_w"] * s5[None, :]                       # (2C, C) -> split
    wla = wl[:C].astype(_MX)                              # w_emb half
    wlb = wl[C:].astype(_MX)                              # k half
    tl = row(t5)

    wse1 = (p["se1_w"] * s6[None, :]).astype(f32)
    bse1 = row(p["se1_b"] * s6 + t6)
    wse20 = p["se2_w"][:, 0::2].astype(f32)
    bse20 = row(p["se2_b"][0::2])
    wse21 = p["se2_w"][:, 1::2].astype(f32)
    bse21 = row(p["se2_b"][1::2])

    return [wp, tp, wk, tk,
            we1a, we1b, te1, we2, be2,
            grp, grpT, gng, gnb,
            we3, be3, wc, tc, wla, wlb, tl,
            wse1, bse1, wse20, bse20, wse21, bse21]


def cot_layer_forward(x_nchw, y_tok, params, *, kernel_size, dw_stride, block_b=None):
    """x_nchw: (B, dim, H, W) CNN map; y_tok: (B, H*W, dim) tokens. Returns NCHW."""
    B, C, H, W = x_nchw.shape
    HW = H * W
    # TODO(synk): F.interpolate nearest-upsample for dw_stride > 1 is not implemented —
    # the original forward only composes when dw_stride == 1 (qk concat needs equal HW).
    assert dw_stride == 1
    assert kernel_size % 2 == 1
    assert y_tok.shape == (B, HW, C)
    assert C % 8 == 0

    if block_b is None:
        block_b = 1
        for cand in range(B, 0, -1):           # target ~256-512 GEMM rows per grid step
            if B % cand == 0 and cand * HW <= 512:
                block_b = cand
                break
    assert B % block_b == 0

    pad = kernel_size // 2
    Hp = H + 2 * pad
    Wp = _round_up(W + 2 * pad, 8)             # sublane-pad the padded width

    ops = _pack_params(params, C, kernel_size)
    x_cl = jnp.transpose(x_nchw, (0, 2, 3, 1)).reshape(B, HW, C)    # channels-last rows
    y_bf = y_tok.astype(_MX)                   # tokens are only ever MXU operands

    def io_spec():
        return pl.BlockSpec((block_b, HW, C), lambda i: (i, 0, 0))

    def full_spec(a):
        nd = a.ndim
        # TODO(synk): at production scale on v7x (64 MiB VMEM) single-buffer these
        # constant-index weight blocks (pipeline_mode=pl.Buffered(1)) for headroom.
        return pl.BlockSpec(a.shape, lambda i, _nd=nd: (0,) * _nd)

    grid_spec = pltpu.PrefetchScalarGridSpec(
        num_scalar_prefetch=0,
        grid=(B // block_b,),
        in_specs=[io_spec(), io_spec()] + [full_spec(a) for a in ops],
        out_specs=io_spec(),
        scratch_shapes=[pltpu.VMEM((block_b, Hp, Wp, C), jnp.float32)],
    )
    out_cl = pl.pallas_call(
        functools.partial(_cot_kernel, H, W, block_b, kernel_size),
        out_shape=jax.ShapeDtypeStruct((B, HW, C), jnp.float32),
        grid_spec=grid_spec,
        compiler_params=pltpu.CompilerParams(
            dimension_semantics=("parallel",),            # independent batch blocks
            vmem_limit_bytes=48 * 1024 * 1024),           # explicit for v7x's 64 MiB
    )(x_cl, y_bf, *ops)
    return jnp.transpose(out_cl.reshape(B, H, W, C), (0, 3, 1, 2))


# --------------------------------------------------------------------------------------
# Pure-JAX reference (raw params, f32, eval-mode BN) for verification
# --------------------------------------------------------------------------------------
def reference_forward(x_nchw, y_tok, p, *, kernel_size, dw_stride):
    assert dw_stride == 1
    B, C, H, W = x_nchw.shape
    k = kernel_size
    pad = k // 2
    Cg = C // 4

    def bn(v, pre, eps=1e-5):
        return ((v - p[pre + "_m"]) / jnp.sqrt(p[pre + "_v"] + eps)
                * p[pre + "_g"] + p[pre + "_b"])

    # FCUUp
    y0 = jnp.einsum("bhwc,cd->bhwd", y_tok.reshape(B, H, W, C),
                    p["conv_p_w"]) + p["conv_p_b"]
    y0 = jnp.maximum(bn(y0, "bn1", 1e-6), 0.0)

    # key_embed: kxk grouped conv (groups=4), BN, ReLU
    y0p = jnp.pad(y0, ((0, 0), (pad, pad), (pad, pad), (0, 0)))
    acc = jnp.zeros((B, H, W, C), jnp.float32)
    for g in range(4):
        seg = y0p[..., g * Cg:(g + 1) * Cg]
        og = jnp.zeros((B, H, W, Cg), jnp.float32)
        for dy in range(k):
            for dx in range(k):
                win = seg[:, dy:dy + H, dx:dx + W, :]
                og = og + jnp.einsum("bhwc,cd->bhwd", win, p["key_w"][g, dy, dx])
        acc = acc.at[..., g * Cg:(g + 1) * Cg].set(og)
    y_r = jnp.maximum(bn(acc, "bn2"), 0.0)

    x_cl = jnp.transpose(x_nchw, (0, 2, 3, 1))
    qk = jnp.concatenate([y_r, x_cl], axis=-1)
    e1 = jnp.maximum(bn(jnp.einsum("bhwc,cd->bhwd", qk, p["emb1_w"]), "bn3"), 0.0)
    e2 = jnp.einsum("bhwc,cd->bhwd", e1, p["emb2_w"]) + p["emb2_b"]

    G = C // 8
    gsz = k * k
    Cmid = G * gsz
    e2g = e2.reshape(B, H * W, G, gsz)
    mu = e2g.mean(axis=(1, 3), keepdims=True)
    var = ((e2g - mu) ** 2).mean(axis=(1, 3), keepdims=True)
    e2n = ((e2g - mu) / jnp.sqrt(var + 1e-5)).reshape(B, H, W, Cmid)
    e2n = e2n * p["gn_g"] + p["gn_b"]

    w_emb = jnp.einsum("bhwc,cd->bhwd", e2n, p["emb3_w"]) + p["emb3_b"]
    k1 = bn(jnp.einsum("bhwc,cd->bhwd", y_r, p["c1x1_w"]), "bn4")
    kk = jnp.maximum(
        bn(jnp.einsum("bhwc,cd->bhwd",
                      jnp.concatenate([w_emb, k1], axis=-1), p["local_w"]), "bn5"), 0.0)

    gap = (x_cl + kk).mean(axis=(1, 2))                                   # (B, C)
    s1 = jnp.maximum(bn(gap @ p["se1_w"] + p["se1_b"], "bn6"), 0.0)
    z = (s1 @ p["se2_w"] + p["se2_b"]).reshape(B, C, 2)
    a = jax.nn.softmax(z, axis=2)
    out = x_cl * a[:, None, None, :, 0] + kk * a[:, None, None, :, 1]
    return jnp.transpose(out, (0, 3, 1, 2))


# --------------------------------------------------------------------------------------
# Parameter initialization (eval-mode BN stats included)
# --------------------------------------------------------------------------------------
def init_params(key, dim, kernel_size):
    C, k = dim, kernel_size
    Cg, C2 = C // 4, C // 2
    Cmid = k * k * C // 8
    A = max(C * 2 // 4, 32)
    ks = iter(jax.random.split(key, 64))
    nrm = lambda shape, std: std * jax.random.normal(next(ks), shape, jnp.float32)

    p = {}

    def add_bn(name, n):
        p[name + "_g"] = 1.0 + nrm((n,), 0.1)
        p[name + "_b"] = nrm((n,), 0.1)
        p[name + "_m"] = nrm((n,), 0.1)
        p[name + "_v"] = jax.random.uniform(next(ks), (n,), jnp.float32, 0.5, 1.5)

    p["conv_p_w"] = nrm((C, C), C ** -0.5)
    p["conv_p_b"] = nrm((C,), 0.1)
    add_bn("bn1", C)
    p["key_w"] = nrm((4, k, k, Cg, Cg), (Cg * k * k) ** -0.5)
    add_bn("bn2", C)
    p["emb1_w"] = nrm((2 * C, C2), (2 * C) ** -0.5)
    add_bn("bn3", C2)
    p["emb2_w"] = nrm((C2, Cmid), C2 ** -0.5)
    p["emb2_b"] = nrm((Cmid,), 0.1)
    p["gn_g"] = 1.0 + nrm((Cmid,), 0.1)
    p["gn_b"] = nrm((Cmid,), 0.1)
    p["emb3_w"] = nrm((Cmid, C), Cmid ** -0.5)
    p["emb3_b"] = nrm((C,), 0.1)
    p["c1x1_w"] = nrm((C, C), C ** -0.5)
    add_bn("bn4", C)
    p["local_w"] = nrm((2 * C, C), (2 * C) ** -0.5)
    add_bn("bn5", C)
    p["se1_w"] = nrm((C, A), C ** -0.5)
    p["se1_b"] = nrm((A,), 0.1)
    add_bn("bn6", A)
    p["se2_w"] = nrm((A, 2 * C), A ** -0.5)
    p["se2_b"] = nrm((2 * C,), 0.1)
    return p


if __name__ == "__main__":
    dim = 128            # multiple of 128 keeps all loads/stores lane-dense
    kernel_size = 3
    dw_stride = 1        # the module's forward requires matching spatial dims at the concat
    B, H, W = 4, 8, 8
    HW = H * W

    key = jax.random.PRNGKey(0)
    kx, ky, kp = jax.random.split(key, 3)
    x = jax.random.normal(kx, (B, dim, H, W), jnp.float32)    # CNN feature map (NCHW)
    y = jax.random.normal(ky, (B, HW, dim), jnp.float32)      # transformer tokens
    params = init_params(kp, dim, kernel_size)

    out = cot_layer_forward(x, y, params, kernel_size=kernel_size, dw_stride=dw_stride)
    out = jax.block_until_ready(out)

    ref = reference_forward(x, y, params, kernel_size=kernel_size, dw_stride=dw_stride)
    if not jnp.allclose(out, ref, rtol=5e-2, atol=5e-2):
        max_err = float(jnp.max(jnp.abs(out - ref)))
        raise AssertionError(f"Pallas kernel mismatch vs JAX reference (max|err|={max_err})")
    print("KERNEL_OK")
</pallas_src>

<mosaic_0001>
module attributes {stable_mosaic.version = 11 : i64} {
  func.func @_cot_kernel(%arg0: i32, %arg1: memref<4x64x128xf32, #tpu.memory_space<vmem>>, %arg2: memref<4x64x128xbf16, #tpu.memory_space<vmem>>, %arg3: memref<128x128xbf16, #tpu.memory_space<vmem>>, %arg4: memref<1x128xf32, #tpu.memory_space<vmem>>, %arg5: memref<9x128x128xbf16, #tpu.memory_space<vmem>>, %arg6: memref<1x128xf32, #tpu.memory_space<vmem>>, %arg7: memref<128x128xbf16, #tpu.memory_space<vmem>>, %arg8: memref<128x128xbf16, #tpu.memory_space<vmem>>, %arg9: memref<1x128xf32, #tpu.memory_space<vmem>>, %arg10: memref<128x256xbf16, #tpu.memory_space<vmem>>, %arg11: memref<1x256xf32, #tpu.memory_space<vmem>>, %arg12: memref<256x16xf32, #tpu.memory_space<vmem>>, %arg13: memref<16x256xf32, #tpu.memory_space<vmem>>, %arg14: memref<1x256xf32, #tpu.memory_space<vmem>>, %arg15: memref<1x256xf32, #tpu.memory_space<vmem>>, %arg16: memref<256x128xbf16, #tpu.memory_space<vmem>>, %arg17: memref<1x128xf32, #tpu.memory_space<vmem>>, %arg18: memref<128x128xbf16, #tpu.memory_space<vmem>>, %arg19: memref<1x128xf32, #tpu.memory_space<vmem>>, %arg20: memref<128x128xbf16, #tpu.memory_space<vmem>>, %arg21: memref<128x128xbf16, #tpu.memory_space<vmem>>, %arg22: memref<1x128xf32, #tpu.memory_space<vmem>>, %arg23: memref<128x64xf32, #tpu.memory_space<vmem>>, %arg24: memref<1x64xf32, #tpu.memory_space<vmem>>, %arg25: memref<64x128xf32, #tpu.memory_space<vmem>>, %arg26: memref<1x128xf32, #tpu.memory_space<vmem>>, %arg27: memref<64x128xf32, #tpu.memory_space<vmem>>, %arg28: memref<1x128xf32, #tpu.memory_space<vmem>>, %arg29: memref<4x64x128xf32, #tpu.memory_space<vmem>>, %arg30: memref<4x10x16x128xf32, #tpu.memory_space<vmem>>) attributes {dimension_semantics = [#tpu.dimension_semantics<parallel>], iteration_bounds = array<i64: 1>, scalar_prefetch = 0 : i64, scratch_operands = 1 : i64, tpu.core_type = #tpu.core_type<tc>, window_params = [{transform_indices = @transform_0, window_bounds = array<i64: 4, 64, 128>}, {transform_indices = @transform_1, window_bounds = array<i64: 4, 64, 128>}, {pipeline_mode = #tpu.pipeline_mode<synchronous>, transform_indices = @transform_2, window_bounds = array<i64: 128, 128>}, {pipeline_mode = #tpu.pipeline_mode<synchronous>, transform_indices = @transform_3, window_bounds = array<i64: 1, 128>}, {pipeline_mode = #tpu.pipeline_mode<synchronous>, transform_indices = @transform_4, window_bounds = array<i64: 9, 128, 128>}, {pipeline_mode = #tpu.pipeline_mode<synchronous>, transform_indices = @transform_5, window_bounds = array<i64: 1, 128>}, {pipeline_mode = #tpu.pipeline_mode<synchronous>, transform_indices = @transform_6, window_bounds = array<i64: 128, 128>}, {pipeline_mode = #tpu.pipeline_mode<synchronous>, transform_indices = @transform_7, window_bounds = array<i64: 128, 128>}, {pipeline_mode = #tpu.pipeline_mode<synchronous>, transform_indices = @transform_8, window_bounds = array<i64: 1, 128>}, {pipeline_mode = #tpu.pipeline_mode<synchronous>, transform_indices = @transform_9, window_bounds = array<i64: 128, 256>}, {pipeline_mode = #tpu.pipeline_mode<synchronous>, transform_indices = @transform_10, window_bounds = array<i64: 1, 256>}, {pipeline_mode = #tpu.pipeline_mode<synchronous>, transform_indices = @transform_11, window_bounds = array<i64: 256, 16>}, {pipeline_mode = #tpu.pipeline_mode<synchronous>, transform_indices = @transform_12, window_bounds = array<i64: 16, 256>}, {pipeline_mode = #tpu.pipeline_mode<synchronous>, transform_indices = @transform_13, window_bounds = array<i64: 1, 256>}, {pipeline_mode = #tpu.pipeline_mode<synchronous>, transform_indices = @transform_14, window_bounds = array<i64: 1, 256>}, {pipeline_mode = #tpu.pipeline_mode<synchronous>, transform_indices = @transform_15, window_bounds = array<i64: 256, 128>}, {pipeline_mode = #tpu.pipeline_mode<synchronous>, transform_indices = @transform_16, window_bounds = array<i64: 1, 128>}, {pipeline_mode = #tpu.pipeline_mode<synchronous>, transform_indices = @transform_17, window_bounds = array<i64: 128, 128>}, {pipeline_mode = #tpu.pipeline_mode<synchronous>, transform_indices = @transform_18, window_bounds = array<i64: 1, 128>}, {pipeline_mode = #tpu.pipeline_mode<synchronous>, transform_indices = @transform_19, window_bounds = array<i64: 128, 128>}, {pipeline_mode = #tpu.pipeline_mode<synchronous>, transform_indices = @transform_20, window_bounds = array<i64: 128, 128>}, {pipeline_mode = #tpu.pipeline_mode<synchronous>, transform_indices = @transform_21, window_bounds = array<i64: 1, 128>}, {pipeline_mode = #tpu.pipeline_mode<synchronous>, transform_indices = @transform_22, window_bounds = array<i64: 128, 64>}, {pipeline_mode = #tpu.pipeline_mode<synchronous>, transform_indices = @transform_23, window_bounds = array<i64: 1, 64>}, {pipeline_mode = #tpu.pipeline_mode<synchronous>, transform_indices = @transform_24, window_bounds = array<i64: 64, 128>}, {pipeline_mode = #tpu.pipeline_mode<synchronous>, transform_indices = @transform_25, window_bounds = array<i64: 1, 128>}, {pipeline_mode = #tpu.pipeline_mode<synchronous>, transform_indices = @transform_26, window_bounds = array<i64: 64, 128>}, {pipeline_mode = #tpu.pipeline_mode<synchronous>, transform_indices = @transform_27, window_bounds = array<i64: 1, 128>}, {transform_indices = @transform_28, window_bounds = array<i64: 4, 64, 128>}]} {
    %c0 = arith.constant 0 : index
    %c0_0 = arith.constant 0 : index
    %c0_1 = arith.constant 0 : index
    %0 = vector.load %arg2[%c0, %c0_0, %c0_1] : memref<4x64x128xbf16, #tpu.memory_space<vmem>>, vector<4x64x128xbf16>
    %1 = vector.shape_cast %0 : vector<4x64x128xbf16> to vector<256x128xbf16>
    %c0_2 = arith.constant 0 : index
    %c0_3 = arith.constant 0 : index
    %2 = vector.load %arg3[%c0_2, %c0_3] : memref<128x128xbf16, #tpu.memory_space<vmem>>, vector<128x128xbf16>
    %cst = arith.constant dense<0.000000e+00> : vector<256x128xf32>
    %3 = tpu.matmul %1, %2, %cst {dimension_numbers = #tpu.dot_dimension_numbers<[1], [0], [0], [1], [0, 0, 1, 1], [], []>} : vector<256x128xbf16>, vector<128x128xbf16>, vector<256x128xf32> -> vector<256x128xf32>
    %c0_4 = arith.constant 0 : index
    %c0_5 = arith.constant 0 : index
    %4 = vector.load %arg4[%c0_4, %c0_5] : memref<1x128xf32, #tpu.memory_space<vmem>>, vector<1x128xf32>
    %5 = vector.broadcast %4 : vector<1x128xf32> to vector<256x128xf32>
    %6 = arith.addf %3, %5 : vector<256x128xf32>
    %cst_6 = arith.constant 0.000000e+00 : f32
    %7 = vector.broadcast %cst_6 : f32 to vector<256x128xf32>
    %8 = arith.maximumf %6, %7 : vector<256x128xf32>
    %cst_7 = arith.constant 0.000000e+00 : f32
    %9 = vector.broadcast %cst_7 : f32 to vector<4x10x16x128xf32>
    %c0_8 = arith.constant 0 : index
    %c0_9 = arith.constant 0 : index
    %c0_10 = arith.constant 0 : index
    %c0_11 = arith.constant 0 : index
    %10 = vector.load %arg30[%c0_8, %c0_9, %c0_10, %c0_11] : memref<4x10x16x128xf32, #tpu.memory_space<vmem>>, vector<4x10x16x128xf32>
    tpu.vector_store %arg30[%c0_8, %c0_9, %c0_10, %c0_11], %9 {strides = array<i32>} : memref<4x10x16x128xf32, #tpu.memory_space<vmem>>, vector<4x10x16x128xf32>,
    %11 = vector.shape_cast %8 : vector<256x128xf32> to vector<4x8x8x128xf32>
    %c0_12 = arith.constant 0 : index
    %c1 = arith.constant 1 : index
    %c1_13 = arith.constant 1 : index
    %c0_14 = arith.constant 0 : index
    %12 = vector.load %arg30[%c0_12, %c1, %c1_13, %c0_14] : memref<4x10x16x128xf32, #tpu.memory_space<vmem>>, vector<4x8x8x128xf32>
    tpu.vector_store %arg30[%c0_12, %c1, %c1_13, %c0_14], %11 {strides = array<i32>} : memref<4x10x16x128xf32, #tpu.memory_space<vmem>>, vector<4x8x8x128xf32>,
    %cst_15 = arith.constant 0.000000e+00 : f32
    %13 = vector.broadcast %cst_15 : f32 to vector<256x128xf32>
    %c0_16 = arith.constant 0 : index
    %c0_17 = arith.constant 0 : index
    %c0_18 = arith.constant 0 : index
    %c0_19 = arith.constant 0 : index
    %14 = vector.load %arg30[%c0_16, %c0_17, %c0_18, %c0_19] : memref<4x10x16x128xf32, #tpu.memory_space<vmem>>, vector<4x8x8x128xf32>
    %15 = vector.shape_cast %14 : vector<4x8x8x128xf32> to vector<256x128xf32>
    %c0_20 = arith.constant 0 : index
    %c0_21 = arith.constant 0 : index
    %c0_22 = arith.constant 0 : index
    %16 = vector.load %arg5[%c0_20, %c0_21, %c0_22] : memref<9x128x128xbf16, #tpu.memory_space<vmem>>, vector<1x128x128xbf16>
    %17 = vector.shape_cast %16 : vector<1x128x128xbf16> to vector<128x128xbf16>
    %18 = arith.truncf %15 : vector<256x128xf32> to vector<256x128xbf16>
    %cst_23 = arith.constant dense<0.000000e+00> : vector<256x128xf32>
    %19 = tpu.matmul %18, %17, %cst_23 {dimension_numbers = #tpu.dot_dimension_numbers<[1], [0], [0], [1], [0, 0, 1, 1], [], []>} : vector<256x128xbf16>, vector<128x128xbf16>, vector<256x128xf32> -> vector<256x128xf32>
    %20 = arith.addf %13, %19 : vector<256x128xf32>
    %c0_24 = arith.constant 0 : index
    %c0_25 = arith.constant 0 : index
    %c1_26 = arith.constant 1 : index
    %c0_27 = arith.constant 0 : index
    %21 = vector.load %arg30[%c0_24, %c0_25, %c1_26, %c0_27] : memref<4x10x16x128xf32, #tpu.memory_space<vmem>>, vector<4x8x8x128xf32>
    %22 = vector.shape_cast %21 : vector<4x8x8x128xf32> to vector<256x128xf32>
    %c1_28 = arith.constant 1 : index
    %c0_29 = arith.constant 0 : index
    %c0_30 = arith.constant 0 : index
    %23 = vector.load %arg5[%c1_28, %c0_29, %c0_30] : memref<9x128x128xbf16, #tpu.memory_space<vmem>>, vector<1x128x128xbf16>
    %24 = vector.shape_cast %23 : vector<1x128x128xbf16> to vector<128x128xbf16>
    %25 = arith.truncf %22 : vector<256x128xf32> to vector<256x128xbf16>
    %cst_31 = arith.constant dense<0.000000e+00> : vector<256x128xf32>
    %26 = tpu.matmul %25, %24, %cst_31 {dimension_numbers = #tpu.dot_dimension_numbers<[1], [0], [0], [1], [0, 0, 1, 1], [], []>} : vector<256x128xbf16>, vector<128x128xbf16>, vector<256x128xf32> -> vector<256x128xf32>
    %27 = arith.addf %20, %26 : vector<256x128xf32>
    %c0_32 = arith.constant 0 : index
    %c0_33 = arith.constant 0 : index
    %c2 = arith.constant 2 : index
    %c0_34 = arith.constant 0 : index
    %28 = vector.load %arg30[%c0_32, %c0_33, %c2, %c0_34] : memref<4x10x16x128xf32, #tpu.memory_space<vmem>>, vector<4x8x8x128xf32>
    %29 = vector.shape_cast %28 : vector<4x8x8x128xf32> to vector<256x128xf32>
    %c2_35 = arith.constant 2 : index
    %c0_36 = arith.constant 0 : index
    %c0_37 = arith.constant 0 : index
    %30 = vector.load %arg5[%c2_35, %c0_36, %c0_37] : memref<9x128x128xbf16, #tpu.memory_space<vmem>>, vector<1x128x128xbf16>
    %31 = vector.shape_cast %30 : vector<1x128x128xbf16> to vector<128x128xbf16>
    %32 = arith.truncf %29 : vector<256x128xf32> to vector<256x128xbf16>
    %cst_38 = arith.constant dense<0.000000e+00> : vector<256x128xf32>
    %33 = tpu.matmul %32, %31, %cst_38 {dimension_numbers = #tpu.dot_dimension_numbers<[1], [0], [0], [1], [0, 0, 1, 1], [], []>} : vector<256x128xbf16>, vector<128x128xbf16>, vector<256x128xf32> -> vector<256x128xf32>
    %34 = arith.addf %27, %33 : vector<256x128xf32>
    %c0_39 = arith.constant 0 : index
    %c1_40 = arith.constant 1 : index
    %c0_41 = arith.constant 0 : index
    %c0_42 = arith.constant 0 : index
    %35 = vector.load %arg30[%c0_39, %c1_40, %c0_41, %c0_42] : memref<4x10x16x128xf32, #tpu.memory_space<vmem>>, vector<4x8x8x128xf32>
    %36 = vector.shape_cast %35 : vector<4x8x8x128xf32> to vector<256x128xf32>
    %c3 = arith.constant 3 : index
    %c0_43 = arith.constant 0 : index
    %c0_44 = arith.constant 0 : index
    %37 = vector.load %arg5[%c3, %c0_43, %c0_44] : memref<9x128x128xbf16, #tpu.memory_space<vmem>>, vector<1x128x128xbf16>
    %38 = vector.shape_cast %37 : vector<1x128x128xbf16> to vector<128x128xbf16>
    %39 = arith.truncf %36 : vector<256x128xf32> to vector<256x128xbf16>
    %cst_45 = arith.constant dense<0.000000e+00> : vector<256x128xf32>
    %40 = tpu.matmul %39, %38, %cst_45 {dimension_numbers = #tpu.dot_dimension_numbers<[1], [0], [0], [1], [0, 0, 1, 1], [], []>} : vector<256x128xbf16>, vector<128x128xbf16>, vector<256x128xf32> -> vector<256x128xf32>
    %41 = arith.addf %34, %40 : vector<256x128xf32>
    %c0_46 = arith.constant 0 : index
    %c1_47 = arith.constant 1 : index
    %c1_48 = arith.constant 1 : index
    %c0_49 = arith.constant 0 : index
    %42 = vector.load %arg30[%c0_46, %c1_47, %c1_48, %c0_49] : memref<4x10x16x128xf32, #tpu.memory_space<vmem>>, vector<4x8x8x128xf32>
    %43 = vector.shape_cast %42 : vector<4x8x8x128xf32> to vector<256x128xf32>
    %c4 = arith.constant 4 : index
    %c0_50 = arith.constant 0 : index
    %c0_51 = arith.constant 0 : index
    %44 = vector.load %arg5[%c4, %c0_50, %c0_51] : memref<9x128x128xbf16, #tpu.memory_space<vmem>>, vector<1x128x128xbf16>
    %45 = vector.shape_cast %44 : vector<1x128x128xbf16> to vector<128x128xbf16>
    %46 = arith.truncf %43 : vector<256x128xf32> to vector<256x128xbf16>
    %cst_52 = arith.constant dense<0.000000e+00> : vector<256x128xf32>
    %47 = tpu.matmul %46, %45, %cst_52 {dimension_numbers = #tpu.dot_dimension_numbers<[1], [0], [0], [1], [0, 0, 1, 1], [], []>} : vector<256x128xbf16>, vector<128x128xbf16>, vector<256x128xf32> -> vector<256x128xf32>
    %48 = arith.addf %41, %47 : vector<256x128xf32>
    %c0_53 = arith.constant 0 : index
    %c1_54 = arith.constant 1 : index
    %c2_55 = arith.constant 2 : index
    %c0_56 = arith.constant 0 : index
    %49 = vector.load %arg30[%c0_53, %c1_54, %c2_55, %c0_56] : memref<4x10x16x128xf32, #tpu.memory_space<vmem>>, vector<4x8x8x128xf32>
    %50 = vector.shape_cast %49 : vector<4x8x8x128xf32> to vector<256x128xf32>
    %c5 = arith.constant 5 : index
    %c0_57 = arith.constant 0 : index
    %c0_58 = arith.constant 0 : index
    %51 = vector.load %arg5[%c5, %c0_57, %c0_58] : memref<9x128x128xbf16, #tpu.memory_space<vmem>>, vector<1x128x128xbf16>
    %52 = vector.shape_cast %51 : vector<1x128x128xbf16> to vector<128x128xbf16>
    %53 = arith.truncf %50 : vector<256x128xf32> to vector<256x128xbf16>
    %cst_59 = arith.constant dense<0.000000e+00> : vector<256x128xf32>
    %54 = tpu.matmul %53, %52, %cst_59 {dimension_numbers = #tpu.dot_dimension_numbers<[1], [0], [0], [1], [0, 0, 1, 1], [], []>} : vector<256x128xbf16>, vector<128x128xbf16>, vector<256x128xf32> -> vector<256x128xf32>
    %55 = arith.addf %48, %54 : vector<256x128xf32>
    %c0_60 = arith.constant 0 : index
    %c2_61 = arith.constant 2 : index
    %c0_62 = arith.constant 0 : index
    %c0_63 = arith.constant 0 : index
    %56 = vector.load %arg30[%c0_60, %c2_61, %c0_62, %c0_63] : memref<4x10x16x128xf32, #tpu.memory_space<vmem>>, vector<4x8x8x128xf32>
    %57 = vector.shape_cast %56 : vector<4x8x8x128xf32> to vector<256x128xf32>
    %c6 = arith.constant 6 : index
    %c0_64 = arith.constant 0 : index
    %c0_65 = arith.constant 0 : index
    %58 = vector.load %arg5[%c6, %c0_64, %c0_65] : memref<9x128x128xbf16, #tpu.memory_space<vmem>>, vector<1x128x128xbf16>
    %59 = vector.shape_cast %58 : vector<1x128x128xbf16> to vector<128x128xbf16>
    %60 = arith.truncf %57 : vector<256x128xf32> to vector<256x128xbf16>
    %cst_66 = arith.constant dense<0.000000e+00> : vector<256x128xf32>
    %61 = tpu.matmul %60, %59, %cst_66 {dimension_numbers = #tpu.dot_dimension_numbers<[1], [0], [0], [1], [0, 0, 1, 1], [], []>} : vector<256x128xbf16>, vector<128x128xbf16>, vector<256x128xf32> -> vector<256x128xf32>
    %62 = arith.addf %55, %61 : vector<256x128xf32>
    %c0_67 = arith.constant 0 : index
    %c2_68 = arith.constant 2 : index
    %c1_69 = arith.constant 1 : index
    %c0_70 = arith.constant 0 : index
    %63 = vector.load %arg30[%c0_67, %c2_68, %c1_69, %c0_70] : memref<4x10x16x128xf32, #tpu.memory_space<vmem>>, vector<4x8x8x128xf32>
    %64 = vector.shape_cast %63 : vector<4x8x8x128xf32> to vector<256x128xf32>
    %c7 = arith.constant 7 : index
    %c0_71 = arith.constant 0 : index
    %c0_72 = arith.constant 0 : index
    %65 = vector.load %arg5[%c7, %c0_71, %c0_72] : memref<9x128x128xbf16, #tpu.memory_space<vmem>>, vector<1x128x128xbf16>
    %66 = vector.shape_cast %65 : vector<1x128x128xbf16> to vector<128x128xbf16>
    %67 = arith.truncf %64 : vector<256x128xf32> to vector<256x128xbf16>
    %cst_73 = arith.constant dense<0.000000e+00> : vector<256x128xf32>
    %68 = tpu.matmul %67, %66, %cst_73 {dimension_numbers = #tpu.dot_dimension_numbers<[1], [0], [0], [1], [0, 0, 1, 1], [], []>} : vector<256x128xbf16>, vector<128x128xbf16>, vector<256x128xf32> -> vector<256x128xf32>
    %69 = arith.addf %62, %68 : vector<256x128xf32>
    %c0_74 = arith.constant 0 : index
    %c2_75 = arith.constant 2 : index
    %c2_76 = arith.constant 2 : index
    %c0_77 = arith.constant 0 : index
    %70 = vector.load %arg30[%c0_74, %c2_75, %c2_76, %c0_77] : memref<4x10x16x128xf32, #tpu.memory_space<vmem>>, vector<4x8x8x128xf32>
    %71 = vector.shape_cast %70 : vector<4x8x8x128xf32> to vector<256x128xf32>
    %c8 = arith.constant 8 : index
    %c0_78 = arith.constant 0 : index
    %c0_79 = arith.constant 0 : index
    %72 = vector.load %arg5[%c8, %c0_78, %c0_79] : memref<9x128x128xbf16, #tpu.memory_space<vmem>>, vector<1x128x128xbf16>
    %73 = vector.shape_cast %72 : vector<1x128x128xbf16> to vector<128x128xbf16>
    %74 = arith.truncf %71 : vector<256x128xf32> to vector<256x128xbf16>
    %cst_80 = arith.constant dense<0.000000e+00> : vector<256x128xf32>
    %75 = tpu.matmul %74, %73, %cst_80 {dimension_numbers = #tpu.dot_dimension_numbers<[1], [0], [0], [1], [0, 0, 1, 1], [], []>} : vector<256x128xbf16>, vector<128x128xbf16>, vector<256x128xf32> -> vector<256x128xf32>
    %76 = arith.addf %69, %75 : vector<256x128xf32>
    %c0_81 = arith.constant 0 : index
    %c0_82 = arith.constant 0 : index
    %77 = vector.load %arg6[%c0_81, %c0_82] : memref<1x128xf32, #tpu.memory_space<vmem>>, vector<1x128xf32>
    %78 = vector.broadcast %77 : vector<1x128xf32> to vector<256x128xf32>
    %79 = arith.addf %76, %78 : vector<256x128xf32>
    %cst_83 = arith.constant 0.000000e+00 : f32
    %80 = vector.broadcast %cst_83 : f32 to vector<256x128xf32>
    %81 = arith.maximumf %79, %80 : vector<256x128xf32>
    %c0_84 = arith.constant 0 : index
    %c0_85 = arith.constant 0 : index
    %82 = vector.load %arg7[%c0_84, %c0_85] : memref<128x128xbf16, #tpu.memory_space<vmem>>, vector<128x128xbf16>
    %83 = arith.truncf %81 : vector<256x128xf32> to vector<256x128xbf16>
    %cst_86 = arith.constant dense<0.000000e+00> : vector<256x128xf32>
    %84 = tpu.matmul %83, %82, %cst_86 {dimension_numbers = #tpu.dot_dimension_numbers<[1], [0], [0], [1], [0, 0, 1, 1], [], []>} : vector<256x128xbf16>, vector<128x128xbf16>, vector<256x128xf32> -> vector<256x128xf32>
    %c0_87 = arith.constant 0 : index
    %c0_88 = arith.constant 0 : index
    %c0_89 = arith.constant 0 : index
    %85 = vector.load %arg1[%c0_87, %c0_88, %c0_89] : memref<4x64x128xf32, #tpu.memory_space<vmem>>, vector<4x64x128xf32>
    %86 = vector.shape_cast %85 : vector<4x64x128xf32> to vector<256x128xf32>
    %c0_90 = arith.constant 0 : index
    %c0_91 = arith.constant 0 : index
    %87 = vector.load %arg8[%c0_90, %c0_91] : memref<128x128xbf16, #tpu.memory_space<vmem>>, vector<128x128xbf16>
    %88 = arith.truncf %86 : vector<256x128xf32> to vector<256x128xbf16>
    %cst_92 = arith.constant dense<0.000000e+00> : vector<256x128xf32>
    %89 = tpu.matmul %88, %87, %cst_92 {dimension_numbers = #tpu.dot_dimension_numbers<[1], [0], [0], [1], [0, 0, 1, 1], [], []>} : vector<256x128xbf16>, vector<128x128xbf16>, vector<256x128xf32> -> vector<256x128xf32>
    %90 = arith.addf %84, %89 : vector<256x128xf32>
    %c0_93 = arith.constant 0 : index
    %c0_94 = arith.constant 0 : index
    %91 = vector.load %arg9[%c0_93, %c0_94] : memref<1x128xf32, #tpu.memory_space<vmem>>, vector<1x128xf32>
    %92 = vector.broadcast %91 : vector<1x128xf32> to vector<256x128xf32>
    %93 = arith.addf %90, %92 : vector<256x128xf32>
    %cst_95 = arith.constant 0.000000e+00 : f32
    %94 = vector.broadcast %cst_95 : f32 to vector<256x128xf32>
    %95 = arith.maximumf %93, %94 : vector<256x128xf32>
    %c0_96 = arith.constant 0 : index
    %c0_97 = arith.constant 0 : index
    %96 = vector.load %arg10[%c0_96, %c0_97] : memref<128x256xbf16, #tpu.memory_space<vmem>>, vector<128x256xbf16>
    %97 = arith.truncf %95 : vector<256x128xf32> to vector<256x128xbf16>
    %cst_98 = arith.constant dense<0.000000e+00> : vector<256x256xf32>
    %98 = tpu.matmul %97, %96, %cst_98 {dimension_numbers = #tpu.dot_dimension_numbers<[1], [0], [0], [1], [0, 0, 1, 1], [], []>} : vector<256x128xbf16>, vector<128x256xbf16>, vector<256x256xf32> -> vector<256x256xf32>
    %c0_99 = arith.constant 0 : index
    %c0_100 = arith.constant 0 : index
    %99 = vector.load %arg11[%c0_99, %c0_100] : memref<1x256xf32, #tpu.memory_space<vmem>>, vector<1x256xf32>
    %100 = vector.broadcast %99 : vector<1x256xf32> to vector<256x256xf32>
    %101 = arith.addf %98, %100 : vector<256x256xf32>
    %102 = vector.shape_cast %101 : vector<256x256xf32> to vector<4x64x256xf32>
    %cst_101 = arith.constant dense<0.000000e+00> : vector<4x256xf32>
    %103 = vector.multi_reduction <add>, %102, %cst_101 [1] : vector<4x64x256xf32> to vector<4x256xf32>
    %104 = arith.mulf %102, %102 : vector<4x64x256xf32>
    %cst_102 = arith.constant dense<0.000000e+00> : vector<4x256xf32>
    %105 = vector.multi_reduction <add>, %104, %cst_102 [1] : vector<4x64x256xf32> to vector<4x256xf32>
    %c0_103 = arith.constant 0 : index
    %c0_104 = arith.constant 0 : index
    %106 = vector.load %arg12[%c0_103, %c0_104] : memref<256x16xf32, #tpu.memory_space<vmem>>, vector<256x16xf32>
    %cst_105 = arith.constant dense<0.000000e+00> : vector<4x16xf32>
    %107 = tpu.matmul %103, %106, %cst_105 {dimension_numbers = #tpu.dot_dimension_numbers<[1], [0], [0], [1], [0, 0, 1, 1], [], []>} : vector<4x256xf32>, vector<256x16xf32>, vector<4x16xf32> -> vector<4x16xf32>
    %cst_106 = arith.constant 0.00173611112 : f32
    %108 = vector.broadcast %cst_106 : f32 to vector<4x16xf32>
    %109 = arith.mulf %107, %108 : vector<4x16xf32>
    %c0_107 = arith.constant 0 : index
    %c0_108 = arith.constant 0 : index
    %110 = vector.load %arg12[%c0_107, %c0_108] : memref<256x16xf32, #tpu.memory_space<vmem>>, vector<256x16xf32>
    %cst_109 = arith.constant dense<0.000000e+00> : vector<4x16xf32>
    %111 = tpu.matmul %105, %110, %cst_109 {dimension_numbers = #tpu.dot_dimension_numbers<[1], [0], [0], [1], [0, 0, 1, 1], [], []>} : vector<4x256xf32>, vector<256x16xf32>, vector<4x16xf32> -> vector<4x16xf32>
    %cst_110 = arith.constant 0.00173611112 : f32
    %112 = vector.broadcast %cst_110 : f32 to vector<4x16xf32>
    %113 = arith.mulf %111, %112 : vector<4x16xf32>
    %114 = arith.mulf %109, %109 : vector<4x16xf32>
    %115 = arith.subf %113, %114 : vector<4x16xf32>
    %cst_111 = arith.constant 9.99999974E-6 : f32
    %116 = vector.broadcast %cst_111 : f32 to vector<4x16xf32>
    %117 = arith.addf %115, %116 : vector<4x16xf32>
    %118 = math.rsqrt %117 : vector<4x16xf32>
    %c0_112 = arith.constant 0 : index
    %c0_113 = arith.constant 0 : index
    %119 = vector.load %arg13[%c0_112, %c0_113] : memref<16x256xf32, #tpu.memory_space<vmem>>, vector<16x256xf32>
    %cst_114 = arith.constant dense<0.000000e+00> : vector<4x256xf32>
    %120 = tpu.matmul %109, %119, %cst_114 {dimension_numbers = #tpu.dot_dimension_numbers<[1], [0], [0], [1], [0, 0, 1, 1], [], []>} : vector<4x16xf32>, vector<16x256xf32>, vector<4x256xf32> -> vector<4x256xf32>
    %121 = vector.shape_cast %120 : vector<4x256xf32> to vector<4x1x256xf32>
    %c0_115 = arith.constant 0 : index
    %c0_116 = arith.constant 0 : index
    %122 = vector.load %arg13[%c0_115, %c0_116] : memref<16x256xf32, #tpu.memory_space<vmem>>, vector<16x256xf32>
    %cst_117 = arith.constant dense<0.000000e+00> : vector<4x256xf32>
    %123 = tpu.matmul %118, %122, %cst_117 {dimension_numbers = #tpu.dot_dimension_numbers<[1], [0], [0], [1], [0, 0, 1, 1], [], []>} : vector<4x16xf32>, vector<16x256xf32>, vector<4x256xf32> -> vector<4x256xf32>
    %124 = vector.shape_cast %123 : vector<4x256xf32> to vector<4x1x256xf32>
    %125 = vector.broadcast %121 : vector<4x1x256xf32> to vector<4x64x256xf32>
    %126 = arith.subf %102, %125 : vector<4x64x256xf32>
    %127 = vector.broadcast %124 : vector<4x1x256xf32> to vector<4x64x256xf32>
    %128 = arith.mulf %126, %127 : vector<4x64x256xf32>
    %c0_118 = arith.constant 0 : index
    %c0_119 = arith.constant 0 : index
    %129 = vector.load %arg14[%c0_118, %c0_119] : memref<1x256xf32, #tpu.memory_space<vmem>>, vector<1x256xf32>
    %130 = vector.shape_cast %129 : vector<1x256xf32> to vector<1x1x256xf32>
    %131 = vector.broadcast %130 : vector<1x1x256xf32> to vector<4x64x256xf32>
    %132 = arith.mulf %128, %131 : vector<4x64x256xf32>
    %c0_120 = arith.constant 0 : index
    %c0_121 = arith.constant 0 : index
    %133 = vector.load %arg15[%c0_120, %c0_121] : memref<1x256xf32, #tpu.memory_space<vmem>>, vector<1x256xf32>
    %134 = vector.shape_cast %133 : vector<1x256xf32> to vector<1x1x256xf32>
    %135 = vector.broadcast %134 : vector<1x1x256xf32> to vector<4x64x256xf32>
    %136 = arith.addf %132, %135 : vector<4x64x256xf32>
    %137 = vector.shape_cast %136 : vector<4x64x256xf32> to vector<256x256xf32>
    %c0_122 = arith.constant 0 : index
    %c0_123 = arith.constant 0 : index
    %138 = vector.load %arg16[%c0_122, %c0_123] : memref<256x128xbf16, #tpu.memory_space<vmem>>, vector<256x128xbf16>
    %139 = arith.truncf %137 : vector<256x256xf32> to vector<256x256xbf16>
    %cst_124 = arith.constant dense<0.000000e+00> : vector<256x128xf32>
    %140 = tpu.matmul %139, %138, %cst_124 {dimension_numbers = #tpu.dot_dimension_numbers<[1], [0], [0], [1], [0, 0, 1, 1], [], []>} : vector<256x256xbf16>, vector<256x128xbf16>, vector<256x128xf32> -> vector<256x128xf32>
    %c0_125 = arith.constant 0 : index
    %c0_126 = arith.constant 0 : index
    %141 = vector.load %arg17[%c0_125, %c0_126] : memref<1x128xf32, #tpu.memory_space<vmem>>, vector<1x128xf32>
    %142 = vector.broadcast %141 : vector<1x128xf32> to vector<256x128xf32>
    %143 = arith.addf %140, %142 : vector<256x128xf32>
    %c0_127 = arith.constant 0 : index
    %c0_128 = arith.constant 0 : index
    %144 = vector.load %arg18[%c0_127, %c0_128] : memref<128x128xbf16, #tpu.memory_space<vmem>>, vector<128x128xbf16>
    %145 = arith.truncf %81 : vector<256x128xf32> to vector<256x128xbf16>
    %cst_129 = arith.constant dense<0.000000e+00> : vector<256x128xf32>
    %146 = tpu.matmul %145, %144, %cst_129 {dimension_numbers = #tpu.dot_dimension_numbers<[1], [0], [0], [1], [0, 0, 1, 1], [], []>} : vector<256x128xbf16>, vector<128x128xbf16>, vector<256x128xf32> -> vector<256x128xf32>
    %c0_130 = arith.constant 0 : index
    %c0_131 = arith.constant 0 : index
    %147 = vector.load %arg19[%c0_130, %c0_131] : memref<1x128xf32, #tpu.memory_space<vmem>>, vector<1x128xf32>
    %148 = vector.broadcast %147 : vector<1x128xf32> to vector<256x128xf32>
    %149 = arith.addf %146, %148 : vector<256x128xf32>
    %c0_132 = arith.constant 0 : index
    %c0_133 = arith.constant 0 : index
    %150 = vector.load %arg20[%c0_132, %c0_133] : memref<128x128xbf16, #tpu.memory_space<vmem>>, vector<128x128xbf16>
    %151 = arith.truncf %143 : vector<256x128xf32> to vector<256x128xbf16>
    %cst_134 = arith.constant dense<0.000000e+00> : vector<256x128xf32>
    %152 = tpu.matmul %151, %150, %cst_134 {dimension_numbers = #tpu.dot_dimension_numbers<[1], [0], [0], [1], [0, 0, 1, 1], [], []>} : vector<256x128xbf16>, vector<128x128xbf16>, vector<256x128xf32> -> vector<256x128xf32>
    %c0_135 = arith.constant 0 : index
    %c0_136 = arith.constant 0 : index
    %153 = vector.load %arg21[%c0_135, %c0_136] : memref<128x128xbf16, #tpu.memory_space<vmem>>, vector<128x128xbf16>
    %154 = arith.truncf %149 : vector<256x128xf32> to vector<256x128xbf16>
    %cst_137 = arith.constant dense<0.000000e+00> : vector<256x128xf32>
    %155 = tpu.matmul %154, %153, %cst_137 {dimension_numbers = #tpu.dot_dimension_numbers<[1], [0], [0], [1], [0, 0, 1, 1], [], []>} : vector<256x128xbf16>, vector<128x128xbf16>, vector<256x128xf32> -> vector<256x128xf32>
    %156 = arith.addf %152, %155 : vector<256x128xf32>
    %c0_138 = arith.constant 0 : index
    %c0_139 = arith.constant 0 : index
    %157 = vector.load %arg22[%c0_138, %c0_139] : memref<1x128xf32, #tpu.memory_space<vmem>>, vector<1x128xf32>
    %158 = vector.broadcast %157 : vector<1x128xf32> to vector<256x128xf32>
    %159 = arith.addf %156, %158 : vector<256x128xf32>
    %cst_140 = arith.constant 0.000000e+00 : f32
    %160 = vector.broadcast %cst_140 : f32 to vector<256x128xf32>
    %161 = arith.maximumf %159, %160 : vector<256x128xf32>
    %c0_141 = arith.constant 0 : index
    %c0_142 = arith.constant 0 : index
    %c0_143 = arith.constant 0 : index
    %162 = vector.load %arg1[%c0_141, %c0_142, %c0_143] : memref<4x64x128xf32, #tpu.memory_space<vmem>>, vector<4x64x128xf32>
    %163 = vector.shape_cast %161 : vector<256x128xf32> to vector<4x64x128xf32>
    %164 = arith.addf %162, %163 : vector<4x64x128xf32>
    %cst_144 = arith.constant dense<0.000000e+00> : vector<4x128xf32>
    %165 = vector.multi_reduction <add>, %164, %cst_144 [1] : vector<4x64x128xf32> to vector<4x128xf32>
    %cst_145 = arith.constant 1.562500e-02 : f32
    %166 = vector.broadcast %cst_145 : f32 to vector<4x128xf32>
    %167 = arith.mulf %165, %166 : vector<4x128xf32>
    %c0_146 = arith.constant 0 : index
    %c0_147 = arith.constant 0 : index
    %168 = vector.load %arg23[%c0_146, %c0_147] : memref<128x64xf32, #tpu.memory_space<vmem>>, vector<128x64xf32>
    %cst_148 = arith.constant dense<0.000000e+00> : vector<4x64xf32>
    %169 = tpu.matmul %167, %168, %cst_148 {dimension_numbers = #tpu.dot_dimension_numbers<[1], [0], [0], [1], [0, 0, 1, 1], [], []>} : vector<4x128xf32>, vector<128x64xf32>, vector<4x64xf32> -> vector<4x64xf32>
    %c0_149 = arith.constant 0 : index
    %c0_150 = arith.constant 0 : index
    %170 = vector.load %arg24[%c0_149, %c0_150] : memref<1x64xf32, #tpu.memory_space<vmem>>, vector<1x64xf32>
    %171 = vector.broadcast %170 : vector<1x64xf32> to vector<4x64xf32>
    %172 = arith.addf %169, %171 : vector<4x64xf32>
    %cst_151 = arith.constant 0.000000e+00 : f32
    %173 = vector.broadcast %cst_151 : f32 to vector<4x64xf32>
    %174 = arith.maximumf %172, %173 : vector<4x64xf32>
    %c0_152 = arith.constant 0 : index
    %c0_153 = arith.constant 0 : index
    %175 = vector.load %arg25[%c0_152, %c0_153] : memref<64x128xf32, #tpu.memory_space<vmem>>, vector<64x128xf32>
    %cst_154 = arith.constant dense<0.000000e+00> : vector<4x128xf32>
    %176 = tpu.matmul %174, %175, %cst_154 {dimension_numbers = #tpu.dot_dimension_numbers<[1], [0], [0], [1], [0, 0, 1, 1], [], []>} : vector<4x64xf32>, vector<64x128xf32>, vector<4x128xf32> -> vector<4x128xf32>
    %c0_155 = arith.constant 0 : index
    %c0_156 = arith.constant 0 : index
    %177 = vector.load %arg26[%c0_155, %c0_156] : memref<1x128xf32, #tpu.memory_space<vmem>>, vector<1x128xf32>
    %178 = vector.broadcast %177 : vector<1x128xf32> to vector<4x128xf32>
    %179 = arith.addf %176, %178 : vector<4x128xf32>
    %c0_157 = arith.constant 0 : index
    %c0_158 = arith.constant 0 : index
    %180 = vector.load %arg27[%c0_157, %c0_158] : memref<64x128xf32, #tpu.memory_space<vmem>>, vector<64x128xf32>
    %cst_159 = arith.constant dense<0.000000e+00> : vector<4x128xf32>
    %181 = tpu.matmul %174, %180, %cst_159 {dimension_numbers = #tpu.dot_dimension_numbers<[1], [0], [0], [1], [0, 0, 1, 1], [], []>} : vector<4x64xf32>, vector<64x128xf32>, vector<4x128xf32> -> vector<4x128xf32>
    %c0_160 = arith.constant 0 : index
    %c0_161 = arith.constant 0 : index
    %182 = vector.load %arg28[%c0_160, %c0_161] : memref<1x128xf32, #tpu.memory_space<vmem>>, vector<1x128xf32>
    %183 = vector.broadcast %182 : vector<1x128xf32> to vector<4x128xf32>
    %184 = arith.addf %181, %183 : vector<4x128xf32>
    %185 = arith.maximumf %179, %184 : vector<4x128xf32>
    %186 = arith.subf %179, %185 : vector<4x128xf32>
    %187 = math.exp %186 : vector<4x128xf32>
    %188 = arith.subf %184, %185 : vector<4x128xf32>
    %189 = math.exp %188 : vector<4x128xf32>
    %190 = arith.addf %187, %189 : vector<4x128xf32>
    %191 = tpu.reciprocal %190 {approx = true} : vector<4x128xf32> -> vector<4x128xf32>
    %192 = arith.mulf %187, %191 : vector<4x128xf32>
    %193 = vector.shape_cast %192 : vector<4x128xf32> to vector<4x1x128xf32>
    %194 = arith.mulf %189, %191 : vector<4x128xf32>
    %195 = vector.shape_cast %194 : vector<4x128xf32> to vector<4x1x128xf32>
    %196 = vector.broadcast %193 : vector<4x1x128xf32> to vector<4x64x128xf32>
    %197 = arith.mulf %162, %196 : vector<4x64x128xf32>
    %198 = vector.broadcast %195 : vector<4x1x128xf32> to vector<4x64x128xf32>
    %199 = arith.mulf %163, %198 : vector<4x64x128xf32>
    %200 = arith.addf %197, %199 : vector<4x64x128xf32>
    %c0_162 = arith.constant 0 : index
    %c0_163 = arith.constant 0 : index
    %c0_164 = arith.constant 0 : index
    %201 = vector.load %arg29[%c0_162, %c0_163, %c0_164] : memref<4x64x128xf32, #tpu.memory_space<vmem>>, vector<4x64x128xf32>
    tpu.vector_store %arg29[%c0_162, %c0_163, %c0_164], %200 {strides = array<i32>} : memref<4x64x128xf32, #tpu.memory_space<vmem>>, vector<4x64x128xf32>,
    return
  }
  func.func @transform_0(%arg0: i32) -> (i32, i32, i32) {
    %c0_i32 = arith.constant 0 : i32
    %c0_i32_0 = arith.constant 0 : i32
    %c0_i32_1 = arith.constant 0 : i32
    return %arg0, %c0_i32, %c0_i32_0 : i32, i32, i32
  }
  func.func @transform_1(%arg0: i32) -> (i32, i32, i32) {
    %c0_i32 = arith.constant 0 : i32
    %c0_i32_0 = arith.constant 0 : i32
    %c0_i32_1 = arith.constant 0 : i32
    return %arg0, %c0_i32, %c0_i32_0 : i32, i32, i32
  }
  func.func @transform_2(%arg0: i32) -> (i32, i32) {
    %c0_i32 = arith.constant 0 : i32
    %c0_i32_0 = arith.constant 0 : i32
    %c0_i32_1 = arith.constant 0 : i32
    return %c0_i32, %c0_i32_0 : i32, i32
  }
  func.func @transform_3(%arg0: i32) -> (i32, i32) {
    %c0_i32 = arith.constant 0 : i32
    %c0_i32_0 = arith.constant 0 : i32
    %c0_i32_1 = arith.constant 0 : i32
    return %c0_i32, %c0_i32_0 : i32, i32
  }
  func.func @transform_4(%arg0: i32) -> (i32, i32, i32) {
    %c0_i32 = arith.constant 0 : i32
    %c0_i32_0 = arith.constant 0 : i32
    %c0_i32_1 = arith.constant 0 : i32
    %c0_i32_2 = arith.constant 0 : i32
    return %c0_i32, %c0_i32_0, %c0_i32_1 : i32, i32, i32
  }
  func.func @transform_5(%arg0: i32) -> (i32, i32) {
    %c0_i32 = arith.constant 0 : i32
    %c0_i32_0 = arith.constant 0 : i32
    %c0_i32_1 = arith.constant 0 : i32
    return %c0_i32, %c0_i32_0 : i32, i32
  }
  func.func @transform_6(%arg0: i32) -> (i32, i32) {
    %c0_i32 = arith.constant 0 : i32
    %c0_i32_0 = arith.constant 0 : i32
    %c0_i32_1 = arith.constant 0 : i32
    return %c0_i32, %c0_i32_0 : i32, i32
  }
  func.func @transform_7(%arg0: i32) -> (i32, i32) {
    %c0_i32 = arith.constant 0 : i32
    %c0_i32_0 = arith.constant 0 : i32
    %c0_i32_1 = arith.constant 0 : i32
    return %c0_i32, %c0_i32_0 : i32, i32
  }
  func.func @transform_8(%arg0: i32) -> (i32, i32) {
    %c0_i32 = arith.constant 0 : i32
    %c0_i32_0 = arith.constant 0 : i32
    %c0_i32_1 = arith.constant 0 : i32
    return %c0_i32, %c0_i32_0 : i32, i32
  }
  func.func @transform_9(%arg0: i32) -> (i32, i32) {
    %c0_i32 = arith.constant 0 : i32
    %c0_i32_0 = arith.constant 0 : i32
    %c0_i32_1 = arith.constant 0 : i32
    return %c0_i32, %c0_i32_0 : i32, i32
  }
  func.func @transform_10(%arg0: i32) -> (i32, i32) {
    %c0_i32 = arith.constant 0 : i32
    %c0_i32_0 = arith.constant 0 : i32
    %c0_i32_1 = arith.constant 0 : i32
    return %c0_i32, %c0_i32_0 : i32, i32
  }
  func.func @transform_11(%arg0: i32) -> (i32, i32) {
    %c0_i32 = arith.constant 0 : i32
    %c0_i32_0 = arith.constant 0 : i32
    %c0_i32_1 = arith.constant 0 : i32
    return %c0_i32, %c0_i32_0 : i32, i32
  }
  func.func @transform_12(%arg0: i32) -> (i32, i32) {
    %c0_i32 = arith.constant 0 : i32
    %c0_i32_0 = arith.constant 0 : i32
    %c0_i32_1 = arith.constant 0 : i32
    return %c0_i32, %c0_i32_0 : i32, i32
  }
  func.func @transform_13(%arg0: i32) -> (i32, i32) {
    %c0_i32 = arith.constant 0 : i32
    %c0_i32_0 = arith.constant 0 : i32
    %c0_i32_1 = arith.constant 0 : i32
    return %c0_i32, %c0_i32_0 : i32, i32
  }
  func.func @transform_14(%arg0: i32) -> (i32, i32) {
    %c0_i32 = arith.constant 0 : i32
    %c0_i32_0 = arith.constant 0 : i32
    %c0_i32_1 = arith.constant 0 : i32
    return %c0_i32, %c0_i32_0 : i32, i32
  }
  func.func @transform_15(%arg0: i32) -> (i32, i32) {
    %c0_i32 = arith.constant 0 : i32
    %c0_i32_0 = arith.constant 0 : i32
    %c0_i32_1 = arith.constant 0 : i32
    return %c0_i32, %c0_i32_0 : i32, i32
  }
  func.func @transform_16(%arg0: i32) -> (i32, i32) {
    %c0_i32 = arith.constant 0 : i32
    %c0_i32_0 = arith.constant 0 : i32
    %c0_i32_1 = arith.constant 0 : i32
    return %c0_i32, %c0_i32_0 : i32, i32
  }
  func.func @transform_17(%arg0: i32) -> (i32, i32) {
    %c0_i32 = arith.constant 0 : i32
    %c0_i32_0 = arith.constant 0 : i32
    %c0_i32_1 = arith.constant 0 : i32
    return %c0_i32, %c0_i32_0 : i32, i32
  }
  func.func @transform_18(%arg0: i32) -> (i32, i32) {
    %c0_i32 = arith.constant 0 : i32
    %c0_i32_0 = arith.constant 0 : i32
    %c0_i32_1 = arith.constant 0 : i32
    return %c0_i32, %c0_i32_0 : i32, i32
  }
  func.func @transform_19(%arg0: i32) -> (i32, i32) {
    %c0_i32 = arith.constant 0 : i32
    %c0_i32_0 = arith.constant 0 : i32
    %c0_i32_1 = arith.constant 0 : i32
    return %c0_i32, %c0_i32_0 : i32, i32
  }
  func.func @transform_20(%arg0: i32) -> (i32, i32) {
    %c0_i32 = arith.constant 0 : i32
    %c0_i32_0 = arith.constant 0 : i32
    %c0_i32_1 = arith.constant 0 : i32
    return %c0_i32, %c0_i32_0 : i32, i32
  }
  func.func @transform_21(%arg0: i32) -> (i32, i32) {
    %c0_i32 = arith.constant 0 : i32
    %c0_i32_0 = arith.constant 0 : i32
    %c0_i32_1 = arith.constant 0 : i32
    return %c0_i32, %c0_i32_0 : i32, i32
  }
  func.func @transform_22(%arg0: i32) -> (i32, i32) {
    %c0_i32 = arith.constant 0 : i32
    %c0_i32_0 = arith.constant 0 : i32
    %c0_i32_1 = arith.constant 0 : i32
    return %c0_i32, %c0_i32_0 : i32, i32
  }
  func.func @transform_23(%arg0: i32) -> (i32, i32) {
    %c0_i32 = arith.constant 0 : i32
    %c0_i32_0 = arith.constant 0 : i32
    %c0_i32_1 = arith.constant 0 : i32
    return %c0_i32, %c0_i32_0 : i32, i32
  }
  func.func @transform_24(%arg0: i32) -> (i32, i32) {
    %c0_i32 = arith.constant 0 : i32
    %c0_i32_0 = arith.constant 0 : i32
    %c0_i32_1 = arith.constant 0 : i32
    return %c0_i32, %c0_i32_0 : i32, i32
  }
  func.func @transform_25(%arg0: i32) -> (i32, i32) {
    %c0_i32 = arith.constant 0 : i32
    %c0_i32_0 = arith.constant 0 : i32
    %c0_i32_1 = arith.constant 0 : i32
    return %c0_i32, %c0_i32_0 : i32, i32
  }
  func.func @transform_26(%arg0: i32) -> (i32, i32) {
    %c0_i32 = arith.constant 0 : i32
    %c0_i32_0 = arith.constant 0 : i32
    %c0_i32_1 = arith.constant 0 : i32
    return %c0_i32, %c0_i32_0 : i32, i32
  }
  func.func @transform_27(%arg0: i32) -> (i32, i32) {
    %c0_i32 = arith.constant 0 : i32
    %c0_i32_0 = arith.constant 0 : i32
    %c0_i32_1 = arith.constant 0 : i32
    return %c0_i32, %c0_i32_0 : i32, i32
  }
  func.func @transform_28(%arg0: i32) -> (i32, i32, i32) {
    %c0_i32 = arith.constant 0 : i32
    %c0_i32_0 = arith.constant 0 : i32
    %c0_i32_1 = arith.constant 0 : i32
    return %arg0, %c0_i32, %c0_i32_0 : i32, i32, i32
  }
}

</mosaic_0001>

<bundles_post_ra>
// kernel: tpu_custom_call.1
= control target key start
LH: loop header
LB: loop body
LE: loop exit
PB: predicated region body
PF: predicated region fallthrough
CT: control target
= control target key end

     0   :  { %s13914_s0 = inlined_call_operand.vmem [shape: f32[4,64,128], index: 0, kind: input, shape index: {}]   ;;  %s13915_s1 = inlined_call_operand.vmem [shape: bf16[4,64,128], index: 1, kind: input, shape index: {}]   ;;  %s13916_s2 = inlined_call_operand.hbm [shape: bf16[128,128], index: 2, kind: input, shape index: {}]   ;;  %s13917_s3 = inlined_call_operand.hbm [shape: f32[1,128], index: 3, kind: input, shape index: {}]   ;;  %s13918_s4 = inlined_call_operand.hbm [shape: bf16[9,128,128], index: 4, kind: input, shape index: {}]   ;;  %s13919_s5 = inlined_call_operand.hbm [shape: f32[1,128], index: 5, kind: input, shape index: {}]   ;;  %s13920_s6 = inlined_call_operand.hbm [shape: bf16[128,128], index: 6, kind: input, shape index: {}]   ;;  %s13921_s7 = inlined_call_operand.hbm [shape: bf16[128,128], index: 7, kind: input, shape index: {}]   ;;  %s13922_s8 = inlined_call_operand.hbm [shape: f32[1,128], index: 8, kind: input, shape index: {}]   ;;  %s13923_s9 = inlined_call_operand.hbm [shape: bf16[128,256], index: 9, kind: input, shape index: {}]   ;;  %s13924_s10 = inlined_call_operand.vmem [shape: f32[1,256], index: 10, kind: input, shape index: {}]   ;;  %s13925_s11 = inlined_call_operand.vmem [shape: f32[256,16], index: 11, kind: input, shape index: {}]   ;;  %s13926_s12 = inlined_call_operand.hbm [shape: f32[16,256], index: 12, kind: input, shape index: {}]   ;;  %s13927_s13 = inlined_call_operand.hbm [shape: f32[1,256], index: 13, kind: input, shape index: {}]   ;;  %s13928_s14 = inlined_call_operand.hbm [shape: f32[1,256], index: 14, kind: input, shape index: {}]   ;;  %s13929_s15 = inlined_call_operand.vmem [shape: bf16[256,128], index: 15, kind: input, shape index: {}]   ;;  %s13930_s16 = inlined_call_operand.hbm [shape: f32[1,128], index: 16, kind: input, shape index: {}]   ;;  %s13931_s17 = inlined_call_operand.hbm [shape: bf16[128,128], index: 17, kind: input, shape index: {}]   ;;  %s13932_s18 = inlined_call_operand.hbm [shape: f32[1,128], index: 18, kind: input, shape index: {}]   ;;  %s13933_s19 = inlined_call_operand.hbm [shape: bf16[128,128], index: 19, kind: input, shape index: {}]   ;;  %s13934_s20 = inlined_call_operand.hbm [shape: bf16[128,128], index: 20, kind: input, shape index: {}]   ;;  %s13935_s21 = inlined_call_operand.hbm [shape: f32[1,128], index: 21, kind: input, shape index: {}]   ;;  %s13936_s22 = inlined_call_operand.vmem [shape: f32[128,64], index: 22, kind: input, shape index: {}]   ;;  %s13937_s23 = inlined_call_operand.hbm [shape: f32[1,64], index: 23, kind: input, shape index: {}]   ;;  %s13938_s24 = inlined_call_operand.hbm [shape: f32[64,128], index: 24, kind: input, shape index: {}]   ;;  %s13939_s25 = inlined_call_operand.hbm [shape: f32[1,128], index: 25, kind: input, shape index: {}]   ;;  %s13940_s26 = inlined_call_operand.vmem [shape: f32[64,128], index: 26, kind: input, shape index: {}]   ;;  %s13941_s27 = inlined_call_operand.hbm [shape: f32[1,128], index: 27, kind: input, shape index: {}]   ;;  %s13942_s28 = inlined_call_operand.hbm [shape: f32[4,64,128], index: 28, kind: output, shape index: {}]  }
   0x1   :  { %14196 = sst [smem:[#allocation131_spill]] %s13914_s0 }
   0x2   :  { %14197 = sst [smem:[#allocation132_spill]] %s13915_s1 }
   0x3   :  { %14198 = sst [smem:[#allocation133_spill]] %s13916_s2 }
   0x4   :  { %14199 = sst [smem:[#allocation134_spill]] %s13917_s3 }
   0x5   :  { %14200 = sst [smem:[#allocation135_spill]] %s13918_s4 }
   0x6   :  { %14201 = sst [smem:[#allocation136_spill]] %s13919_s5 }
   0x7   :  { %14202 = sst [smem:[#allocation137_spill]] %s13920_s6 }
   0x8   :  { %14203 = sst [smem:[#allocation138_spill]] %s13921_s7 }
   0x9   :  { %14204 = sst [smem:[#allocation139_spill]] %s13922_s8 }
   0xa   :  { %14205 = sst [smem:[#allocation140_spill]] %s13923_s9 }
   0xb   :  { %14206 = sst [smem:[#allocation141_spill]] %s13924_s10 }
   0xc   :  { %14207 = sst [smem:[#allocation142_spill]] %s13925_s11 }
   0xd   :  { %14208 = sst [smem:[#allocation143_spill]] %s13926_s12 }
   0xe   :  { %14209 = sst [smem:[#allocation144_spill]] %s13940_s26 }
   0xf   :  { %14210 = sst [smem:[#allocation145_spill]] %s13942_s28 }
  0x10   :  { %33 = vsyncpa [#allocation4], 0 }
  0x11   :  { %34 = vsyncpa [#allocation7], 0 }
  0x12   :  { %35 = vsyncpa [#allocation10], 0 }
  0x13   :  { %36 = vsyncpa [#allocation13], 0 }
  0x14   :  { %37 = vsyncpa [#allocation16], 0 }
  0x15   :  { %38 = vsyncpa [#allocation19], 0 }
  0x16   :  { %39 = vsyncpa [#allocation22], 0 }
  0x17   :  { %40 = vsyncpa [#allocation25], 0 }
  0x18   :  { %41 = vsyncpa [#allocation28], 0 }
  0x19   :  { %42 = vsyncpa [#allocation31], 0 }
  0x1a   :  { %43 = vsyncpa [#allocation34], 0 }
  0x1b   :  { %44 = vsyncpa [#allocation5], 0  ;;  %s10073_s8 = smov [#allocation6]   ;;  %s10074_s9 = smov [#allocation9]  }
  0x1c   :  { %s67_s5 = sshll.u32 %s10073_s8, 4  ;;  %s89_s30 = sshll.u32 %s10074_s9, 4  ;;  %s68_s5 = int_to_ptr.vmem [resolvable:$true] %s67_s5  ;;  %s90_s30 = int_to_ptr.vmem [resolvable:$true] %s89_s30 }
  0x1d   :  { %s14211_s10 = sld [smem:[#allocation134_spill]] }
  0x23   :  { %s9565_s0 = scalar_lea.hbm %s14211_s10, 16 }
  0x24   :  { %p9566_p0 = scmp.ne.s32.totalorder %s14211_s10, %s9565_s0  ;;  %p9569_p1 = scmp.lt.u32.totalorder %s9565_s0, %s14211_s10 }
  0x26   :  { %p9571_p2 = pnand %p9569_p1, %p9566_p0 }
  0x28   :  { %9574 = shalt.err (!%p9571_p2)
}
  0x29   :  { %s9575_s12 = scalar_lea.vmem %s68_s5, 16  ;;  %s9579_s1 = scalar_lea.vmem %s68_s5, 32 }
  0x2a   :  { %p9576_p3 = scmp.ne.s32.totalorder %s68_s5, %s9575_s12  ;;  %p9580_p4 = scmp.lt.s32.totalorder %s68_s5, %s68_s5 }
  0x2b   :  { %p9581_p5 = scmp.lt.s32.totalorder %s9579_s1, %s9575_s12 }
  0x2d   :  { %p9582_p6 = por %p9581_p5, %p9580_p4 }
  0x2f   :  { %p9583_p7 = pnand %p9582_p6, %p9576_p3 }
  0x31   :  { %9586 = shalt.err (!%p9583_p7)
}
  0x32   :  { %70 = dma.hbm_to_vmem [thread:$0]  %s14211_s10, 16, %s68_s5, [#allocation7]  }
  0x33   :  { %s14212_s6 = sld [smem:[#allocation136_spill]] }
  0x39   :  { %s9587_s11 = scalar_lea.hbm %s14212_s6, 16 }
  0x3a   :  { %p9588_p8 = scmp.ne.s32.totalorder %s14212_s6, %s9587_s11  ;;  %p9591_p9 = scmp.lt.u32.totalorder %s9587_s11, %s14212_s6 }
  0x3c   :  { %p9593_p10 = pnand %p9591_p9, %p9588_p8 }
  0x3e   :  { %9596 = shalt.err (!%p9593_p10)
}
  0x3f   :  { %s9597_s12 = scalar_lea.vmem %s90_s30, 16  ;;  %s9601_s1 = scalar_lea.vmem %s90_s30, 32 }
  0x40   :  { %p9598_p11 = scmp.ne.s32.totalorder %s90_s30, %s9597_s12  ;;  %p9602_p12 = scmp.lt.s32.totalorder %s90_s30, %s90_s30 }
  0x41   :  { %p9603_p13 = scmp.lt.s32.totalorder %s9601_s1, %s9597_s12 }
  0x43   :  { %p9604_p0 = por %p9603_p13, %p9602_p12 }
  0x45   :  { %p9605_p1 = pnand %p9604_p0, %p9598_p11 }
  0x47   :  { %9608 = shalt.err (!%p9605_p1)
}
  0x48   :  { %92 = dma.hbm_to_vmem [thread:$0]  %s14212_s6, 16, %s90_s30, [#allocation10]  }
  0x49   :  { %s10075_s4 = smov [#allocation12]   ;;  %s10076_s9 = smov [#allocation15]  }
  0x4a   :  { %s110_s8 = sshll.u32 %s10075_s4, 4  ;;  %s132_s3 = sshll.u32 %s10076_s9, 4  ;;  %s111_s8 = int_to_ptr.vmem [resolvable:$true] %s110_s8  ;;  %s10275_s3 = int_to_ptr.vmem [resolvable:$true] %s132_s3 }
  0x4b   :  { %s14213_s0 = sld [smem:[#allocation138_spill]] }
  0x51   :  { %s9609_s2 = scalar_lea.hbm %s14213_s0, 1024 }
  0x52   :  { %p9610_p2 = scmp.ne.s32.totalorder %s14213_s0, %s9609_s2  ;;  %p9613_p3 = scmp.lt.u32.totalorder %s9609_s2, %s14213_s0 }
  0x54   :  { %p9615_p4 = pnand %p9613_p3, %p9610_p2 }
  0x56   :  { %9618 = shalt.err (!%p9615_p4)
}
  0x57   :  { %s9619_s30 = scalar_lea.vmem %s111_s8, 1024  ;;  %p9624_p6 = scmp.lt.s32.totalorder %s111_s8, %s111_s8 }
  0x58   :  { %p9620_p5 = scmp.ne.s32.totalorder %s111_s8, %s9619_s30  ;;  %p9625_p7 = scmp.lt.s32.totalorder %s9619_s30, %s9619_s30 }
  0x5a   :  { %p9626_p8 = por %p9625_p7, %p9624_p6 }
  0x5c   :  { %p9627_p9 = pnand %p9626_p8, %p9620_p5 }
  0x5e   :  { %9630 = shalt.err (!%p9627_p9)
}
  0x5f   :  { %s13956_s6 = smov 64   ;;  %s13958_s5 = smov 4  }
  0x60   :  { %116 = dma.hbm_to_vmem [thread:$0]  %s14213_s0, 1024, %s111_s8, [#allocation13], %s13956_s6, %s13956_s6, %s13958_s5  }
  0x61   :  { %s14214_s11 = sld [smem:[#allocation140_spill]] }
  0x67   :  { %s9631_s29 = scalar_lea.hbm %s14214_s11, 2048 }
  0x68   :  { %p9632_p10 = scmp.ne.s32.totalorder %s14214_s11, %s9631_s29  ;;  %p9635_p11 = scmp.lt.u32.totalorder %s9631_s29, %s14214_s11 }
  0x6a   :  { %p9637_p12 = pnand %p9635_p11, %p9632_p10 }
  0x6c   :  { %9640 = shalt.err (!%p9637_p12)
}
  0x6d   :  { %s9641_s30 = scalar_lea.vmem %s10275_s3, 2048  ;;  %p9646_p0 = scmp.lt.s32.totalorder %s10275_s3, %s10275_s3 }
  0x6e   :  { %p9642_p13 = scmp.ne.s32.totalorder %s10275_s3, %s9641_s30  ;;  %p9647_p1 = scmp.lt.s32.totalorder %s9641_s30, %s9641_s30 }
  0x70   :  { %p9648_p2 = por %p9647_p1, %p9646_p0 }
  0x72   :  { %p9649_p3 = pnand %p9648_p2, %p9642_p13 }
  0x74   :  { %9652 = shalt.err (!%p9649_p3)
}
  0x75   :  { %s10079_s8 = smov 128   ;;  %s10080_s0 = smov 8  }
  0x76   :  { %138 = dma.hbm_to_vmem [thread:$0]  %s14214_s11, 2048, %s10275_s3, [#allocation16], %s10079_s8, %s10079_s8, %s10080_s0  }
  0x77   :  { %s10081_s28 = smov [#allocation18]   ;;  %s10082_s29 = smov [#allocation21]  }
  0x78   :  { %s161_s9 = sshll.u32 %s10081_s28, 4  ;;  %s183_s2 = sshll.u32 %s10082_s29, 4  ;;  %s162_s9 = int_to_ptr.vmem [resolvable:$true] %s161_s9  ;;  %s184_s2 = int_to_ptr.vmem [resolvable:$true] %s183_s2 }
  0x79   :  { %s9653_s1 = scalar_lea.hbm %s13927_s13, 32 }
  0x7a   :  { %p9654_p4 = scmp.ne.s32.totalorder %s13927_s13, %s9653_s1  ;;  %p9657_p5 = scmp.lt.u32.totalorder %s9653_s1, %s13927_s13 }
  0x7c   :  { %p9659_p6 = pnand %p9657_p5, %p9654_p4 }
  0x7e   :  { %9662 = shalt.err (!%p9659_p6)
}
  0x7f   :  { %s9663_s3 = scalar_lea.vmem %s162_s9, 32  ;;  %p9668_p8 = scmp.lt.s32.totalorder %s162_s9, %s162_s9 }
  0x80   :  { %p9664_p7 = scmp.ne.s32.totalorder %s162_s9, %s9663_s3  ;;  %p9669_p9 = scmp.lt.s32.totalorder %s9663_s3, %s9663_s3 }
  0x82   :  { %p9670_p10 = por %p9669_p9, %p9668_p8 }
  0x84   :  { %p9671_p11 = pnand %p9670_p10, %p9664_p7 }
  0x86   :  { %9674 = shalt.err (!%p9671_p11)
}
  0x87   :  { %164 = dma.hbm_to_vmem [thread:$0]  %s13927_s13, 32, %s162_s9, [#allocation19]  }
  0x88   :  { %s9675_s28 = scalar_lea.hbm %s13930_s16, 16 }
  0x89   :  { %p9676_p12 = scmp.ne.s32.totalorder %s13930_s16, %s9675_s28  ;;  %p9679_p13 = scmp.lt.u32.totalorder %s9675_s28, %s13930_s16 }
  0x8b   :  { %p9681_p0 = pnand %p9679_p13, %p9676_p12 }
  0x8d   :  { %9684 = shalt.err (!%p9681_p0)
}
  0x8e   :  { %s9685_s12 = scalar_lea.vmem %s184_s2, 16  ;;  %s9689_s1 = scalar_lea.vmem %s184_s2, 32 }
  0x8f   :  { %p9686_p1 = scmp.ne.s32.totalorder %s184_s2, %s9685_s12  ;;  %p9690_p2 = scmp.lt.s32.totalorder %s184_s2, %s184_s2 }
  0x90   :  { %p9691_p3 = scmp.lt.s32.totalorder %s9689_s1, %s9685_s12 }
  0x92   :  { %p9692_p4 = por %p9691_p3, %p9690_p2 }
  0x94   :  { %p9693_p5 = pnand %p9692_p4, %p9686_p1 }
  0x96   :  { %9696 = shalt.err (!%p9693_p5)
}
  0x97   :  { %186 = dma.hbm_to_vmem [thread:$0]  %s13930_s16, 16, %s184_s2, [#allocation22]  }
  0x98   :  { %s10083_s30 = smov [#allocation24]   ;;  %s10084_s11 = smov [#allocation27]  }
  0x99   :  { %s205_s3 = sshll.u32 %s10083_s30, 4  ;;  %s226_s10 = sshll.u32 %s10084_s11, 4  ;;  %s206_s3 = int_to_ptr.vmem [resolvable:$true] %s205_s3  ;;  %s10336_s10 = int_to_ptr.vmem [resolvable:$true] %s226_s10 }
  0x9a   :  { %s9697_s28 = scalar_lea.hbm %s13932_s18, 16 }
  0x9b   :  { %p9698_p6 = scmp.ne.s32.totalorder %s13932_s18, %s9697_s28  ;;  %p9701_p7 = scmp.lt.u32.totalorder %s9697_s28, %s13932_s18 }
  0x9d   :  { %p9703_p8 = pnand %p9701_p7, %p9698_p6 }
  0x9f   :  { %9706 = shalt.err (!%p9703_p8)
}
  0xa0   :  { %s9707_s16 = scalar_lea.vmem %s206_s3, 16  ;;  %s9711_s2 = scalar_lea.vmem %s206_s3, 32 }
  0xa1   :  { %p9708_p9 = scmp.ne.s32.totalorder %s206_s3, %s9707_s16  ;;  %p9712_p10 = scmp.lt.s32.totalorder %s206_s3, %s206_s3 }
  0xa2   :  { %p9713_p11 = scmp.lt.s32.totalorder %s9711_s2, %s9707_s16 }
  0xa4   :  { %p9714_p12 = por %p9713_p11, %p9712_p10 }
  0xa6   :  { %p9715_p13 = pnand %p9714_p12, %p9708_p9 }
  0xa8   :  { %9718 = shalt.err (!%p9715_p13)
}
  0xa9   :  { %208 = dma.hbm_to_vmem [thread:$0]  %s13932_s18, 16, %s206_s3, [#allocation25]  }
  0xaa   :  { %s9719_s30 = scalar_lea.hbm %s13934_s20, 1024 }
  0xab   :  { %p9720_p0 = scmp.ne.s32.totalorder %s13934_s20, %s9719_s30  ;;  %p9723_p1 = scmp.lt.u32.totalorder %s9719_s30, %s13934_s20 }
  0xad   :  { %p9725_p2 = pnand %p9723_p1, %p9720_p0 }
  0xaf   :  { %9728 = shalt.err (!%p9725_p2)
}
  0xb0   :  { %s9729_s29 = scalar_lea.vmem %s10336_s10, 1024  ;;  %p9734_p4 = scmp.lt.s32.totalorder %s10336_s10, %s10336_s10 }
  0xb1   :  { %p9730_p3 = scmp.ne.s32.totalorder %s10336_s10, %s9729_s29  ;;  %p9735_p5 = scmp.lt.s32.totalorder %s9729_s29, %s9729_s29 }
  0xb3   :  { %p9736_p6 = por %p9735_p5, %p9734_p4 }
  0xb5   :  { %p9737_p7 = pnand %p9736_p6, %p9730_p3 }
  0xb7   :  { %9740 = shalt.err (!%p9737_p7)
}
  0xb8   :  { %s14215_s18 = smov 4   ;;  %s14216_s3 = smov 64  }
  0xb9   :  { %232 = dma.hbm_to_vmem [thread:$0]  %s13934_s20, 1024, %s10336_s10, [#allocation28], %s14216_s3, %s14216_s3, %s14215_s18  }
  0xba   :  { %s10085_s7 = smov [#allocation30]   ;;  %s10086_s2 = smov [#allocation33]  }
  0xbb   :  { %s251_s16 = sshll.u32 %s10085_s7, 4  ;;  %s273_s12 = sshll.u32 %s10086_s2, 4  ;;  %s252_s16 = int_to_ptr.vmem [resolvable:$true] %s251_s16  ;;  %s274_s12 = int_to_ptr.vmem [resolvable:$true] %s273_s12 }
  0xbc   :  { %s9741_s9 = scalar_lea.hbm %s13937_s23, 16 }
  0xbd   :  { %p9742_p8 = scmp.ne.s32.totalorder %s13937_s23, %s9741_s9  ;;  %p9745_p9 = scmp.lt.u32.totalorder %s9741_s9, %s13937_s23 }
  0xbf   :  { %p9747_p10 = pnand %p9745_p9, %p9742_p8 }
  0xc1   :  { %9750 = shalt.err (!%p9747_p10)
}
  0xc2   :  { %s9751_s20 = scalar_lea.vmem %s252_s16, 16  ;;  %s9755_s10 = scalar_lea.vmem %s252_s16, 32 }
  0xc3   :  { %p9752_p11 = scmp.ne.s32.totalorder %s252_s16, %s9751_s20  ;;  %p9756_p12 = scmp.lt.s32.totalorder %s252_s16, %s252_s16 }
  0xc4   :  { %p9757_p13 = scmp.lt.s32.totalorder %s9755_s10, %s9751_s20 }
  0xc6   :  { %p9758_p0 = por %p9757_p13, %p9756_p12 }
  0xc8   :  { %p9759_p1 = pnand %p9758_p0, %p9752_p11 }
  0xca   :  { %9762 = shalt.err (!%p9759_p1)
}
  0xcb   :  { %254 = dma.hbm_to_vmem [thread:$0]  %s13937_s23, 16, %s252_s16, [#allocation31]  }
  0xcc   :  { %s9763_s7 = scalar_lea.hbm %s13939_s25, 16 }
  0xcd   :  { %p9764_p2 = scmp.ne.s32.totalorder %s13939_s25, %s9763_s7  ;;  %p9767_p3 = scmp.lt.u32.totalorder %s9763_s7, %s13939_s25 }
  0xcf   :  { %p9769_p4 = pnand %p9767_p3, %p9764_p2 }
  0xd1   :  { %9772 = shalt.err (!%p9769_p4)
}
  0xd2   :  { %s9773_s30 = scalar_lea.vmem %s274_s12, 16  ;;  %s9777_s11 = scalar_lea.vmem %s274_s12, 32 }
  0xd3   :  { %p9774_p5 = scmp.ne.s32.totalorder %s274_s12, %s9773_s30  ;;  %p9778_p6 = scmp.lt.s32.totalorder %s274_s12, %s274_s12 }
  0xd4   :  { %p9779_p7 = scmp.lt.s32.totalorder %s9777_s11, %s9773_s30 }
  0xd6   :  { %p9780_p8 = por %p9779_p7, %p9778_p6 }
  0xd8   :  { %p9781_p9 = pnand %p9780_p8, %p9774_p5 }
  0xda   :  { %9784 = shalt.err (!%p9781_p9)
}
  0xdb   :  { %276 = dma.hbm_to_vmem [thread:$0]  %s13939_s25, 16, %s274_s12, [#allocation34]  }
  0xdc   :  { %s10087_s4 = smov [#allocation3]   ;;  %s10088_s20 = smov [#allocation8]  }
  0xdd   :  { %s54_s6 = sshll.u32 %s10087_s4, 4  ;;  %s76_s10 = sshll.u32 %s10088_s20, 4  ;;  %s55_s6 = int_to_ptr.vmem [resolvable:$true] %s54_s6  ;;  %s10394_s10 = int_to_ptr.vmem [resolvable:$true] %s76_s10 }
  0xde   :  { %s14217_s26 = sld [smem:[#allocation133_spill]] }
  0xe4   :  { %s9785_s5 = scalar_lea.hbm %s14217_s26, 1024 }
  0xe5   :  { %p9786_p10 = scmp.ne.s32.totalorder %s14217_s26, %s9785_s5  ;;  %p9789_p11 = scmp.lt.u32.totalorder %s9785_s5, %s14217_s26 }
  0xe7   :  { %p9791_p12 = pnand %p9789_p11, %p9786_p10 }
  0xe9   :  { %9794 = shalt.err (!%p9791_p12)
}
  0xea   :  { %s9795_s25 = scalar_lea.vmem %s55_s6, 1024  ;;  %p9800_p0 = scmp.lt.s32.totalorder %s55_s6, %s55_s6 }
  0xeb   :  { %p9796_p13 = scmp.ne.s32.totalorder %s55_s6, %s9795_s25  ;;  %p9801_p1 = scmp.lt.s32.totalorder %s9795_s25, %s9795_s25 }
  0xed   :  { %p9802_p2 = por %p9801_p1, %p9800_p0 }
  0xef   :  { %p9803_p3 = pnand %p9802_p2, %p9796_p13 }
  0xf1   :  { %9806 = shalt.err (!%p9803_p3)
}
  0xf2   :  { %60 = dma.hbm_to_vmem [thread:$0]  %s14217_s26, 1024, %s55_s6, [#allocation4], %s14216_s3, %s14216_s3, %s14215_s18  }
  0xf3   :  { %s14218_s23 = sld [smem:[#allocation135_spill]] }
  0xf9   :  { %s9807_s16 = scalar_lea.hbm %s14218_s23, 9216 }
  0xfa   :  { %p9808_p4 = scmp.ne.s32.totalorder %s14218_s23, %s9807_s16  ;;  %p9811_p5 = scmp.lt.u32.totalorder %s9807_s16, %s14218_s23 }
  0xfc   :  { %p9813_p6 = pnand %p9811_p5, %p9808_p4 }
  0xfe   :  { %9816 = shalt.err (!%p9813_p6)
}
  0xff   :  { %s9817_s5 = scalar_lea.vmem %s10394_s10, 9216  ;;  %p9822_p8 = scmp.lt.s32.totalorder %s10394_s10, %s10394_s10 }
 0x100   :  { %p9818_p7 = scmp.ne.s32.totalorder %s10394_s10, %s9817_s5  ;;  %p9823_p9 = scmp.lt.s32.totalorder %s9817_s5, %s9817_s5 }
 0x102   :  { %p9824_p10 = por %p9823_p9, %p9822_p8 }
 0x104   :  { %p9825_p11 = pnand %p9824_p10, %p9818_p7 }
 0x106   :  { %9828 = shalt.err (!%p9825_p11)
}
 0x107   :  { %82 = dma.hbm_to_vmem [thread:$0]  %s14218_s23, 9216, %s10394_s10, [#allocation7], %s14216_s3, %s14216_s3, %s14215_s18  }
 0x108   :  { %s10089_s7 = smov [#allocation11]   ;;  %s10090_s1 = smov [#allocation14]  }
 0x109   :  { %s98_s2 = sshll.u32 %s10089_s7, 4  ;;  %s123_s13 = sshll.u32 %s10090_s1, 4  ;;  %s99_s2 = int_to_ptr.vmem [resolvable:$true] %s98_s2  ;;  %s124_s13 = int_to_ptr.vmem [resolvable:$true] %s123_s13 }
 0x10a   :  { %s14219_s9 = sld [smem:[#allocation137_spill]] }
 0x110   :  { %s9829_s30 = scalar_lea.hbm %s14219_s9, 1024 }
 0x111   :  { %p9830_p12 = scmp.ne.s32.totalorder %s14219_s9, %s9829_s30  ;;  %p9833_p13 = scmp.lt.u32.totalorder %s9829_s30, %s14219_s9 }
 0x113   :  { %p9835_p0 = pnand %p9833_p13, %p9830_p12 }
 0x115   :  { %9838 = shalt.err (!%p9835_p0)
}
 0x116   :  { %s9839_s10 = scalar_lea.vmem %s99_s2, 1024  ;;  %p9844_p2 = scmp.lt.s32.totalorder %s99_s2, %s99_s2 }
 0x117   :  { %p9840_p1 = scmp.ne.s32.totalorder %s99_s2, %s9839_s10  ;;  %p9845_p3 = scmp.lt.s32.totalorder %s9839_s10, %s9839_s10 }
 0x119   :  { %p9846_p4 = por %p9845_p3, %p9844_p2 }
 0x11b   :  { %p9847_p5 = pnand %p9846_p4, %p9840_p1 }
 0x11d   :  { %9850 = shalt.err (!%p9847_p5)
}
 0x11e   :  { %104 = dma.hbm_to_vmem [thread:$0]  %s14219_s9, 1024, %s99_s2, [#allocation10], %s14216_s3, %s14216_s3, %s14215_s18  }
 0x11f   :  { %s14220_s6 = sld [smem:[#allocation139_spill]] }
 0x125   :  { %s9851_s26 = scalar_lea.hbm %s14220_s6, 16 }
 0x126   :  { %p9852_p6 = scmp.ne.s32.totalorder %s14220_s6, %s9851_s26  ;;  %p9855_p7 = scmp.lt.u32.totalorder %s9851_s26, %s14220_s6 }
 0x128   :  { %p9857_p8 = pnand %p9855_p7, %p9852_p6 }
 0x12a   :  { %9860 = shalt.err (!%p9857_p8)
}
 0x12b   :  { %s9861_s30 = scalar_lea.vmem %s124_s13, 16  ;;  %s9865_s11 = scalar_lea.vmem %s124_s13, 32 }
 0x12c   :  { %p9862_p9 = scmp.ne.s32.totalorder %s124_s13, %s9861_s30  ;;  %p9866_p10 = scmp.lt.s32.totalorder %s124_s13, %s124_s13 }
 0x12d   :  { %p9867_p11 = scmp.lt.s32.totalorder %s9865_s11, %s9861_s30 }
 0x12f   :  { %p9868_p12 = por %p9867_p11, %p9866_p10 }
 0x131   :  { %p9869_p13 = pnand %p9868_p12, %p9862_p9 }
 0x133   :  { %9872 = shalt.err (!%p9869_p13)
}
 0x134   :  { %126 = dma.hbm_to_vmem [thread:$0]  %s14220_s6, 16, %s124_s13, [#allocation13]  }
 0x135   :  { %s10091_s16 = smov [#allocation17]   ;;  %s14221_s23 = sld [smem:[#allocation143_spill]] }
 0x136   :  { %s148_s4 = sshll.u32 %s10091_s16, 4  ;;  %s149_s4 = int_to_ptr.vmem [resolvable:$true] %s148_s4 }
 0x13b   :  { %s9873_s28 = scalar_lea.hbm %s14221_s23, 512 }
 0x13c   :  { %p9874_p0 = scmp.ne.s32.totalorder %s14221_s23, %s9873_s28  ;;  %p9877_p1 = scmp.lt.u32.totalorder %s9873_s28, %s14221_s23 }
 0x13e   :  { %p9879_p2 = pnand %p9877_p1, %p9874_p0 }
 0x140   :  { %9882 = shalt.err (!%p9879_p2)
}
 0x141   :  { %s9883_s1 = scalar_lea.vmem %s149_s4, 512  ;;  %p9888_p4 = scmp.lt.s32.totalorder %s149_s4, %s149_s4 }
 0x142   :  { %p9884_p3 = scmp.ne.s32.totalorder %s149_s4, %s9883_s1  ;;  %p9889_p5 = scmp.lt.s32.totalorder %s9883_s1, %s9883_s1 }
 0x144   :  { %p9890_p6 = por %p9889_p5, %p9888_p4 }
 0x146   :  { %p9891_p7 = pnand %p9890_p6, %p9884_p3 }
 0x148   :  { %9894 = shalt.err (!%p9891_p7)
}
 0x149   :  { %s10092_s13 = smov 256   ;;  %s10093_s6 = smov 16  }
 0x14a   :  { %154 = dma.hbm_to_vmem [thread:$0]  %s14221_s23, 512, %s149_s4, [#allocation16], %s10092_s13, %s10092_s13, %s10093_s6  }
 0x14b   :  { %s10094_s30 = smov [#allocation20]   ;;  %s10095_s2 = smov [#allocation23]  }
 0x14c   :  { %s171_s11 = sshll.u32 %s10094_s30, 4  ;;  %s192_s9 = sshll.u32 %s10095_s2, 4  ;;  %s172_s11 = int_to_ptr.vmem [resolvable:$true] %s171_s11  ;;  %s193_s9 = int_to_ptr.vmem [resolvable:$true] %s192_s9 }
 0x14d   :  { %s9895_s10 = scalar_lea.hbm %s13928_s14, 32 }
 0x14e   :  { %p9896_p8 = scmp.ne.s32.totalorder %s13928_s14, %s9895_s10  ;;  %p9899_p9 = scmp.lt.u32.totalorder %s9895_s10, %s13928_s14 }
 0x150   :  { %p9901_p10 = pnand %p9899_p9, %p9896_p8 }
 0x152   :  { %9904 = shalt.err (!%p9901_p10)
}
 0x153   :  { %s9905_s4 = scalar_lea.vmem %s172_s11, 32  ;;  %p9910_p12 = scmp.lt.s32.totalorder %s172_s11, %s172_s11 }
 0x154   :  { %p9906_p11 = scmp.ne.s32.totalorder %s172_s11, %s9905_s4  ;;  %p9911_p13 = scmp.lt.s32.totalorder %s9905_s4, %s9905_s4 }
 0x156   :  { %p9912_p0 = por %p9911_p13, %p9910_p12 }
 0x158   :  { %p9913_p1 = pnand %p9912_p0, %p9906_p11 }
 0x15a   :  { %9916 = shalt.err (!%p9913_p1)
}
 0x15b   :  { %174 = dma.hbm_to_vmem [thread:$0]  %s13928_s14, 32, %s172_s11, [#allocation19]  }
 0x15c   :  { %s9917_s6 = scalar_lea.hbm %s13931_s17, 1024 }
 0x15d   :  { %p9918_p2 = scmp.ne.s32.totalorder %s13931_s17, %s9917_s6  ;;  %p9921_p3 = scmp.lt.u32.totalorder %s9917_s6, %s13931_s17 }
 0x15f   :  { %p9923_p4 = pnand %p9921_p3, %p9918_p2 }
 0x161   :  { %9926 = shalt.err (!%p9923_p4)
}
 0x162   :  { %s9927_s16 = scalar_lea.vmem %s193_s9, 1024  ;;  %p9932_p6 = scmp.lt.s32.totalorder %s193_s9, %s193_s9 }
 0x163   :  { %p9928_p5 = scmp.ne.s32.totalorder %s193_s9, %s9927_s16  ;;  %p9933_p7 = scmp.lt.s32.totalorder %s9927_s16, %s9927_s16 }
 0x165   :  { %p9934_p8 = por %p9933_p7, %p9932_p6 }
 0x167   :  { %p9935_p9 = pnand %p9934_p8, %p9928_p5 }
 0x169   :  { %9938 = shalt.err (!%p9935_p9)
}
 0x16a   :  { %198 = dma.hbm_to_vmem [thread:$0]  %s13931_s17, 1024, %s193_s9, [#allocation22], %s14216_s3, %s14216_s3, %s14215_s18  }
 0x16b   :  { %s10096_s20 = smov [#allocation26]   ;;  %s10097_s28 = smov [#allocation29]  }
 0x16c   :  { %s214_s10 = sshll.u32 %s10096_s20, 4  ;;  %s239_s29 = sshll.u32 %s10097_s28, 4  ;;  %s215_s10 = int_to_ptr.vmem [resolvable:$true] %s214_s10  ;;  %s240_s29 = int_to_ptr.vmem [resolvable:$true] %s239_s29 }
 0x16d   :  { %s9939_s4 = scalar_lea.hbm %s13933_s19, 1024 }
 0x16e   :  { %p9940_p10 = scmp.ne.s32.totalorder %s13933_s19, %s9939_s4  ;;  %p9943_p11 = scmp.lt.u32.totalorder %s9939_s4, %s13933_s19 }
 0x170   :  { %p9945_p12 = pnand %p9943_p11, %p9940_p10 }
 0x172   :  { %9948 = shalt.err (!%p9945_p12)
}
 0x173   :  { %s9949_s17 = scalar_lea.vmem %s215_s10, 1024  ;;  %p9954_p0 = scmp.lt.s32.totalorder %s215_s10, %s215_s10 }
 0x174   :  { %p9950_p13 = scmp.ne.s32.totalorder %s215_s10, %s9949_s17  ;;  %p9955_p1 = scmp.lt.s32.totalorder %s9949_s17, %s9949_s17 }
 0x176   :  { %p9956_p2 = por %p9955_p1, %p9954_p0 }
 0x178   :  { %p9957_p3 = pnand %p9956_p2, %p9950_p13 }
 0x17a   :  { %9960 = shalt.err (!%p9957_p3)
}
 0x17b   :  { %220 = dma.hbm_to_vmem [thread:$0]  %s13933_s19, 1024, %s215_s10, [#allocation25], %s14216_s3, %s14216_s3, %s14215_s18  }
 0x17c   :  { %s9961_s30 = scalar_lea.hbm %s13935_s21, 16 }
 0x17d   :  { %p9962_p4 = scmp.ne.s32.totalorder %s13935_s21, %s9961_s30  ;;  %p9965_p5 = scmp.lt.u32.totalorder %s9961_s30, %s13935_s21 }
 0x17f   :  { %p9967_p6 = pnand %p9965_p5, %p9962_p4 }
 0x181   :  { %9970 = shalt.err (!%p9967_p6)
}
 0x182   :  { %s9971_s20 = scalar_lea.vmem %s240_s29, 16  ;;  %s9975_s28 = scalar_lea.vmem %s240_s29, 32 }
 0x183   :  { %p9972_p7 = scmp.ne.s32.totalorder %s240_s29, %s9971_s20  ;;  %p9976_p8 = scmp.lt.s32.totalorder %s240_s29, %s240_s29 }
 0x184   :  { %p9977_p9 = scmp.lt.s32.totalorder %s9975_s28, %s9971_s20 }
 0x186   :  { %p9978_p10 = por %p9977_p9, %p9976_p8 }
 0x188   :  { %p9979_p11 = pnand %p9978_p10, %p9972_p7 }
 0x18a   :  { %9982 = shalt.err (!%p9979_p11)
}
 0x18b   :  { %242 = dma.hbm_to_vmem [thread:$0]  %s13935_s21, 16, %s240_s29, [#allocation28]  }
 0x18c   :  { %s10098_s3 = smov [#allocation32]   ;;  %s10099_s5 = smov [#allocation35]  }
 0x18d   :  { %s260_s10 = sshll.u32 %s10098_s3, 4  ;;  %s285_s26 = sshll.u32 %s10099_s5, 4  ;;  %s261_s10 = int_to_ptr.vmem [resolvable:$true] %s260_s10  ;;  %s286_s26 = int_to_ptr.vmem [resolvable:$true] %s285_s26 }
 0x18e   :  { %s9983_s7 = scalar_lea.hbm %s13938_s24, 1024 }
 0x18f   :  { %p9984_p12 = scmp.ne.s32.totalorder %s13938_s24, %s9983_s7  ;;  %p9987_p13 = scmp.lt.u32.totalorder %s9983_s7, %s13938_s24 }
 0x191   :  { %p9989_p0 = pnand %p9987_p13, %p9984_p12 }
 0x193   :  { %9992 = shalt.err (!%p9989_p0)
}
 0x194   :  { %s9993_s21 = scalar_lea.vmem %s261_s10, 1024  ;;  %p9998_p2 = scmp.lt.s32.totalorder %s261_s10, %s261_s10 }
 0x195   :  { %p9994_p1 = scmp.ne.s32.totalorder %s261_s10, %s9993_s21  ;;  %p9999_p3 = scmp.lt.s32.totalorder %s9993_s21, %s9993_s21 }
 0x197   :  { %p10000_p4 = por %p9999_p3, %p9998_p2 }
 0x199   :  { %p10001_p5 = pnand %p10000_p4, %p9994_p1 }
 0x19b   :  { %10004 = shalt.err (!%p10001_p5)
}
 0x19c   :  { %266 = dma.hbm_to_vmem [thread:$0]  %s13938_s24, 1024, %s261_s10, [#allocation31], %s10079_s8, %s10079_s8, %s10080_s0  }
 0x19d   :  { %s10005_s30 = scalar_lea.hbm %s13941_s27, 16 }
 0x19e   :  { %p10006_p6 = scmp.ne.s32.totalorder %s13941_s27, %s10005_s30  ;;  %p10009_p7 = scmp.lt.u32.totalorder %s10005_s30, %s13941_s27 }
 0x1a0   :  { %p10011_p8 = pnand %p10009_p7, %p10006_p6 }
 0x1a2   :  { %10014 = shalt.err (!%p10011_p8)
}
 0x1a3   :  { %s10015_s20 = scalar_lea.vmem %s286_s26, 16  ;;  %s10019_s28 = scalar_lea.vmem %s286_s26, 32 }
 0x1a4   :  { %p10016_p9 = scmp.ne.s32.totalorder %s286_s26, %s10015_s20  ;;  %p10020_p10 = scmp.lt.s32.totalorder %s286_s26, %s286_s26 }
 0x1a5   :  { %p10021_p11 = scmp.lt.s32.totalorder %s10019_s28, %s10015_s20 }
 0x1a7   :  { %p10022_p12 = por %p10021_p11, %p10020_p10 }
 0x1a9   :  { %p10023_p13 = pnand %p10022_p12, %p10016_p9 }
 0x1ab   :  { %10026 = shalt.err (!%p10023_p13)
}
 0x1ac   :  { %288 = dma.hbm_to_vmem [thread:$0]  %s13941_s27, 16, %s286_s26, [#allocation34]  }
 0x1ad   :  { %10049 = dma.done.wait [#allocation4], 1024  }
 0x1ae   :  { %10050 = vsyncadd [#allocation4], 4294966272 }
 0x1af   :  { %10051 = dma.done.wait [#allocation7], 9232  }
 0x1b0   :  { %10052 = vsyncadd [#allocation7], 4294958064 }
 0x1b1   :  { %10053 = dma.done.wait [#allocation10], 1040  }
 0x1b2   :  { %10054 = vsyncadd [#allocation10], 4294966256 }
 0x1b3   :  { %10055 = dma.done.wait [#allocation13], 1040  }
 0x1b4   :  { %10056 = vsyncadd [#allocation13], 4294966256 }
 0x1b5   :  { %10057 = dma.done.wait [#allocation16], 2560  }
 0x1b6   :  { %10058 = vsyncadd [#allocation16], 4294964736 }
 0x1b7   :  { %10059 = dma.done.wait [#allocation19], 64  }
 0x1b8   :  { %10060 = vsyncadd [#allocation19], 4294967232 }
 0x1b9   :  { %10061 = dma.done.wait [#allocation22], 1040  }
 0x1ba   :  { %10062 = vsyncadd [#allocation22], 4294966256 }
 0x1bb   :  { %10063 = dma.done.wait [#allocation25], 1040  }
 0x1bc   :  { %10064 = vsyncadd [#allocation25], 4294966256 }
 0x1bd   :  { %10065 = dma.done.wait [#allocation28], 1040  }
 0x1be   :  { %10066 = vsyncadd [#allocation28], 4294966256 }
 0x1bf   :  { %10067 = dma.done.wait [#allocation31], 1040  }
 0x1c0   :  { %10068 = vsyncadd [#allocation31], 4294966256 }
 0x1c1   :  { %10069 = dma.done.wait [#allocation34], 32  }
 0x1c2   :  { %10070 = vsyncadd [#allocation34], 4294967264  ;;  %v9346_v0 = vld [vmem:[#allocation3] sm:$0xff]   ;;  %v9347_v1 = vld [vmem:[#allocation3 + $0x8] sm:$0xff]   ;;  %s14222_s3 = sld [smem:[#allocation132_spill]]  ;;  %v13962_v30 = vmov 0.0  }
 0x1c3   :  { %8064 = vmatprep.subr.bf16.mxu0 %v9346_v0  ;;  %v9348_v2 = vld [vmem:[#allocation3 + $0x10] sm:$0xff]   ;;  %v9349_v3 = vld [vmem:[#allocation3 + $0x18] sm:$0xff]   ;;  %v9350_v5 = vld [vmem:[#allocation3 + $0x20] sm:$0xff]   ;;  %751 = vst [vmem:[#allocation2 + $0x30] sm:$0xff] %v13962_v30  ;;  %s14321_s7 = sld [smem:[#allocation131_spill]]  ;;  %s14340_s14 = sld [smem:[#allocation142_spill]] }
 0x1c4   :  { %8065 = vmatpush3.bf16.msra.mxu0 %v9346_v0  ;;  %v9351_v6 = vld [vmem:[#allocation3 + $0x28] sm:$0xff]   ;;  %v9352_v7 = vld [vmem:[#allocation3 + $0x30] sm:$0xff]   ;;  %v9353_v8 = vld [vmem:[#allocation3 + $0x38] sm:$0xff]   ;;  %752 = vst [vmem:[#allocation2 + $0x38] sm:$0xff] %v13962_v30  ;;  %s14350_s1 = sld [smem:[#allocation141_spill]]  ;;  %vm4833_vm0 = vcmask 1041409  }
 0x1c5   :  { %8066 = vmatprep.subr.bf16.mxu0 %v9347_v1  ;;  %v9370_v9 = vld [vmem:[#allocation8 + $0x40] sm:$0xff]   ;;  %v9371_v10 = vld [vmem:[#allocation8 + $0x48] sm:$0xff]   ;;  %v9372_v11 = vld [vmem:[#allocation8 + $0x50] sm:$0xff]   ;;  %745 = vst [vmem:[#allocation2] sm:$0xff] %v13962_v30  ;;  %vm4835_vm1 = vcmask 1042434   ;;  %vm4837_vm2 = vcmask 1043459  }
 0x1c6   :  { %8112 = vmatprep.subr.bf16.mxu1 %v9370_v9  ;;  %v9373_v14 = vld [vmem:[#allocation8 + $0x58] sm:$0xff]   ;;  %v9374_v28 = vld [vmem:[#allocation8 + $0x60] sm:$0xff]   ;;  %v10599_v29 = vld [vmem:[#allocation8 + $0x68] sm:$0xff]   ;;  %746 = vst [vmem:[#allocation2 + $0x8] sm:$0xff] %v13962_v30  ;;  %vm5010_vm3 = vcmask 130048   ;;  %vm10104_vm4 = vmmov 0  }
 0x1c7   :  { %8113 = vmatpush3.bf16.msra.mxu1 %v9370_v9  ;;  %747 = vst [vmem:[#allocation2 + $0x10] sm:$0xff] %v13962_v30  ;;  %748 = vst [vmem:[#allocation2 + $0x18] sm:$0xff] %v13962_v30  ;;  %v9376_v31 = vld [vmem:[#allocation8 + $0x70] sm:$0xff]   ;;  %v9377_v32 = vld [vmem:[#allocation8 + $0x78] sm:$0xff]   ;;  %s14615_s10 = sld [smem:[#allocation144_spill]]  ;;  %vm6891_vm5 = vcmask 523264  }
 0x1c8   :  { %8067 = vmatpush3.bf16.msra.mxu0 %v9347_v1  ;;  %v9354_v4 = vld [vmem:[%s14222_s3] sm:$0xff]   ;;  %v9355_v12 = vld [vmem:[%s14222_s3 + $0x8] sm:$0xff]   ;;  %8114 = vmatprep.subr.bf16.mxu1 %v9371_v10  ;;  %v9356_v13 = vld [vmem:[%s14222_s3 + $0x10] sm:$0xff]   ;;  %749 = vst [vmem:[#allocation2 + $0x20] sm:$0xff] %v13962_v30  ;;  %s10105_s25 = smov [#allocation36]  }
 0x1c9   :  { %8068 = vmatprep.subr.bf16.mxu0 %v9348_v2  ;;  %8080 = vmatprep.mubr.bf16.mxu0 %v9354_v4  ;;  %v9357_v15 = vld [vmem:[%s14222_s3 + $0x18] sm:$0xff]   ;;  %v9358_v16 = vld [vmem:[%s14222_s3 + $0x20] sm:$0xff]   ;;  %v9359_v17 = vld [vmem:[%s14222_s3 + $0x28] sm:$0xff]   ;;  %750 = vst [vmem:[#allocation2 + $0x28] sm:$0xff] %v13962_v30  ;;  %s7284_s12 = sshll.u32 %s10105_s25, 4  ;;  %s7285_s12 = int_to_ptr.vmem [resolvable:$true] %s7284_s12 }
 0x1ca   :  { %v9360_v18 = vld [vmem:[%s14222_s3 + $0x30] sm:$0xff]   ;;  %v9361_v19 = vld [vmem:[%s14222_s3 + $0x38] sm:$0xff]   ;;  %v9362_v20 = vld [vmem:[%s14222_s3 + $0x40] sm:$0xff]   ;;  %753 = vst [vmem:[#allocation2 + $0x40] sm:$0xff] %v13962_v30  ;;  %s10027_s30 = scalar_lea.vmem %s7285_s12, 4096  ;;  %p10032_p1 = scmp.lt.s32.totalorder %s7285_s12, %s7285_s12 }
 0x1cb   :  { %8115 = vmatpush3.bf16.msra.mxu1 %v9371_v10  ;;  %v9363_v21 = vld [vmem:[%s14222_s3 + $0x48] sm:$0xff]   ;;  %v9364_v22 = vld [vmem:[%s14222_s3 + $0x50] sm:$0xff]   ;;  %v9365_v23 = vld [vmem:[%s14222_s3 + $0x58] sm:$0xff]   ;;  %754 = vst [vmem:[#allocation2 + $0x48] sm:$0xff] %v13962_v30  ;;  %p10028_p0 = scmp.ne.s32.totalorder %s7285_s12, %s10027_s30  ;;  %p10033_p2 = scmp.lt.s32.totalorder %s10027_s30, %s10027_s30 }
 0x1cc   :  { %8069 = vmatpush3.bf16.msra.mxu0 %v9348_v2  ;;  %8116 = vmatprep.subr.bf16.mxu1 %v9372_v11  ;;  %v9366_v24 = vld [vmem:[%s14222_s3 + $0x60] sm:$0xff]   ;;  %v9367_v25 = vld [vmem:[%s14222_s3 + $0x68] sm:$0xff]   ;;  %v9368_v26 = vld [vmem:[%s14222_s3 + $0x70] sm:$0xff]   ;;  %755 = vst [vmem:[#allocation2 + $0x50] sm:$0xff] %v13962_v30 }
 0x1cd   :  { %8070 = vmatprep.subr.bf16.mxu0 %v9349_v3  ;;  %v9369_v27 = vld [vmem:[%s14222_s3 + $0x78] sm:$0xff]   ;;  %756 = vst [vmem:[#allocation2 + $0x58] sm:$0xff] %v13962_v30  ;;  %757 = vst [vmem:[#allocation2 + $0x60] sm:$0xff] %v13962_v30  ;;  %v9378_v33 = vld [vmem:[#allocation8] sm:$0xff]   ;;  %p10034_p3 = por %p10033_p2, %p10032_p1 }
 0x1ce   :  { %758 = vst [vmem:[#allocation2 + $0x68] sm:$0xff] %v13962_v30  ;;  %759 = vst [vmem:[#allocation2 + $0x70] sm:$0xff] %v13962_v30  ;;  %v10683_v34 = vld [vmem:[#allocation6] ss:$0 sm:$0xff]  ;;  %v922_v43 = vld [vmem:[#allocation2 + $0x1] sm:$0xff] }
 0x1cf   :  { %8117 = vmatpush3.bf16.msra.mxu1 %v9372_v11  ;;  %760 = vst [vmem:[#allocation2 + $0x78] sm:$0xff] %v13962_v30  ;;  %761 = vst [vmem:[#allocation2 + $0x80] sm:$0xff] %v13962_v30  ;;  %v9379_v51 = vld [vmem:[#allocation8 + $0x8] sm:$0xff]   ;;  %v9380_v61 = vld [vmem:[#allocation8 + $0x10] sm:$0xff]   ;;  %p10035_p4 = pnand %p10034_p3, %p10028_p0 }
 0x1d0   :  { %8071 = vmatpush3.bf16.msra.mxu0 %v9349_v3  ;;  %8118 = vmatprep.subr.bf16.mxu1 %v9373_v14  ;;  %762 = vst [vmem:[#allocation2 + $0x88] sm:$0xff] %v13962_v30  ;;  %763 = vst [vmem:[#allocation2 + $0x90] sm:$0xff] %v13962_v30 }
 0x1d1   :  { %8072 = vmatprep.subr.bf16.mxu0 %v9350_v5  ;;  %764 = vst [vmem:[#allocation2 + $0x98] sm:$0xff] %v13962_v30  ;;  %765 = vst [vmem:[#allocation2 + $0xa0] sm:$0xff] %v13962_v30 }
 0x1d2   :  { %766 = vst [vmem:[#allocation2 + $0xa8] sm:$0xff] %v13962_v30  ;;  %767 = vst [vmem:[#allocation2 + $0xb0] sm:$0xff] %v13962_v30 }
 0x1d3   :  { %8119 = vmatpush3.bf16.msra.mxu1 %v9373_v14  ;;  %768 = vst [vmem:[#allocation2 + $0xb8] sm:$0xff] %v13962_v30  ;;  %769 = vst [vmem:[#allocation2 + $0xc0] sm:$0xff] %v13962_v30 }
 0x1d4   :  { %8073 = vmatpush3.bf16.msra.mxu0 %v9350_v5  ;;  %8120 = vmatprep.subr.bf16.mxu1 %v9374_v28  ;;  %770 = vst [vmem:[#allocation2 + $0xc8] sm:$0xff] %v13962_v30  ;;  %771 = vst [vmem:[#allocation2 + $0xd0] sm:$0xff] %v13962_v30 }
 0x1d5   :  { %8074 = vmatprep.subr.bf16.mxu0 %v9351_v6  ;;  %772 = vst [vmem:[#allocation2 + $0xd8] sm:$0xff] %v13962_v30  ;;  %773 = vst [vmem:[#allocation2 + $0xe0] sm:$0xff] %v13962_v30 }
 0x1d6   :  { %774 = vst [vmem:[#allocation2 + $0xe8] sm:$0xff] %v13962_v30  ;;  %775 = vst [vmem:[#allocation2 + $0xf0] sm:$0xff] %v13962_v30 }
 0x1d7   :  { %8121 = vmatpush3.bf16.msra.mxu1 %v9374_v28  ;;  %776 = vst [vmem:[#allocation2 + $0xf8] sm:$0xff] %v13962_v30  ;;  %777 = vst [vmem:[#allocation2 + $0x100] sm:$0xff] %v13962_v30 }
 0x1d8   :  { %8075 = vmatpush3.bf16.msra.mxu0 %v9351_v6  ;;  %778 = vst [vmem:[#allocation2 + $0x108] sm:$0xff] %v13962_v30  ;;  %779 = vst [vmem:[#allocation2 + $0x110] sm:$0xff] %v13962_v30  ;;  %8122 = vmatprep.subr.bf16.mxu1 %v10599_v29 }
 0x1d9   :  { %8076 = vmatprep.subr.bf16.mxu0 %v9352_v7  ;;  %780 = vst [vmem:[#allocation2 + $0x118] sm:$0xff] %v13962_v30  ;;  %781 = vst [vmem:[#allocation2 + $0x120] sm:$0xff] %v13962_v30 }
 0x1da   :  { %782 = vst [vmem:[#allocation2 + $0x128] sm:$0xff] %v13962_v30  ;;  %783 = vst [vmem:[#allocation2 + $0x130] sm:$0xff] %v13962_v30 }
 0x1db   :  { %784 = vst [vmem:[#allocation2 + $0x138] sm:$0xff] %v13962_v30  ;;  %785 = vst [vmem:[#allocation2 + $0x140] sm:$0xff] %v13962_v30  ;;  %8123 = vmatpush3.bf16.msra.mxu1 %v10599_v29  ;;  %v9382_v29 = vld [vmem:[#allocation8 + $0x20] sm:$0xff]  }
 0x1dc   :  { %8077 = vmatpush3.bf16.msra.mxu0 %v9352_v7  ;;  %786 = vst [vmem:[#allocation2 + $0x148] sm:$0xff] %v13962_v30  ;;  %787 = vst [vmem:[#allocation2 + $0x150] sm:$0xff] %v13962_v30  ;;  %8124 = vmatprep.subr.bf16.mxu1 %v9376_v31 }
 0x1dd   :  { %8078 = vmatprep.subr.bf16.mxu0 %v9353_v8  ;;  %788 = vst [vmem:[#allocation2 + $0x158] sm:$0xff] %v13962_v30  ;;  %789 = vst [vmem:[#allocation2 + $0x160] sm:$0xff] %v13962_v30 }
 0x1de   :  { %790 = vst [vmem:[#allocation2 + $0x168] sm:$0xff] %v13962_v30  ;;  %791 = vst [vmem:[#allocation2 + $0x170] sm:$0xff] %v13962_v30 }
 0x1df   :  { %792 = vst [vmem:[#allocation2 + $0x178] sm:$0xff] %v13962_v30  ;;  %793 = vst [vmem:[#allocation2 + $0x180] sm:$0xff] %v13962_v30  ;;  %8125 = vmatpush3.bf16.msra.mxu1 %v9376_v31 }
 0x1e0   :  { %8079 = vmatpush3.bf16.msra.mxu0 %v9353_v8  ;;  %794 = vst [vmem:[#allocation2 + $0x188] sm:$0xff] %v13962_v30  ;;  %795 = vst [vmem:[#allocation2 + $0x190] sm:$0xff] %v13962_v30  ;;  %8126 = vmatprep.subr.bf16.mxu1 %v9377_v32 }
 0x1e1   :  { %796 = vst [vmem:[#allocation2 + $0x198] sm:$0xff] %v13962_v30  ;;  %797 = vst [vmem:[#allocation2 + $0x1a0] sm:$0xff] %v13962_v30 }
 0x1e2   :  { %798 = vst [vmem:[#allocation2 + $0x1a8] sm:$0xff] %v13962_v30  ;;  %799 = vst [vmem:[#allocation2 + $0x1b0] sm:$0xff] %v13962_v30 }
 0x1e3   :  { %8081 = vmatmul.mubr.bf16.vlgmr.msra.gmra.mrb[0].mxu0 %v9355_v12  ;;  %800 = vst [vmem:[#allocation2 + $0x1b8] sm:$0xff] %v13962_v30  ;;  %801 = vst [vmem:[#allocation2 + $0x1c0] sm:$0xff] %v13962_v30  ;;  %8127 = vmatpush3.bf16.msra.mxu1 %v9377_v32  ;;  %v9381_v12 = vld [vmem:[#allocation8 + $0x18] sm:$0xff]  }
 0x1e4   :  { %8084 = vmatprep.mubr.bf16.mxu0 %v9356_v13  ;;  %802 = vst [vmem:[#allocation2 + $0x1c8] sm:$0xff] %v13962_v30  ;;  %803 = vst [vmem:[#allocation2 + $0x1d0] sm:$0xff] %v13962_v30  ;;  %8160 = vmatprep.subr.bf16.mxu1 %v9378_v33 }
 0x1e5   :  { %804 = vst [vmem:[#allocation2 + $0x1d8] sm:$0xff] %v13962_v30  ;;  %805 = vst [vmem:[#allocation2 + $0x1e0] sm:$0xff] %v13962_v30 }
 0x1e6   :  { %806 = vst [vmem:[#allocation2 + $0x1e8] sm:$0xff] %v13962_v30  ;;  %807 = vst [vmem:[#allocation2 + $0x1f0] sm:$0xff] %v13962_v30 }
 0x1e7   :  { %808 = vst [vmem:[#allocation2 + $0x1f8] sm:$0xff] %v13962_v30  ;;  %809 = vst [vmem:[#allocation2 + $0x200] sm:$0xff] %v13962_v30 }
 0x1e8   :  { %810 = vst [vmem:[#allocation2 + $0x208] sm:$0xff] %v13962_v30  ;;  %811 = vst [vmem:[#allocation2 + $0x210] sm:$0xff] %v13962_v30 }
 0x1e9   :  { %812 = vst [vmem:[#allocation2 + $0x218] sm:$0xff] %v13962_v30  ;;  %813 = vst [vmem:[#allocation2 + $0x220] sm:$0xff] %v13962_v30 }
 0x1ea   :  { %814 = vst [vmem:[#allocation2 + $0x228] sm:$0xff] %v13962_v30  ;;  %815 = vst [vmem:[#allocation2 + $0x230] sm:$0xff] %v13962_v30 }
 0x1eb   :  { %8085 = vmatmul.mubr.bf16.gmra.mrb[4].mxu0 %v9357_v15  ;;  %816 = vst [vmem:[#allocation2 + $0x238] sm:$0xff] %v13962_v30  ;;  %817 = vst [vmem:[#allocation2 + $0x240] sm:$0xff] %v13962_v30 }
 0x1ec   :  { %8088 = vmatprep.mubr.bf16.mxu0 %v9358_v16  ;;  %818 = vst [vmem:[#allocation2 + $0x248] sm:$0xff] %v13962_v30  ;;  %819 = vst [vmem:[#allocation2 + $0x250] sm:$0xff] %v13962_v30 }
 0x1ed   :  { %820 = vst [vmem:[#allocation2 + $0x258] sm:$0xff] %v13962_v30  ;;  %821 = vst [vmem:[#allocation2 + $0x260] sm:$0xff] %v13962_v30 }
 0x1ee   :  { %822 = vst [vmem:[#allocation2 + $0x268] sm:$0xff] %v13962_v30  ;;  %823 = vst [vmem:[#allocation2 + $0x270] sm:$0xff] %v13962_v30 }
 0x1ef   :  { %824 = vst [vmem:[#allocation2 + $0x278] sm:$0xff] %v13962_v30  ;;  %v946_v30 = vld [vmem:[#allocation2 + $0x1e1] sm:$0xff] }
 0x1f3   :  { %8089 = vmatmul.mubr.bf16.gmra.mrb[8].mxu0 %v9359_v17 }
 0x1f4   :  { %8092 = vmatprep.mubr.bf16.mxu0 %v9360_v18 }
 0x1fb   :  { %8093 = vmatmul.mubr.bf16.gmra.mrb[12].mxu0 %v9361_v19 }
 0x1fc   :  { %8096 = vmatprep.mubr.bf16.mxu0 %v9362_v20 }
 0x203   :  { %8097 = vmatmul.mubr.bf16.gmra.mrb[16].mxu0 %v9363_v21 }
 0x204   :  { %8100 = vmatprep.mubr.bf16.mxu0 %v9364_v22 }
 0x20b   :  { %8101 = vmatmul.mubr.bf16.gmra.mrb[20].mxu0 %v9365_v23 }
 0x20c   :  { %8104 = vmatprep.mubr.bf16.mxu0 %v9366_v24 }
 0x213   :  { %8105 = vmatmul.mubr.bf16.gmra.mrb[24].mxu0 %v9367_v25 }
 0x214   :  { %8108 = vmatprep.mubr.bf16.mxu0 %v9368_v26  ;;  %v930_v26 = vld [vmem:[#allocation2 + $0xa1] sm:$0xff] }
 0x21b   :  { %8109 = vmatmul.mubr.bf16.gmra.mrb[28].mxu0 %v9369_v27 }
 0x2b6   :  { %v8082_v35 = vpop.f32.mrb[0].mxu0 }
 0x2b7   :  { %v595_v36 = vadd.f32 %v8082_v35, %v10683_v34  ;;  %v586_v37 = vpop.f32.mrb[1].mxu0 }
 0x2b8   :  { %v587_v38 = vadd.f32 %v10683_v34, %v586_v37  ;;  %v8083_v39 = vpop.f32.mrb[2].mxu0 }
 0x2b9   :  { %v715_v40 = vmax.f32 %v595_v36, 0.0  ;;  %v598_v41 = vadd.f32 %v8083_v39, %v10683_v34  ;;  %v589_v42 = vpop.f32.mrb[3].mxu0 }
 0x2ba   :  { %v713_v44 = vmax.f32 %v587_v38, 0.0  ;;  %v590_v45 = vadd.f32 %v10683_v34, %v589_v42 }
 0x2bb   :  { %828 = vst [vmem:[#allocation2 + $0x31] sm:$0xff] %v715_v40  ;;  %v716_v46 = vmax.f32 %v598_v41, 0.0  ;;  %v9383_v41 = vld [vmem:[#allocation8 + $0x28] sm:$0xff]  }
 0x2bc   :  { %826 = vst [vmem:[#allocation2 + $0x11] sm:$0xff] %v713_v44  ;;  %v714_v47 = vmax.f32 %v590_v45, 0.0  ;;  %v971_v48 = vpack.c.bf16 %v713_v44, %v922_v43 }
 0x2bd   :  { %829 = vst [vmem:[#allocation2 + $0x41] sm:$0xff] %v716_v46 }
 0x2be   :  { %827 = vst [vmem:[#allocation2 + $0x21] sm:$0xff] %v714_v47  ;;  %v8086_v49 = vpop.f32.mrb[4].mxu0  ;;  %8128 = vmatprep.mubr.bf16.mxu1 %v971_v48  ;;  %v972_v50 = vpack.c.bf16 %v715_v40, %v714_v47 }
 0x2bf   :  { %v611_v52 = vadd.f32 %v8086_v49, %v10683_v34  ;;  %v602_v53 = vpop.f32.mrb[5].mxu0 }
 0x2c0   :  { %v603_v54 = vadd.f32 %v10683_v34, %v602_v53  ;;  %v8087_v55 = vpop.f32.mrb[6].mxu0  ;;  %8129 = vmatmul.mubr.bf16.vlgmr.msra.gmra.mrb[0].mxu1 %v972_v50 }
 0x2c1   :  { %v719_v56 = vmax.f32 %v611_v52, 0.0  ;;  %v614_v57 = vadd.f32 %v8087_v55, %v10683_v34  ;;  %v605_v58 = vpop.f32.mrb[7].mxu0  ;;  %8161 = vmatpush3.bf16.msra.mxu1 %v9378_v33 }
 0x2c2   :  { %v717_v59 = vmax.f32 %v603_v54, 0.0  ;;  %v606_v60 = vadd.f32 %v10683_v34, %v605_v58  ;;  %8162 = vmatprep.subr.bf16.mxu1 %v9379_v51  ;;  %v10693_v63 = vld [vmem:[#allocation2 + $0x30] sm:$0xff] }
 0x2c3   :  { %832 = vst [vmem:[#allocation2 + $0x71] sm:$0xff] %v719_v56  ;;  %v720_v62 = vmax.f32 %v614_v57, 0.0  ;;  %v10697_v3 = vld [vmem:[#allocation2 + $0x32] sm:$0xff] }
 0x2c4   :  { %830 = vst [vmem:[#allocation2 + $0x51] sm:$0xff] %v717_v59  ;;  %v718_v0 = vmax.f32 %v606_v60, 0.0  ;;  %v973_v1 = vpack.c.bf16 %v717_v59, %v716_v46  ;;  %v10695_v2 = vld [vmem:[#allocation2 + $0x40] sm:$0xff]  ;;  %v10711_v13 = vld [vmem:[#allocation2 + $0x10] sm:$0xff] }
 0x2c5   :  { %v10699_v4 = vld [vmem:[#allocation2 + $0x42] sm:$0xff]  ;;  %833 = vst [vmem:[#allocation2 + $0x81] sm:$0xff] %v720_v62  ;;  %8163 = vmatpush3.bf16.msra.mxu1 %v9379_v51  ;;  %v10713_v14 = vld [vmem:[#allocation2 + $0x12] sm:$0xff] }
 0x2c6   :  { %v10701_v5 = vld [vmem:[#allocation2 + $0x20] sm:$0xff]  ;;  %831 = vst [vmem:[#allocation2 + $0x61] sm:$0xff] %v718_v0  ;;  %v8090_v10 = vpop.f32.mrb[8].mxu0  ;;  %8132 = vmatprep.mubr.bf16.mxu1 %v973_v1  ;;  %v974_v11 = vpack.c.bf16 %v719_v56, %v718_v0  ;;  %8164 = vmatprep.subr.bf16.mxu1 %v9380_v61  ;;  %v10718_v18 = vld [vmem:[#allocation2 + $0x31] sm:$0xff] }
 0x2c7   :  { %v10703_v6 = vld [vmem:[#allocation2 + $0x22] sm:$0xff]  ;;  %v627_v15 = vadd.f32 %v8090_v10, %v10683_v34  ;;  %v618_v16 = vpop.f32.mrb[9].mxu0  ;;  %v9384_v59 = vld [vmem:[#allocation8 + $0x30] sm:$0xff]  }
 0x2c8   :  { %v10707_v8 = vld [vmem:[#allocation2 + $0x21] sm:$0xff]  ;;  %v619_v20 = vadd.f32 %v10683_v34, %v618_v16  ;;  %v8091_v21 = vpop.f32.mrb[10].mxu0  ;;  %8133 = vmatmul.mubr.bf16.gmra.mrb[4].mxu1 %v974_v11 }
 0x2c9   :  { %v723_v23 = vmax.f32 %v627_v15, 0.0  ;;  %v630_v24 = vadd.f32 %v8091_v21, %v10683_v34  ;;  %v621_v25 = vpop.f32.mrb[11].mxu0  ;;  %8165 = vmatpush3.bf16.msra.mxu1 %v9380_v61  ;;  %v10746_v47 = vld [vmem:[#allocation2 + $0x41] sm:$0xff] }
 0x2ca   :  { %v721_v27 = vmax.f32 %v619_v20, 0.0  ;;  %v622_v28 = vadd.f32 %v10683_v34, %v621_v25  ;;  %8166 = vmatprep.subr.bf16.mxu1 %v9381_v12  ;;  %14226 = vst [vmem:[#allocation52_spill] sm:$0xff] %v10746_v47  ;;  %v10748_v48 = vld [vmem:[#allocation2 + $0x71] sm:$0xff] }
 0x2cb   :  { %836 = vst [vmem:[#allocation2 + $0xd1] sm:$0xff] %v723_v23  ;;  %v724_v31 = vmax.f32 %v630_v24, 0.0  ;;  %v10729_v35 = vld [vmem:[#allocation2 + $0x51] sm:$0xff]  ;;  %14227 = vst [vmem:[#allocation53_spill] sm:$0xff] %v10748_v48  ;;  %v9385_v24 = vld [vmem:[#allocation8 + $0x38] sm:$0xff]  }
 0x2cc   :  { %834 = vst [vmem:[#allocation2 + $0xb1] sm:$0xff] %v721_v27  ;;  %v10727_v32 = vmax.f32 %v622_v28, 0.0  ;;  %v975_v33 = vpack.c.bf16 %v721_v27, %v930_v26  ;;  %14224 = vst [vmem:[#allocation50_spill] sm:$0xff] %v10729_v35  ;;  %v10739_v42 = vld [vmem:[#allocation2 + $0x50] sm:$0xff]  ;;  %v1413_v35 = vld [vmem:[#allocation2 + $0xa2] sm:$0xff] }
 0x2cd   :  { %837 = vst [vmem:[#allocation2 + $0xe1] sm:$0xff] %v724_v31  ;;  %8167 = vmatpush3.bf16.msra.mxu1 %v9381_v12  ;;  %v10731_v36 = vld [vmem:[#allocation2 + $0x60] sm:$0xff]  ;;  %v10741_v43 = vld [vmem:[#allocation2 + $0x52] sm:$0xff] }
 0x2ce   :  { %14223 = vst [vmem:[#allocation49_spill] sm:$0xff] %v10727_v32  ;;  %v10733_v37 = vld [vmem:[#allocation2 + $0x62] sm:$0xff]  ;;  %835 = vst [vmem:[#allocation2 + $0xc1] sm:$0xff] %v10727_v32  ;;  %v8094_v39 = vpop.f32.mrb[12].mxu0  ;;  %8136 = vmatprep.mubr.bf16.mxu1 %v975_v33  ;;  %v976_v40 = vpack.c.bf16 %v723_v23, %v10727_v32  ;;  %8168 = vmatprep.subr.bf16.mxu1 %v9382_v29  ;;  %v9387_v32 = vld [vmem:[#allocation8 + $0x88] sm:$0xff]  }
 0x2cf   :  { %v10735_v38 = vld [vmem:[#allocation2 + $0x61] sm:$0xff]  ;;  %v643_v44 = vadd.f32 %v8094_v39, %v10683_v34  ;;  %v634_v45 = vpop.f32.mrb[13].mxu0  ;;  %v11035_v47 = vld [vmem:[#allocation2 + $0x72] sm:$0xff] }
 0x2d0   :  { %14225 = vst [vmem:[#allocation51_spill] sm:$0xff] %v10735_v38  ;;  %v635_v50 = vadd.f32 %v10683_v34, %v634_v45  ;;  %v8095_v51 = vpop.f32.mrb[14].mxu0  ;;  %8137 = vmatmul.mubr.bf16.gmra.mrb[8].mxu1 %v976_v40  ;;  %14254 = vst [vmem:[#allocation79_spill] sm:$0xff] %v11035_v47 }
 0x2d1   :  { %v727_v54 = vmax.f32 %v643_v44, 0.0  ;;  %v10758_v55 = vadd.f32 %v8095_v51, %v10683_v34  ;;  %v637_v56 = vpop.f32.mrb[15].mxu0  ;;  %8169 = vmatpush3.bf16.msra.mxu1 %v9382_v29 }
 0x2d2   :  { %v10760_v57 = vmax.f32 %v635_v50, 0.0  ;;  %v638_v58 = vadd.f32 %v10683_v34, %v637_v56  ;;  %8170 = vmatprep.subr.bf16.mxu1 %v9383_v41  ;;  %v10764_v61 = vld [vmem:[#allocation2 + $0xd0] sm:$0xff]  ;;  %v938_v50 = vld [vmem:[#allocation2 + $0x141] sm:$0xff] }
 0x2d3   :  { %14228 = vst [vmem:[#allocation54_spill] sm:$0xff] %v10758_v55  ;;  %840 = vst [vmem:[#allocation2 + $0x111] sm:$0xff] %v727_v54  ;;  %v13961_v60 = vmax.f32 %v10758_v55, 0.0  ;;  %v10772_v10 = vld [vmem:[#allocation2 + $0xd2] sm:$0xff]  ;;  %v10806_v56 = vld [vmem:[#allocation8 + $0x80] sm:$0xff]  }
 0x2d4   :  { %14229 = vst [vmem:[#allocation55_spill] sm:$0xff] %v10760_v57  ;;  %838 = vst [vmem:[#allocation2 + $0xf1] sm:$0xff] %v10760_v57  ;;  %v10767_v62 = vmax.f32 %v638_v58, 0.0  ;;  %v977_v0 = vpack.c.bf16 %v10760_v57, %v724_v31  ;;  %v10770_v1 = vld [vmem:[#allocation2 + $0xe0] sm:$0xff]  ;;  %v10788_v25 = vld [vmem:[#allocation2 + $0xb0] sm:$0xff]  ;;  %v14245_v57 = vmov 0.0  }
 0x2d5   :  { %v10774_v11 = vld [vmem:[#allocation2 + $0xe2] sm:$0xff]  ;;  %841 = vst [vmem:[#allocation2 + $0x121] sm:$0xff] %v13961_v60  ;;  %8171 = vmatpush3.bf16.msra.mxu1 %v9383_v41  ;;  %v10790_v26 = vld [vmem:[#allocation2 + $0xb2] sm:$0xff] }
 0x2d6   :  { %14230 = vst [vmem:[#allocation56_spill] sm:$0xff] %v10767_v62  ;;  %v10778_v12 = vld [vmem:[#allocation2 + $0xc0] sm:$0xff]  ;;  %839 = vst [vmem:[#allocation2 + $0x101] sm:$0xff] %v10767_v62  ;;  %v8098_v21 = vpop.f32.mrb[16].mxu0  ;;  %8140 = vmatprep.mubr.bf16.mxu1 %v977_v0  ;;  %v978_v23 = vpack.c.bf16 %v727_v54, %v10767_v62  ;;  %8172 = vmatprep.subr.bf16.mxu1 %v9384_v59  ;;  %v906_v62 = vpack.c.bf16 %v10711_v13, %v14245_v57 }
 0x2d7   :  { %v10780_v15 = vld [vmem:[#allocation2 + $0xc2] sm:$0xff]  ;;  %v659_v27 = vadd.f32 %v8098_v21, %v10683_v34  ;;  %v650_v28 = vpop.f32.mrb[17].mxu0 }
 0x2d8   :  { %v651_v39 = vadd.f32 %v10683_v34, %v650_v28  ;;  %v8099_v40 = vpop.f32.mrb[18].mxu0  ;;  %8141 = vmatmul.mubr.bf16.gmra.mrb[12].mxu1 %v978_v23 }
 0x2d9   :  { %v10800_v41 = vmax.f32 %v659_v27, 0.0  ;;  %v662_v44 = vadd.f32 %v8099_v40, %v10683_v34  ;;  %v653_v45 = vpop.f32.mrb[19].mxu0  ;;  %8173 = vmatpush3.bf16.msra.mxu1 %v9384_v59 }
 0x2da   :  { %v10803_v51 = vmax.f32 %v651_v39, 0.0  ;;  %v654_v54 = vadd.f32 %v10683_v34, %v653_v45  ;;  %8174 = vmatprep.subr.bf16.mxu1 %v9385_v24 }
 0x2db   :  { %14231 = vst [vmem:[#allocation57_spill] sm:$0xff] %v10800_v41  ;;  %844 = vst [vmem:[#allocation2 + $0x171] sm:$0xff] %v10800_v41  ;;  %v10809_v58 = vmax.f32 %v662_v44, 0.0  ;;  %v10826_v40 = vld [vmem:[#allocation2 + $0xf0] sm:$0xff] }
 0x2dc   :  { %14232 = vst [vmem:[#allocation58_spill] sm:$0xff] %v10803_v51  ;;  %842 = vst [vmem:[#allocation2 + $0x151] sm:$0xff] %v10803_v51  ;;  %v10812_v0 = vmax.f32 %v654_v54, 0.0  ;;  %v979_v21 = vpack.c.bf16 %v10803_v51, %v938_v50  ;;  %v10828_v44 = vld [vmem:[#allocation2 + $0xf2] sm:$0xff] }
 0x2dd   :  { %14233 = vst [vmem:[#allocation59_spill] sm:$0xff] %v10809_v58  ;;  %845 = vst [vmem:[#allocation2 + $0x181] sm:$0xff] %v10809_v58  ;;  %8175 = vmatpush3.bf16.msra.mxu1 %v9385_v24  ;;  %v10816_v59 = vld [vmem:[#allocation2 + $0x100] sm:$0xff] }
 0x2de   :  { %14234 = vst [vmem:[#allocation60_spill] sm:$0xff] %v10812_v0  ;;  %v10818_v23 = vld [vmem:[#allocation2 + $0x102] sm:$0xff]  ;;  %843 = vst [vmem:[#allocation2 + $0x161] sm:$0xff] %v10812_v0  ;;  %v8102_v28 = vpop.f32.mrb[20].mxu0  ;;  %8144 = vmatprep.mubr.bf16.mxu1 %v979_v21  ;;  %v980_v39 = vpack.c.bf16 %v10800_v41, %v10812_v0  ;;  %8208 = vmatprep.subr.bf16.mxu1 %v10806_v56 }
 0x2df   :  { %v675_v24 = vadd.f32 %v8102_v28, %v10683_v34  ;;  %v666_v45 = vpop.f32.mrb[21].mxu0 }
 0x2e0   :  { %v667_v53 = vadd.f32 %v10683_v34, %v666_v45  ;;  %v8103_v52 = vpop.f32.mrb[22].mxu0  ;;  %8145 = vmatmul.mubr.bf16.gmra.mrb[16].mxu1 %v980_v39 }
 0x2e1   :  { %v735_v22 = vmax.f32 %v675_v24, 0.0  ;;  %v678_v20 = vadd.f32 %v8103_v52, %v10683_v34  ;;  %v669_v33 = vpop.f32.mrb[23].mxu0 }
 0x2e2   :  { %v10839_v49 = vmax.f32 %v667_v53, 0.0  ;;  %v670_v28 = vadd.f32 %v10683_v34, %v669_v33  ;;  %v10842_v19 = vld [vmem:[#allocation2 + $0x170] sm:$0xff] }
 0x2e3   :  { %848 = vst [vmem:[#allocation2 + $0x1b1] sm:$0xff] %v735_v22  ;;  %v736_v9 = vmax.f32 %v678_v20, 0.0  ;;  %v10851_v24 = vld [vmem:[#allocation2 + $0x172] sm:$0xff] }
 0x2e4   :  { %14235 = vst [vmem:[#allocation61_spill] sm:$0xff] %v10839_v49  ;;  %846 = vst [vmem:[#allocation2 + $0x191] sm:$0xff] %v10839_v49  ;;  %v10845_v27 = vmax.f32 %v670_v28, 0.0  ;;  %v981_v45 = vpack.c.bf16 %v10839_v49, %v10809_v58  ;;  %v10849_v39 = vld [vmem:[#allocation2 + $0x180] sm:$0xff]  ;;  %v10855_v53 = vld [vmem:[#allocation2 + $0x150] sm:$0xff] }
 0x2e5   :  { %v10853_v52 = vld [vmem:[#allocation2 + $0x182] sm:$0xff]  ;;  %849 = vst [vmem:[#allocation2 + $0x1c1] sm:$0xff] %v736_v9  ;;  %v10863_v21 = vpack.c.bf16 %v736_v9, %v735_v22  ;;  %v10869_v50 = vld [vmem:[#allocation2 + $0x152] sm:$0xff]  ;;  %v914_v48 = vpack.c.bf16 %v10855_v53, %v14245_v57 }
 0x2e6   :  { %14236 = vst [vmem:[#allocation62_spill] sm:$0xff] %v10845_v27  ;;  %v10857_v33 = vld [vmem:[#allocation2 + $0x160] sm:$0xff]  ;;  %847 = vst [vmem:[#allocation2 + $0x1a1] sm:$0xff] %v10845_v27  ;;  %v8106_v60 = vpop.f32.mrb[24].mxu0  ;;  %8148 = vmatprep.mubr.bf16.mxu1 %v981_v45  ;;  %v982_v31 = vpack.c.bf16 %v735_v22, %v10845_v27 }
 0x2e7   :  { %v10859_v20 = vld [vmem:[#allocation2 + $0x162] sm:$0xff]  ;;  %14237 = vst [vmem:[#allocation63_spill] sm:$0xff] %v10863_v21  ;;  %v691_v29 = vadd.f32 %v8106_v60, %v10683_v34  ;;  %v682_v46 = vpop.f32.mrb[25].mxu0 }
 0x2e8   :  { %v683_v28 = vadd.f32 %v10683_v34, %v682_v46  ;;  %v8107_v7 = vpop.f32.mrb[26].mxu0  ;;  %8149 = vmatmul.mubr.bf16.gmra.mrb[20].mxu1 %v982_v31 }
 0x2e9   :  { %v10879_v45 = vmax.f32 %v691_v29, 0.0  ;;  %v694_v22 = vadd.f32 %v8107_v7, %v10683_v34  ;;  %v685_v17 = vpop.f32.mrb[27].mxu0 }
 0x2ea   :  { %v10882_v16 = vmax.f32 %v683_v28, 0.0  ;;  %v686_v60 = vadd.f32 %v10683_v34, %v685_v17 }
 0x2eb   :  { %14238 = vst [vmem:[#allocation64_spill] sm:$0xff] %v10879_v45  ;;  %852 = vst [vmem:[#allocation2 + $0x211] sm:$0xff] %v10879_v45  ;;  %v10886_v9 = vmax.f32 %v694_v22, 0.0  ;;  %v10893_v29 = vld [vmem:[#allocation2 + $0x190] sm:$0xff] }
 0x2ec   :  { %14239 = vst [vmem:[#allocation65_spill] sm:$0xff] %v10882_v16  ;;  %850 = vst [vmem:[#allocation2 + $0x1f1] sm:$0xff] %v10882_v16  ;;  %v10889_v54 = vmax.f32 %v686_v60, 0.0  ;;  %v983_v46 = vpack.c.bf16 %v10882_v16, %v946_v30  ;;  %v10904_v60 = vld [vmem:[#allocation2 + $0x192] sm:$0xff] }
 0x2ed   :  { %14240 = vst [vmem:[#allocation66_spill] sm:$0xff] %v10886_v9  ;;  %853 = vst [vmem:[#allocation2 + $0x221] sm:$0xff] %v10886_v9  ;;  %v10895_v7 = vld [vmem:[#allocation2 + $0x1a0] sm:$0xff] }
 0x2ee   :  { %14241 = vst [vmem:[#allocation67_spill] sm:$0xff] %v10889_v54  ;;  %v10897_v31 = vld [vmem:[#allocation2 + $0x1a2] sm:$0xff]  ;;  %851 = vst [vmem:[#allocation2 + $0x201] sm:$0xff] %v10889_v54  ;;  %v8110_v28 = vpop.f32.mrb[28].mxu0  ;;  %8152 = vmatprep.mubr.bf16.mxu1 %v983_v46  ;;  %v984_v22 = vpack.c.bf16 %v10879_v45, %v10889_v54  ;;  %v10965_v54 = vpack.c.bf16 %v10693_v63, %v10701_v5 }
 0x2ef   :  { %v707_v21 = vadd.f32 %v8110_v28, %v10683_v34  ;;  %v698_v49 = vpop.f32.mrb[29].mxu0 }
 0x2f0   :  { %v699_v41 = vadd.f32 %v10683_v34, %v698_v49  ;;  %v8111_v46 = vpop.f32.mrb[30].mxu0  ;;  %8153 = vmatmul.mubr.bf16.gmra.mrb[24].mxu1 %v984_v22  ;;  %14246 = vst [vmem:[#allocation71_spill] sm:$0xff] %v10965_v54 }
 0x2f1   :  { %v743_v58 = vmax.f32 %v707_v21, 0.0  ;;  %v710_v45 = vadd.f32 %v8111_v46, %v10683_v34  ;;  %v701_v51 = vpop.f32.mrb[31].mxu0 }
 0x2f2   :  { %v10915_v0 = vmax.f32 %v699_v41, 0.0  ;;  %v702_v30 = vadd.f32 %v10683_v34, %v701_v51  ;;  %v10918_v55 = vld [vmem:[#allocation2 + $0x210] sm:$0xff] }
 0x2f3   :  { %856 = vst [vmem:[#allocation2 + $0x251] sm:$0xff] %v743_v58  ;;  %v744_v28 = vmax.f32 %v710_v45, 0.0  ;;  %v10927_v21 = vld [vmem:[#allocation2 + $0x212] sm:$0xff] }
 0x2f4   :  { %14242 = vst [vmem:[#allocation68_spill] sm:$0xff] %v10915_v0  ;;  %854 = vst [vmem:[#allocation2 + $0x231] sm:$0xff] %v10915_v0  ;;  %v10921_v27 = vmax.f32 %v702_v30, 0.0  ;;  %v985_v49 = vpack.c.bf16 %v10915_v0, %v10886_v9  ;;  %v10925_v22 = vld [vmem:[#allocation2 + $0x220] sm:$0xff]  ;;  %v10931_v41 = vld [vmem:[#allocation2 + $0x1f0] sm:$0xff] }
 0x2f5   :  { %v10929_v46 = vld [vmem:[#allocation2 + $0x222] sm:$0xff]  ;;  %857 = vst [vmem:[#allocation2 + $0x261] sm:$0xff] %v744_v28  ;;  %v10939_v30 = vpack.c.bf16 %v744_v28, %v743_v58  ;;  %v10945_v16 = vld [vmem:[#allocation2 + $0x1f2] sm:$0xff]  ;;  %v9389_v28 = vld [vmem:[#allocation8 + $0x98] sm:$0xff]  }
 0x2f6   :  { %14243 = vst [vmem:[#allocation69_spill] sm:$0xff] %v10921_v27  ;;  %v10933_v34 = vld [vmem:[#allocation2 + $0x200] sm:$0xff]  ;;  %855 = vst [vmem:[#allocation2 + $0x241] sm:$0xff] %v10921_v27  ;;  %8156 = vmatprep.mubr.bf16.mxu1 %v985_v49  ;;  %v986_v9 = vpack.c.bf16 %v743_v58, %v10921_v27  ;;  %v9388_v45 = vld [vmem:[#allocation8 + $0x90] sm:$0xff]  }
 0x2f7   :  { %v10935_v51 = vld [vmem:[#allocation2 + $0x202] sm:$0xff]  ;;  %14244 = vst [vmem:[#allocation70_spill] sm:$0xff] %v10939_v30  ;;  %v10975_v0 = vld [vmem:[#allocation2 + $0x70] sm:$0xff] }
 0x2f8   :  { %8157 = vmatmul.mubr.bf16.gmra.mrb[28].mxu1 %v986_v9  ;;  %v10979_v27 = vpack.c.bf16 %v10975_v0, %v10731_v36  ;;  %v910_v9 = vpack.c.bf16 %v10788_v25, %v14245_v57 }
 0x2f9   :  { %8176 = vmatprep.mubr.bf16.mxu1 %v906_v62  ;;  %v908_v62 = vpack.c.bf16 %v10739_v42, %v10695_v2 }
 0x2fa   :  { %14247 = vst [vmem:[#allocation72_spill] sm:$0xff] %v10979_v27 }
 0x2fb   :  { %v10955_v17 = vld [vmem:[#allocation2 + $0x230] sm:$0xff] }
 0x2fc   :  { %v10959_v58 = vld [vmem:[#allocation2 + $0x232] sm:$0xff] }
 0x2fd   :  { %v10957_v49 = vld [vmem:[#allocation2 + $0x240] sm:$0xff] }
 0x2fe   :  { %v10961_v30 = vld [vmem:[#allocation2 + $0x242] sm:$0xff] }
 0x300   :  { %8177 = vmatmul.mubr.bf16.vlgmr.msra.gmra.mrb[0].mxu1 %v10965_v54  ;;  %v912_v54 = vpack.c.bf16 %v10826_v40, %v10770_v1 }
 0x301   :  { %8209 = vmatpush3.bf16.msra.mxu1 %v10806_v56  ;;  %8180 = vmatprep.mubr.bf16.mxu1 %v908_v62  ;;  %v9390_v56 = vld [vmem:[#allocation8 + $0xa0] sm:$0xff]   ;;  %v10986_v62 = vpack.c.bf16 %v10764_v61, %v10778_v12 }
 0x302   :  { %8210 = vmatprep.subr.bf16.mxu1 %v9387_v32 }
 0x303   :  { %14248 = vst [vmem:[#allocation73_spill] sm:$0xff] %v10986_v62 }
 0x305   :  { %8211 = vmatpush3.bf16.msra.mxu1 %v9387_v32  ;;  %v9391_v32 = vld [vmem:[#allocation8 + $0xa8] sm:$0xff]  }
 0x306   :  { %8212 = vmatprep.subr.bf16.mxu1 %v9388_v45 }
 0x308   :  { %8181 = vmatmul.mubr.bf16.gmra.mrb[4].mxu1 %v10979_v27  ;;  %v9392_v27 = vld [vmem:[#allocation8 + $0xb0] sm:$0xff]  }
 0x309   :  { %8184 = vmatprep.mubr.bf16.mxu1 %v910_v9  ;;  %8213 = vmatpush3.bf16.msra.mxu1 %v9388_v45  ;;  %v10991_v9 = vld [vmem:[#allocation2 + $0x110] sm:$0xff] }
 0x30a   :  { %8214 = vmatprep.subr.bf16.mxu1 %v9389_v28  ;;  %v10995_v45 = vpack.c.bf16 %v10991_v9, %v10816_v59 }
 0x30c   :  { %14249 = vst [vmem:[#allocation74_spill] sm:$0xff] %v10995_v45 }
 0x30d   :  { %8215 = vmatpush3.bf16.msra.mxu1 %v9389_v28  ;;  %v9393_v28 = vld [vmem:[#allocation8 + $0xb8] sm:$0xff]  }
 0x30e   :  { %8216 = vmatprep.subr.bf16.mxu1 %v9390_v56 }
 0x310   :  { %8185 = vmatmul.mubr.bf16.gmra.mrb[8].mxu1 %v10986_v62  ;;  %v11007_v62 = vld [vmem:[#allocation2 + $0x1b0] sm:$0xff] }
 0x311   :  { %8188 = vmatprep.mubr.bf16.mxu1 %v912_v54  ;;  %8217 = vmatpush3.bf16.msra.mxu1 %v9390_v56  ;;  %v9394_v54 = vld [vmem:[#allocation8 + $0xc0] sm:$0xff]   ;;  %v11002_v56 = vpack.c.bf16 %v10842_v19, %v10857_v33 }
 0x312   :  { %8218 = vmatprep.subr.bf16.mxu1 %v9391_v32 }
 0x313   :  { %14250 = vst [vmem:[#allocation75_spill] sm:$0xff] %v11002_v56 }
 0x315   :  { %8219 = vmatpush3.bf16.msra.mxu1 %v9391_v32  ;;  %v916_v32 = vpack.c.bf16 %v10893_v29, %v10849_v39 }
 0x316   :  { %8220 = vmatprep.subr.bf16.mxu1 %v9392_v27 }
 0x318   :  { %8189 = vmatmul.mubr.bf16.gmra.mrb[12].mxu1 %v10995_v45  ;;  %v11023_v45 = vld [vmem:[#allocation2 + $0x250] sm:$0xff] }
 0x319   :  { %8192 = vmatprep.mubr.bf16.mxu1 %v914_v48  ;;  %8221 = vmatpush3.bf16.msra.mxu1 %v9392_v27  ;;  %v11011_v48 = vpack.c.bf16 %v11007_v62, %v10895_v7  ;;  %v918_v27 = vpack.c.bf16 %v10931_v41, %v14245_v57  ;;  %v11027_v38 = vpack.c.bf16 %v11023_v45, %v10957_v49 }
 0x31a   :  { %8222 = vmatprep.subr.bf16.mxu1 %v9393_v28 }
 0x31b   :  { %14251 = vst [vmem:[#allocation76_spill] sm:$0xff] %v11011_v48  ;;  %14253 = vst [vmem:[#allocation78_spill] sm:$0xff] %v11027_v38 }
 0x31d   :  { %8223 = vmatpush3.bf16.msra.mxu1 %v9393_v28  ;;  %v11018_v28 = vpack.c.bf16 %v10918_v55, %v10933_v34 }
 0x31e   :  { %8256 = vmatprep.subr.bf16.mxu1 %v9394_v54 }
 0x31f   :  { %14252 = vst [vmem:[#allocation77_spill] sm:$0xff] %v11018_v28 }
 0x320   :  { %8193 = vmatmul.mubr.bf16.gmra.mrb[16].mxu1 %v11002_v56  ;;  %v920_v56 = vpack.c.bf16 %v10955_v17, %v10925_v22 }
 0x321   :  { %8196 = vmatprep.mubr.bf16.mxu1 %v916_v32  ;;  %v1405_v32 = vld [vmem:[#allocation2 + $0x2] sm:$0xff] }
 0x322   :  { %v1454_v57 = vpack.c.bf16 %v10713_v14, %v1405_v32  ;;  %v1457_v32 = vpack.c.bf16 %v11035_v47, %v10733_v37  ;;  %v9400_v47 = vld [vmem:[#allocation8 + $0xf0] sm:$0xff]  }
 0x328   :  { %8197 = vmatmul.mubr.bf16.gmra.mrb[20].mxu1 %v11011_v48  ;;  %v9395_v48 = vld [vmem:[#allocation8 + $0xc8] sm:$0xff]  }
 0x329   :  { %8200 = vmatprep.mubr.bf16.mxu1 %v918_v27  ;;  %v1455_v27 = vpack.c.bf16 %v10697_v3, %v10703_v6 }
 0x330   :  { %8201 = vmatmul.mubr.bf16.gmra.mrb[24].mxu1 %v11018_v28  ;;  %v1456_v28 = vpack.c.bf16 %v10741_v43, %v10699_v4 }
 0x331   :  { %8204 = vmatprep.mubr.bf16.mxu1 %v920_v56  ;;  %v9396_v56 = vld [vmem:[#allocation8 + $0xd0] sm:$0xff]  }
 0x338   :  { %8205 = vmatmul.mubr.bf16.gmra.mrb[28].mxu1 %v11027_v38  ;;  %v1458_v38 = vpack.c.bf16 %v10790_v26, %v1413_v35  ;;  %v1421_v35 = vld [vmem:[#allocation2 + $0x142] sm:$0xff] }
 0x339   :  { %8224 = vmatprep.mubr.bf16.mxu1 %v1454_v57  ;;  %v9397_v57 = vld [vmem:[#allocation8 + $0xd8] sm:$0xff]  }
 0x340   :  { %8225 = vmatmul.mubr.bf16.vlgmr.msra.gmra.mrb[0].mxu1 %v1455_v27  ;;  %v9398_v27 = vld [vmem:[#allocation8 + $0xe0] sm:$0xff]  }
 0x341   :  { %8257 = vmatpush3.bf16.msra.mxu1 %v9394_v54  ;;  %8228 = vmatprep.mubr.bf16.mxu1 %v1456_v28  ;;  %v1459_v54 = vpack.c.bf16 %v10772_v10, %v10780_v15  ;;  %v9399_v28 = vld [vmem:[#allocation8 + $0xe8] sm:$0xff]  }
 0x342   :  { %8258 = vmatprep.subr.bf16.mxu1 %v9395_v48 }
 0x345   :  { %8259 = vmatpush3.bf16.msra.mxu1 %v9395_v48  ;;  %v1460_v48 = vpack.c.bf16 %v10828_v44, %v10774_v11 }
 0x346   :  { %8260 = vmatprep.subr.bf16.mxu1 %v9396_v56 }
 0x348   :  { %8229 = vmatmul.mubr.bf16.gmra.mrb[4].mxu1 %v1457_v32  ;;  %v11044_v32 = vld [vmem:[#allocation2 + $0x112] sm:$0xff] }
 0x349   :  { %8232 = vmatprep.mubr.bf16.mxu1 %v1458_v38  ;;  %8261 = vmatpush3.bf16.msra.mxu1 %v9396_v56  ;;  %14255 = vst [vmem:[#allocation80_spill] sm:$0xff] %v11044_v32  ;;  %v1461_v38 = vpack.c.bf16 %v11044_v32, %v10818_v23  ;;  %v9401_v56 = vld [vmem:[#allocation8 + $0xf8] sm:$0xff]   ;;  %v11053_v32 = vld [vmem:[#allocation2 + $0x1b2] sm:$0xff] }
 0x34a   :  { %8262 = vmatprep.subr.bf16.mxu1 %v9397_v57 }
 0x34d   :  { %8263 = vmatpush3.bf16.msra.mxu1 %v9397_v57  ;;  %v1462_v57 = vpack.c.bf16 %v10869_v50, %v1421_v35  ;;  %v1465_v35 = vpack.c.bf16 %v11053_v32, %v10897_v31 }
 0x34e   :  { %8264 = vmatprep.subr.bf16.mxu1 %v9398_v27 }
 0x350   :  { %8233 = vmatmul.mubr.bf16.gmra.mrb[8].mxu1 %v1459_v54  ;;  %v9402_v54 = vld [vmem:[#allocation8 + $0x100] sm:$0xff]  }
 0x351   :  { %8236 = vmatprep.mubr.bf16.mxu1 %v1460_v48  ;;  %8265 = vmatpush3.bf16.msra.mxu1 %v9398_v27  ;;  %v1463_v27 = vpack.c.bf16 %v10851_v24, %v10859_v20  ;;  %v1429_v48 = vld [vmem:[#allocation2 + $0x1e2] sm:$0xff] }
 0x352   :  { %8266 = vmatprep.subr.bf16.mxu1 %v9399_v28 }
 0x355   :  { %8267 = vmatpush3.bf16.msra.mxu1 %v9399_v28  ;;  %v1464_v28 = vpack.c.bf16 %v10904_v60, %v10853_v52 }
 0x356   :  { %8268 = vmatprep.subr.bf16.mxu1 %v9400_v47 }
 0x358   :  { %8237 = vmatmul.mubr.bf16.gmra.mrb[12].mxu1 %v1461_v38  ;;  %v1467_v38 = vpack.c.bf16 %v10927_v21, %v10935_v51 }
 0x359   :  { %8240 = vmatprep.mubr.bf16.mxu1 %v1462_v57  ;;  %8269 = vmatpush3.bf16.msra.mxu1 %v9400_v47  ;;  %v1466_v47 = vpack.c.bf16 %v10945_v16, %v1429_v48  ;;  %v11062_v57 = vld [vmem:[#allocation2 + $0x252] sm:$0xff]  ;;  %v9403_v48 = vld [vmem:[#allocation8 + $0x108] sm:$0xff]  }
 0x35a   :  { %8270 = vmatprep.subr.bf16.mxu1 %v9401_v56 }
 0x35d   :  { %8271 = vmatpush3.bf16.msra.mxu1 %v9401_v56  ;;  %v1468_v56 = vpack.c.bf16 %v10959_v58, %v10929_v46 }
 0x35e   :  { %8304 = vmatprep.subr.bf16.mxu1 %v9402_v54 }
 0x360   :  { %8241 = vmatmul.mubr.bf16.gmra.mrb[16].mxu1 %v1463_v27  ;;  %v1469_v27 = vpack.c.bf16 %v11062_v57, %v10961_v30 }
 0x361   :  { %8244 = vmatprep.mubr.bf16.mxu1 %v1464_v28  ;;  %v14256_v28 = vpack.c.bf16 %v10701_v5, %v10711_v13  ;;  %v9405_v5 = vld [vmem:[#allocation8 + $0x118] sm:$0xff]   ;;  %v9407_v13 = vld [vmem:[#allocation8 + $0x128] sm:$0xff]  }
 0x368   :  { %8245 = vmatmul.mubr.bf16.gmra.mrb[20].mxu1 %v1465_v35  ;;  %v14257_v35 = vpack.c.bf16 %v10695_v2, %v10693_v63  ;;  %v14259_v63 = vpack.c.bf16 %v10778_v12, %v10788_v25  ;;  %v9406_v2 = vld [vmem:[#allocation8 + $0x120] sm:$0xff]   ;;  %v9409_v25 = vld [vmem:[#allocation8 + $0x138] sm:$0xff]  }
 0x369   :  { %8248 = vmatprep.mubr.bf16.mxu1 %v1466_v47  ;;  %v14258_v47 = vpack.c.bf16 %v10731_v36, %v10739_v42  ;;  %v14260_v36 = vpack.c.bf16 %v10770_v1, %v10764_v61  ;;  %v14261_v42 = vpack.c.bf16 %v10816_v59, %v10826_v40  ;;  %v14262_v61 = vpack.c.bf16 %v10857_v33, %v10855_v53  ;;  %v9410_v1 = vld [vmem:[#allocation8 + $0x140] sm:$0xff]  }
 0x36a   :  { %v14263_v59 = vpack.c.bf16 %v10849_v39, %v10842_v19  ;;  %v14264_v40 = vpack.c.bf16 %v10895_v7, %v10893_v29  ;;  %v14265_v53 = vpack.c.bf16 %v10933_v34, %v10931_v41  ;;  %v14266_v33 = vpack.c.bf16 %v10925_v22, %v10918_v55  ;;  %v11114_v39 = vld [vmem:[#allocation2 + $0x260] sm:$0xff]  ;;  %v2017_v7 = vld [vmem:[#allocation2 + $0x11] sm:$0xff] }
 0x36b   :  { %v14267_v19 = vpack.c.bf16 %v10957_v49, %v10955_v17  ;;  %v1775_v29 = vpack.c.bf16 %v11114_v39, %v11023_v45  ;;  %v14268_v41 = vld [vmem:[#allocation52_spill] sm:$0xff]  ;;  %v14269_v55 = vld [vmem:[#allocation50_spill] sm:$0xff]  ;;  %v14270_v22 = vld [vmem:[#allocation51_spill] sm:$0xff] }
 0x36c   :  { %v2067_v34 = vpack.c.bf16 %v14268_v41, %v10718_v18  ;;  %v9412_v17 = vld [vmem:[#allocation8 + $0x150] sm:$0xff]   ;;  %v11123_v49 = vld [vmem:[#allocation2 + $0x81] sm:$0xff] }
 0x36d   :  { %v2025_v45 = vld [vmem:[#allocation2 + $0xb1] sm:$0xff] }
 0x370   :  { %8249 = vmatmul.mubr.bf16.gmra.mrb[24].mxu1 %v1467_v38  ;;  %v9404_v38 = vld [vmem:[#allocation8 + $0x110] sm:$0xff]  }
 0x371   :  { %8252 = vmatprep.mubr.bf16.mxu1 %v1468_v56  ;;  %v11075_v56 = vld [vmem:[#allocation2 + $0x80] sm:$0xff] }
 0x378   :  { %8253 = vmatmul.mubr.bf16.gmra.mrb[28].mxu1 %v1469_v27  ;;  %v1763_v27 = vpack.c.bf16 %v11075_v56, %v10975_v0  ;;  %v9408_v0 = vld [vmem:[#allocation8 + $0x130] sm:$0xff]  }
 0x379   :  { %8272 = vmatprep.mubr.bf16.mxu1 %v14256_v28 }
 0x380   :  { %8273 = vmatmul.mubr.bf16.vlgmr.msra.gmra.mrb[0].mxu1 %v14257_v35  ;;  %v2068_v35 = vpack.c.bf16 %v14270_v22, %v14269_v55 }
 0x381   :  { %8305 = vmatpush3.bf16.msra.mxu1 %v9402_v54  ;;  %8276 = vmatprep.mubr.bf16.mxu1 %v14258_v47  ;;  %v11088_v54 = vld [vmem:[#allocation2 + $0x120] sm:$0xff]  ;;  %v14271_v47 = vld [vmem:[#allocation53_spill] sm:$0xff] }
 0x382   :  { %8306 = vmatprep.subr.bf16.mxu1 %v9403_v48  ;;  %v1767_v12 = vpack.c.bf16 %v11088_v54, %v10991_v9  ;;  %v11101_v9 = vld [vmem:[#allocation2 + $0x1c0] sm:$0xff] }
 0x383   :  { %v1771_v28 = vpack.c.bf16 %v11101_v9, %v11007_v62  ;;  %v2066_v62 = vpack.c.bf16 %v10707_v8, %v2017_v7 }
 0x385   :  { %8307 = vmatpush3.bf16.msra.mxu1 %v9403_v48  ;;  %v9411_v48 = vld [vmem:[#allocation8 + $0x148] sm:$0xff]  }
 0x386   :  { %8308 = vmatprep.subr.bf16.mxu1 %v9404_v38 }
 0x388   :  { %8277 = vmatmul.mubr.bf16.gmra.mrb[4].mxu1 %v1763_v27  ;;  %v9413_v27 = vld [vmem:[#allocation8 + $0x158] sm:$0xff]  }
 0x389   :  { %8280 = vmatprep.mubr.bf16.mxu1 %v14259_v63  ;;  %8309 = vmatpush3.bf16.msra.mxu1 %v9404_v38  ;;  %v2069_v38 = vpack.c.bf16 %v11123_v49, %v14271_v47 }
 0x38a   :  { %8310 = vmatprep.subr.bf16.mxu1 %v9405_v5 }
 0x38d   :  { %8311 = vmatpush3.bf16.msra.mxu1 %v9405_v5  ;;  %v14272_v5 = vld [vmem:[#allocation49_spill] sm:$0xff] }
 0x38e   :  { %8312 = vmatprep.subr.bf16.mxu1 %v9406_v2  ;;  %v2070_v63 = vpack.c.bf16 %v14272_v5, %v2025_v45  ;;  %v14285_v45 = vld [vmem:[#allocation61_spill] sm:$0xff]  ;;  %v14288_v5 = vld [vmem:[#allocation67_spill] sm:$0xff] }
 0x390   :  { %8281 = vmatmul.mubr.bf16.gmra.mrb[8].mxu1 %v14260_v36  ;;  %v11130_v36 = vld [vmem:[#allocation2 + $0xd1] sm:$0xff] }
 0x391   :  { %8284 = vmatprep.mubr.bf16.mxu1 %v14261_v42  ;;  %8313 = vmatpush3.bf16.msra.mxu1 %v9406_v2  ;;  %v9414_v2 = vld [vmem:[#allocation8 + $0x160] sm:$0xff]  }
 0x392   :  { %8314 = vmatprep.subr.bf16.mxu1 %v9407_v13 }
 0x395   :  { %8315 = vmatpush3.bf16.msra.mxu1 %v9407_v13  ;;  %v11128_v13 = vld [vmem:[#allocation2 + $0xe1] sm:$0xff] }
 0x396   :  { %8316 = vmatprep.subr.bf16.mxu1 %v9408_v0  ;;  %v2071_v42 = vpack.c.bf16 %v11128_v13, %v11130_v36 }
 0x398   :  { %8285 = vmatmul.mubr.bf16.gmra.mrb[12].mxu1 %v1767_v12  ;;  %v14273_v12 = vld [vmem:[#allocation56_spill] sm:$0xff] }
 0x399   :  { %8288 = vmatprep.mubr.bf16.mxu1 %v14262_v61  ;;  %8317 = vmatpush3.bf16.msra.mxu1 %v9408_v0  ;;  %v9415_v0 = vld [vmem:[#allocation8 + $0x168] sm:$0xff]  }
 0x39a   :  { %8318 = vmatprep.subr.bf16.mxu1 %v9409_v25 }
 0x39d   :  { %8319 = vmatpush3.bf16.msra.mxu1 %v9409_v25  ;;  %v14274_v25 = vld [vmem:[#allocation55_spill] sm:$0xff] }
 0x39e   :  { %8352 = vmatprep.subr.bf16.mxu1 %v9410_v1  ;;  %v14275_v61 = vpack.c.bf16 %v14273_v12, %v14274_v25  ;;  %v14294_v25 = vld [vmem:[#allocation69_spill] sm:$0xff] }
 0x3a0   :  { %8289 = vmatmul.mubr.bf16.gmra.mrb[16].mxu1 %v14263_v59  ;;  %v11137_v59 = vld [vmem:[#allocation2 + $0x111] sm:$0xff] }
 0x3a1   :  { %8292 = vmatprep.mubr.bf16.mxu1 %v14264_v40  ;;  %v14276_v40 = vld [vmem:[#allocation54_spill] sm:$0xff] }
 0x3a8   :  { %8293 = vmatmul.mubr.bf16.gmra.mrb[20].mxu1 %v1771_v28  ;;  %v14277_v28 = vmax.f32 %v14276_v40, 0.0  ;;  %v14297_v40 = vld [vmem:[#allocation70_spill] sm:$0xff] }
 0x3a9   :  { %8296 = vmatprep.mubr.bf16.mxu1 %v14265_v53 }
 0x3aa   :  { %v2073_v53 = vpack.c.bf16 %v14277_v28, %v11137_v59  ;;  %v14298_v28 = vpack.c.bf16 %v10703_v6, %v10713_v14  ;;  %v9421_v6 = vld [vmem:[#allocation8 + $0x198] sm:$0xff]   ;;  %v9423_v14 = vld [vmem:[#allocation8 + $0x1a8] sm:$0xff]  }
 0x3b0   :  { %8297 = vmatmul.mubr.bf16.gmra.mrb[24].mxu1 %v14266_v33  ;;  %v9417_v33 = vld [vmem:[#allocation8 + $0x178] sm:$0xff]  }
 0x3b1   :  { %8300 = vmatprep.mubr.bf16.mxu1 %v14267_v19  ;;  %v14278_v19 = vld [vmem:[#allocation60_spill] sm:$0xff] }
 0x3b8   :  { %8301 = vmatmul.mubr.bf16.gmra.mrb[28].mxu1 %v1775_v29  ;;  %v14279_v29 = vld [vmem:[#allocation58_spill] sm:$0xff] }
 0x3b9   :  { %8320 = vmatprep.mubr.bf16.mxu1 %v2066_v62  ;;  %v14280_v7 = vpack.c.bf16 %v14278_v19, %v14279_v29  ;;  %v9418_v62 = vld [vmem:[#allocation8 + $0x180] sm:$0xff]   ;;  %v14300_v19 = vpack.c.bf16 %v10733_v37, %v10741_v43  ;;  %v9420_v29 = vld [vmem:[#allocation8 + $0x190] sm:$0xff]   ;;  %v14303_v37 = vpack.c.bf16 %v10774_v11, %v10772_v10  ;;  %v14304_v43 = vpack.c.bf16 %v10818_v23, %v10828_v44 }
 0x3ba   :  { %v14306_v10 = vpack.c.bf16 %v10859_v20, %v10869_v50  ;;  %v9426_v11 = vld [vmem:[#allocation8 + $0x1c0] sm:$0xff]   ;;  %v14307_v23 = vpack.c.bf16 %v10853_v52, %v10851_v24  ;;  %v14308_v44 = vpack.c.bf16 %v10897_v31, %v10904_v60  ;;  %v14309_v50 = vpack.c.bf16 %v10935_v51, %v10945_v16  ;;  %v9427_v51 = vld [vmem:[#allocation8 + $0x1c8] sm:$0xff]  }
 0x3bb   :  { %v14310_v20 = vpack.c.bf16 %v10929_v46, %v10927_v21  ;;  %v14311_v24 = vpack.c.bf16 %v10961_v30, %v10959_v58  ;;  %v11210_v52 = vld [vmem:[#allocation2 + $0x262] sm:$0xff]  ;;  %v14313_v21 = vld [vmem:[#allocation72_spill] sm:$0xff] }
 0x3bc   :  { %v2387_v31 = vpack.c.bf16 %v11210_v52, %v11062_v57  ;;  %v14312_v60 = vld [vmem:[#allocation71_spill] sm:$0xff]  ;;  %v9428_v46 = vld [vmem:[#allocation8 + $0x1d0] sm:$0xff]  }
 0x3bd   :  { %v9530_v30 = vld [vmem:[#allocation2] sm:$0xff]  ;;  %v14314_v57 = vld [vmem:[#allocation73_spill] sm:$0xff] }
 0x3be   :  { %v2682_v58 = vpack.c.bf16 %v9530_v30, %v11075_v56  ;;  %v9432_v56 = vld [vmem:[#allocation8 + $0x1f0] sm:$0xff]  }
 0x3c0   :  { %8321 = vmatmul.mubr.bf16.vlgmr.msra.gmra.mrb[0].mxu1 %v2067_v34  ;;  %v14281_v34 = vld [vmem:[#allocation59_spill] sm:$0xff] }
 0x3c1   :  { %8353 = vmatpush3.bf16.msra.mxu1 %v9410_v1  ;;  %8324 = vmatprep.mubr.bf16.mxu1 %v2068_v35  ;;  %v9416_v1 = vld [vmem:[#allocation8 + $0x170] sm:$0xff]  }
 0x3c2   :  { %8354 = vmatprep.subr.bf16.mxu1 %v9411_v48 }
 0x3c5   :  { %8355 = vmatpush3.bf16.msra.mxu1 %v9411_v48  ;;  %v14282_v48 = vld [vmem:[#allocation57_spill] sm:$0xff] }
 0x3c6   :  { %8356 = vmatprep.subr.bf16.mxu1 %v9412_v17  ;;  %v14283_v35 = vpack.c.bf16 %v14281_v34, %v14282_v48  ;;  %v14301_v34 = vld [vmem:[#allocation79_spill] sm:$0xff] }
 0x3c8   :  { %8325 = vmatmul.mubr.bf16.gmra.mrb[4].mxu1 %v2069_v38 }
 0x3c9   :  { %8328 = vmatprep.mubr.bf16.mxu1 %v2070_v63  ;;  %8357 = vmatpush3.bf16.msra.mxu1 %v9412_v17  ;;  %v14284_v17 = vld [vmem:[#allocation62_spill] sm:$0xff]  ;;  %v14289_v63 = vld [vmem:[#allocation65_spill] sm:$0xff] }
 0x3ca   :  { %8358 = vmatprep.subr.bf16.mxu1 %v9413_v27  ;;  %v14286_v38 = vpack.c.bf16 %v14284_v17, %v14285_v45  ;;  %v9425_v17 = vld [vmem:[#allocation8 + $0x1b8] sm:$0xff]   ;;  %v11197_v45 = vld [vmem:[#allocation2 + $0x1c2] sm:$0xff] }
 0x3cd   :  { %8359 = vmatpush3.bf16.msra.mxu1 %v9413_v27  ;;  %v14287_v27 = vld [vmem:[#allocation63_spill] sm:$0xff] }
 0x3ce   :  { %8360 = vmatprep.subr.bf16.mxu1 %v9414_v2 }
 0x3d0   :  { %8329 = vmatmul.mubr.bf16.gmra.mrb[8].mxu1 %v2071_v42  ;;  %v14291_v42 = vld [vmem:[#allocation66_spill] sm:$0xff] }
 0x3d1   :  { %8332 = vmatprep.mubr.bf16.mxu1 %v14275_v61  ;;  %8361 = vmatpush3.bf16.msra.mxu1 %v9414_v2  ;;  %v14290_v2 = vpack.c.bf16 %v14288_v5, %v14289_v63  ;;  %v14295_v61 = vld [vmem:[#allocation68_spill] sm:$0xff]  ;;  %v9429_v5 = vld [vmem:[#allocation8 + $0x1d8] sm:$0xff]   ;;  %v9430_v63 = vld [vmem:[#allocation8 + $0x1e0] sm:$0xff]  }
 0x3d2   :  { %8362 = vmatprep.subr.bf16.mxu1 %v9415_v0 }
 0x3d5   :  { %8363 = vmatpush3.bf16.msra.mxu1 %v9415_v0  ;;  %v14292_v0 = vld [vmem:[#allocation64_spill] sm:$0xff] }
 0x3d6   :  { %8364 = vmatprep.subr.bf16.mxu1 %v9416_v1  ;;  %v14293_v12 = vpack.c.bf16 %v14291_v42, %v14292_v0  ;;  %v2640_v42 = vld [vmem:[#allocation2 + $0xe0] sm:$0xff] }
 0x3d8   :  { %8333 = vmatmul.mubr.bf16.gmra.mrb[12].mxu1 %v2073_v53  ;;  %v9419_v53 = vld [vmem:[#allocation8 + $0x188] sm:$0xff]  }
 0x3d9   :  { %8336 = vmatprep.mubr.bf16.mxu1 %v14280_v7  ;;  %8365 = vmatpush3.bf16.msra.mxu1 %v9416_v1  ;;  %v14296_v1 = vpack.c.bf16 %v14294_v25, %v14295_v61  ;;  %v11171_v7 = vld [vmem:[#allocation2 + $0x82] sm:$0xff]  ;;  %v2686_v61 = vpack.c.bf16 %v9530_v30, %v11088_v54  ;;  %v14318_v54 = vld [vmem:[#allocation77_spill] sm:$0xff] }
 0x3da   :  { %8366 = vmatprep.subr.bf16.mxu1 %v9417_v33  ;;  %v2375_v48 = vpack.c.bf16 %v11171_v7, %v14301_v34  ;;  %v14315_v25 = vld [vmem:[#allocation74_spill] sm:$0xff]  ;;  %v2690_v34 = vpack.c.bf16 %v9530_v30, %v11101_v9 }
 0x3db   :  { %v3651_v9 = vld [vmem:[%s14321_s7] sm:$0xff] }
 0x3dd   :  { %8367 = vmatpush3.bf16.msra.mxu1 %v9417_v33  ;;  %v14299_v33 = vpack.c.bf16 %v10699_v4, %v10697_v3  ;;  %v14302_v3 = vpack.c.bf16 %v10780_v15, %v10790_v26  ;;  %v9422_v4 = vld [vmem:[#allocation8 + $0x1a0] sm:$0xff]   ;;  %v14305_v15 = vld [vmem:[#allocation80_spill] sm:$0xff] }
 0x3de   :  { %8400 = vmatprep.subr.bf16.mxu1 %v9418_v62 }
 0x3e0   :  { %8337 = vmatmul.mubr.bf16.gmra.mrb[16].mxu1 %v14283_v35  ;;  %v11184_v35 = vld [vmem:[#allocation2 + $0x122] sm:$0xff] }
 0x3e1   :  { %8340 = vmatprep.mubr.bf16.mxu1 %v14286_v38  ;;  %v2379_v26 = vpack.c.bf16 %v11184_v35, %v14305_v15  ;;  %v2383_v38 = vpack.c.bf16 %v11197_v45, %v11053_v32  ;;  %v2633_v32 = vld [vmem:[#allocation2 + $0x50] sm:$0xff]  ;;  %v3652_v15 = vld [vmem:[%s14321_s7 + $0x8] sm:$0xff] }
 0x3e8   :  { %8341 = vmatmul.mubr.bf16.gmra.mrb[20].mxu1 %v14287_v27  ;;  %v2632_v27 = vld [vmem:[#allocation2 + $0x40] sm:$0xff] }
 0x3e9   :  { %8344 = vmatprep.mubr.bf16.mxu1 %v14290_v2  ;;  %v2680_v16 = vpack.c.bf16 %v2633_v32, %v2632_v27  ;;  %v2641_v2 = vld [vmem:[#allocation2 + $0xf0] sm:$0xff]  ;;  %v9449_v32 = vld [vmem:[#allocation12 + $0x38] sm:$0xff]  }
 0x3ea   :  { %v2684_v0 = vpack.c.bf16 %v2641_v2, %v2640_v42  ;;  %v2950_v27 = vld [vmem:[#allocation2 + $0x121] sm:$0xff] }
 0x3f0   :  { %8345 = vmatmul.mubr.bf16.gmra.mrb[24].mxu1 %v14293_v12  ;;  %v9431_v12 = vld [vmem:[#allocation8 + $0x1e8] sm:$0xff]  }
 0x3f1   :  { %8348 = vmatprep.mubr.bf16.mxu1 %v14296_v1  ;;  %v9433_v1 = vld [vmem:[#allocation8 + $0x1f8] sm:$0xff]  }
 0x3f8   :  { %8349 = vmatmul.mubr.bf16.gmra.mrb[28].mxu1 %v14297_v40  ;;  %v14316_v40 = vld [vmem:[#allocation75_spill] sm:$0xff] }
 0x3f9   :  { %8368 = vmatprep.mubr.bf16.mxu1 %v14298_v28  ;;  %v9434_v28 = vld [vmem:[#allocation8 + $0x200] sm:$0xff]  }
 0x400   :  { %8369 = vmatmul.mubr.bf16.vlgmr.msra.gmra.mrb[0].mxu1 %v14299_v33  ;;  %v2648_v33 = vld [vmem:[#allocation2 + $0x180] sm:$0xff] }
 0x401   :  { %8401 = vmatpush3.bf16.msra.mxu1 %v9418_v62  ;;  %8372 = vmatprep.mubr.bf16.mxu1 %v14300_v19  ;;  %v9424_v62 = vld [vmem:[#allocation8 + $0x1b0] sm:$0xff]  }
 0x402   :  { %8402 = vmatprep.subr.bf16.mxu1 %v9419_v53 }
 0x405   :  { %8403 = vmatpush3.bf16.msra.mxu1 %v9419_v53  ;;  %v2649_v53 = vld [vmem:[#allocation2 + $0x190] sm:$0xff] }
 0x406   :  { %8404 = vmatprep.subr.bf16.mxu1 %v9420_v29  ;;  %v2688_v19 = vpack.c.bf16 %v2649_v53, %v2648_v33  ;;  %v9452_v53 = vld [vmem:[#allocation11 + $0x10] sm:$0xff]   ;;  %v2954_v33 = vld [vmem:[#allocation2 + $0x181] sm:$0xff] }
 0x408   :  { %8373 = vmatmul.mubr.bf16.gmra.mrb[4].mxu1 %v2375_v48  ;;  %v2657_v48 = vld [vmem:[#allocation2 + $0x230] sm:$0xff] }
 0x409   :  { %8376 = vmatprep.mubr.bf16.mxu1 %v14302_v3  ;;  %8405 = vmatpush3.bf16.msra.mxu1 %v9420_v29  ;;  %v14317_v29 = vld [vmem:[#allocation76_spill] sm:$0xff] }
 0x40a   :  { %8406 = vmatprep.subr.bf16.mxu1 %v9421_v6 }
 0x40d   :  { %8407 = vmatpush3.bf16.msra.mxu1 %v9421_v6  ;;  %v2656_v6 = vld [vmem:[#allocation2 + $0x220] sm:$0xff] }
 0x40e   :  { %8408 = vmatprep.subr.bf16.mxu1 %v9422_v4  ;;  %v2692_v3 = vpack.c.bf16 %v2657_v48, %v2656_v6  ;;  %v9453_v6 = vld [vmem:[#allocation11 + $0x18] sm:$0xff]  }
 0x410   :  { %8377 = vmatmul.mubr.bf16.gmra.mrb[8].mxu1 %v14303_v37  ;;  %v9442_v37 = vld [vmem:[#allocation12] sm:$0xff]  }
 0x411   :  { %8380 = vmatprep.mubr.bf16.mxu1 %v14304_v43  ;;  %8409 = vmatpush3.bf16.msra.mxu1 %v9422_v4  ;;  %v14319_v4 = vld [vmem:[#allocation78_spill] sm:$0xff]  ;;  %v9443_v43 = vld [vmem:[#allocation12 + $0x8] sm:$0xff]  }
 0x412   :  { %8410 = vmatprep.subr.bf16.mxu1 %v9423_v14  ;;  %8544 = vmatprep.subr.bf16.mxu0 %v9442_v37 }
 0x413   :  { %8545 = vmatpush3.bf16.msra.mxu0 %v9442_v37  ;;  %v3661_v37 = vld [vmem:[%s14321_s7 + $0x50] sm:$0xff] }
 0x414   :  { %8546 = vmatprep.subr.bf16.mxu0 %v9443_v43 }
 0x415   :  { %8411 = vmatpush3.bf16.msra.mxu1 %v9423_v14  ;;  %v2694_v14 = vpack.c.bf16 %v9530_v30, %v11114_v39  ;;  %v3699_v39 = vpack.c.bf16 %v3652_v15, %v3651_v9  ;;  %v3655_v30 = vld [vmem:[%s14321_s7 + $0x20] sm:$0xff]  ;;  %v3664_v9 = vld [vmem:[%s14321_s7 + $0x68] sm:$0xff] }
 0x416   :  { %8412 = vmatprep.subr.bf16.mxu1 %v9424_v62  ;;  %v9454_v15 = vld [vmem:[#allocation11 + $0x20] sm:$0xff]  }
 0x417   :  { %8560 = vmatprep.mubr.bf16.mxu0 %v3699_v39  ;;  %8547 = vmatpush3.bf16.msra.mxu0 %v9443_v43  ;;  %v3662_v43 = vld [vmem:[%s14321_s7 + $0x58] sm:$0xff] }
 0x418   :  { %8381 = vmatmul.mubr.bf16.gmra.mrb[12].mxu1 %v2379_v26  ;;  %v9444_v26 = vld [vmem:[#allocation12 + $0x10] sm:$0xff]  }
 0x419   :  { %8384 = vmatprep.mubr.bf16.mxu1 %v14306_v10  ;;  %8413 = vmatpush3.bf16.msra.mxu1 %v9424_v62  ;;  %v14320_v62 = vpack.c.bf16 %v10718_v18, %v10707_v8  ;;  %v14322_v8 = vpack.c.bf16 %v14269_v55, %v14268_v41  ;;  %v9445_v18 = vld [vmem:[#allocation12 + $0x18] sm:$0xff]   ;;  %v14323_v10 = vpack.c.bf16 %v14271_v47, %v14270_v22  ;;  %v2947_v47 = vld [vmem:[#allocation2 + $0xf1] sm:$0xff] }
 0x41a   :  { %8414 = vmatprep.subr.bf16.mxu1 %v9425_v17  ;;  %8548 = vmatprep.subr.bf16.mxu0 %v9444_v26  ;;  %v9437_v41 = vld [vmem:[#allocation8 + $0x218] sm:$0xff]   ;;  %v9438_v22 = vld [vmem:[#allocation8 + $0x220] sm:$0xff]   ;;  %v2961_v39 = vld [vmem:[#allocation2 + $0x211] sm:$0xff] }
 0x41b   :  { %8549 = vmatpush3.bf16.msra.mxu0 %v9444_v26 }
 0x41c   :  { %8550 = vmatprep.subr.bf16.mxu0 %v9445_v18 }
 0x41d   :  { %8415 = vmatpush3.bf16.msra.mxu1 %v9425_v17  ;;  %v9435_v17 = vld [vmem:[#allocation8 + $0x208] sm:$0xff]  }
 0x41e   :  { %8448 = vmatprep.subr.bf16.mxu1 %v9426_v11 }
 0x41f   :  { %8551 = vmatpush3.bf16.msra.mxu0 %v9445_v18 }
 0x420   :  { %8385 = vmatmul.mubr.bf16.gmra.mrb[16].mxu1 %v14307_v23  ;;  %v2943_v23 = vld [vmem:[#allocation2 + $0x91] sm:$0xff] }
 0x421   :  { %8388 = vmatprep.mubr.bf16.mxu1 %v14308_v44  ;;  %v2944_v44 = vld [vmem:[#allocation2 + $0xc1] sm:$0xff] }
 0x422   :  { %v2989_v55 = vpack.c.bf16 %v11130_v36, %v2944_v44  ;;  %v3665_v44 = vld [vmem:[%s14321_s7 + $0x70] sm:$0xff] }
 0x428   :  { %8389 = vmatmul.mubr.bf16.gmra.mrb[20].mxu1 %v2383_v38  ;;  %v9446_v38 = vld [vmem:[#allocation12 + $0x20] sm:$0xff]  }
 0x429   :  { %8392 = vmatprep.mubr.bf16.mxu1 %v14309_v50  ;;  %v2988_v50 = vpack.c.bf16 %v2943_v23, %v11123_v49  ;;  %8552 = vmatprep.subr.bf16.mxu0 %v9446_v38  ;;  %v2990_v49 = vpack.c.bf16 %v2947_v47, %v11128_v13  ;;  %v3653_v13 = vld [vmem:[%s14321_s7 + $0x10] sm:$0xff]  ;;  %v2964_v23 = vld [vmem:[#allocation2 + $0x241] sm:$0xff] }
 0x42a   :  { %8553 = vmatpush3.bf16.msra.mxu0 %v9446_v38  ;;  %v3666_v38 = vld [vmem:[%s14321_s7 + $0x78] sm:$0xff] }
 0x42b   :  { %v2965_v47 = vld [vmem:[#allocation2 + $0x251] sm:$0xff] }
 0x430   :  { %8393 = vmatmul.mubr.bf16.gmra.mrb[24].mxu1 %v14310_v20  ;;  %v9447_v20 = vld [vmem:[#allocation12 + $0x28] sm:$0xff]  }
 0x431   :  { %8396 = vmatprep.mubr.bf16.mxu1 %v14311_v24  ;;  %v2948_v24 = vld [vmem:[#allocation2 + $0x101] sm:$0xff]  ;;  %8554 = vmatprep.subr.bf16.mxu0 %v9447_v20 }
 0x432   :  { %v2991_v36 = vpack.c.bf16 %v11137_v59, %v2948_v24  ;;  %8555 = vmatpush3.bf16.msra.mxu0 %v9447_v20  ;;  %v3654_v59 = vld [vmem:[%s14321_s7 + $0x18] sm:$0xff]  ;;  %v2962_v20 = vld [vmem:[#allocation2 + $0x221] sm:$0xff]  ;;  %v3706_v24 = vpack.c.bf16 %v3666_v38, %v3665_v44 }
 0x433   :  { %v3700_v2 = vpack.c.bf16 %v3654_v59, %v3653_v13  ;;  %v3243_v59 = vld [vmem:[#allocation2 + $0x32] sm:$0xff]  ;;  %v3266_v44 = vld [vmem:[#allocation2 + $0x202] sm:$0xff] }
 0x438   :  { %8397 = vmatmul.mubr.bf16.gmra.mrb[28].mxu1 %v2387_v31  ;;  %v9448_v31 = vld [vmem:[#allocation12 + $0x30] sm:$0xff]  }
 0x439   :  { %8416 = vmatprep.mubr.bf16.mxu1 %v14312_v60  ;;  %v9439_v60 = vld [vmem:[#allocation8 + $0x228] sm:$0xff]   ;;  %8556 = vmatprep.subr.bf16.mxu0 %v9448_v31 }
 0x43a   :  { %8557 = vmatpush3.bf16.msra.mxu0 %v9448_v31  ;;  %v2999_v31 = vpack.c.bf16 %v2965_v47, %v2964_v23  ;;  %v3265_v23 = vld [vmem:[#allocation2 + $0x1d2] sm:$0xff] }
 0x43b   :  { %8558 = vmatprep.subr.bf16.mxu0 %v9449_v32  ;;  %v3302_v38 = vpack.c.bf16 %v3265_v23, %v11197_v45  ;;  %v3271_v47 = vld [vmem:[#allocation2 + $0x252] sm:$0xff]  ;;  %v3679_v45 = vld [vmem:[%s14321_s7 + $0xe0] sm:$0xff] }
 0x43c   :  { %v9467_v23 = vld [vmem:[#allocation15 + $0x30] ss:$8 sps:$4 sm:$0xff]  }
 0x43e   :  { %8559 = vmatpush3.bf16.msra.mxu0 %v9449_v32  ;;  %v3669_v32 = vld [vmem:[%s14321_s7 + $0x90] sm:$0xff] }
 0x440   :  { %8417 = vmatmul.mubr.bf16.vlgmr.msra.gmra.mrb[0].mxu1 %v2680_v16  ;;  %v2951_v16 = vld [vmem:[#allocation2 + $0x131] sm:$0xff] }
 0x441   :  { %8449 = vmatpush3.bf16.msra.mxu1 %v9426_v11  ;;  %8420 = vmatprep.mubr.bf16.mxu1 %v14313_v21  ;;  %v9436_v11 = vld [vmem:[#allocation8 + $0x210] sm:$0xff]   ;;  %v2952_v21 = vld [vmem:[#allocation2 + $0x161] sm:$0xff] }
 0x442   :  { %8450 = vmatprep.subr.bf16.mxu1 %v9427_v51  ;;  %8561 = vmatmul.mubr.bf16.vlgmr.msra.gmra.mrb[32].mxu0 %v3700_v2  ;;  %v3246_v2 = vld [vmem:[#allocation2 + $0x62] sm:$0xff] }
 0x445   :  { %8451 = vmatpush3.bf16.msra.mxu1 %v9427_v51  ;;  %v9440_v51 = vld [vmem:[#allocation8 + $0x230] sm:$0xff]  }
 0x446   :  { %8452 = vmatprep.subr.bf16.mxu1 %v9428_v46 }
 0x448   :  { %8421 = vmatmul.mubr.bf16.gmra.mrb[4].mxu1 %v2682_v58  ;;  %v3656_v58 = vld [vmem:[%s14321_s7 + $0x28] sm:$0xff] }
 0x449   :  { %8424 = vmatprep.mubr.bf16.mxu1 %v14314_v57  ;;  %8453 = vmatpush3.bf16.msra.mxu1 %v9428_v46  ;;  %v9450_v46 = vld [vmem:[#allocation11] sm:$0xff]   ;;  %v2953_v57 = vld [vmem:[#allocation2 + $0x171] sm:$0xff] }
 0x44a   :  { %8454 = vmatprep.subr.bf16.mxu1 %v9429_v5  ;;  %v2993_v42 = vpack.c.bf16 %v2953_v57, %v2952_v21  ;;  %8592 = vmatprep.subr.bf16.mxu0 %v9450_v46  ;;  %v3672_v21 = vld [vmem:[%s14321_s7 + $0xa8] sm:$0xff]  ;;  %v3673_v57 = vld [vmem:[%s14321_s7 + $0xb0] sm:$0xff] }
 0x44b   :  { %8593 = vmatpush3.bf16.msra.mxu0 %v9450_v46 }
 0x44d   :  { %8455 = vmatpush3.bf16.msra.mxu1 %v9429_v5  ;;  %v2992_v5 = vpack.c.bf16 %v2951_v16, %v2950_v27  ;;  %v3670_v27 = vld [vmem:[%s14321_s7 + $0x98] sm:$0xff]  ;;  %v3242_v16 = vld [vmem:[#allocation2 + $0x22] sm:$0xff] }
 0x44e   :  { %8456 = vmatprep.subr.bf16.mxu1 %v9430_v63  ;;  %v3708_v46 = vpack.c.bf16 %v3670_v27, %v3669_v32  ;;  %v3681_v32 = vld [vmem:[%s14321_s7 + $0xf0] sm:$0xff]  ;;  %v3682_v27 = vld [vmem:[%s14321_s7 + $0xf8] sm:$0xff] }
 0x450   :  { %8425 = vmatmul.mubr.bf16.gmra.mrb[8].mxu1 %v2684_v0  ;;  %v3701_v0 = vpack.c.bf16 %v3656_v58, %v3655_v30  ;;  %v3291_v30 = vpack.c.bf16 %v3243_v59, %v3242_v16  ;;  %v3714_v16 = vpack.c.bf16 %v3682_v27, %v3681_v32 }
 0x451   :  { %8428 = vmatprep.mubr.bf16.mxu1 %v14315_v25  ;;  %8457 = vmatpush3.bf16.msra.mxu1 %v9430_v63  ;;  %v9441_v63 = vld [vmem:[#allocation8 + $0x238] sm:$0xff]   ;;  %v2955_v25 = vld [vmem:[#allocation2 + $0x191] sm:$0xff] }
 0x452   :  { %8458 = vmatprep.subr.bf16.mxu1 %v9431_v12  ;;  %8564 = vmatprep.mubr.bf16.mxu0 %v3701_v0  ;;  %v3676_v0 = vld [vmem:[%s14321_s7 + $0xc8] sm:$0xff] }
 0x455   :  { %8459 = vmatpush3.bf16.msra.mxu1 %v9431_v12  ;;  %v9451_v12 = vld [vmem:[#allocation11 + $0x8] sm:$0xff]  }
 0x456   :  { %8460 = vmatprep.subr.bf16.mxu1 %v9432_v56  ;;  %8594 = vmatprep.subr.bf16.mxu0 %v9451_v12 }
 0x457   :  { %8595 = vmatpush3.bf16.msra.mxu0 %v9451_v12  ;;  %v3244_v12 = vld [vmem:[#allocation2 + $0x42] sm:$0xff] }
 0x458   :  { %8429 = vmatmul.mubr.bf16.gmra.mrb[12].mxu1 %v2686_v61  ;;  %v3657_v61 = vld [vmem:[%s14321_s7 + $0x30] sm:$0xff]  ;;  %8596 = vmatprep.subr.bf16.mxu0 %v9452_v53 }
 0x459   :  { %8432 = vmatprep.mubr.bf16.mxu1 %v14316_v40  ;;  %8461 = vmatpush3.bf16.msra.mxu1 %v9432_v56  ;;  %v2956_v56 = vld [vmem:[#allocation2 + $0x1a1] sm:$0xff] }
 0x45a   :  { %8462 = vmatprep.subr.bf16.mxu1 %v9433_v1  ;;  %v3659_v40 = vld [vmem:[%s14321_s7 + $0x40] sm:$0xff] }
 0x45b   :  { %8597 = vmatpush3.bf16.msra.mxu0 %v9452_v53  ;;  %v3677_v53 = vld [vmem:[%s14321_s7 + $0xd0] sm:$0xff] }
 0x45c   :  { %8598 = vmatprep.subr.bf16.mxu0 %v9453_v6 }
 0x45d   :  { %8463 = vmatpush3.bf16.msra.mxu1 %v9433_v1  ;;  %v3658_v1 = vld [vmem:[%s14321_s7 + $0x38] sm:$0xff] }
 0x45e   :  { %8496 = vmatprep.subr.bf16.mxu1 %v9434_v28 }
 0x45f   :  { %8599 = vmatpush3.bf16.msra.mxu0 %v9453_v6  ;;  %v3253_v6 = vld [vmem:[#allocation2 + $0xf2] sm:$0xff] }
 0x460   :  { %8433 = vmatmul.mubr.bf16.gmra.mrb[16].mxu1 %v2688_v19  ;;  %v2994_v19 = vpack.c.bf16 %v2955_v25, %v2954_v33  ;;  %8600 = vmatprep.subr.bf16.mxu0 %v9454_v15  ;;  %v3678_v33 = vld [vmem:[%s14321_s7 + $0xd8] sm:$0xff] }
 0x461   :  { %8436 = vmatprep.mubr.bf16.mxu1 %v14317_v29  ;;  %v2957_v29 = vld [vmem:[#allocation2 + $0x1b1] sm:$0xff] }
 0x463   :  { %8601 = vmatpush3.bf16.msra.mxu0 %v9454_v15 }
 0x468   :  { %8437 = vmatmul.mubr.bf16.gmra.mrb[20].mxu1 %v2690_v34  ;;  %v3702_v34 = vpack.c.bf16 %v3658_v1, %v3657_v61 }
 0x469   :  { %8440 = vmatprep.mubr.bf16.mxu1 %v14318_v54  ;;  %v2995_v54 = vpack.c.bf16 %v2957_v29, %v2956_v56  ;;  %v3247_v56 = vld [vmem:[#allocation2 + $0x72] sm:$0xff] }
 0x46a   :  { %8565 = vmatmul.mubr.bf16.gmra.mrb[36].mxu0 %v3702_v34  ;;  %v3293_v1 = vpack.c.bf16 %v3247_v56, %v3246_v2  ;;  %v3251_v34 = vld [vmem:[#allocation2 + $0xd2] sm:$0xff] }
 0x470   :  { %8441 = vmatmul.mubr.bf16.gmra.mrb[24].mxu1 %v2692_v3  ;;  %v2958_v3 = vld [vmem:[#allocation2 + $0x1c1] sm:$0xff] }
 0x471   :  { %8444 = vmatprep.mubr.bf16.mxu1 %v14319_v4  ;;  %v2959_v4 = vld [vmem:[#allocation2 + $0x1d1] sm:$0xff] }
 0x472   :  { %v2996_v26 = vpack.c.bf16 %v2959_v4, %v2958_v3  ;;  %v3254_v3 = vld [vmem:[#allocation2 + $0x102] sm:$0xff] }
 0x473   :  { %v3252_v4 = vld [vmem:[#allocation2 + $0xe2] sm:$0xff] }
 0x478   :  { %8445 = vmatmul.mubr.bf16.gmra.mrb[28].mxu1 %v2694_v14  ;;  %v2960_v14 = vld [vmem:[#allocation2 + $0x201] sm:$0xff] }
 0x479   :  { %8464 = vmatprep.mubr.bf16.mxu1 %v14320_v62  ;;  %v3663_v62 = vld [vmem:[%s14321_s7 + $0x60] sm:$0xff] }
 0x47a   :  { %v3705_v18 = vpack.c.bf16 %v3664_v9, %v3663_v62  ;;  %v3257_v62 = vld [vmem:[#allocation2 + $0x132] sm:$0xff]  ;;  %v3258_v9 = vld [vmem:[#allocation2 + $0x162] sm:$0xff] }
 0x47b   :  { %v3298_v15 = vpack.c.bf16 %v3257_v62, %v11184_v35  ;;  %v3269_v35 = vld [vmem:[#allocation2 + $0x232] sm:$0xff] }
 0x480   :  { %8465 = vmatmul.mubr.bf16.vlgmr.msra.gmra.mrb[0].mxu1 %v14322_v8  ;;  %v2997_v8 = vpack.c.bf16 %v2961_v39, %v2960_v14  ;;  %v3296_v14 = vpack.c.bf16 %v3253_v6, %v3252_v4  ;;  %v3261_v39 = vld [vmem:[#allocation2 + $0x192] sm:$0xff] }
 0x481   :  { %8497 = vmatpush3.bf16.msra.mxu1 %v9434_v28  ;;  %8468 = vmatprep.mubr.bf16.mxu1 %v14323_v10  ;;  %v3660_v28 = vld [vmem:[%s14321_s7 + $0x48] sm:$0xff] }
 0x482   :  { %8498 = vmatprep.subr.bf16.mxu1 %v9435_v17  ;;  %v3703_v48 = vpack.c.bf16 %v3660_v28, %v3659_v40  ;;  %v9455_v10 = vld [vmem:[#allocation11 + $0x28] sm:$0xff]  }
 0x483   :  { %8602 = vmatprep.subr.bf16.mxu0 %v9455_v10  ;;  %v3249_v28 = vld [vmem:[#allocation2 + $0x92] sm:$0xff] }
 0x484   :  { %8568 = vmatprep.mubr.bf16.mxu0 %v3703_v48  ;;  %8603 = vmatpush3.bf16.msra.mxu0 %v9455_v10  ;;  %v3294_v29 = vpack.c.bf16 %v3249_v28, %v11171_v7  ;;  %v3263_v10 = vld [vmem:[#allocation2 + $0x1b2] sm:$0xff] }
 0x485   :  { %8499 = vmatpush3.bf16.msra.mxu1 %v9435_v17  ;;  %v3704_v17 = vpack.c.bf16 %v3662_v43, %v3661_v37  ;;  %v3255_v37 = vld [vmem:[#allocation2 + $0x112] sm:$0xff] }
 0x486   :  { %8500 = vmatprep.subr.bf16.mxu1 %v9436_v11  ;;  %v3297_v43 = vpack.c.bf16 %v3255_v37, %v3254_v3  ;;  %v9466_v4 = vld [vmem:[#allocation15 + $0x24] ss:$8 sps:$4 sm:$0xff]  }
 0x487   :  { %8569 = vmatmul.mubr.bf16.gmra.mrb[40].mxu0 %v3704_v17  ;;  %v3262_v17 = vld [vmem:[#allocation2 + $0x1a2] sm:$0xff] }
 0x488   :  { %8469 = vmatmul.mubr.bf16.gmra.mrb[4].mxu1 %v2988_v50  ;;  %8572 = vmatprep.mubr.bf16.mxu0 %v3705_v18  ;;  %v3667_v50 = vld [vmem:[%s14321_s7 + $0x80] sm:$0xff] }
 0x489   :  { %8472 = vmatprep.mubr.bf16.mxu1 %v2989_v55  ;;  %8501 = vmatpush3.bf16.msra.mxu1 %v9436_v11  ;;  %v2963_v11 = vld [vmem:[#allocation2 + $0x231] sm:$0xff] }
 0x48a   :  { %8502 = vmatprep.subr.bf16.mxu1 %v9437_v41  ;;  %v9456_v55 = vld [vmem:[#allocation11 + $0x30] sm:$0xff]  }
 0x48b   :  { %8604 = vmatprep.subr.bf16.mxu0 %v9456_v55 }
 0x48c   :  { %8605 = vmatpush3.bf16.msra.mxu0 %v9456_v55  ;;  %v3270_v55 = vld [vmem:[#allocation2 + $0x242] sm:$0xff] }
 0x48d   :  { %8503 = vmatpush3.bf16.msra.mxu1 %v9437_v41  ;;  %v3668_v41 = vld [vmem:[%s14321_s7 + $0x88] sm:$0xff] }
 0x48e   :  { %8504 = vmatprep.subr.bf16.mxu1 %v9438_v22 }
 0x48f   :  { %8573 = vmatmul.mubr.bf16.gmra.mrb[44].mxu0 %v3706_v24  ;;  %v3305_v24 = vpack.c.bf16 %v3271_v47, %v3270_v55  ;;  %v9470_v47 = vld [vmem:[#allocation15 + $0x40] ss:$8 sps:$4 sm:$0xff]  }
 0x490   :  { %8473 = vmatmul.mubr.bf16.gmra.mrb[8].mxu1 %v2990_v49  ;;  %v3707_v49 = vpack.c.bf16 %v3668_v41, %v3667_v50  ;;  %v3267_v50 = vld [vmem:[#allocation2 + $0x212] sm:$0xff] }
 0x491   :  { %8476 = vmatprep.mubr.bf16.mxu1 %v2991_v36  ;;  %8505 = vmatpush3.bf16.msra.mxu1 %v9438_v22  ;;  %v2998_v22 = vpack.c.bf16 %v2963_v11, %v2962_v20  ;;  %v2966_v36 = vld [vmem:[#allocation2 + $0x261] sm:$0xff]  ;;  %v3301_v11 = vpack.c.bf16 %v3263_v10, %v3262_v17  ;;  %v3303_v41 = vpack.c.bf16 %v3267_v50, %v3266_v44  ;;  %v9472_v50 = vld [vmem:[#allocation15 + $0x44] ss:$8 sps:$4 sm:$0xff]  }
 0x492   :  { %8506 = vmatprep.subr.bf16.mxu1 %v9439_v60  ;;  %8576 = vmatprep.mubr.bf16.mxu0 %v3707_v49  ;;  %v3268_v20 = vld [vmem:[#allocation2 + $0x222] sm:$0xff] }
 0x495   :  { %8507 = vmatpush3.bf16.msra.mxu1 %v9439_v60  ;;  %v2967_v60 = vld [vmem:[#allocation2 + $0x271] sm:$0xff] }
 0x496   :  { %8508 = vmatprep.subr.bf16.mxu1 %v9440_v51  ;;  %v3000_v13 = vpack.c.bf16 %v2967_v60, %v2966_v36  ;;  %v3680_v60 = vld [vmem:[%s14321_s7 + $0xe8] sm:$0xff] }
 0x497   :  { %8577 = vmatmul.mubr.bf16.gmra.mrb[48].mxu0 %v3708_v46  ;;  %v3713_v36 = vpack.c.bf16 %v3680_v60, %v3679_v45 }
 0x498   :  { %8477 = vmatmul.mubr.bf16.gmra.mrb[12].mxu1 %v2992_v5  ;;  %v3245_v5 = vld [vmem:[#allocation2 + $0x52] sm:$0xff] }
 0x499   :  { %8480 = vmatprep.mubr.bf16.mxu1 %v2993_v42  ;;  %8509 = vmatpush3.bf16.msra.mxu1 %v9440_v51  ;;  %v3671_v51 = vld [vmem:[%s14321_s7 + $0xa0] sm:$0xff]  ;;  %v3292_v25 = vpack.c.bf16 %v3245_v5, %v3244_v12 }
 0x49a   :  { %8510 = vmatprep.subr.bf16.mxu1 %v9441_v63  ;;  %v3709_v58 = vpack.c.bf16 %v3672_v21, %v3671_v51  ;;  %v3675_v42 = vld [vmem:[%s14321_s7 + $0xc0] sm:$0xff]  ;;  %v9460_v51 = vld [vmem:[#allocation15 + $0x4] ss:$8 sps:$4 sm:$0xff]  }
 0x49b   :  { %v3711_v40 = vpack.c.bf16 %v3676_v0, %v3675_v42  ;;  %v11339_v21 = vld [vmem:[#allocation9] ss:$0 sm:$0xff] }
 0x49c   :  { %8580 = vmatprep.mubr.bf16.mxu0 %v3709_v58 }
 0x49d   :  { %8511 = vmatpush3.bf16.msra.mxu1 %v9441_v63  ;;  %v3674_v63 = vld [vmem:[%s14321_s7 + $0xb8] sm:$0xff] }
 0x49e   :  { %v3710_v61 = vpack.c.bf16 %v3674_v63, %v3673_v57 }
 0x4a0   :  { %8481 = vmatmul.mubr.bf16.gmra.mrb[16].mxu1 %v2994_v19  ;;  %8581 = vmatmul.mubr.bf16.gmra.mrb[52].mxu0 %v3710_v61  ;;  %v3250_v19 = vld [vmem:[#allocation2 + $0xc2] sm:$0xff] }
 0x4a1   :  { %8484 = vmatprep.mubr.bf16.mxu1 %v2995_v54  ;;  %8584 = vmatprep.mubr.bf16.mxu0 %v3711_v40  ;;  %v3712_v54 = vpack.c.bf16 %v3678_v33, %v3677_v53  ;;  %v3295_v48 = vpack.c.bf16 %v3251_v34, %v3250_v19  ;;  %v9463_v53 = vld [vmem:[#allocation15 + $0x14] ss:$8 sps:$4 sm:$0xff]  }
 0x4a8   :  { %8485 = vmatmul.mubr.bf16.gmra.mrb[20].mxu1 %v2996_v26  ;;  %8585 = vmatmul.mubr.bf16.gmra.mrb[56].mxu0 %v3712_v54  ;;  %v3259_v26 = vld [vmem:[#allocation2 + $0x172] sm:$0xff] }
 0x4a9   :  { %8488 = vmatprep.mubr.bf16.mxu1 %v2997_v8  ;;  %v3299_v7 = vpack.c.bf16 %v3259_v26, %v3258_v9  ;;  %v3260_v8 = vld [vmem:[#allocation2 + $0x182] sm:$0xff]  ;;  %8588 = vmatprep.mubr.bf16.mxu0 %v3713_v36 }
 0x4aa   :  { %v3300_v18 = vpack.c.bf16 %v3261_v39, %v3260_v8  ;;  %v9469_v39 = vld [vmem:[#allocation15 + $0x34] ss:$8 sps:$4 sm:$0xff]  }
 0x4b0   :  { %8489 = vmatmul.mubr.bf16.gmra.mrb[24].mxu1 %v2998_v22  ;;  %v3304_v22 = vpack.c.bf16 %v3269_v35, %v3268_v20  ;;  %8589 = vmatmul.mubr.bf16.gmra.mrb[60].mxu0 %v3714_v16  ;;  %v9473_v16 = vld [vmem:[#allocation15 + $0x50] ss:$8 sps:$4 sm:$0xff]  }
 0x4b1   :  { %8492 = vmatprep.mubr.bf16.mxu1 %v2999_v31  ;;  %v3273_v31 = vld [vmem:[#allocation2 + $0x272] sm:$0xff] }
 0x4b2   :  { %v3306_v49 = vpack.c.bf16 %v3273_v31, %v11210_v52  ;;  %v9457_v52 = vld [vmem:[#allocation11 + $0x38] sm:$0xff]  }
 0x4b3   :  { %8606 = vmatprep.subr.bf16.mxu0 %v9457_v52 }
 0x4b4   :  { %8607 = vmatpush3.bf16.msra.mxu0 %v9457_v52 }
 0x4b5   :  { %4328 = vmatprep.subr.bf16.mxu0 %v9460_v51 }
 0x4b8   :  { %8493 = vmatmul.mubr.bf16.gmra.mrb[28].mxu1 %v3000_v13 }
 0x4b9   :  { %8512 = vmatprep.mubr.bf16.mxu1 %v3291_v30 }
 0x4c0   :  { %8513 = vmatmul.mubr.bf16.vlgmr.msra.gmra.mrb[0].mxu1 %v3292_v25 }
 0x4c1   :  { %8516 = vmatprep.mubr.bf16.mxu1 %v3293_v1  ;;  %v9458_v1 = vld [vmem:[#allocation15] ss:$8 sps:$4 sm:$0xff]  }
 0x4c8   :  { %8517 = vmatmul.mubr.bf16.gmra.mrb[4].mxu1 %v3294_v29 }
 0x4c9   :  { %8520 = vmatprep.mubr.bf16.mxu1 %v3295_v48  ;;  %v9461_v48 = vld [vmem:[#allocation15 + $0x10] ss:$8 sps:$4 sm:$0xff]  }
 0x4d0   :  { %8521 = vmatmul.mubr.bf16.gmra.mrb[8].mxu1 %v3296_v14 }
 0x4d1   :  { %8524 = vmatprep.mubr.bf16.mxu1 %v3297_v43 }
 0x4d8   :  { %8525 = vmatmul.mubr.bf16.gmra.mrb[12].mxu1 %v3298_v15  ;;  %v9464_v15 = vld [vmem:[#allocation15 + $0x20] ss:$8 sps:$4 sm:$0xff]  }
 0x4d9   :  { %8528 = vmatprep.mubr.bf16.mxu1 %v3299_v7 }
 0x4e0   :  { %8529 = vmatmul.mubr.bf16.gmra.mrb[16].mxu1 %v3300_v18 }
 0x4e1   :  { %8532 = vmatprep.mubr.bf16.mxu1 %v3301_v11 }
 0x4e8   :  { %8533 = vmatmul.mubr.bf16.gmra.mrb[20].mxu1 %v3302_v38 }
 0x4e9   :  { %8536 = vmatprep.mubr.bf16.mxu1 %v3303_v41 }
 0x4f0   :  { %8537 = vmatmul.mubr.bf16.gmra.mrb[24].mxu1 %v3304_v22 }
 0x4f1   :  { %8540 = vmatprep.mubr.bf16.mxu1 %v3305_v24 }
 0x4f8   :  { %8541 = vmatmul.mubr.bf16.gmra.mrb[28].mxu1 %v3306_v49  ;;  %v9475_v49 = vld [vmem:[#allocation15 + $0x54] ss:$8 sps:$4 sm:$0xff]  }
 0x593   :  { %v8514_v13 = vpop.f32.mrb[0].mxu1 }
 0x594   :  { %v3557_v59 = vadd.f32 %v8514_v13, %v11339_v21  ;;  %v3389_v46 = vpop.f32.mrb[1].mxu1  ;;  %v9478_v13 = vld [vmem:[#allocation15 + $0x64] ss:$8 sps:$4 sm:$0xff]  }
 0x595   :  { %v3555_v30 = vadd.f32 %v11339_v21, %v3389_v46  ;;  %v8515_v58 = vpop.f32.mrb[2].mxu1 }
 0x596   :  { %v3558_v5 = vadd.f32 %v8515_v58, %v11339_v21  ;;  %v3392_v57 = vpop.f32.mrb[3].mxu1  ;;  %v3589_v2 = vmax.f32 %v3557_v59, 0.0 }
 0x597   :  { %v3556_v63 = vadd.f32 %v11339_v21, %v3392_v57  ;;  %v3587_v0 = vmax.f32 %v3555_v30, 0.0  ;;  %v9476_v57 = vld [vmem:[#allocation15 + $0x60] ss:$8 sps:$4 sm:$0xff]  }
 0x598   :  { %v3590_v42 = vmax.f32 %v3558_v5, 0.0 }
 0x599   :  { %v3588_v12 = vmax.f32 %v3556_v63, 0.0 }
 0x59a   :  { %v11345_v25 = vpack.c.bf16 %v3590_v42, %v3589_v2 }
 0x59b   :  { %v11347_v56 = vpack.c.bf16 %v3588_v12, %v3587_v0  ;;  %v8518_v61 = vpop.f32.mrb[4].mxu1 }
 0x59c   :  { %14324 = vst [vmem:[#allocation52_spill] sm:$0xff] %v11345_v25  ;;  %v3561_v40 = vadd.f32 %v8518_v61, %v11339_v21  ;;  %v3405_v28 = vpop.f32.mrb[5].mxu1 }
 0x59d   :  { %14325 = vst [vmem:[#allocation50_spill] sm:$0xff] %v11347_v56  ;;  %v3559_v33 = vadd.f32 %v11339_v21, %v3405_v28  ;;  %v8519_v19 = vpop.f32.mrb[6].mxu1  ;;  %8608 = vmatprep.mubr.bf16.mxu0 %v11347_v56 }
 0x59e   :  { %v3562_v29 = vadd.f32 %v8519_v19, %v11339_v21  ;;  %v3408_v34 = vpop.f32.mrb[7].mxu1  ;;  %8609 = vmatmul.mubr.bf16.vlgmr.msra.gmra.mrb[32].mxu0 %v11345_v25  ;;  %v3593_v6 = vmax.f32 %v3561_v40, 0.0 }
 0x59f   :  { %v3560_v54 = vadd.f32 %v11339_v21, %v3408_v34  ;;  %4329 = vmatpush1.bf16.msra.mxu0 %v9458_v1  ;;  %v3591_v14 = vmax.f32 %v3559_v33, 0.0 }
 0x5a0   :  { %v3594_v3 = vmax.f32 %v3562_v29, 0.0  ;;  %4330 = vmatprep.subr.bf16.mxu0 %v9463_v53 }
 0x5a1   :  { %v3592_v37 = vmax.f32 %v3560_v54, 0.0 }
 0x5a2   :  { %v11355_v43 = vpack.c.bf16 %v3594_v3, %v3593_v6 }
 0x5a3   :  { %v11357_v62 = vpack.c.bf16 %v3592_v37, %v3591_v14  ;;  %v8522_v9 = vpop.f32.mrb[8].mxu1  ;;  %4331 = vmatpush1.bf16.msra.mxu0 %v9461_v48 }
 0x5a4   :  { %14326 = vst [vmem:[#allocation51_spill] sm:$0xff] %v11355_v43  ;;  %v3565_v26 = vadd.f32 %v8522_v9, %v11339_v21  ;;  %v3421_v7 = vpop.f32.mrb[9].mxu1  ;;  %4332 = vmatprep.subr.bf16.mxu0 %v9466_v4 }
 0x5a5   :  { %14327 = vst [vmem:[#allocation53_spill] sm:$0xff] %v11357_v62  ;;  %v3563_v17 = vadd.f32 %v11339_v21, %v3421_v7  ;;  %v8523_v8 = vpop.f32.mrb[10].mxu1  ;;  %8612 = vmatprep.mubr.bf16.mxu0 %v11357_v62 }
 0x5a6   :  { %v3566_v18 = vadd.f32 %v8523_v8, %v11339_v21  ;;  %v3424_v10 = vpop.f32.mrb[11].mxu1  ;;  %8613 = vmatmul.mubr.bf16.gmra.mrb[36].mxu0 %v11355_v43  ;;  %v3597_v44 = vmax.f32 %v3565_v26, 0.0 }
 0x5a7   :  { %v3564_v11 = vadd.f32 %v11339_v21, %v3424_v10  ;;  %4333 = vmatpush1.bf16.msra.mxu0 %v9464_v15  ;;  %v3595_v41 = vmax.f32 %v3563_v17, 0.0 }
 0x5a8   :  { %v3598_v38 = vmax.f32 %v3566_v18, 0.0  ;;  %4334 = vmatprep.subr.bf16.mxu0 %v9469_v39 }
 0x5a9   :  { %v3596_v35 = vmax.f32 %v3564_v11, 0.0 }
 0x5aa   :  { %v11365_v55 = vpack.c.bf16 %v3598_v38, %v3597_v44 }
 0x5ab   :  { %v11367_v20 = vpack.c.bf16 %v3596_v35, %v3595_v41  ;;  %v8526_v22 = vpop.f32.mrb[12].mxu1  ;;  %4335 = vmatpush1.bf16.msra.mxu0 %v9467_v23 }
 0x5ac   :  { %14328 = vst [vmem:[#allocation49_spill] sm:$0xff] %v11365_v55  ;;  %v3569_v24 = vadd.f32 %v8526_v22, %v11339_v21  ;;  %v3437_v31 = vpop.f32.mrb[13].mxu1  ;;  %4336 = vmatprep.subr.bf16.mxu0 %v9472_v50 }
 0x5ad   :  { %14329 = vst [vmem:[#allocation56_spill] sm:$0xff] %v11367_v20  ;;  %v3567_v45 = vadd.f32 %v11339_v21, %v3437_v31  ;;  %v8527_v60 = vpop.f32.mrb[14].mxu1  ;;  %8616 = vmatprep.mubr.bf16.mxu0 %v11367_v20 }
 0x5ae   :  { %v3570_v36 = vadd.f32 %v8527_v60, %v11339_v21  ;;  %v3440_v32 = vpop.f32.mrb[15].mxu1  ;;  %8617 = vmatmul.mubr.bf16.gmra.mrb[40].mxu0 %v11365_v55  ;;  %v3601_v52 = vmax.f32 %v3569_v24, 0.0 }
 0x5af   :  { %v3568_v27 = vadd.f32 %v11339_v21, %v3440_v32  ;;  %4337 = vmatpush1.bf16.msra.mxu0 %v9470_v47  ;;  %v3599_v59 = vmax.f32 %v3567_v45, 0.0 }
 0x5b0   :  { %v3602_v51 = vmax.f32 %v3570_v36, 0.0  ;;  %4338 = vmatprep.subr.bf16.mxu0 %v9475_v49 }
 0x5b1   :  { %v3600_v46 = vmax.f32 %v3568_v27, 0.0 }
 0x5b2   :  { %v11375_v30 = vpack.c.bf16 %v3602_v51, %v3601_v52 }
 0x5b3   :  { %v11377_v58 = vpack.c.bf16 %v3600_v46, %v3599_v59  ;;  %v8530_v5 = vpop.f32.mrb[16].mxu1  ;;  %4339 = vmatpush1.bf16.msra.mxu0 %v9473_v16 }
 0x5b4   :  { %14330 = vst [vmem:[#allocation55_spill] sm:$0xff] %v11375_v30  ;;  %v3573_v63 = vadd.f32 %v8530_v5, %v11339_v21  ;;  %v3453_v2 = vpop.f32.mrb[17].mxu1  ;;  %4340 = vmatprep.subr.bf16.mxu0 %v9478_v13 }
 0x5b5   :  { %14331 = vst [vmem:[#allocation54_spill] sm:$0xff] %v11377_v58  ;;  %v3571_v42 = vadd.f32 %v11339_v21, %v3453_v2  ;;  %v8531_v0 = vpop.f32.mrb[18].mxu1  ;;  %8620 = vmatprep.mubr.bf16.mxu0 %v11377_v58  ;;  %v9481_v2 = vld [vmem:[#allocation15 + $0x74] ss:$8 sps:$4 sm:$0xff]  }
 0x5b6   :  { %v3574_v12 = vadd.f32 %v8531_v0, %v11339_v21  ;;  %v3456_v61 = vpop.f32.mrb[19].mxu1  ;;  %8621 = vmatmul.mubr.bf16.gmra.mrb[44].mxu0 %v11375_v30  ;;  %v3605_v40 = vmax.f32 %v3573_v63, 0.0  ;;  %v9479_v63 = vld [vmem:[#allocation15 + $0x70] ss:$8 sps:$4 sm:$0xff]  }
 0x5b7   :  { %v3572_v1 = vadd.f32 %v11339_v21, %v3456_v61  ;;  %4341 = vmatpush1.bf16.msra.mxu0 %v9476_v57  ;;  %v3603_v53 = vmax.f32 %v3571_v42, 0.0  ;;  %v10101_v42 = vmov 0  }
 0x5b8   :  { %v3606_v28 = vmax.f32 %v3574_v12, 0.0  ;;  %4342 = vmatprep.subr.bf16.mxu0 %v9481_v2 }
 0x5b9   :  { %v3604_v33 = vmax.f32 %v3572_v1, 0.0 }
 0x5ba   :  { %v11385_v19 = vpack.c.bf16 %v3606_v28, %v3605_v40 }
 0x5bb   :  { %v11387_v29 = vpack.c.bf16 %v3604_v33, %v3603_v53  ;;  %v8534_v34 = vpop.f32.mrb[20].mxu1  ;;  %4343 = vmatpush1.bf16.msra.mxu0 %v9479_v63 }
 0x5bc   :  { %14332 = vst [vmem:[#allocation60_spill] sm:$0xff] %v11385_v19  ;;  %v3577_v54 = vadd.f32 %v8534_v34, %v11339_v21  ;;  %v3469_v48 = vpop.f32.mrb[21].mxu1 }
 0x5bd   :  { %14333 = vst [vmem:[#allocation58_spill] sm:$0xff] %v11387_v29  ;;  %v3575_v6 = vadd.f32 %v11339_v21, %v3469_v48  ;;  %v8535_v3 = vpop.f32.mrb[22].mxu1  ;;  %8624 = vmatprep.mubr.bf16.mxu0 %v11387_v29 }
 0x5be   :  { %v3578_v4 = vadd.f32 %v8535_v3, %v11339_v21  ;;  %v3472_v14 = vpop.f32.mrb[23].mxu1  ;;  %8625 = vmatmul.mubr.bf16.gmra.mrb[48].mxu0 %v11385_v19  ;;  %v3609_v9 = vmax.f32 %v3577_v54, 0.0 }
 0x5bf   :  { %v3576_v37 = vadd.f32 %v11339_v21, %v3472_v14  ;;  %v3607_v26 = vmax.f32 %v3575_v6, 0.0 }
 0x5c0   :  { %v3610_v15 = vmax.f32 %v3578_v4, 0.0 }
 0x5c1   :  { %v3608_v7 = vmax.f32 %v3576_v37, 0.0 }
 0x5c2   :  { %v11395_v39 = vpack.c.bf16 %v3610_v15, %v3609_v9 }
 0x5c3   :  { %v11397_v17 = vpack.c.bf16 %v3608_v7, %v3607_v26  ;;  %v8538_v8 = vpop.f32.mrb[24].mxu1 }
 0x5c4   :  { %14334 = vst [vmem:[#allocation59_spill] sm:$0xff] %v11395_v39  ;;  %v3581_v18 = vadd.f32 %v8538_v8, %v11339_v21  ;;  %v3485_v10 = vpop.f32.mrb[25].mxu1 }
 0x5c5   :  { %14335 = vst [vmem:[#allocation57_spill] sm:$0xff] %v11397_v17  ;;  %v3579_v11 = vadd.f32 %v11339_v21, %v3485_v10  ;;  %v8539_v23 = vpop.f32.mrb[26].mxu1  ;;  %8628 = vmatprep.mubr.bf16.mxu0 %v11397_v17 }
 0x5c6   :  { %v3582_v44 = vadd.f32 %v8539_v23, %v11339_v21  ;;  %v3488_v38 = vpop.f32.mrb[27].mxu1  ;;  %8629 = vmatmul.mubr.bf16.gmra.mrb[52].mxu0 %v11395_v39  ;;  %v3613_v41 = vmax.f32 %v3581_v18, 0.0 }
 0x5c7   :  { %v3580_v50 = vadd.f32 %v11339_v21, %v3488_v38  ;;  %v3611_v22 = vmax.f32 %v3579_v11, 0.0 }
 0x5c8   :  { %v3614_v35 = vmax.f32 %v3582_v44, 0.0 }
 0x5c9   :  { %v3612_v47 = vmax.f32 %v3580_v50, 0.0 }
 0x5ca   :  { %v11405_v24 = vpack.c.bf16 %v3614_v35, %v3613_v41 }
 0x5cb   :  { %v11407_v31 = vpack.c.bf16 %v3612_v47, %v3611_v22  ;;  %v8542_v49 = vpop.f32.mrb[28].mxu1 }
 0x5cc   :  { %14336 = vst [vmem:[#allocation62_spill] sm:$0xff] %v11405_v24  ;;  %v3585_v45 = vadd.f32 %v8542_v49, %v11339_v21  ;;  %v3501_v60 = vpop.f32.mrb[29].mxu1 }
 0x5cd   :  { %14337 = vst [vmem:[#allocation61_spill] sm:$0xff] %v11407_v31  ;;  %v3583_v36 = vadd.f32 %v11339_v21, %v3501_v60  ;;  %v8543_v32 = vpop.f32.mrb[30].mxu1  ;;  %8632 = vmatprep.mubr.bf16.mxu0 %v11407_v31 }
 0x5ce   :  { %v3586_v27 = vadd.f32 %v8543_v32, %v11339_v21  ;;  %v3504_v16 = vpop.f32.mrb[31].mxu1  ;;  %8633 = vmatmul.mubr.bf16.gmra.mrb[56].mxu0 %v11405_v24  ;;  %v3617_v51 = vmax.f32 %v3585_v45, 0.0 }
 0x5cf   :  { %v3584_v52 = vadd.f32 %v11339_v21, %v3504_v16  ;;  %v3615_v59 = vmax.f32 %v3583_v36, 0.0  ;;  %v11422_v21 = vld [vmem:[#allocation14] ss:$0 sm:$0xff] }
 0x5d0   :  { %v3618_v13 = vmax.f32 %v3586_v27, 0.0 }
 0x5d1   :  { %v3616_v46 = vmax.f32 %v3584_v52, 0.0 }
 0x5d2   :  { %v11415_v5 = vpack.c.bf16 %v3618_v13, %v3617_v51 }
 0x5d3   :  { %v11417_v57 = vpack.c.bf16 %v3616_v46, %v3615_v59 }
 0x5d4   :  { %14338 = vst [vmem:[#allocation63_spill] sm:$0xff] %v11415_v5 }
 0x5d5   :  { %14339 = vst [vmem:[#allocation67_spill] sm:$0xff] %v11417_v57  ;;  %8636 = vmatprep.mubr.bf16.mxu0 %v11417_v57 }
 0x5d6   :  { %8637 = vmatmul.mubr.bf16.gmra.mrb[60].mxu0 %v11415_v5 }
 0x5d7   :  { %4360 = vmatprep.mubr.bf16.mxu0 %v10101_v42 }
 0x671   :  { %v8610_v0 = vpop.f32.mrb[32].mxu0 }
 0x672   :  { %v4142_v12 = vadd.f32 %v8610_v0, %v11422_v21  ;;  %v4006_v61 = vpop.f32.mrb[33].mxu0 }
 0x673   :  { %v4140_v1 = vadd.f32 %v11422_v21, %v4006_v61  ;;  %v8611_v40 = vpop.f32.mrb[34].mxu0 }
 0x674   :  { %v4143_v28 = vadd.f32 %v8611_v40, %v11422_v21  ;;  %v4009_v53 = vpop.f32.mrb[35].mxu0  ;;  %v4174_v34 = vmax.f32 %v4142_v12, 0.0 }
 0x675   :  { %v4141_v33 = vadd.f32 %v11422_v21, %v4009_v53  ;;  %v4172_v48 = vmax.f32 %v4140_v1, 0.0 }
 0x676   :  { %v4175_v54 = vmax.f32 %v4143_v28, 0.0 }
 0x677   :  { %v4173_v6 = vmax.f32 %v4141_v33, 0.0 }
 0x678   :  { %v4221_v3 = vpack.c.bf16 %v4175_v54, %v4174_v34 }
 0x679   :  { %v4220_v4 = vpack.c.bf16 %v4173_v6, %v4172_v48  ;;  %v8614_v14 = vpop.f32.mrb[36].mxu0 }
 0x67a   :  { %v4146_v37 = vadd.f32 %v8614_v14, %v11422_v21  ;;  %v4022_v9 = vpop.f32.mrb[37].mxu0 }
 0x67b   :  { %v4144_v15 = vadd.f32 %v11422_v21, %v4022_v9  ;;  %v8615_v26 = vpop.f32.mrb[38].mxu0  ;;  %4361 = vmatmul.mubr.bf16.vlgmr.msra.gmra.mrb[64].mxu0 %v4220_v4 }
 0x67c   :  { %v4147_v7 = vadd.f32 %v8615_v26, %v11422_v21  ;;  %v4025_v8 = vpop.f32.mrb[39].mxu0  ;;  %4370 = vmatprep.mubr.bf16.mxu0 %v10101_v42  ;;  %v4178_v10 = vmax.f32 %v4146_v37, 0.0 }
 0x67d   :  { %v4145_v18 = vadd.f32 %v11422_v21, %v4025_v8  ;;  %v4176_v23 = vmax.f32 %v4144_v15, 0.0 }
 0x67e   :  { %v4179_v11 = vmax.f32 %v4147_v7, 0.0 }
 0x67f   :  { %v4177_v44 = vmax.f32 %v4145_v18, 0.0 }
 0x680   :  { %v4223_v38 = vpack.c.bf16 %v4179_v11, %v4178_v10 }
 0x681   :  { %v4222_v50 = vpack.c.bf16 %v4177_v44, %v4176_v23  ;;  %v8618_v41 = vpop.f32.mrb[40].mxu0 }
 0x682   :  { %v4150_v35 = vadd.f32 %v8618_v41, %v11422_v21  ;;  %v4038_v22 = vpop.f32.mrb[41].mxu0 }
 0x683   :  { %v4148_v47 = vadd.f32 %v11422_v21, %v4038_v22  ;;  %v8619_v49 = vpop.f32.mrb[42].mxu0  ;;  %4371 = vmatmul.mubr.bf16.gmra.mrb[68].mxu0 %v4221_v3 }
 0x684   :  { %v4151_v45 = vadd.f32 %v8619_v49, %v11422_v21  ;;  %v4041_v60 = vpop.f32.mrb[43].mxu0  ;;  %4380 = vmatprep.mubr.bf16.mxu0 %v10101_v42  ;;  %v4182_v32 = vmax.f32 %v4150_v35, 0.0 }
 0x685   :  { %v4149_v36 = vadd.f32 %v11422_v21, %v4041_v60  ;;  %v4180_v16 = vmax.f32 %v4148_v47, 0.0 }
 0x686   :  { %v4183_v27 = vmax.f32 %v4151_v45, 0.0 }
 0x687   :  { %v4181_v52 = vmax.f32 %v4149_v36, 0.0 }
 0x688   :  { %v4225_v51 = vpack.c.bf16 %v4183_v27, %v4182_v32 }
 0x689   :  { %v4224_v13 = vpack.c.bf16 %v4181_v52, %v4180_v16  ;;  %v8622_v59 = vpop.f32.mrb[44].mxu0 }
 0x68a   :  { %v4154_v46 = vadd.f32 %v8622_v59, %v11422_v21  ;;  %v4054_v63 = vpop.f32.mrb[45].mxu0 }
 0x68b   :  { %v4152_v2 = vadd.f32 %v11422_v21, %v4054_v63  ;;  %v8623_v0 = vpop.f32.mrb[46].mxu0  ;;  %4381 = vmatmul.mubr.bf16.gmra.mrb[72].mxu0 %v4222_v50 }
 0x68c   :  { %v4155_v12 = vadd.f32 %v8623_v0, %v11422_v21  ;;  %v4057_v61 = vpop.f32.mrb[47].mxu0  ;;  %4390 = vmatprep.mubr.bf16.mxu0 %v10101_v42  ;;  %v4186_v40 = vmax.f32 %v4154_v46, 0.0 }
 0x68d   :  { %v4153_v1 = vadd.f32 %v11422_v21, %v4057_v61  ;;  %v4184_v53 = vmax.f32 %v4152_v2, 0.0 }
 0x68e   :  { %v4187_v28 = vmax.f32 %v4155_v12, 0.0 }
 0x68f   :  { %v4185_v33 = vmax.f32 %v4153_v1, 0.0 }
 0x690   :  { %v11443_v34 = vpack.c.bf16 %v4187_v28, %v4186_v40 }
 0x691   :  { %v4226_v54 = vpack.c.bf16 %v4185_v33, %v4184_v53  ;;  %v8626_v48 = vpop.f32.mrb[48].mxu0 }
 0x692   :  { %v4158_v6 = vadd.f32 %v8626_v48, %v11422_v21  ;;  %v4070_v3 = vpop.f32.mrb[49].mxu0 }
 0x693   :  { %v4156_v4 = vadd.f32 %v11422_v21, %v4070_v3  ;;  %v8627_v14 = vpop.f32.mrb[50].mxu0  ;;  %4391 = vmatmul.mubr.bf16.gmra.mrb[76].mxu0 %v4223_v38 }
 0x694   :  { %v4159_v37 = vadd.f32 %v8627_v14, %v11422_v21  ;;  %v4073_v9 = vpop.f32.mrb[51].mxu0  ;;  %4400 = vmatprep.mubr.bf16.mxu0 %v10101_v42  ;;  %v4190_v26 = vmax.f32 %v4158_v6, 0.0 }
 0x695   :  { %v4157_v15 = vadd.f32 %v11422_v21, %v4073_v9  ;;  %v4188_v8 = vmax.f32 %v4156_v4, 0.0 }
 0x696   :  { %v4191_v7 = vmax.f32 %v4159_v37, 0.0 }
 0x697   :  { %v4189_v18 = vmax.f32 %v4157_v15, 0.0 }
 0x698   :  { %v4229_v10 = vpack.c.bf16 %v4191_v7, %v4190_v26 }
 0x699   :  { %v4228_v11 = vpack.c.bf16 %v4189_v18, %v4188_v8  ;;  %v8630_v23 = vpop.f32.mrb[52].mxu0 }
 0x69a   :  { %v4162_v44 = vadd.f32 %v8630_v23, %v11422_v21  ;;  %v4086_v50 = vpop.f32.mrb[53].mxu0 }
 0x69b   :  { %v4160_v41 = vadd.f32 %v11422_v21, %v4086_v50  ;;  %v8631_v38 = vpop.f32.mrb[54].mxu0  ;;  %4401 = vmatmul.mubr.bf16.gmra.mrb[80].mxu0 %v4224_v13  ;;  %v4812_v50 = vld [vmem:[%s14340_s14 + $0x98] sm:$0xff] }
 0x69c   :  { %v4163_v35 = vadd.f32 %v8631_v38, %v11422_v21  ;;  %v4089_v22 = vpop.f32.mrb[55].mxu0  ;;  %4410 = vmatprep.mubr.bf16.mxu0 %v10101_v42  ;;  %v4194_v49 = vmax.f32 %v4162_v44, 0.0  ;;  %v4811_v44 = vld [vmem:[%s14340_s14 + $0x90] sm:$0xff] }
 0x69d   :  { %v4161_v47 = vadd.f32 %v11422_v21, %v4089_v22  ;;  %v4192_v60 = vmax.f32 %v4160_v41, 0.0  ;;  %v4795_v41 = vld [vmem:[%s14340_s14 + $0x10] sm:$0xff]  ;;  %v11501_v38 = vpack.c.bf16 %v4812_v50, %v4811_v44  ;;  %v4813_v22 = vld [vmem:[%s14340_s14 + $0xa0] sm:$0xff] }
 0x69e   :  { %v4195_v45 = vmax.f32 %v4163_v35, 0.0  ;;  %v4796_v35 = vld [vmem:[%s14340_s14 + $0x18] sm:$0xff] }
 0x69f   :  { %v4193_v36 = vmax.f32 %v4161_v47, 0.0  ;;  %v4814_v47 = vld [vmem:[%s14340_s14 + $0xa8] sm:$0xff] }
 0x6a0   :  { %v4231_v32 = vpack.c.bf16 %v4195_v45, %v4194_v49  ;;  %v4797_v49 = vld [vmem:[%s14340_s14 + $0x20] sm:$0xff]  ;;  %v11519_v45 = vpack.c.bf16 %v4814_v47, %v4813_v22 }
 0x6a1   :  { %v4230_v27 = vpack.c.bf16 %v4193_v36, %v4192_v60  ;;  %v8634_v16 = vpop.f32.mrb[56].mxu0  ;;  %v4798_v60 = vld [vmem:[%s14340_s14 + $0x28] sm:$0xff] }
 0x6a2   :  { %v4166_v52 = vadd.f32 %v8634_v16, %v11422_v21  ;;  %v4102_v59 = vpop.f32.mrb[57].mxu0  ;;  %v11524_v36 = vpack.c.bf16 %v4798_v60, %v4797_v49  ;;  %v4799_v16 = vld [vmem:[%s14340_s14 + $0x30] sm:$0xff] }
 0x6a3   :  { %v4164_v46 = vadd.f32 %v11422_v21, %v4102_v59  ;;  %v8635_v13 = vpop.f32.mrb[58].mxu0  ;;  %4411 = vmatmul.mubr.bf16.gmra.mrb[84].mxu0 %v4225_v51  ;;  %v4800_v59 = vld [vmem:[%s14340_s14 + $0x38] sm:$0xff] }
 0x6a4   :  { %v4167_v63 = vadd.f32 %v8635_v13, %v11422_v21  ;;  %v4105_v2 = vpop.f32.mrb[59].mxu0  ;;  %4420 = vmatprep.mubr.bf16.mxu0 %v10101_v42  ;;  %v4198_v12 = vmax.f32 %v4166_v52, 0.0  ;;  %v4817_v13 = vld [vmem:[%s14340_s14 + $0xc0] sm:$0xff] }
 0x6a5   :  { %v4165_v0 = vadd.f32 %v11422_v21, %v4105_v2  ;;  %v4196_v1 = vmax.f32 %v4164_v46, 0.0  ;;  %v11542_v46 = vpack.c.bf16 %v4800_v59, %v4799_v16  ;;  %v4801_v2 = vld [vmem:[%s14340_s14 + $0x40] sm:$0xff] }
 0x6a6   :  { %v4199_v61 = vmax.f32 %v4167_v63, 0.0  ;;  %v4818_v63 = vld [vmem:[%s14340_s14 + $0xc8] sm:$0xff] }
 0x6a7   :  { %v4197_v40 = vmax.f32 %v4165_v0, 0.0  ;;  %v11555_v0 = vpack.c.bf16 %v4818_v63, %v4817_v13  ;;  %v4238_v13 = vlaneseq }
 0x6a8   :  { %v4233_v28 = vpack.c.bf16 %v4199_v61, %v4198_v12  ;;  %v4802_v12 = vld [vmem:[%s14340_s14 + $0x48] sm:$0xff] }
 0x6a9   :  { %v4232_v53 = vpack.c.bf16 %v4197_v40, %v4196_v1  ;;  %v8638_v33 = vpop.f32.mrb[60].mxu0  ;;  %v11560_v61 = vpack.c.bf16 %v4802_v12, %v4801_v2  ;;  %v4819_v1 = vld [vmem:[%s14340_s14 + $0xd0] sm:$0xff]  ;;  %v4820_v40 = vld [vmem:[%s14340_s14 + $0xd8] sm:$0xff] }
 0x6aa   :  { %v4170_v48 = vadd.f32 %v8638_v33, %v11422_v21  ;;  %v4118_v6 = vpop.f32.mrb[61].mxu0  ;;  %v4804_v33 = vld [vmem:[%s14340_s14 + $0x58] sm:$0xff] }
 0x6ab   :  { %v4168_v3 = vadd.f32 %v11422_v21, %v4118_v6  ;;  %v8639_v51 = vpop.f32.mrb[62].mxu0  ;;  %4421 = vmatmul.mubr.bf16.gmra.mrb[88].mxu0 %v4226_v54  ;;  %v4793_v54 = vld [vmem:[%s14340_s14] sm:$0xff] }
 0x6ac   :  { %v4171_v4 = vadd.f32 %v8639_v51, %v11422_v21  ;;  %v4121_v14 = vpop.f32.mrb[63].mxu0  ;;  %4430 = vmatprep.mubr.bf16.mxu0 %v10101_v42  ;;  %v4202_v9 = vmax.f32 %v4170_v48, 0.0  ;;  %v4821_v6 = vld [vmem:[%s14340_s14 + $0xe0] sm:$0xff] }
 0x6ad   :  { %v4169_v37 = vadd.f32 %v11422_v21, %v4121_v14  ;;  %v4200_v26 = vmax.f32 %v4168_v3, 0.0  ;;  %v4809_v21 = vld [vmem:[%s14340_s14 + $0x80] sm:$0xff]  ;;  %v4822_v3 = vld [vmem:[%s14340_s14 + $0xe8] sm:$0xff] }
 0x6ae   :  { %v4203_v15 = vmax.f32 %v4171_v4, 0.0  ;;  %v4805_v51 = vld [vmem:[%s14340_s14 + $0x60] sm:$0xff]  ;;  %v11591_v4 = vpack.c.bf16 %v4822_v3, %v4821_v6  ;;  %v4806_v14 = vld [vmem:[%s14340_s14 + $0x68] sm:$0xff] }
 0x6af   :  { %v4201_v7 = vmax.f32 %v4169_v37, 0.0  ;;  %v11596_v37 = vpack.c.bf16 %v4806_v14, %v4805_v51  ;;  %v4236_v6 = vld [vmem:[%s14350_s1] sm:$0x3] }
 0x6b0   :  { %v4235_v8 = vpack.c.bf16 %v4203_v15, %v4202_v9  ;;  %14343 = vst [vmem:[#allocation64_spill] sm:$0xff] %v11591_v4 }
 0x6b1   :  { %v4234_v18 = vpack.c.bf16 %v4201_v7, %v4200_v26  ;;  %14344 = vst [vmem:[#allocation69_spill] sm:$0xff] %v11596_v37 }
 0x6b3   :  { %4431 = vmatmul.mubr.bf16.gmra.mrb[92].mxu0 %v11443_v34  ;;  %v4810_v34 = vld [vmem:[%s14340_s14 + $0x88] sm:$0xff] }
 0x6b4   :  { %4440 = vmatprep.mubr.bf16.mxu0 %v10101_v42 }
 0x6bb   :  { %4441 = vmatmul.mubr.bf16.gmra.mrb[96].mxu0 %v4228_v11  ;;  %v4794_v11 = vld [vmem:[%s14340_s14 + $0x8] sm:$0xff] }
 0x6bc   :  { %4450 = vmatprep.mubr.bf16.mxu0 %v10101_v42  ;;  %v11486_v23 = vpack.c.bf16 %v4794_v11, %v4793_v54  ;;  %v4808_v11 = vld [vmem:[%s14340_s14 + $0x78] sm:$0xff] }
 0x6c3   :  { %4451 = vmatmul.mubr.bf16.gmra.mrb[100].mxu0 %v4229_v10  ;;  %v11481_v10 = vpack.c.bf16 %v4810_v34, %v4809_v21  ;;  %v4807_v21 = vld [vmem:[%s14340_s14 + $0x70] sm:$0xff] }
 0x6c4   :  { %4460 = vmatprep.mubr.bf16.mxu0 %v10101_v42  ;;  %v11614_v50 = vpack.c.bf16 %v4808_v11, %v4807_v21 }
 0x6c5   :  { %8858 = vmatprep.subr.bf16.mxu0 %v11481_v10 }
 0x6c6   :  { %8860 = vmatpush3.bf16.msra.mxu0 %v11486_v23  ;;  %14346 = vst [vmem:[#allocation70_spill] sm:$0xff] %v11614_v50 }
 0x6c7   :  { %8862 = vmatprep.subr.bf16.mxu0 %v11501_v38 }
 0x6cb   :  { %4461 = vmatmul.mubr.bf16.gmra.mrb[104].mxu0 %v4230_v27  ;;  %v4816_v27 = vld [vmem:[%s14340_s14 + $0xb8] sm:$0xff] }
 0x6cc   :  { %4470 = vmatprep.mubr.bf16.mxu0 %v10101_v42 }
 0x6d3   :  { %4471 = vmatmul.mubr.bf16.gmra.mrb[108].mxu0 %v4231_v32  ;;  %v4815_v32 = vld [vmem:[%s14340_s14 + $0xb0] sm:$0xff] }
 0x6d4   :  { %4480 = vmatprep.mubr.bf16.mxu0 %v10101_v42  ;;  %v11537_v52 = vpack.c.bf16 %v4816_v27, %v4815_v32 }
 0x6db   :  { %4481 = vmatmul.mubr.bf16.gmra.mrb[112].mxu0 %v4232_v53  ;;  %v11573_v53 = vpack.c.bf16 %v4820_v40, %v4819_v1  ;;  %v11627_v40 = vshrl.u32 %v4238_v13, 7 }
 0x6dc   :  { %4490 = vmatprep.mubr.bf16.mxu0 %v10101_v42 }
 0x6dd   :  { %14341 = vst [vmem:[#allocation65_spill] sm:$0xff] %v11573_v53  ;;  %14347 = vst [vmem:[#allocation79_spill] sm:$0xff] %v11627_v40 }
 0x6e3   :  { %4491 = vmatmul.mubr.bf16.gmra.mrb[116].mxu0 %v4233_v28  ;;  %v4803_v28 = vld [vmem:[%s14340_s14 + $0x50] sm:$0xff] }
 0x6e4   :  { %4500 = vmatprep.mubr.bf16.mxu0 %v10101_v42  ;;  %v11578_v48 = vpack.c.bf16 %v4804_v33, %v4803_v28  ;;  %v11633_v28 = vsub.s32 1, %v11627_v40 }
 0x6e6   :  { %14342 = vst [vmem:[#allocation66_spill] sm:$0xff] %v11578_v48  ;;  %14349 = vst [vmem:[#allocation71_spill] sm:$0xff] %v11633_v28 }
 0x6eb   :  { %4501 = vmatmul.mubr.bf16.gmra.mrb[120].mxu0 %v4234_v18  ;;  %v4824_v18 = vld [vmem:[%s14340_s14 + $0xf8] sm:$0xff] }
 0x6ec   :  { %4510 = vmatprep.mubr.bf16.mxu0 %v10101_v42  ;;  %v11506_v42 = vpack.c.bf16 %v4796_v35, %v4795_v41 }
 0x6ee   :  { %8864 = vmatpush3.bf16.msra.mxu0 %v11506_v42 }
 0x6ef   :  { %8866 = vmatprep.subr.bf16.mxu0 %v11519_v45 }
 0x6f2   :  { %8868 = vmatpush3.bf16.msra.mxu0 %v11524_v36 }
 0x6f3   :  { %4511 = vmatmul.mubr.bf16.gmra.mrb[124].mxu0 %v4235_v8  ;;  %8870 = vmatprep.subr.bf16.mxu0 %v11537_v52  ;;  %v4823_v8 = vld [vmem:[%s14340_s14 + $0xf0] sm:$0xff] }
 0x6f4   :  { %v11609_v54 = vpack.c.bf16 %v4824_v18, %v4823_v8  ;;  %v11650_v18 = vrot.slane %v4236_v6, %v11633_v28 }
 0x6f6   :  { %8872 = vmatpush3.bf16.msra.mxu0 %v11542_v46  ;;  %14345 = vst [vmem:[#allocation68_spill] sm:$0xff] %v11609_v54 }
 0x6f7   :  { %8874 = vmatprep.subr.bf16.mxu0 %v11555_v0 }
 0x6fa   :  { %8876 = vmatpush3.bf16.msra.mxu0 %v11560_v61 }
 0x6fb   :  { %8878 = vmatprep.subr.bf16.mxu0 %v11573_v53 }
 0x6fe   :  { %8880 = vmatpush3.bf16.msra.mxu0 %v11578_v48 }
 0x6ff   :  { %8882 = vmatprep.subr.bf16.mxu0 %v11591_v4 }
 0x702   :  { %8884 = vmatpush3.bf16.msra.mxu0 %v11596_v37 }
 0x703   :  { %8886 = vmatprep.subr.bf16.mxu0 %v11609_v54 }
 0x706   :  { %8888 = vmatpush3.bf16.msra.mxu0 %v11614_v50 }
 0x707   :  { %8890 = vmatprep.subr.bf16.mxu0 %v11481_v10  ;;  %v11630_v10 = vsub.s32 0, %v11627_v40 }
 0x709   :  { %14348 = vst [vmem:[#allocation80_spill] sm:$0xff] %v11630_v10  ;;  %v11647_v8 = vrot.slane %v4236_v6, %v11630_v10 }
 0x74e   :  { %v4362_v9 = vpop.f32.mrb[64].mxu0 }
 0x74f   :  { %v4364_v15 = vpop.f32.mrb[65].mxu0  ;;  %v11659_v13 = vadd.f32 %v4362_v9, %v11647_v8 }
 0x750   :  { %v4366_v26 = vpop.f32.mrb[66].mxu0  ;;  %v11662_v5 = vadd.f32 %v4364_v15, %v11650_v18 }
 0x751   :  { %v4368_v7 = vpop.f32.mrb[67].mxu0  ;;  %v11653_v21 = vadd.f32 %v4366_v26, %v11647_v8  ;;  %14353 = vst [vmem:[#allocation74_spill] sm:$0xff] %v11659_v13 }
 0x752   :  { %v11656_v11 = vadd.f32 %v4368_v7, %v11650_v18  ;;  %14354 = vst [vmem:[#allocation75_spill] sm:$0xff] %v11662_v5 }
 0x753   :  { %14351 = vst [vmem:[#allocation72_spill] sm:$0xff] %v11653_v21  ;;  %v4521_v26 = vadd.f32 %v11653_v21, %v11659_v13 }
 0x754   :  { %14352 = vst [vmem:[#allocation73_spill] sm:$0xff] %v11656_v11  ;;  %v4534_v9 = vadd.f32 %v11656_v11, %v11662_v5  ;;  %v4628_v19 = vmul.f32 %v11656_v11, %v11656_v11 }
 0x756   :  { %v4372_v34 = vpop.f32.mrb[68].mxu0 }
 0x757   :  { %v4374_v44 = vpop.f32.mrb[69].mxu0  ;;  %v11665_v57 = vadd.f32 %v4372_v34, %v11647_v8 }
 0x758   :  { %v4376_v41 = vpop.f32.mrb[70].mxu0  ;;  %v11668_v24 = vadd.f32 %v4374_v44, %v11650_v18 }
 0x759   :  { %v4378_v35 = vpop.f32.mrb[71].mxu0  ;;  %14355 = vst [vmem:[#allocation76_spill] sm:$0xff] %v11665_v57  ;;  %v4522_v34 = vadd.f32 %v4521_v26, %v11665_v57  ;;  %v11685_v44 = vadd.f32 %v4376_v41, %v11647_v8  ;;  %v4626_v26 = vmul.f32 %v11662_v5, %v11662_v5 }
 0x75a   :  { %14356 = vst [vmem:[#allocation77_spill] sm:$0xff] %v11668_v24  ;;  %v4535_v39 = vadd.f32 %v4534_v9, %v11668_v24  ;;  %v11688_v17 = vadd.f32 %v4378_v35, %v11650_v18  ;;  %v4630_v9 = vmul.f32 %v11668_v24, %v11668_v24 }
 0x75b   :  { %14357 = vst [vmem:[#allocation78_spill] sm:$0xff] %v11685_v44  ;;  %v4523_v41 = vadd.f32 %v4522_v34, %v11685_v44  ;;  %v4702_v55 = vadd.f32 %v4628_v19, %v4626_v26 }
 0x75c   :  { %14358 = vst [vmem:[#allocation81_spill] sm:$0xff] %v11688_v17  ;;  %v4536_v35 = vadd.f32 %v4535_v39, %v11688_v17  ;;  %v4632_v39 = vmul.f32 %v11688_v17, %v11688_v17 }
 0x75d   :  { %v4703_v34 = vadd.f32 %v4702_v55, %v4630_v9  ;;  %v4625_v9 = vmul.f32 %v11659_v13, %v11659_v13 }
 0x75e   :  { %v4382_v22 = vpop.f32.mrb[72].mxu0 }
 0x75f   :  { %v4384_v47 = vpop.f32.mrb[73].mxu0  ;;  %v11693_v29 = vadd.f32 %v4382_v22, %v11647_v8 }
 0x760   :  { %v4386_v49 = vpop.f32.mrb[74].mxu0  ;;  %v11696_v30 = vadd.f32 %v4384_v47, %v11650_v18 }
 0x761   :  { %v4388_v60 = vpop.f32.mrb[75].mxu0  ;;  %14359 = vst [vmem:[#allocation82_spill] sm:$0xff] %v11693_v29  ;;  %v4524_v22 = vadd.f32 %v4523_v41, %v11693_v29  ;;  %v11711_v43 = vadd.f32 %v4386_v49, %v11647_v8 }
 0x762   :  { %14360 = vst [vmem:[#allocation83_spill] sm:$0xff] %v11696_v30  ;;  %v4537_v47 = vadd.f32 %v4536_v35, %v11696_v30  ;;  %v11714_v62 = vadd.f32 %v4388_v60, %v11650_v18  ;;  %v4634_v49 = vmul.f32 %v11696_v30, %v11696_v30  ;;  %v4627_v60 = vmul.f32 %v11653_v21, %v11653_v21 }
 0x763   :  { %14361 = vst [vmem:[#allocation84_spill] sm:$0xff] %v11711_v43  ;;  %v4525_v41 = vadd.f32 %v4524_v22, %v11711_v43  ;;  %v4704_v35 = vadd.f32 %v4703_v34, %v4632_v39 }
 0x764   :  { %14362 = vst [vmem:[#allocation85_spill] sm:$0xff] %v11714_v62  ;;  %v4538_v55 = vadd.f32 %v4537_v47, %v11714_v62  ;;  %v4636_v21 = vmul.f32 %v11714_v62, %v11714_v62  ;;  %v4633_v62 = vmul.f32 %v11693_v29, %v11693_v29 }
 0x765   :  { %v4705_v47 = vadd.f32 %v4704_v35, %v4634_v49 }
 0x766   :  { %v4392_v32 = vpop.f32.mrb[76].mxu0 }
 0x767   :  { %v4394_v27 = vpop.f32.mrb[77].mxu0  ;;  %v11723_v19 = vadd.f32 %v4392_v32, %v11647_v8  ;;  %v4629_v32 = vmul.f32 %v11665_v57, %v11665_v57  ;;  %v4689_v57 = vadd.f32 %v4627_v60, %v4625_v9  ;;  %v4706_v35 = vadd.f32 %v4705_v47, %v4636_v21 }
 0x768   :  { %v4396_v16 = vpop.f32.mrb[78].mxu0  ;;  %v11726_v26 = vadd.f32 %v4394_v27, %v11650_v18 }
 0x769   :  { %v4398_v59 = vpop.f32.mrb[79].mxu0  ;;  %14363 = vst [vmem:[#allocation86_spill] sm:$0xff] %v11723_v19  ;;  %v4526_v27 = vadd.f32 %v4525_v41, %v11723_v19  ;;  %v11741_v30 = vadd.f32 %v4396_v16, %v11647_v8  ;;  %v4690_v16 = vadd.f32 %v4689_v57, %v4629_v32 }
 0x76a   :  { %14364 = vst [vmem:[#allocation87_spill] sm:$0xff] %v11726_v26  ;;  %v4539_v17 = vadd.f32 %v4538_v55, %v11726_v26  ;;  %v11744_v24 = vadd.f32 %v4398_v59, %v11650_v18  ;;  %v4638_v39 = vmul.f32 %v11726_v26, %v11726_v26  ;;  %v4631_v59 = vmul.f32 %v11685_v44, %v11685_v44 }
 0x76b   :  { %14365 = vst [vmem:[#allocation88_spill] sm:$0xff] %v11741_v30  ;;  %v4527_v55 = vadd.f32 %v4526_v27, %v11741_v30  ;;  %v4635_v44 = vmul.f32 %v11711_v43, %v11711_v43 }
 0x76c   :  { %14366 = vst [vmem:[#allocation89_spill] sm:$0xff] %v11744_v24  ;;  %v4540_v49 = vadd.f32 %v4539_v17, %v11744_v24  ;;  %v4707_v60 = vadd.f32 %v4706_v35, %v4638_v39  ;;  %v4640_v9 = vmul.f32 %v11744_v24, %v11744_v24  ;;  %v4691_v11 = vadd.f32 %v4690_v16, %v4631_v59 }
 0x76d   :  { %v4528_v26 = vrot.slane %v4527_v55, 4 }
 0x76e   :  { %v11619_v63 = vpop.f32.mrb[80].mxu0  ;;  %v4541_v5 = vrot.slane %v4540_v49, 4  ;;  %v4692_v32 = vadd.f32 %v4691_v11, %v4633_v62  ;;  %v4708_v17 = vadd.f32 %v4707_v60, %v4640_v9 }
 0x76f   :  { %v11621_v2 = vpop.f32.mrb[81].mxu0  ;;  %v4529_v16 = vadd.f32 %v4528_v26, %v4527_v55  ;;  %v11786_v11 = vadd.f32 %v11619_v63, %v11647_v8 }
 0x770   :  { %v11623_v12 = vpop.f32.mrb[82].mxu0  ;;  %v4542_v59 = vadd.f32 %v4541_v5, %v4540_v49  ;;  %v11782_v62 = vadd.f32 %v11621_v2, %v11650_v18  ;;  %v4693_v35 = vadd.f32 %v4692_v32, %v4635_v44  ;;  %v4637_v5 = vmul.f32 %v11723_v19, %v11723_v19 }
 0x771   :  { %v11625_v1 = vpop.f32.mrb[83].mxu0  ;;  %v11772_v21 = vadd.f32 %v11623_v12, %v11647_v8  ;;  %14370 = vst [vmem:[#allocation93_spill] sm:$0xff] %v11786_v11  ;;  %v4709_v26 = vrot.slane %v4708_v17, 4  ;;  %v4530_v55 = vrot.slane %v4529_v16, 2 }
 0x772   :  { %v11776_v47 = vadd.f32 %v11625_v1, %v11650_v18  ;;  %14369 = vst [vmem:[#allocation92_spill] sm:$0xff] %v11782_v62  ;;  %v4543_v49 = vrot.slane %v4542_v59, 2 }
 0x773   :  { %14367 = vst [vmem:[#allocation90_spill] sm:$0xff] %v11772_v21  ;;  %v4547_v2 = vadd.f32 %v11772_v21, %v11786_v11  ;;  %v4643_v43 = vmul.f32 %v11772_v21, %v11772_v21  ;;  %v11834_v40 = vadd.f32 %v4530_v55, %v4529_v16 }
 0x774   :  { %14368 = vst [vmem:[#allocation91_spill] sm:$0xff] %v11776_v47  ;;  %v4644_v63 = vmul.f32 %v11776_v47, %v11776_v47 }
 0x776   :  { %v11635_v33 = vpop.f32.mrb[84].mxu0 }
 0x777   :  { %v11640_v3 = vpop.f32.mrb[85].mxu0  ;;  %v11790_v12 = vadd.f32 %v11635_v33, %v11647_v8  ;;  %v4642_v33 = vmul.f32 %v11782_v62, %v11782_v62 }
 0x778   :  { %v11642_v51 = vpop.f32.mrb[86].mxu0  ;;  %v11794_v1 = vadd.f32 %v11640_v3, %v11650_v18  ;;  %v4560_v3 = vadd.f32 %v11776_v47, %v11782_v62 }
 0x779   :  { %v11644_v14 = vpop.f32.mrb[87].mxu0  ;;  %14371 = vst [vmem:[#allocation94_spill] sm:$0xff] %v11790_v12  ;;  %v4548_v44 = vadd.f32 %v4547_v2, %v11790_v12  ;;  %v11811_v32 = vadd.f32 %v11642_v51, %v11647_v8  ;;  %v11822_v2 = vadd.f32 %v4693_v35, %v4637_v5  ;;  %v4728_v29 = vadd.f32 %v4644_v63, %v4642_v33 }
 0x77a   :  { %14372 = vst [vmem:[#allocation95_spill] sm:$0xff] %v11794_v1  ;;  %v4646_v9 = vmul.f32 %v11794_v1, %v11794_v1  ;;  %v11815_v19 = vadd.f32 %v11644_v14, %v11650_v18  ;;  %v4561_v47 = vadd.f32 %v4560_v3, %v11794_v1  ;;  %v11838_v3 = vmul.f32 %v11741_v30, %v11741_v30 }
 0x77b   :  { %14373 = vst [vmem:[#allocation96_spill] sm:$0xff] %v11811_v32  ;;  %v11840_v1 = vadd.f32 %v4709_v26, %v4708_v17  ;;  %v4641_v35 = vmul.f32 %v11786_v11, %v11786_v11  ;;  %v11844_v5 = vadd.f32 %v4543_v49, %v4542_v59  ;;  %v4549_v63 = vadd.f32 %v4548_v44, %v11811_v32 }
 0x77c   :  { %14374 = vst [vmem:[#allocation97_spill] sm:$0xff] %v11815_v19  ;;  %v4645_v16 = vmul.f32 %v11790_v12, %v11790_v12  ;;  %v4562_v55 = vadd.f32 %v4561_v47, %v11815_v19 }
 0x77d   :  { %v4715_v33 = vadd.f32 %v4643_v43, %v4641_v35 }
 0x77e   :  { %v11670_v6 = vpop.f32.mrb[88].mxu0 }
 0x77f   :  { %v11672_v31 = vpop.f32.mrb[89].mxu0  ;;  %v11826_v28 = vadd.f32 %v11670_v6, %v11647_v8  ;;  %v4729_v6 = vadd.f32 %v4728_v29, %v4646_v9 }
 0x780   :  { %v11678_v7 = vpop.f32.mrb[90].mxu0  ;;  %v11830_v51 = vadd.f32 %v11672_v31, %v11650_v18  ;;  %v4648_v31 = vmul.f32 %v11815_v19, %v11815_v19 }
 0x781   :  { %v11680_v15 = vpop.f32.mrb[91].mxu0  ;;  %14375 = vst [vmem:[#allocation98_spill] sm:$0xff] %v11826_v28  ;;  %v4550_v26 = vadd.f32 %v4549_v63, %v11826_v28  ;;  %v11861_v59 = vadd.f32 %v11678_v7, %v11647_v8  ;;  %v4711_v7 = vrot.slane %v11840_v1, 2 }
 0x782   :  { %14376 = vst [vmem:[#allocation99_spill] sm:$0xff] %v11830_v51  ;;  %v4650_v29 = vmul.f32 %v11830_v51, %v11830_v51  ;;  %v4563_v49 = vadd.f32 %v4562_v55, %v11830_v51  ;;  %v11870_v47 = vadd.f32 %v11680_v15, %v11650_v18  ;;  %v4730_v35 = vadd.f32 %v4729_v6, %v4648_v31 }
 0x783   :  { %14378 = vst [vmem:[#allocation101_spill] sm:$0xff] %v11861_v59  ;;  %v4716_v55 = vadd.f32 %v4715_v33, %v4645_v16 }
 0x784   :  { %14380 = vst [vmem:[#allocation103_spill] sm:$0xff] %v11870_v47  ;;  %v4731_v31 = vadd.f32 %v4730_v35, %v4650_v29 }
 0x786   :  { %v11704_v58 = vpop.f32.mrb[92].mxu0 }
 0x787   :  { %v11706_v20 = vpop.f32.mrb[93].mxu0 }
 0x788   :  { %v11716_v25 = vpop.f32.mrb[94].mxu0 }
 0x789   :  { %v11720_v56 = vpop.f32.mrb[95].mxu0 }
 0x78a   :  { %v11934_v19 = vadd.f32 %v11720_v56, %v11650_v18 }
 0x78c   :  { %14389 = vst [vmem:[#allocation112_spill] sm:$0xff] %v11934_v19 }
 0x78e   :  { %v11746_v22 = vpop.f32.mrb[96].mxu0 }
 0x78f   :  { %v11750_v13 = vpop.f32.mrb[97].mxu0 }
 0x790   :  { %v11752_v34 = vpop.f32.mrb[98].mxu0 }
 0x791   :  { %v11756_v41 = vpop.f32.mrb[99].mxu0  ;;  %v11854_v17 = vadd.f32 %v11752_v34, %v11647_v8  ;;  %v11874_v34 = vadd.f32 %v11746_v22, %v11647_v8  ;;  %v4647_v22 = vmul.f32 %v11811_v32, %v11811_v32  ;;  %v4564_v32 = vadd.f32 %v4563_v49, %v11870_v47 }
 0x792   :  { %v11865_v43 = vadd.f32 %v11756_v41, %v11650_v18  ;;  %v11882_v41 = vadd.f32 %v11750_v13, %v11650_v18  ;;  %v4551_v13 = vadd.f32 %v4550_v26, %v11861_v59  ;;  %v4652_v26 = vmul.f32 %v11870_v47, %v11870_v47 }
 0x793   :  { %14377 = vst [vmem:[#allocation100_spill] sm:$0xff] %v11854_v17  ;;  %14381 = vst [vmem:[#allocation104_spill] sm:$0xff] %v11874_v34  ;;  %v4573_v51 = vadd.f32 %v11854_v17, %v11874_v34  ;;  %v4717_v54 = vadd.f32 %v4716_v55, %v4647_v22 }
 0x794   :  { %14379 = vst [vmem:[#allocation102_spill] sm:$0xff] %v11865_v43  ;;  %14383 = vst [vmem:[#allocation106_spill] sm:$0xff] %v11882_v41  ;;  %v4660_v33 = vmul.f32 %v11865_v43, %v11865_v43  ;;  %v4732_v11 = vadd.f32 %v4731_v31, %v4652_v26 }
 0x796   :  { %v4452_v10 = vpop.f32.mrb[100].mxu0 }
 0x797   :  { %v4454_v57 = vpop.f32.mrb[101].mxu0  ;;  %v11877_v44 = vadd.f32 %v4452_v10, %v11647_v8  ;;  %v11891_v10 = vadd.f32 %v11704_v58, %v11647_v8  ;;  %v4586_v58 = vadd.f32 %v11865_v43, %v11882_v41 }
 0x798   :  { %v11768_v27 = vpop.f32.mrb[102].mxu0  ;;  %v11885_v63 = vadd.f32 %v4454_v57, %v11650_v18  ;;  %v11900_v57 = vadd.f32 %v11706_v20, %v11650_v18  ;;  %v4658_v20 = vmul.f32 %v11882_v41, %v11882_v41 }
 0x799   :  { %v11778_v39 = vpop.f32.mrb[103].mxu0  ;;  %14382 = vst [vmem:[#allocation105_spill] sm:$0xff] %v11877_v44  ;;  %14385 = vst [vmem:[#allocation108_spill] sm:$0xff] %v11891_v10  ;;  %v4574_v12 = vadd.f32 %v4573_v51, %v11877_v44  ;;  %v11910_v29 = vadd.f32 %v11768_v27, %v11647_v8  ;;  %v4552_v43 = vadd.f32 %v4551_v13, %v11891_v10  ;;  %v4532_v13 = vrot.slane %v11834_v40, 1 }
 0x79a   :  { %14384 = vst [vmem:[#allocation107_spill] sm:$0xff] %v11885_v63  ;;  %14386 = vst [vmem:[#allocation109_spill] sm:$0xff] %v11900_v57  ;;  %v4662_v35 = vmul.f32 %v11885_v63, %v11885_v63  ;;  %v11920_v49 = vadd.f32 %v11778_v39, %v11650_v18  ;;  %v11925_v51 = vadd.f32 %v11716_v25, %v11647_v8  ;;  %v4545_v25 = vrot.slane %v11844_v5, 1 }
 0x79b   :  { %v4587_v27 = vadd.f32 %v4586_v58, %v11885_v63  ;;  %v4565_v41 = vadd.f32 %v4564_v32, %v11900_v57  ;;  %v4754_v21 = vadd.f32 %v4660_v33, %v4658_v20  ;;  %v4654_v58 = vmul.f32 %v11900_v57, %v11900_v57 }
 0x79c   :  { %14387 = vst [vmem:[#allocation110_spill] sm:$0xff] %v11920_v49  ;;  %14388 = vst [vmem:[#allocation111_spill] sm:$0xff] %v11925_v51  ;;  %v4649_v32 = vmul.f32 %v11826_v28, %v11826_v28  ;;  %v4664_v33 = vmul.f32 %v11920_v49, %v11920_v49  ;;  %v4553_v20 = vadd.f32 %v4552_v43, %v11925_v51 }
 0x79d   :  { %v4755_v56 = vadd.f32 %v4754_v21, %v4662_v35  ;;  %v4588_v30 = vadd.f32 %v4587_v27, %v11920_v49  ;;  %v4566_v28 = vadd.f32 %v4565_v41, %v11934_v19  ;;  %v4733_v26 = vadd.f32 %v4732_v11, %v4654_v58 }
 0x79e   :  { %v4462_v60 = vpop.f32.mrb[104].mxu0  ;;  %v4656_v35 = vmul.f32 %v11934_v19, %v11934_v19  ;;  %v11969_v55 = vadd.f32 %v4532_v13, %v11834_v40  ;;  %v11972_v41 = vadd.f32 %v4711_v7, %v11840_v1  ;;  %v4554_v11 = vrot.slane %v4553_v20, 4 }
 0x79f   :  { %v4464_v24 = vpop.f32.mrb[105].mxu0  ;;  %v11929_v47 = vadd.f32 %v4462_v60, %v11647_v8  ;;  %v4575_v60 = vadd.f32 %v4574_v12, %v11910_v29  ;;  %v4756_v22 = vadd.f32 %v4755_v56, %v4664_v33  ;;  %v11979_v49 = vadd.f32 %v4545_v25, %v11844_v5 }
 0x7a0   :  { %v11820_v62 = vpop.f32.mrb[106].mxu0  ;;  %v11937_v39 = vadd.f32 %v4464_v24, %v11650_v18  ;;  %v4734_v7 = vadd.f32 %v4733_v26, %v4656_v35 }
 0x7a1   :  { %v11832_v14 = vpop.f32.mrb[107].mxu0  ;;  %v4576_v50 = vadd.f32 %v4575_v60, %v11929_v47  ;;  %v11953_v57 = vadd.f32 %v11820_v62, %v11647_v8  ;;  %v4718_v60 = vadd.f32 %v4717_v54, %v4649_v32 }
 0x7a2   :  { %14390 = vst [vmem:[#allocation113_spill] sm:$0xff] %v11937_v39  ;;  %v4666_v21 = vmul.f32 %v11937_v39, %v11937_v39  ;;  %v11960_v31 = vadd.f32 %v11832_v14, %v11650_v18  ;;  %v4589_v27 = vadd.f32 %v4588_v30, %v11937_v39  ;;  %v4651_v30 = vmul.f32 %v11861_v59, %v11861_v59 }
 0x7a3   :  { %v4577_v58 = vadd.f32 %v4576_v50, %v11953_v57 }
 0x7a4   :  { %14391 = vst [vmem:[#allocation114_spill] sm:$0xff] %v11960_v31  ;;  %v4757_v40 = vadd.f32 %v4756_v22, %v4666_v21  ;;  %v4668_v1 = vmul.f32 %v11960_v31, %v11960_v31  ;;  %v4590_v13 = vadd.f32 %v4589_v27, %v11960_v31  ;;  %v4555_v21 = vadd.f32 %v4554_v11, %v4553_v20 }
 0x7a5   :  { %v4713_v27 = vrot.slane %v11972_v41, 1  ;;  %v4719_v20 = vadd.f32 %v4718_v60, %v4651_v30 }
 0x7a6   :  { %v4472_v9 = vpop.f32.mrb[108].mxu0  ;;  %v4758_v22 = vadd.f32 %v4757_v40, %v4668_v1 }
 0x7a7   :  { %v4474_v15 = vpop.f32.mrb[109].mxu0  ;;  %v11966_v62 = vadd.f32 %v4472_v9, %v11647_v8  ;;  %v4567_v9 = vrot.slane %v4566_v28, 4 }
 0x7a8   :  { %v11895_v6 = vpop.f32.mrb[110].mxu0  ;;  %v11975_v14 = vadd.f32 %v4474_v15, %v11650_v18 }
 0x7a9   :  { %v4478_v16 = vpop.f32.mrb[111].mxu0  ;;  %14392 = vst [vmem:[#allocation115_spill] sm:$0xff] %v11966_v62  ;;  %v4578_v15 = vadd.f32 %v4577_v58, %v11966_v62  ;;  %v11994_v25 = vadd.f32 %v11895_v6, %v11647_v8  ;;  %v4568_v11 = vadd.f32 %v4567_v9, %v4566_v28  ;;  %v4556_v9 = vrot.slane %v4555_v21, 2 }
 0x7aa   :  { %14393 = vst [vmem:[#allocation116_spill] sm:$0xff] %v11975_v14  ;;  %v4670_v5 = vmul.f32 %v11975_v14, %v11975_v14  ;;  %v11997_v32 = vadd.f32 %v4478_v16, %v11650_v18  ;;  %v4591_v6 = vadd.f32 %v4590_v13, %v11975_v14 }
 0x7ab   :  { %v4579_v39 = vadd.f32 %v4578_v15, %v11994_v25 }
 0x7ac   :  { %14395 = vst [vmem:[#allocation118_spill] sm:$0xff] %v11997_v32  ;;  %v4759_v31 = vadd.f32 %v4758_v22, %v4670_v5  ;;  %v4672_v40 = vmul.f32 %v11997_v32, %v11997_v32  ;;  %v4592_v13 = vadd.f32 %v4591_v6, %v11997_v32  ;;  %v4653_v5 = vmul.f32 %v11891_v10, %v11891_v10 }
 0x7ad   :  { %v4569_v22 = vrot.slane %v4568_v11, 2  ;;  %v4580_v32 = vrot.slane %v4579_v39, 4 }
 0x7ae   :  { %v4482_v63 = vpop.f32.mrb[112].mxu0  ;;  %v4760_v59 = vadd.f32 %v4759_v31, %v4672_v40 }
 0x7af   :  { %v4484_v24 = vpop.f32.mrb[113].mxu0  ;;  %v12011_v16 = vadd.f32 %v4482_v63, %v11647_v8 }
 0x7b0   :  { %v4486_v12 = vpop.f32.mrb[114].mxu0  ;;  %v12003_v26 = vadd.f32 %v4484_v24, %v11650_v18  ;;  %v4735_v24 = vrot.slane %v4734_v7, 4 }
 0x7b1   :  { %v4488_v43 = vpop.f32.mrb[115].mxu0  ;;  %v12000_v56 = vadd.f32 %v4486_v12, %v11647_v8 }
 0x7b2   :  { %v11988_v54 = vadd.f32 %v4488_v43, %v11650_v18  ;;  %14396 = vst [vmem:[#allocation119_spill] sm:$0xff] %v12003_v26  ;;  %v4674_v1 = vmul.f32 %v12003_v26, %v12003_v26  ;;  %v4736_v19 = vadd.f32 %v4735_v24, %v4734_v7  ;;  %v4659_v7 = vmul.f32 %v11854_v17, %v11854_v17 }
 0x7b3   :  { %v4599_v63 = vadd.f32 %v12000_v56, %v12011_v16  ;;  %v4593_v24 = vrot.slane %v4592_v13, 4 }
 0x7b4   :  { %14394 = vst [vmem:[#allocation117_spill] sm:$0xff] %v11988_v54  ;;  %v4612_v60 = vadd.f32 %v11988_v54, %v12003_v26 }
 0x7b6   :  { %v4492_v50 = vpop.f32.mrb[116].mxu0 }
 0x7b7   :  { %v4494_v33 = vpop.f32.mrb[117].mxu0  ;;  %v12014_v12 = vadd.f32 %v4492_v50, %v11647_v8 }
 0x7b8   :  { %v12006_v43 = vadd.f32 %v4494_v33, %v11650_v18  ;;  %v4496_v35 = vpop.f32.mrb[118].mxu0  ;;  %v4676_v33 = vmul.f32 %v11988_v54, %v11988_v54 }
 0x7b9   :  { %v4498_v58 = vpop.f32.mrb[119].mxu0  ;;  %v4600_v15 = vadd.f32 %v4599_v63, %v12014_v12  ;;  %v12035_v50 = vadd.f32 %v4496_v35, %v11647_v8 }
 0x7ba   :  { %14397 = vst [vmem:[#allocation120_spill] sm:$0xff] %v12006_v43  ;;  %v4678_v28 = vmul.f32 %v12006_v43, %v12006_v43  ;;  %v12030_v30 = vadd.f32 %v4498_v58, %v11650_v18  ;;  %v4780_v14 = vadd.f32 %v4676_v33, %v4674_v1  ;;  %v4613_v54 = vadd.f32 %v4612_v60, %v12006_v43 }
 0x7bb   :  { %14399 = vst [vmem:[#allocation122_spill] sm:$0xff] %v12035_v50  ;;  %v4657_v58 = vmul.f32 %v11874_v34, %v11874_v34  ;;  %v4557_v1 = vadd.f32 %v4556_v9, %v4555_v21  ;;  %v4601_v31 = vadd.f32 %v4600_v15, %v12035_v50  ;;  %v4761_v43 = vrot.slane %v4760_v59, 4 }
 0x7bc   :  { %14398 = vst [vmem:[#allocation121_spill] sm:$0xff] %v12030_v30  ;;  %v4781_v35 = vadd.f32 %v4780_v14, %v4678_v28  ;;  %v4680_v37 = vmul.f32 %v12030_v30, %v12030_v30  ;;  %v4614_v60 = vadd.f32 %v4613_v54, %v12030_v30  ;;  %v4661_v15 = vmul.f32 %v11877_v44, %v11877_v44 }
 0x7bd   :  { %v12068_v30 = vadd.f32 %v4719_v20, %v4653_v5  ;;  %v4558_v17 = vrot.slane %v4557_v1, 1  ;;  %v4594_v34 = vadd.f32 %v4593_v24, %v4592_v13 }
 0x7be   :  { %v4502_v26 = vpop.f32.mrb[120].mxu0 }
 0x7bf   :  { %v12043_v6 = vadd.f32 %v4502_v26, %v11647_v8  ;;  %v4504_v63 = vpop.f32.mrb[121].mxu0  ;;  %v12053_v26 = vadd.f32 %v4569_v22, %v4568_v11  ;;  %v4581_v11 = vadd.f32 %v4580_v32, %v4579_v39  ;;  %v4782_v22 = vadd.f32 %v4781_v35, %v4680_v37 }
 0x7c0   :  { %v12048_v10 = vadd.f32 %v4504_v63, %v11650_v18  ;;  %v4506_v33 = vpop.f32.mrb[122].mxu0  ;;  %v4737_v63 = vrot.slane %v4736_v19, 2  ;;  %v4762_v39 = vadd.f32 %v4761_v43, %v4760_v59  ;;  %v4595_v35 = vrot.slane %v4594_v34, 2 }
 0x7c1   :  { %14400 = vst [vmem:[#allocation123_spill] sm:$0xff] %v12043_v6  ;;  %v4508_v40 = vpop.f32.mrb[123].mxu0  ;;  %v4602_v21 = vadd.f32 %v4601_v31, %v12043_v6  ;;  %v12063_v9 = vadd.f32 %v4506_v33, %v11647_v8  ;;  %v4571_v4 = vrot.slane %v12053_v26, 1  ;;  %v4741_v31 = vadd.f32 %v4659_v7, %v4657_v58 }
 0x7c2   :  { %14401 = vst [vmem:[#allocation124_spill] sm:$0xff] %v12048_v10  ;;  %v4682_v14 = vmul.f32 %v12048_v10, %v12048_v10  ;;  %v12059_v28 = vadd.f32 %v4508_v40, %v11650_v18  ;;  %v4615_v54 = vadd.f32 %v4614_v60, %v12048_v10  ;;  %v12071_v40 = vadd.f32 %v4713_v27, %v11972_v41 }
 0x7c3   :  { %14403 = vst [vmem:[#allocation126_spill] sm:$0xff] %v12063_v9  ;;  %v4738_v44 = vadd.f32 %v4737_v63, %v4736_v19  ;;  %v4603_v37 = vadd.f32 %v4602_v21, %v12063_v9  ;;  %v4742_v13 = vadd.f32 %v4741_v31, %v4661_v15  ;;  %v4582_v5 = vrot.slane %v4581_v11, 2 }
 0x7c4   :  { %14402 = vst [vmem:[#allocation125_spill] sm:$0xff] %v12059_v28  ;;  %v4783_v48 = vadd.f32 %v4782_v22, %v4682_v14  ;;  %v4684_v33 = vmul.f32 %v12059_v28, %v12059_v28  ;;  %v4616_v41 = vadd.f32 %v4615_v54, %v12059_v28  ;;  %v4675_v7 = vmul.f32 %v12000_v56, %v12000_v56  ;;  %v9499_v28 = vld [vmem:[#allocation23 + $0x8] sm:$0xff]  }
 0x7c5   :  { %v4763_v63 = vrot.slane %v4762_v39, 2  ;;  %v4673_v21 = vmul.f32 %v12011_v16, %v12011_v16  ;;  %v4677_v15 = vmul.f32 %v12014_v12, %v12014_v12 }
 0x7c6   :  { %v4512_v53 = vpop.f32.mrb[124].mxu0  ;;  %v4784_v43 = vadd.f32 %v4783_v48, %v4684_v33  ;;  %v4663_v48 = vmul.f32 %v11910_v29, %v11910_v29  ;;  %v4596_v33 = vadd.f32 %v4595_v35, %v4594_v34  ;;  %v4681_v35 = vmul.f32 %v12043_v6, %v12043_v6 }
 0x7c7   :  { %v12078_v32 = vadd.f32 %v4512_v53, %v11647_v8  ;;  %v4514_v20 = vpop.f32.mrb[125].mxu0 }
 0x7c8   :  { %v12082_v27 = vadd.f32 %v4514_v20, %v11650_v18  ;;  %v4516_v58 = vpop.f32.mrb[126].mxu0 }
 0x7c9   :  { %14404 = vst [vmem:[#allocation127_spill] sm:$0xff] %v12078_v32  ;;  %v4604_v19 = vadd.f32 %v4603_v37, %v12078_v32  ;;  %v12088_v59 = vadd.f32 %v4516_v58, %v11647_v8  ;;  %v4518_v53 = vpop.f32.mrb[127].mxu0  ;;  %v4767_v37 = vadd.f32 %v4675_v7, %v4673_v21  ;;  %v4583_v58 = vadd.f32 %v4582_v5, %v4581_v11 }
 0x7ca   :  { %14405 = vst [vmem:[#allocation128_spill] sm:$0xff] %v12082_v27  ;;  %v4617_v24 = vadd.f32 %v4616_v41, %v12082_v27  ;;  %v4686_v60 = vmul.f32 %v12082_v27, %v12082_v27  ;;  %v12094_v14 = vadd.f32 %v4518_v53, %v11650_v18  ;;  %v4559_v18 = vadd.f32 %v4558_v17, %v4557_v1 }
 0x7cb   :  { %14406 = vst [vmem:[#allocation129_spill] sm:$0xff] %v12088_v59  ;;  %v4605_v8 = vadd.f32 %v4604_v19, %v12088_v59  ;;  %v4665_v41 = vmul.f32 %v11929_v47, %v11929_v47  ;;  %v4768_v27 = vadd.f32 %v4767_v37, %v4677_v15  ;;  %v4739_v1 = vrot.slane %v4738_v44, 1 }
 0x7cc   :  { %14407 = vst [vmem:[#allocation130_spill] sm:$0xff] %v12094_v14  ;;  %v4785_v22 = vadd.f32 %v4784_v43, %v4686_v60  ;;  %v4618_v54 = vadd.f32 %v4617_v24, %v12094_v14  ;;  %v4688_v31 = vmul.f32 %v12094_v14, %v12094_v14  ;;  %v4679_v43 = vmul.f32 %v12035_v50, %v12035_v50 }
 0x7cd   :  { %v4606_v20 = vrot.slane %v4605_v8, 4  ;;  %v4764_v60 = vadd.f32 %v4763_v63, %v4762_v39  ;;  %v4743_v14 = vadd.f32 %v4742_v13, %v4663_v48  ;;  %v4572_v11 = vadd.f32 %v4571_v4, %v12053_v26 }
 0x7ce   :  { %v4619_v53 = vrot.slane %v4618_v54, 4  ;;  %v4786_v19 = vadd.f32 %v4785_v22, %v4688_v31  ;;  %v4597_v5 = vrot.slane %v4596_v33, 1  ;;  %v4584_v22 = vrot.slane %v4583_v58, 1 }
 0x7cf   :  { %v4607_v24 = vadd.f32 %v4606_v20, %v4605_v8  ;;  %v4744_v21 = vadd.f32 %v4743_v14, %v4665_v41  ;;  %v4667_v8 = vmul.f32 %v11953_v57, %v11953_v57  ;;  %v4769_v37 = vadd.f32 %v4768_v27, %v4679_v43 }
 0x7d0   :  { %v4620_v17 = vadd.f32 %v4619_v53, %v4618_v54  ;;  %v4787_v34 = vrot.slane %v4786_v19, 4  ;;  %v4765_v13 = vrot.slane %v4764_v60, 1  ;;  %v4669_v63 = vmul.f32 %v11966_v62, %v11966_v62 }
 0x7d1   :  { %v4608_v7 = vrot.slane %v4607_v24, 2  ;;  %v4740_v54 = vadd.f32 %v4739_v1, %v4738_v44  ;;  %v4770_v53 = vadd.f32 %v4769_v37, %v4681_v35  ;;  %v4683_v4 = vmul.f32 %v12063_v9, %v12063_v9 }
 0x7d2   :  { %v4621_v15 = vrot.slane %v4620_v17, 2  ;;  %v4788_v31 = vadd.f32 %v4787_v34, %v4786_v19  ;;  %v4598_v14 = vadd.f32 %v4597_v5, %v4596_v33  ;;  %v4655_v41 = vmul.f32 %v11925_v51, %v11925_v51 }
 0x7d3   :  { %v4609_v39 = vadd.f32 %v4608_v7, %v4607_v24  ;;  %v4585_v19 = vadd.f32 %v4584_v22, %v4583_v58  ;;  %v4745_v43 = vadd.f32 %v4744_v21, %v4667_v8  ;;  %v4685_v24 = vmul.f32 %v12078_v32, %v12078_v32 }
 0x7d4   :  { %v4622_v48 = vadd.f32 %v4621_v15, %v4620_v17  ;;  %v4789_v20 = vrot.slane %v4788_v31, 2  ;;  %v4766_v17 = vadd.f32 %v4765_v13, %v4764_v60  ;;  %v4839_v1 = vsel %vm4833_vm0, %v4572_v11, %v11979_v49 }
 0x7d5   :  { %v4610_v26 = vrot.slane %v4609_v39, 1  ;;  %v4834_v35 = vsel %vm4833_vm0, %v4559_v18, %v11969_v55  ;;  %v4746_v5 = vadd.f32 %v4745_v43, %v4669_v63  ;;  %v4771_v15 = vadd.f32 %v4770_v53, %v4683_v4 }
 0x7d6   :  { %v4623_v34 = vrot.slane %v4622_v48, 1  ;;  %v4790_v27 = vadd.f32 %v4789_v20, %v4788_v31  ;;  %v4840_v58 = vsel %vm4835_vm1, %v4598_v14, %v4839_v1  ;;  %v4926_v21 = vsel %vm4833_vm0, %v4740_v54, %v12071_v40 }
 0x7d7   :  { %v4611_v7 = vadd.f32 %v4610_v26, %v4609_v39  ;;  %v4671_v22 = vmul.f32 %v11994_v25, %v11994_v25  ;;  %v4836_v31 = vsel %vm4835_vm1, %v4585_v19, %v4834_v35  ;;  %v4772_v49 = vadd.f32 %v4771_v15, %v4685_v24  ;;  %v14413_v35 = vld [vmem:[#allocation70_spill] sm:$0xff] }
 0x7d8   :  { %v4624_v44 = vadd.f32 %v4623_v34, %v4622_v48  ;;  %v4791_v33 = vrot.slane %v4790_v27, 1  ;;  %v4687_v55 = vmul.f32 %v12088_v59, %v12088_v59  ;;  %v4927_v11 = vsel %vm4835_vm1, %v4766_v17, %v4926_v21  ;;  %v14412_v17 = vld [vmem:[#allocation68_spill] sm:$0xff] }
 0x7d9   :  { %v4838_v18 = vsel %vm4837_vm2, %v4611_v7, %v4836_v31  ;;  %v4721_v37 = vadd.f32 %v12068_v30, %v4655_v41  ;;  %v4747_v39 = vadd.f32 %v4746_v5, %v4671_v22  ;;  %v4695_v13 = vadd.f32 %v11822_v2, %v11838_v3  ;;  %v14408_v41 = vld [vmem:[#allocation65_spill] sm:$0xff]  ;;  %v5007_v21 = vld [vmem:[#allocation17 + $0x8] sm:$0xff]  ;;  %v5009_v22 = vld [vmem:[#allocation17 + $0x18] sm:$0xff] }
 0x7da   :  { %v4841_v60 = vsel %vm4837_vm2, %v4624_v44, %v4840_v58  ;;  %v4792_v8 = vadd.f32 %v4791_v33, %v4790_v27  ;;  %v4773_v63 = vadd.f32 %v4772_v49, %v4687_v55  ;;  %v14410_v27 = vld [vmem:[#allocation64_spill] sm:$0xff]  ;;  %v14411_v7 = vld [vmem:[#allocation69_spill] sm:$0xff]  ;;  %v9531_v58 = vld [vmem:[#allocation2] sm:$0xff] }
 0x7db   :  { %4908 = vmatprep.mubr.f32.mxu0 %v4841_v60  ;;  %v4722_v48 = vrot.slane %v4721_v37, 4  ;;  %v4748_v54 = vrot.slane %v4747_v39, 4  ;;  %v4696_v20 = vrot.slane %v4695_v13, 4  ;;  %v8921_v60 = vpack.c.bf16 %v5009_v22, %v5007_v21  ;;  %v5006_v31 = vld [vmem:[#allocation17] sm:$0xff] }
 0x7dc   :  { %4909 = vmatmul.mubr.f32.vlgmr.msra.gmra.mrb[128].mxu0 %v4838_v18  ;;  %v4928_v40 = vsel %vm4837_vm2, %v4792_v8, %v4927_v11  ;;  %v4774_v53 = vrot.slane %v4773_v63, 4  ;;  %v5008_v8 = vld [vmem:[#allocation17 + $0x10] sm:$0xff]  ;;  %v14416_v22 = vld [vmem:[#allocation71_spill] sm:$0xff] }
 0x7dd   :  { %8892 = vmatpush3.bf16.msra.mxu0 %v11486_v23  ;;  %4995 = vmatprep.mubr.f32.mxu0 %v4928_v40  ;;  %v4723_v4 = vadd.f32 %v4722_v48, %v4721_v37  ;;  %v4749_v23 = vadd.f32 %v4748_v54, %v4747_v39  ;;  %v4697_v30 = vadd.f32 %v4696_v20, %v4695_v13 }
 0x7de   :  { %8894 = vmatprep.subr.bf16.mxu0 %v11501_v38  ;;  %v4775_v38 = vadd.f32 %v4774_v53, %v4773_v63  ;;  %v8923_v49 = vpack.c.bf16 %v5008_v8, %v5006_v31  ;;  %v5497_v31 = vld [vmem:[#allocation20] sm:$0x3] }
 0x7df   :  { %v4724_v26 = vrot.slane %v4723_v4, 2  ;;  %v4750_v2 = vrot.slane %v4749_v23, 2 }
 0x7e0   :  { %v4776_v3 = vrot.slane %v4775_v38, 2 }
 0x7e1   :  { %8896 = vmatpush3.bf16.msra.mxu0 %v11506_v42  ;;  %v4698_v42 = vrot.slane %v4697_v30, 2  ;;  %v4725_v14 = vadd.f32 %v4724_v26, %v4723_v4  ;;  %v9482_v4 = vld [vmem:[%s13929_s15 + $0x40] sm:$0xff]   ;;  %v9486_v26 = vld [vmem:[%s13929_s15 + $0x50] sm:$0xff]  }
 0x7e2   :  { %8898 = vmatprep.subr.bf16.mxu0 %v11519_v45  ;;  %v4751_v45 = vadd.f32 %v4750_v2, %v4749_v23  ;;  %v4777_v19 = vadd.f32 %v4776_v3, %v4775_v38  ;;  %v9483_v23 = vld [vmem:[%s13929_s15] sm:$0xff]   ;;  %v9485_v38 = vld [vmem:[%s13929_s15 + $0x8] sm:$0xff]   ;;  %v9487_v2 = vld [vmem:[%s13929_s15 + $0x10] sm:$0xff]  }
 0x7e3   :  { %v4726_v34 = vrot.slane %v4725_v14, 1  ;;  %v9489_v3 = vld [vmem:[%s13929_s15 + $0x18] sm:$0xff]  }
 0x7e4   :  { %v4752_v43 = vrot.slane %v4751_v45, 1  ;;  %v4778_v24 = vrot.slane %v4777_v19, 1 }
 0x7e5   :  { %8900 = vmatpush3.bf16.msra.mxu0 %v11524_v36  ;;  %v4699_v36 = vadd.f32 %v4698_v42, %v4697_v30  ;;  %v9484_v30 = vld [vmem:[%s13929_s15 + $0x48] sm:$0xff]   ;;  %v9488_v42 = vld [vmem:[%s13929_s15 + $0x58] sm:$0xff]  }
 0x7e6   :  { %8902 = vmatprep.subr.bf16.mxu0 %v11537_v52  ;;  %v14409_v52 = vld [vmem:[#allocation66_spill] sm:$0xff]  ;;  %v4753_v44 = vadd.f32 %v4752_v43, %v4751_v45  ;;  %v4779_v1 = vadd.f32 %v4778_v24, %v4777_v19  ;;  %v9494_v19 = vld [vmem:[%s13929_s15 + $0x70] sm:$0xff]  }
 0x7e7   :  { %v9491_v45 = vld [vmem:[%s13929_s15 + $0x20] sm:$0xff]   ;;  %v12208_v43 = vld [vmem:[#allocation23] sm:$0xff]  }
 0x7e9   :  { %8904 = vmatpush3.bf16.msra.mxu0 %v11542_v46  ;;  %v4700_v46 = vrot.slane %v4699_v36, 1 }
 0x7ea   :  { %8906 = vmatprep.subr.bf16.mxu0 %v11555_v0  ;;  %v4727_v0 = vadd.f32 %v4726_v34, %v4725_v14  ;;  %v9490_v14 = vld [vmem:[%s13929_s15 + $0x60] sm:$0xff]   ;;  %v9495_v34 = vld [vmem:[%s13929_s15 + $0x30] sm:$0xff]  }
 0x7ed   :  { %8908 = vmatpush3.bf16.msra.mxu0 %v11560_v61  ;;  %v4701_v61 = vadd.f32 %v4700_v46, %v4699_v36  ;;  %v9493_v36 = vld [vmem:[%s13929_s15 + $0x28] sm:$0xff]  }
 0x7ee   :  { %8910 = vmatprep.subr.bf16.mxu0 %v14408_v41  ;;  %v9492_v41 = vld [vmem:[%s13929_s15 + $0x68] sm:$0xff]  }
 0x7ef   :  { %v4923_v33 = vsel %vm4833_vm0, %v4727_v0, %v4701_v61  ;;  %v10102_v0 = vmov 1966171168   ;;  %v14414_v61 = vld [vmem:[#allocation79_spill] sm:$0xff] }
 0x7f0   :  { %v4924_v5 = vsel %vm4835_vm1, %v4753_v44, %v4923_v33 }
 0x7f1   :  { %8912 = vmatpush3.bf16.msra.mxu0 %v14409_v52  ;;  %v4925_v15 = vsel %vm4837_vm2, %v4779_v1, %v4924_v5  ;;  %v9496_v52 = vld [vmem:[%s13929_s15 + $0x78] sm:$0xff]  }
 0x7f2   :  { %8914 = vmatprep.subr.bf16.mxu0 %v14410_v27  ;;  %v9497_v27 = vld [vmem:[%s13929_s15 + $0x38] sm:$0xff]  }
 0x7f5   :  { %8916 = vmatpush3.bf16.msra.mxu0 %v14411_v7 }
 0x7f6   :  { %8918 = vmatprep.subr.bf16.mxu0 %v14412_v17  ;;  %v5089_v17 = vunpack.c.l.s4 %v10102_v0  ;;  %v14429_v0 = vld [vmem:[#allocation82_spill] sm:$0xff] }
 0x7f8   :  { %v5090_v44 = vunpack.c.0.s8 %v5089_v17  ;;  %v14436_v17 = vld [vmem:[#allocation91_spill] sm:$0xff] }
 0x7f9   :  { %8920 = vmatpush3.bf16.msra.mxu0 %v14413_v35 }
 0x7fa   :  { %8922 = vmatprep.subr.bf16.mxu0 %v8921_v60  ;;  %v12212_v1 = vsub.s32 %v5090_v44, %v14414_v61  ;;  %v14430_v44 = vld [vmem:[#allocation84_spill] sm:$0xff]  ;;  %v14450_v61 = vld [vmem:[#allocation106_spill] sm:$0xff] }
 0x7fc   :  { %4996 = vmatmul.mubr.f32.vlgmr.msra.gmra.mrb[130].mxu0 %v4925_v15  ;;  %14415 = vst [vmem:[#allocation65_spill] sm:$0xff] %v12212_v1 }
 0x7fd   :  { %5078 = vmatprep.mubr.f32.mxu0 %v9531_v58  ;;  %8924 = vmatpush1.bf16.msra.mxu0 %v8923_v49 }
 0x7fe   :  { %8926 = vmatprep.subr.bf16.mxu0 %v8921_v60 }
 0x8af   :  { %v7807_v55 = vpop.f32.mrb[128].mxu0 }
 0x8b0   :  { %v7808_v18 = vpop.f32.mrb[129].mxu0 }
 0x8b1   :  { %v7809_v11 = vadd.f32 %v7808_v18, %v7807_v55 }
 0x8b3   :  { %v4914_v40 = vmul.f32 0.0017361111, %v7809_v11 }
 0x8b5   :  { %7437 = vmatmul.mubr.msk.f32.vlgmr.msra.gmra.mrb[132].mxu0 %vm5010_vm3, %v4914_v40  ;;  %v5002_v63 = vmul.f32 %v4914_v40, %v4914_v40 }
 0x8b6   :  { %8928 = vmatpush1.bf16.msra.mxu0 %v8923_v49  ;;  %5179 = vmatprep.mubr.f32.mxu0 %v9531_v58  ;;  %v5421_v58 = vld [vmem:[#allocation18] sm:$0x3]  ;;  %v14417_v49 = vld [vmem:[#allocation80_spill] sm:$0xff] }
 0x8b7   :  { %7845 = vmatprep.subr.bf16.mxu0 %v9482_v4  ;;  %v12224_v18 = vrot.slane %v5421_v58, %v14417_v49  ;;  %v12227_v11 = vrot.slane %v5421_v58, %v14416_v22  ;;  %v14433_v58 = vld [vmem:[#allocation86_spill] sm:$0xff] }
 0x8cf   :  { %v7842_v37 = vpop.f32.mrb[130].mxu0 }
 0x8d0   :  { %v7843_v39 = vpop.f32.mrb[131].mxu0 }
 0x8d1   :  { %v7844_v13 = vadd.f32 %v7843_v39, %v7842_v37  ;;  %v12236_v39 = vrot.slane %v5497_v31, %v14417_v49 }
 0x8d3   :  { %v5001_v48 = vmul.f32 0.0017361111, %v7844_v13  ;;  %v12239_v13 = vrot.slane %v5497_v31, %v14416_v22  ;;  %v14434_v31 = vld [vmem:[#allocation88_spill] sm:$0xff] }
 0x8d5   :  { %v5003_v54 = vsub.f32 %v5001_v48, %v5002_v63 }
 0x8d7   :  { %v5004_v20 = vadd.f32 1e-05, %v5003_v54  ;;  %v14419_v54 = vld [vmem:[#allocation75_spill] sm:$0xff] }
 0x8d9   :  { %9522 = vrsqrt.f32 %v5004_v20 }
 0x8e3   :  { %v9523_v53 = vpop.eup %9522 }
 0x8e4   :  { %7438 = vmatmul.mubr.msk.f32.vlgmr.msra.gmra.mrb[134].mxu0 %vm5010_vm3, %v9523_v53  ;;  %v14420_v53 = vld [vmem:[#allocation73_spill] sm:$0xff] }
 0x8e5   :  { %7846 = vmatpush3.bf16.msra.mxu0 %v9483_v23 }
 0x8e6   :  { %7847 = vmatprep.subr.bf16.mxu0 %v9484_v30 }
 0x8e9   :  { %7848 = vmatpush3.bf16.msra.mxu0 %v9485_v38  ;;  %v14421_v38 = vld [vmem:[#allocation74_spill] sm:$0xff] }
 0x8ea   :  { %7849 = vmatprep.subr.bf16.mxu0 %v9486_v26  ;;  %v14454_v26 = vld [vmem:[#allocation107_spill] sm:$0xff] }
 0x8ed   :  { %7850 = vmatpush3.bf16.msra.mxu0 %v9487_v2  ;;  %v14422_v2 = vld [vmem:[#allocation72_spill] sm:$0xff] }
 0x8ee   :  { %7851 = vmatprep.subr.bf16.mxu0 %v9488_v42 }
 0x8f1   :  { %7852 = vmatpush3.bf16.msra.mxu0 %v9489_v3  ;;  %v14423_v3 = vld [vmem:[#allocation77_spill] sm:$0xff] }
 0x8f2   :  { %7853 = vmatprep.subr.bf16.mxu0 %v9490_v14  ;;  %v14461_v14 = vld [vmem:[#allocation119_spill] sm:$0xff] }
 0x8f5   :  { %7854 = vmatpush3.bf16.msra.mxu0 %v9491_v45  ;;  %v14424_v45 = vld [vmem:[#allocation81_spill] sm:$0xff] }
 0x8f6   :  { %7855 = vmatprep.subr.bf16.mxu0 %v9492_v41 }
 0x8f9   :  { %7856 = vmatpush3.bf16.msra.mxu0 %v9493_v36  ;;  %v14425_v36 = vld [vmem:[#allocation76_spill] sm:$0xff] }
 0x8fa   :  { %7857 = vmatprep.subr.bf16.mxu0 %v9494_v19  ;;  %v14462_v19 = vld [vmem:[#allocation117_spill] sm:$0xff] }
 0x8fd   :  { %7858 = vmatpush3.bf16.msra.mxu0 %v9495_v34  ;;  %v14426_v34 = vld [vmem:[#allocation78_spill] sm:$0xff] }
 0x8fe   :  { %7859 = vmatprep.subr.bf16.mxu0 %v9496_v52 }
 0x901   :  { %7860 = vmatpush3.bf16.msra.mxu0 %v9497_v27  ;;  %v14427_v27 = vld [vmem:[#allocation83_spill] sm:$0xff] }
 0x902   :  { %8640 = vmatprep.subr.bf16.mxu0 %v12208_v43 }
 0x988   :  { %v5080_v46 = vpop.f32.mrb[132].mxu0 }
 0x989   :  { %v5082_v24 = vpop.f32.mrb[133].mxu0 }
 0x98a   :  { %v5087_v7 = vcombine.low %v5080_v46, %v5082_v24  ;;  %v14428_v24 = vld [vmem:[#allocation85_spill] sm:$0xff] }
 0x98c   :  { %v5094_v35 = vrot.slane %v5087_v7, %v12212_v1  ;;  %v14435_v7 = vld [vmem:[#allocation92_spill] sm:$0xff] }
 0x98e   :  { %v5095_v33 = vcombine.high %v5094_v35, %v5094_v35  ;;  %v5102_v5 = vrot.slane %v5094_v35, %v12212_v1  ;;  %v14431_v35 = vld [vmem:[#allocation87_spill] sm:$0xff] }
 0x990   :  { %v5109_v15 = vrot.slane %v5095_v33, %v12212_v1  ;;  %v5110_v21 = vcombine.high %v5102_v5, %v5102_v5  ;;  %v12218_v60 = vrot.slane %v5102_v5, %v14416_v22  ;;  %v12221_v55 = vrot.slane %v5102_v5, %v14417_v49  ;;  %v14432_v5 = vld [vmem:[#allocation89_spill] sm:$0xff] }
 0x991   :  { %v14457_v33 = vld [vmem:[#allocation113_spill] sm:$0xff] }
 0x992   :  { %v5111_v8 = vcombine.high %v5109_v15, %v5109_v15  ;;  %v12230_v40 = vrot.slane %v5109_v15, %v14417_v49  ;;  %v12233_v37 = vrot.slane %v5109_v15, %v14416_v22  ;;  %v12242_v63 = vrot.slane %v5110_v21, %v14417_v49  ;;  %v14458_v15 = vld [vmem:[#allocation114_spill] sm:$0xff] }
 0x993   :  { %v12245_v48 = vrot.slane %v5110_v21, %v14416_v22  ;;  %v14467_v51 = vsub.f32 %v14419_v54, %v12218_v60  ;;  %v14468_v62 = vsub.f32 %v14420_v53, %v12218_v60  ;;  %v14469_v32 = vsub.f32 %v14421_v38, %v12221_v55 }
 0x994   :  { %14418 = vst [vmem:[#allocation66_spill] sm:$0xff] %v12230_v40  ;;  %v12252_v23 = vrot.slane %v5111_v8, %v14417_v49  ;;  %v12255_v30 = vrot.slane %v5111_v8, %v14416_v22  ;;  %v14463_v40 = vld [vmem:[#allocation120_spill] sm:$0xff]  ;;  %v14471_v54 = vsub.f32 %v14423_v3, %v12218_v60 }
 0x9b7   :  { %v5181_v52 = vpop.f32.mrb[134].mxu0 }
 0x9b8   :  { %v5183_v8 = vpop.f32.mrb[135].mxu0 }
 0x9b9   :  { %v5188_v41 = vcombine.low %v5181_v52, %v5183_v8 }
 0x9bb   :  { %v5195_v8 = vrot.slane %v5188_v41, %v12212_v1 }
 0x9bd   :  { %v5196_v20 = vcombine.high %v5195_v8, %v5195_v8  ;;  %v5203_v42 = vrot.slane %v5195_v8, %v12212_v1 }
 0x9bf   :  { %v5210_v8 = vrot.slane %v5196_v20, %v12212_v1  ;;  %v5211_v41 = vcombine.high %v5203_v42, %v5203_v42  ;;  %v12377_v21 = vrot.slane %v5203_v42, %v14417_v49  ;;  %v5324_v46 = vrot.slane %v5203_v42, %v14416_v22 }
 0x9c1   :  { %v5212_v9 = vcombine.high %v5210_v8, %v5210_v8  ;;  %v12389_v20 = vrot.slane %v5210_v8, %v14417_v49  ;;  %v12392_v1 = vrot.slane %v5210_v8, %v14416_v22  ;;  %v12395_v42 = vrot.slane %v5211_v41, %v14417_v49 }
 0x9c2   :  { %v12398_v4 = vrot.slane %v5211_v41, %v14416_v22  ;;  %v5358_v52 = vmul.f32 %v5324_v46, %v14467_v51  ;;  %v5360_v59 = vmul.f32 %v5324_v46, %v14468_v62  ;;  %v5357_v8 = vmul.f32 %v12377_v21, %v14469_v32 }
 0x9c3   :  { %v12411_v10 = vrot.slane %v5212_v9, %v14417_v49  ;;  %v12414_v50 = vrot.slane %v5212_v9, %v14416_v22  ;;  %v14470_v41 = vsub.f32 %v14422_v2, %v12221_v55  ;;  %v5362_v62 = vmul.f32 %v5324_v46, %v14471_v54 }
 0x9c4   :  { %v5434_v53 = vmul.f32 %v12227_v11, %v5358_v52  ;;  %v5436_v38 = vmul.f32 %v12227_v11, %v5360_v59  ;;  %v5433_v32 = vmul.f32 %v12224_v18, %v5357_v8  ;;  %v14472_v49 = vsub.f32 %v14424_v45, %v12218_v60 }
 0x9c5   :  { %v5359_v51 = vmul.f32 %v12377_v21, %v14470_v41  ;;  %v5438_v2 = vmul.f32 %v12227_v11, %v5362_v62  ;;  %v14473_v41 = vsub.f32 %v14425_v36, %v12221_v55  ;;  %v14474_v52 = vsub.f32 %v14426_v34, %v12221_v55 }
 0x9c6   :  { %v5364_v9 = vmul.f32 %v5324_v46, %v14472_v49  ;;  %v5510_v8 = vadd.f32 %v12239_v13, %v5434_v53  ;;  %v5512_v54 = vadd.f32 %v12239_v13, %v5436_v38  ;;  %v5509_v49 = vadd.f32 %v12236_v39, %v5433_v32 }
 0x9c7   :  { %v5435_v22 = vmul.f32 %v12224_v18, %v5359_v51  ;;  %v5361_v3 = vmul.f32 %v12377_v21, %v14473_v41  ;;  %v5363_v59 = vmul.f32 %v12377_v21, %v14474_v52  ;;  %v5514_v62 = vadd.f32 %v12239_v13, %v5438_v2 }
 0x9c8   :  { %v5440_v45 = vmul.f32 %v12227_v11, %v5364_v9  ;;  %v5606_v6 = vpack.c.bf16 %v5512_v54, %v5510_v8  ;;  %v14475_v53 = vsub.f32 %v14427_v27, %v12218_v60  ;;  %v14476_v38 = vsub.f32 %v14428_v24, %v12218_v60 }
 0x9c9   :  { %v5511_v51 = vadd.f32 %v12236_v39, %v5435_v22  ;;  %v5437_v36 = vmul.f32 %v12224_v18, %v5361_v3  ;;  %v5439_v41 = vmul.f32 %v12224_v18, %v5363_v59  ;;  %v14477_v3 = vsub.f32 %v14429_v0, %v12221_v55 }
 0x9ca   :  { %v5516_v34 = vadd.f32 %v12239_v13, %v5440_v45  ;;  %v5366_v52 = vmul.f32 %v5324_v46, %v14475_v53  ;;  %v5368_v32 = vmul.f32 %v5324_v46, %v14476_v38  ;;  %5772 = vmatprep.mubr.bf16.mxu0 %v5606_v6  ;;  %v14478_v24 = vsub.f32 %v14430_v44, %v12221_v55 }
 0x9cb   :  { %v5605_v9 = vpack.c.bf16 %v5511_v51, %v5509_v49  ;;  %v5513_v22 = vadd.f32 %v12236_v39, %v5437_v36  ;;  %v5515_v2 = vadd.f32 %v12236_v39, %v5439_v41  ;;  %v5365_v59 = vmul.f32 %v12377_v21, %v14477_v3 }
 0x9cc   :  { %v5608_v8 = vpack.c.bf16 %v5516_v34, %v5514_v62  ;;  %v5442_v27 = vmul.f32 %v12227_v11, %v5366_v52  ;;  %v5444_v54 = vmul.f32 %v12227_v11, %v5368_v32  ;;  %v5367_v49 = vmul.f32 %v12377_v21, %v14478_v24 }
 0x9cd   :  { %5773 = vmatmul.mubr.bf16.vlgmr.msra.gmra.mrb[136].mxu0 %v5605_v9  ;;  %v5607_v45 = vpack.c.bf16 %v5515_v2, %v5513_v22  ;;  %v5441_v51 = vmul.f32 %v12224_v18, %v5365_v59  ;;  %v14479_v0 = vsub.f32 %v14431_v35, %v12218_v60  ;;  %v14480_v6 = vsub.f32 %v14432_v5, %v12218_v60 }
 0x9ce   :  { %8641 = vmatpush3.bf16.msra.mxu0 %v12208_v43  ;;  %5780 = vmatprep.mubr.bf16.mxu0 %v5608_v8  ;;  %v5518_v41 = vadd.f32 %v12239_v13, %v5442_v27  ;;  %v5520_v44 = vadd.f32 %v12239_v13, %v5444_v54  ;;  %v5443_v34 = vmul.f32 %v12224_v18, %v5367_v49  ;;  %v14486_v54 = vld [vmem:[#allocation66_spill] sm:$0xff] }
 0x9cf   :  { %v5370_v36 = vmul.f32 %v5324_v46, %v14479_v0  ;;  %v5372_v62 = vmul.f32 %v5324_v46, %v14480_v6  ;;  %8642 = vmatprep.subr.bf16.mxu0 %v9499_v28  ;;  %v12478_v53 = vadd.f32 %v12236_v39, %v5441_v51  ;;  %v14481_v60 = vsub.f32 %v14433_v58, %v12221_v55  ;;  %v9500_v46 = vld [vmem:[#allocation23 + $0x10] sm:$0xff]  }
 0x9d0   :  { %v5610_v5 = vpack.c.bf16 %v5520_v44, %v5518_v41  ;;  %v5519_v38 = vadd.f32 %v12236_v39, %v5443_v34  ;;  %v14482_v32 = vsub.f32 %v14434_v31, %v12221_v55  ;;  %v14483_v22 = vsub.f32 %v14435_v7, %v12233_v37  ;;  %v14485_v31 = vld [vmem:[#allocation93_spill] sm:$0xff] }
 0x9d1   :  { %v5446_v35 = vmul.f32 %v12227_v11, %v5370_v36  ;;  %v5448_v52 = vmul.f32 %v12227_v11, %v5372_v62  ;;  %v5369_v43 = vmul.f32 %v12377_v21, %v14481_v60  ;;  %v14484_v8 = vsub.f32 %v14436_v17, %v12233_v37  ;;  %v14488_v36 = vld [vmem:[#allocation90_spill] sm:$0xff] }
 0x9d2   :  { %v5371_v9 = vmul.f32 %v12377_v21, %v14482_v32  ;;  %v5374_v2 = vmul.f32 %v12392_v1, %v14483_v22  ;;  %v5609_v55 = vpack.c.bf16 %v5519_v38, %v12478_v53  ;;  %8643 = vmatpush3.bf16.msra.mxu0 %v9499_v28  ;;  %v14487_v24 = vsub.f32 %v14485_v31, %v14486_v54  ;;  %v9501_v62 = vld [vmem:[#allocation23 + $0x18] sm:$0xff]   ;;  %v14492_v38 = vld [vmem:[#allocation97_spill] sm:$0xff] }
 0x9d3   :  { %v12496_v3 = vadd.f32 %v12239_v13, %v5446_v35  ;;  %v5524_v58 = vadd.f32 %v12239_v13, %v5448_v52  ;;  %v5445_v59 = vmul.f32 %v12224_v18, %v5369_v43  ;;  %v5376_v27 = vmul.f32 %v12392_v1, %v14484_v8  ;;  %8644 = vmatprep.subr.bf16.mxu0 %v9500_v46  ;;  %v14490_v53 = vld [vmem:[#allocation95_spill] sm:$0xff]  ;;  %v14494_v22 = vld [vmem:[#allocation94_spill] sm:$0xff] }
 0x9d4   :  { %v5447_v21 = vmul.f32 %v12224_v18, %v5371_v9  ;;  %v5450_v7 = vmul.f32 %v12227_v11, %v5374_v2  ;;  %v5373_v49 = vmul.f32 %v12389_v20, %v14487_v24  ;;  %v14489_v28 = vsub.f32 %v14488_v36, %v14486_v54  ;;  %v9502_v24 = vld [vmem:[#allocation23 + $0x20] sm:$0xff]  }
 0x9d5   :  { %v5612_v51 = vpack.c.bf16 %v5524_v58, %v12496_v3  ;;  %v12513_v0 = vadd.f32 %v12236_v39, %v5445_v59  ;;  %v5452_v17 = vmul.f32 %v12227_v11, %v5376_v27  ;;  %v14491_v35 = vsub.f32 %v14490_v53, %v12233_v37  ;;  %5781 = vmatmul.mubr.bf16.gmra.mrb[140].mxu0 %v5607_v45 }
 0x9d6   :  { %v5375_v6 = vmul.f32 %v12389_v20, %v14489_v28  ;;  %v12521_v41 = vadd.f32 %v12236_v39, %v5447_v21  ;;  %v12524_v44 = vadd.f32 %v12239_v13, %v5450_v7  ;;  %v5449_v34 = vmul.f32 %v12224_v18, %v5373_v49  ;;  %5788 = vmatprep.mubr.bf16.mxu0 %v5610_v5  ;;  %v14496_v7 = vld [vmem:[#allocation96_spill] sm:$0xff] }
 0x9d7   :  { %v5378_v52 = vmul.f32 %v12392_v1, %v14491_v35  ;;  %v12532_v60 = vadd.f32 %v12239_v13, %v5452_v17  ;;  %v14493_v32 = vsub.f32 %v14492_v38, %v12233_v37  ;;  %v14495_v2 = vsub.f32 %v14494_v22, %v14486_v54  ;;  %8645 = vmatpush3.bf16.msra.mxu0 %v9500_v46  ;;  %v14498_v17 = vld [vmem:[#allocation99_spill] sm:$0xff]  ;;  %v14502_v38 = vld [vmem:[#allocation98_spill] sm:$0xff] }
 0x9d8   :  { %v5451_v43 = vmul.f32 %v12224_v18, %v5375_v6  ;;  %v5611_v58 = vpack.c.bf16 %v12521_v41, %v12513_v0  ;;  %v12546_v45 = vadd.f32 %v12236_v39, %v5449_v34  ;;  %v14497_v5 = vsub.f32 %v14496_v7, %v14486_v54  ;;  %8646 = vmatprep.subr.bf16.mxu0 %v9501_v62  ;;  %v14500_v6 = vld [vmem:[#allocation103_spill] sm:$0xff] }
 0x9d9   :  { %v5380_v9 = vmul.f32 %v12392_v1, %v14493_v32  ;;  %v5377_v3 = vmul.f32 %v12389_v20, %v14495_v2  ;;  %v5454_v59 = vmul.f32 %v12227_v11, %v5378_v52  ;;  %v5614_v8 = vpack.c.bf16 %v12532_v60, %v12524_v44 }
 0x9da   :  { %v12552_v27 = vadd.f32 %v12236_v39, %v5451_v43  ;;  %v5379_v31 = vmul.f32 %v12389_v20, %v14497_v5  ;;  %v14499_v36 = vsub.f32 %v14498_v17, %v12233_v37  ;;  %v14501_v34 = vsub.f32 %v14500_v6, %v12233_v37 }
 0x9db   :  { %v5456_v21 = vmul.f32 %v12227_v11, %v5380_v9  ;;  %v12560_v49 = vadd.f32 %v12239_v13, %v5454_v59  ;;  %v5453_v46 = vmul.f32 %v12224_v18, %v5377_v3  ;;  %v14503_v32 = vsub.f32 %v14502_v38, %v14486_v54  ;;  %v14504_v59 = vld [vmem:[#allocation101_spill] sm:$0xff]  ;;  %8647 = vmatpush3.bf16.msra.mxu0 %v9501_v62 }
 0x9dc   :  { %v5382_v28 = vmul.f32 %v12392_v1, %v14499_v36  ;;  %v5384_v53 = vmul.f32 %v12392_v1, %v14501_v34  ;;  %v5613_v35 = vpack.c.bf16 %v12552_v27, %v12546_v45  ;;  %v5455_v43 = vmul.f32 %v12224_v18, %v5379_v31  ;;  %8648 = vmatprep.subr.bf16.mxu0 %v9502_v24 }
 0x9dd   :  { %v12574_v52 = vadd.f32 %v12239_v13, %v5456_v21  ;;  %v5381_v9 = vmul.f32 %v12389_v20, %v14503_v32  ;;  %v12582_v22 = vadd.f32 %v12236_v39, %v5453_v46  ;;  %v14505_v7 = vsub.f32 %v14504_v59, %v14486_v54  ;;  %v14506_v46 = vld [vmem:[#allocation109_spill] sm:$0xff]  ;;  %5789 = vmatmul.mubr.bf16.gmra.mrb[144].mxu0 %v5609_v55 }
 0x9de   :  { %v5458_v2 = vmul.f32 %v12227_v11, %v5382_v28  ;;  %v5460_v3 = vmul.f32 %v12227_v11, %v5384_v53  ;;  %v12593_v31 = vadd.f32 %v12236_v39, %v5455_v43  ;;  %v14507_v36 = vsub.f32 %v14506_v46, %v12233_v37  ;;  %v14508_v53 = vld [vmem:[#allocation112_spill] sm:$0xff]  ;;  %5796 = vmatprep.mubr.bf16.mxu0 %v5612_v51  ;;  %v14512_v46 = vld [vmem:[#allocation111_spill] sm:$0xff] }
 0x9df   :  { %v5383_v21 = vmul.f32 %v12389_v20, %v14505_v7  ;;  %v5616_v5 = vpack.c.bf16 %v12574_v52, %v12560_v49  ;;  %v5457_v17 = vmul.f32 %v12224_v18, %v5381_v9  ;;  %v14509_v43 = vsub.f32 %v14508_v53, %v12233_v37  ;;  %v9503_v32 = vld [vmem:[#allocation23 + $0x28] sm:$0xff]   ;;  %8649 = vmatpush3.bf16.msra.mxu0 %v9502_v24 }
 0x9e0   :  { %v5386_v28 = vmul.f32 %v12392_v1, %v14507_v36  ;;  %v12601_v6 = vadd.f32 %v12239_v13, %v5458_v2  ;;  %v12604_v34 = vadd.f32 %v12239_v13, %v5460_v3  ;;  %v5615_v9 = vpack.c.bf16 %v12593_v31, %v12582_v22  ;;  %v14510_v7 = vld [vmem:[#allocation108_spill] sm:$0xff]  ;;  %8650 = vmatprep.subr.bf16.mxu0 %v9503_v32  ;;  %v14555_v31 = vld [vmem:[#allocation126_spill] sm:$0xff] }
 0x9e1   :  { %v5459_v62 = vmul.f32 %v12224_v18, %v5383_v21  ;;  %v5388_v38 = vmul.f32 %v12392_v1, %v14509_v43  ;;  %v12614_v59 = vadd.f32 %v12236_v39, %v5457_v17  ;;  %v14511_v3 = vsub.f32 %v14510_v7, %v14486_v54  ;;  %v14515_v7 = vld [vmem:[#allocation102_spill] sm:$0xff] }
 0x9e2   :  { %v5462_v2 = vmul.f32 %v12227_v11, %v5386_v28  ;;  %v14513_v17 = vsub.f32 %v14512_v46, %v14486_v54  ;;  %v14514_v51 = vsub.f32 %v14450_v61, %v12245_v48  ;;  %v9504_v46 = vld [vmem:[#allocation23 + $0x30] sm:$0xff]   ;;  %v14541_v52 = vsub.f32 %v12000_v56, %v12252_v23 }
 0x9e3   :  { %v5385_v21 = vmul.f32 %v12389_v20, %v14511_v3  ;;  %v12624_v1 = vadd.f32 %v12236_v39, %v5459_v62  ;;  %v5464_v55 = vmul.f32 %v12227_v11, %v5388_v38  ;;  %v14516_v62 = vsub.f32 %v14515_v7, %v12245_v48  ;;  %v14517_v3 = vld [vmem:[#allocation104_spill] sm:$0xff]  ;;  %v14522_v54 = vld [vmem:[#allocation110_spill] sm:$0xff]  ;;  %8651 = vmatpush3.bf16.msra.mxu0 %v9503_v32 }
 0x9e4   :  { %v5387_v36 = vmul.f32 %v12389_v20, %v14513_v17  ;;  %v12632_v28 = vadd.f32 %v12239_v13, %v5462_v2  ;;  %v5390_v43 = vmul.f32 %v12398_v4, %v14514_v51  ;;  %v14519_v7 = vld [vmem:[#allocation100_spill] sm:$0xff]  ;;  %8652 = vmatprep.subr.bf16.mxu0 %v9504_v46 }
 0x9e5   :  { %v5461_v53 = vmul.f32 %v12224_v18, %v5385_v21  ;;  %v5392_v38 = vmul.f32 %v12398_v4, %v14516_v62  ;;  %v12646_v20 = vadd.f32 %v12239_v13, %v5464_v55  ;;  %v14518_v21 = vsub.f32 %v14517_v3, %v12242_v63  ;;  %5797 = vmatmul.mubr.bf16.gmra.mrb[148].mxu0 %v5611_v58 }
 0x9e6   :  { %v5463_v2 = vmul.f32 %v12224_v18, %v5387_v36  ;;  %v5466_v24 = vmul.f32 %v12227_v11, %v5390_v43  ;;  %v14520_v55 = vsub.f32 %v14519_v7, %v12242_v63  ;;  %v14523_v36 = vsub.f32 %v14522_v54, %v12245_v48  ;;  %5804 = vmatprep.mubr.bf16.mxu0 %v5614_v8 }
 0x9e7   :  { %v5389_v61 = vmul.f32 %v12395_v42, %v14518_v21  ;;  %v12654_v17 = vadd.f32 %v12236_v39, %v5461_v53  ;;  %v5468_v51 = vmul.f32 %v12227_v11, %v5392_v38  ;;  %v14521_v53 = vsub.f32 %v14454_v26, %v12245_v48  ;;  %8653 = vmatpush3.bf16.msra.mxu0 %v9504_v46 }
 0x9e8   :  { %v5391_v62 = vmul.f32 %v12395_v42, %v14520_v55  ;;  %v12665_v3 = vadd.f32 %v12236_v39, %v5463_v2  ;;  %v12673_v38 = vadd.f32 %v12239_v13, %v5466_v24  ;;  %v5396_v2 = vmul.f32 %v12398_v4, %v14523_v36 }
 0x9e9   :  { %v5465_v21 = vmul.f32 %v12224_v18, %v5389_v61  ;;  %v5394_v43 = vmul.f32 %v12398_v4, %v14521_v53  ;;  %v12676_v7 = vadd.f32 %v12239_v13, %v5468_v51  ;;  %v14524_v53 = vld [vmem:[#allocation105_spill] sm:$0xff]  ;;  %v14527_v58 = vsub.f32 %v14457_v33, %v12245_v48 }
 0x9ea   :  { %v5467_v55 = vmul.f32 %v12224_v18, %v5391_v62  ;;  %v5619_v61 = vpack.c.bf16 %v12665_v3, %v12654_v17  ;;  %v14525_v51 = vsub.f32 %v14524_v53, %v12242_v63  ;;  %v9505_v62 = vld [vmem:[#allocation23 + $0x38] sm:$0xff]   ;;  %v5472_v36 = vmul.f32 %v12227_v11, %v5396_v2  ;;  %v14571_v3 = vld [vmem:[#allocation56_spill] sm:$0xff] }
 0x9eb   :  { %v12686_v26 = vadd.f32 %v12236_v39, %v5465_v21  ;;  %v5470_v24 = vmul.f32 %v12227_v11, %v5394_v43  ;;  %v5622_v32 = vpack.c.bf16 %v12676_v7, %v12673_v38  ;;  %v14526_v21 = vsub.f32 %v11910_v29, %v12242_v63  ;;  %8654 = vmatprep.subr.bf16.mxu0 %v9505_v62  ;;  %v14570_v17 = vld [vmem:[#allocation51_spill] sm:$0xff]  ;;  %v12965_v38 = vld [vmem:[#allocation26 + $0x20] sm:$0xff]   ;;  %v12969_v7 = vld [vmem:[#allocation26 + $0x28] sm:$0xff]  }
 0x9ec   :  { %v5393_v37 = vmul.f32 %v12395_v42, %v14525_v51  ;;  %v12699_v54 = vadd.f32 %v12236_v39, %v5467_v55  ;;  %v5398_v55 = vmul.f32 %v12398_v4, %v14527_v58  ;;  %v14528_v2 = vsub.f32 %v14458_v15, %v12245_v48  ;;  %8655 = vmatpush3.bf16.msra.mxu0 %v9505_v62 }
 0x9ed   :  { %v5395_v43 = vmul.f32 %v12395_v42, %v14526_v21  ;;  %v12710_v0 = vadd.f32 %v12239_v13, %v5470_v24  ;;  %v12724_v44 = vadd.f32 %v12239_v13, %v5472_v36  ;;  %v14529_v8 = vsub.f32 %v11929_v47, %v12242_v63  ;;  %5805 = vmatmul.mubr.bf16.gmra.mrb[152].mxu0 %v5613_v35 }
 0x9ee   :  { %v5469_v41 = vmul.f32 %v12224_v18, %v5393_v37  ;;  %v5400_v29 = vmul.f32 %v12398_v4, %v14528_v2  ;;  %v5621_v53 = vpack.c.bf16 %v12699_v54, %v12686_v26  ;;  %v5474_v15 = vmul.f32 %v12227_v11, %v5398_v55  ;;  %5812 = vmatprep.mubr.bf16.mxu0 %v5616_v5  ;;  %v14573_v26 = vld [vmem:[#allocation54_spill] sm:$0xff]  ;;  %v12979_v54 = vld [vmem:[#allocation26 + $0x38] sm:$0xff]  }
 0x9ef   :  { %v5471_v60 = vmul.f32 %v12224_v18, %v5395_v43  ;;  %v5397_v33 = vmul.f32 %v12395_v42, %v14529_v8  ;;  %v14530_v51 = vsub.f32 %v11953_v57, %v12242_v63  ;;  %v5624_v21 = vpack.c.bf16 %v12724_v44, %v12710_v0  ;;  %v14531_v43 = vld [vmem:[#allocation116_spill] sm:$0xff]  ;;  %v14574_v0 = vld [vmem:[#allocation55_spill] sm:$0xff] }
 0x9f0   :  { %v12732_v37 = vadd.f32 %v12236_v39, %v5469_v41  ;;  %v5476_v24 = vmul.f32 %v12227_v11, %v5400_v29  ;;  %v14532_v41 = vsub.f32 %v14531_v43, %v12245_v48  ;;  %v12751_v55 = vadd.f32 %v12239_v13, %v5474_v15  ;;  %v14533_v29 = vld [vmem:[#allocation118_spill] sm:$0xff]  ;;  %v14535_v15 = vld [vmem:[#allocation115_spill] sm:$0xff]  ;;  %v9514_v44 = vld [vmem:[#allocation27] sm:$0xff]  }
 0x9f1   :  { %v5399_v36 = vmul.f32 %v12395_v42, %v14530_v51  ;;  %v12743_v47 = vadd.f32 %v12236_v39, %v5471_v60  ;;  %v5473_v46 = vmul.f32 %v12224_v18, %v5397_v33  ;;  %v14534_v8 = vsub.f32 %v14533_v29, %v12245_v48  ;;  %8688 = vmatprep.subr.bf16.mxu1 %v9514_v44 }
 0x9f2   :  { %v5402_v58 = vmul.f32 %v12398_v4, %v14532_v41  ;;  %v12754_v57 = vadd.f32 %v12239_v13, %v5476_v24  ;;  %v14536_v41 = vsub.f32 %v14535_v15, %v12242_v63  ;;  %v5407_v5 = vmul.f32 %v12411_v10, %v14541_v52  ;;  %8689 = vmatpush3.bf16.msra.mxu1 %v9514_v44 }
 0x9f3   :  { %v5475_v2 = vmul.f32 %v12224_v18, %v5399_v36  ;;  %v5404_v60 = vmul.f32 %v12398_v4, %v14534_v8  ;;  %v5623_v33 = vpack.c.bf16 %v12743_v47, %v12732_v37  ;;  %v12764_v51 = vadd.f32 %v12236_v39, %v5473_v46  ;;  %v14576_v37 = vld [vmem:[#allocation60_spill] sm:$0xff]  ;;  %v9515_v47 = vld [vmem:[#allocation27 + $0x8] sm:$0xff]  }
 0x9f4   :  { %v5478_v43 = vmul.f32 %v12227_v11, %v5402_v58  ;;  %v5401_v24 = vmul.f32 %v12395_v42, %v14536_v41  ;;  %v5626_v36 = vpack.c.bf16 %v12754_v57, %v12751_v55  ;;  %v14537_v46 = vsub.f32 %v11994_v25, %v12242_v63  ;;  %8690 = vmatprep.subr.bf16.mxu1 %v9515_v47  ;;  %v14578_v55 = vld [vmem:[#allocation59_spill] sm:$0xff]  ;;  %v14579_v57 = vld [vmem:[#allocation61_spill] sm:$0xff] }
 0x9f5   :  { %v12774_v48 = vadd.f32 %v12236_v39, %v5475_v2  ;;  %v5480_v4 = vmul.f32 %v12227_v11, %v5404_v60  ;;  %v14538_v2 = vsub.f32 %v14461_v14, %v12255_v30  ;;  %v14539_v60 = vsub.f32 %v14462_v19, %v12255_v30  ;;  %5813 = vmatmul.mubr.bf16.gmra.mrb[156].mxu0 %v5615_v9 }
 0x9f6   :  { %v5403_v29 = vmul.f32 %v12395_v42, %v14537_v46  ;;  %v12785_v58 = vadd.f32 %v12239_v13, %v5478_v43  ;;  %v5477_v62 = vmul.f32 %v12224_v18, %v5401_v24  ;;  %v14540_v14 = vsub.f32 %v12011_v16, %v12252_v23  ;;  %8691 = vmatpush3.bf16.msra.mxu1 %v9515_v47 }
 0x9f7   :  { %v5406_v8 = vmul.f32 %v12414_v50, %v14538_v2  ;;  %v5408_v25 = vmul.f32 %v12414_v50, %v14539_v60  ;;  %v5625_v63 = vpack.c.bf16 %v12774_v48, %v12764_v51  ;;  %v12802_v42 = vadd.f32 %v12239_v13, %v5480_v4  ;;  %v14580_v51 = vld [vmem:[#allocation62_spill] sm:$0xff]  ;;  %v9517_v48 = vld [vmem:[#allocation27 + $0x18] sm:$0xff]  }
 0x9f8   :  { %v5479_v45 = vmul.f32 %v12224_v18, %v5403_v29  ;;  %v5405_v27 = vmul.f32 %v12411_v10, %v14540_v14  ;;  %v12810_v19 = vadd.f32 %v12236_v39, %v5477_v62  ;;  %v14542_v41 = vsub.f32 %v14463_v40, %v12255_v30  ;;  %v14543_v29 = vld [vmem:[#allocation121_spill] sm:$0xff] }
 0x9f9   :  { %v5482_v35 = vmul.f32 %v12227_v11, %v5406_v8  ;;  %v5484_v49 = vmul.f32 %v12227_v11, %v5408_v25  ;;  %v5628_v43 = vpack.c.bf16 %v12802_v42, %v12785_v58  ;;  %v5483_v46 = vmul.f32 %v12224_v18, %v5407_v5  ;;  %v14582_v58 = vld [vmem:[#allocation63_spill] sm:$0xff]  ;;  %v9519_v42 = vld [vmem:[#allocation27 + $0x28] sm:$0xff]  }
 0x9fa   :  { %v12821_v15 = vadd.f32 %v12236_v39, %v5479_v45  ;;  %v5481_v16 = vmul.f32 %v12224_v18, %v5405_v27  ;;  %v5410_v24 = vmul.f32 %v12414_v50, %v14542_v41  ;;  %v14544_v62 = vsub.f32 %v14543_v29, %v12255_v30 }
 0x9fb   :  { %v12829_v4 = vadd.f32 %v12239_v13, %v5482_v35  ;;  %v12832_v56 = vadd.f32 %v12239_v13, %v5484_v49  ;;  %v14545_v25 = vsub.f32 %v12014_v12, %v12252_v23  ;;  %v5559_v27 = vadd.f32 %v12236_v39, %v5483_v46  ;;  %v14546_v49 = vld [vmem:[#allocation122_spill] sm:$0xff] }
 0x9fc   :  { %v5412_v2 = vmul.f32 %v12414_v50, %v14544_v62  ;;  %v5627_v8 = vpack.c.bf16 %v12821_v15, %v12810_v19  ;;  %v5557_v40 = vadd.f32 %v12236_v39, %v5481_v16  ;;  %v5486_v60 = vmul.f32 %v12227_v11, %v5410_v24  ;;  %v14548_v16 = vld [vmem:[#allocation124_spill] sm:$0xff]  ;;  %v14550_v24 = vld [vmem:[#allocation125_spill] sm:$0xff] }
 0x9fd   :  { %v5409_v45 = vmul.f32 %v12411_v10, %v14545_v25  ;;  %v5630_v14 = vpack.c.bf16 %v12832_v56, %v12829_v4  ;;  %v14547_v52 = vsub.f32 %v14546_v49, %v12252_v23  ;;  %v14549_v12 = vsub.f32 %v14548_v16, %v12255_v30  ;;  %v14557_v16 = vld [vmem:[#allocation128_spill] sm:$0xff] }
 0x9fe   :  { %v5488_v35 = vmul.f32 %v12227_v11, %v5412_v2  ;;  %v5562_v5 = vadd.f32 %v12239_v13, %v5486_v60  ;;  %v14551_v4 = vsub.f32 %v14550_v24, %v12255_v30  ;;  %v5629_v46 = vpack.c.bf16 %v5559_v27, %v5557_v40  ;;  %v14552_v2 = vld [vmem:[#allocation123_spill] sm:$0xff]  ;;  %v14559_v24 = vld [vmem:[#allocation130_spill] sm:$0xff] }
 0x9ff   :  { %v5411_v19 = vmul.f32 %v12411_v10, %v14547_v52  ;;  %v5485_v15 = vmul.f32 %v12224_v18, %v5409_v45  ;;  %v5414_v41 = vmul.f32 %v12414_v50, %v14549_v12  ;;  %v14553_v60 = vsub.f32 %v14552_v2, %v12252_v23  ;;  %v14561_v2 = vld [vmem:[#allocation127_spill] sm:$0xff] }
 0xa00   :  { %v5416_v56 = vmul.f32 %v12414_v50, %v14551_v4  ;;  %v5564_v29 = vadd.f32 %v12239_v13, %v5488_v35  ;;  %v14554_v45 = vpack.c.bf16 %v12604_v34, %v12601_v6  ;;  %v14556_v9 = vsub.f32 %v14555_v31, %v12252_v23  ;;  %v14563_v31 = vld [vmem:[#allocation129_spill] sm:$0xff] }
 0xa01   :  { %v5487_v62 = vmul.f32 %v12224_v18, %v5411_v19  ;;  %v5413_v25 = vmul.f32 %v12411_v10, %v14553_v60  ;;  %v5561_v49 = vadd.f32 %v12236_v39, %v5485_v15  ;;  %v5490_v52 = vmul.f32 %v12227_v11, %v5414_v41 }
 0xa02   :  { %5820 = vmatprep.mubr.bf16.mxu0 %v14554_v45  ;;  %v5492_v22 = vmul.f32 %v12227_v11, %v5416_v56  ;;  %v5415_v40 = vmul.f32 %v12411_v10, %v14556_v9  ;;  %v5632_v27 = vpack.c.bf16 %v5564_v29, %v5562_v5  ;;  %v14558_v6 = vsub.f32 %v14557_v16, %v12255_v30 }
 0xa03   :  { %v5563_v35 = vadd.f32 %v12236_v39, %v5487_v62  ;;  %v5489_v19 = vmul.f32 %v12224_v18, %v5413_v25  ;;  %v5566_v15 = vadd.f32 %v12239_v13, %v5490_v52  ;;  %v14560_v4 = vsub.f32 %v14559_v24, %v12255_v30 }
 0xa04   :  { %v5418_v34 = vmul.f32 %v12414_v50, %v14558_v6  ;;  %v5568_v12 = vadd.f32 %v12239_v13, %v5492_v22  ;;  %v5491_v41 = vmul.f32 %v12224_v18, %v5415_v40  ;;  %v14562_v60 = vsub.f32 %v14561_v2, %v12252_v23 }
 0xa05   :  { %v5420_v5 = vmul.f32 %v12414_v50, %v14560_v4  ;;  %v5631_v56 = vpack.c.bf16 %v5563_v35, %v5561_v49  ;;  %v5565_v29 = vadd.f32 %v12236_v39, %v5489_v19  ;;  %v14564_v30 = vsub.f32 %v14563_v31, %v12252_v23 }
 0xa06   :  { %v5494_v62 = vmul.f32 %v12227_v11, %v5418_v34  ;;  %v5417_v25 = vmul.f32 %v12411_v10, %v14562_v60  ;;  %v5634_v45 = vpack.c.bf16 %v5568_v12, %v5566_v15  ;;  %v5567_v52 = vadd.f32 %v12236_v39, %v5491_v41  ;;  %v12993_v12 = vld [vmem:[#allocation21] ss:$0 sm:$0xff] }
 0xa07   :  { %v5496_v22 = vmul.f32 %v12227_v11, %v5420_v5  ;;  %v5419_v50 = vmul.f32 %v12411_v10, %v14564_v30  ;;  %v14565_v16 = vpack.c.bf16 %v12624_v1, %v12614_v59  ;;  %v14566_v23 = vpack.c.bf16 %v12646_v20, %v12632_v28  ;;  %v14568_v59 = vld [vmem:[#allocation52_spill] sm:$0xff]  ;;  %v14569_v1 = vld [vmem:[#allocation53_spill] sm:$0xff]  ;;  %v12955_v28 = vld [vmem:[#allocation26 + $0x10] sm:$0xff]  }
 0xa08   :  { %v5570_v49 = vadd.f32 %v12239_v13, %v5494_v62  ;;  %v5493_v9 = vmul.f32 %v12224_v18, %v5417_v25  ;;  %v5633_v40 = vpack.c.bf16 %v5567_v52, %v5565_v29  ;;  %v12959_v20 = vld [vmem:[#allocation26 + $0x18] sm:$0xff]  }
 0xa09   :  { %v5572_v35 = vadd.f32 %v12239_v13, %v5496_v22  ;;  %v5495_v19 = vmul.f32 %v12224_v18, %v5419_v50  ;;  %5821 = vmatmul.mubr.bf16.gmra.mrb[160].mxu0 %v14565_v16  ;;  %v12924_v13 = vld [vmem:[#allocation26] sm:$0xff]   ;;  %v14567_v18 = vld [vmem:[#allocation50_spill] sm:$0xff] }
 0xa0a   :  { %v5569_v11 = vadd.f32 %v12236_v39, %v5493_v9  ;;  %5828 = vmatprep.mubr.bf16.mxu0 %v14566_v23  ;;  %8736 = vmatprep.subr.bf16.mxu0 %v12924_v13 }
 0xa0b   :  { %v5636_v10 = vpack.c.bf16 %v5572_v35, %v5570_v49  ;;  %v5571_v6 = vadd.f32 %v12236_v39, %v5495_v19  ;;  %v12949_v39 = vld [vmem:[#allocation26 + $0x8] sm:$0xff]  }
 0xa0d   :  { %v5635_v34 = vpack.c.bf16 %v5571_v6, %v5569_v11 }
 0xa11   :  { %5829 = vmatmul.mubr.bf16.gmra.mrb[164].mxu0 %v5619_v61  ;;  %v14572_v61 = vld [vmem:[#allocation49_spill] sm:$0xff] }
 0xa12   :  { %5836 = vmatprep.mubr.bf16.mxu0 %v5622_v32  ;;  %v12975_v32 = vld [vmem:[#allocation26 + $0x30] sm:$0xff]  }
 0xa19   :  { %5837 = vmatmul.mubr.bf16.gmra.mrb[168].mxu0 %v5621_v53  ;;  %v14575_v53 = vld [vmem:[#allocation58_spill] sm:$0xff] }
 0xa1a   :  { %5844 = vmatprep.mubr.bf16.mxu0 %v5624_v21  ;;  %v14577_v21 = vld [vmem:[#allocation57_spill] sm:$0xff] }
 0xa21   :  { %5845 = vmatmul.mubr.bf16.gmra.mrb[172].mxu0 %v5623_v33  ;;  %v9516_v33 = vld [vmem:[#allocation27 + $0x10] sm:$0xff]  }
 0xa22   :  { %5852 = vmatprep.mubr.bf16.mxu0 %v5626_v36  ;;  %8692 = vmatprep.subr.bf16.mxu1 %v9516_v33  ;;  %v14581_v36 = vld [vmem:[#allocation67_spill] sm:$0xff] }
 0xa23   :  { %8693 = vmatpush3.bf16.msra.mxu1 %v9516_v33 }
 0xa24   :  { %8694 = vmatprep.subr.bf16.mxu1 %v9517_v48 }
 0xa27   :  { %8695 = vmatpush3.bf16.msra.mxu1 %v9517_v48 }
 0xa29   :  { %5853 = vmatmul.mubr.bf16.gmra.mrb[176].mxu0 %v5625_v63  ;;  %v9518_v63 = vld [vmem:[#allocation27 + $0x20] sm:$0xff]  }
 0xa2a   :  { %5860 = vmatprep.mubr.bf16.mxu0 %v5628_v43  ;;  %8696 = vmatprep.subr.bf16.mxu1 %v9518_v63  ;;  %v9520_v43 = vld [vmem:[#allocation27 + $0x30] sm:$0xff]  }
 0xa2b   :  { %8697 = vmatpush3.bf16.msra.mxu1 %v9518_v63 }
 0xa2c   :  { %8698 = vmatprep.subr.bf16.mxu1 %v9519_v42 }
 0xa2f   :  { %8699 = vmatpush3.bf16.msra.mxu1 %v9519_v42 }
 0xa30   :  { %8700 = vmatprep.subr.bf16.mxu1 %v9520_v43 }
 0xa31   :  { %5861 = vmatmul.mubr.bf16.gmra.mrb[180].mxu0 %v5627_v8 }
 0xa32   :  { %5868 = vmatprep.mubr.bf16.mxu0 %v5630_v14 }
 0xa33   :  { %8701 = vmatpush3.bf16.msra.mxu1 %v9520_v43 }
 0xa39   :  { %5869 = vmatmul.mubr.bf16.gmra.mrb[184].mxu0 %v5629_v46  ;;  %v9521_v46 = vld [vmem:[#allocation27 + $0x38] sm:$0xff]  }
 0xa3a   :  { %5876 = vmatprep.mubr.bf16.mxu0 %v5632_v27  ;;  %8702 = vmatprep.subr.bf16.mxu1 %v9521_v46 }
 0xa3b   :  { %8703 = vmatpush3.bf16.msra.mxu1 %v9521_v46 }
 0xa3c   :  { %8977 = vmatprep.subr.bf16.mxu1 %v12924_v13 }
 0xa41   :  { %5877 = vmatmul.mubr.bf16.gmra.mrb[188].mxu0 %v5631_v56 }
 0xa42   :  { %5884 = vmatprep.mubr.bf16.mxu0 %v5634_v45 }
 0xa49   :  { %5885 = vmatmul.mubr.bf16.gmra.mrb[192].mxu0 %v5633_v40 }
 0xa4a   :  { %5892 = vmatprep.mubr.bf16.mxu0 %v5636_v10 }
 0xa51   :  { %5893 = vmatmul.mubr.bf16.gmra.mrb[196].mxu0 %v5635_v34 }
 0xa52   :  { %8656 = vmatprep.mubr.bf16.mxu0 %v14567_v18 }
 0xa59   :  { %8657 = vmatmul.mubr.bf16.vlgmr.msra.gmra.mrb[200].mxu0 %v14568_v59 }
 0xa5a   :  { %8660 = vmatprep.mubr.bf16.mxu0 %v14569_v1  ;;  %8737 = vmatpush3.bf16.msra.mxu0 %v12924_v13 }
 0xa5b   :  { %8738 = vmatprep.subr.bf16.mxu0 %v12949_v39 }
 0xa5e   :  { %8739 = vmatpush3.bf16.msra.mxu0 %v12949_v39 }
 0xa5f   :  { %8740 = vmatprep.subr.bf16.mxu0 %v12955_v28 }
 0xa61   :  { %8661 = vmatmul.mubr.bf16.gmra.mrb[204].mxu0 %v14570_v17 }
 0xa62   :  { %8664 = vmatprep.mubr.bf16.mxu0 %v14571_v3  ;;  %8741 = vmatpush3.bf16.msra.mxu0 %v12955_v28 }
 0xa63   :  { %8742 = vmatprep.subr.bf16.mxu0 %v12959_v20 }
 0xa66   :  { %8743 = vmatpush3.bf16.msra.mxu0 %v12959_v20 }
 0xa67   :  { %8744 = vmatprep.subr.bf16.mxu0 %v12965_v38 }
 0xa69   :  { %8665 = vmatmul.mubr.bf16.gmra.mrb[208].mxu0 %v14572_v61 }
 0xa6a   :  { %8668 = vmatprep.mubr.bf16.mxu0 %v14573_v26  ;;  %8745 = vmatpush3.bf16.msra.mxu0 %v12965_v38 }
 0xa6b   :  { %8746 = vmatprep.subr.bf16.mxu0 %v12969_v7 }
 0xa6e   :  { %8747 = vmatpush3.bf16.msra.mxu0 %v12969_v7 }
 0xa6f   :  { %8748 = vmatprep.subr.bf16.mxu0 %v12975_v32 }
 0xa71   :  { %8669 = vmatmul.mubr.bf16.gmra.mrb[212].mxu0 %v14574_v0 }
 0xa72   :  { %8672 = vmatprep.mubr.bf16.mxu0 %v14575_v53  ;;  %8749 = vmatpush3.bf16.msra.mxu0 %v12975_v32 }
 0xa73   :  { %8750 = vmatprep.subr.bf16.mxu0 %v12979_v54 }
 0xa76   :  { %8751 = vmatpush3.bf16.msra.mxu0 %v12979_v54 }
 0xa79   :  { %8673 = vmatmul.mubr.bf16.gmra.mrb[216].mxu0 %v14576_v37 }
 0xa7a   :  { %8676 = vmatprep.mubr.bf16.mxu0 %v14577_v21 }
 0xa81   :  { %8677 = vmatmul.mubr.bf16.gmra.mrb[220].mxu0 %v14578_v55 }
 0xa82   :  { %8680 = vmatprep.mubr.bf16.mxu0 %v14579_v57 }
 0xa89   :  { %8681 = vmatmul.mubr.bf16.gmra.mrb[224].mxu0 %v14580_v51 }
 0xa8a   :  { %8684 = vmatprep.mubr.bf16.mxu0 %v14581_v36 }
 0xa91   :  { %8685 = vmatmul.mubr.bf16.gmra.mrb[228].mxu0 %v14582_v58 }
 0xaa0   :  { %v7861_v8 = vpop.f32.mrb[136].mxu0 }
 0xaa1   :  { %v7862_v14 = vpop.f32.mrb[137].mxu0 }
 0xaa2   :  { %v7863_v27 = vadd.f32 %v7862_v14, %v7861_v8  ;;  %v7864_v15 = vpop.f32.mrb[138].mxu0 }
 0xaa3   :  { %v7865_v41 = vpop.f32.mrb[139].mxu0 }
 0xaa4   :  { %v7866_v24 = vadd.f32 %v7865_v41, %v7864_v15  ;;  %v5775_v4 = vadd.f32 %v7863_v27, %v12993_v12 }
 0xaa6   :  { %v5778_v5 = vadd.f32 %v7866_v24, %v12993_v12 }
 0xaa8   :  { %v7867_v56 = vpop.f32.mrb[140].mxu0  ;;  %v6149_v29 = vpack.c.bf16 %v5778_v5, %v5775_v4 }
 0xaa9   :  { %v7868_v62 = vpop.f32.mrb[141].mxu0 }
 0xaaa   :  { %v7869_v2 = vadd.f32 %v7868_v62, %v7867_v56  ;;  %v7870_v60 = vpop.f32.mrb[142].mxu0  ;;  %8752 = vmatprep.mubr.bf16.mxu0 %v6149_v29 }
 0xaab   :  { %v7871_v25 = vpop.f32.mrb[143].mxu0 }
 0xaac   :  { %v7872_v45 = vadd.f32 %v7871_v25, %v7870_v60  ;;  %v5783_v52 = vadd.f32 %v7869_v2, %v12993_v12 }
 0xaae   :  { %v5786_v22 = vadd.f32 %v7872_v45, %v12993_v12 }
 0xab0   :  { %v6150_v31 = vpack.c.bf16 %v5786_v22, %v5783_v52  ;;  %v7873_v30 = vpop.f32.mrb[144].mxu0 }
 0xab1   :  { %v7874_v50 = vpop.f32.mrb[145].mxu0 }
 0xab2   :  { %v7875_v49 = vadd.f32 %v7874_v50, %v7873_v30  ;;  %v7876_v9 = vpop.f32.mrb[146].mxu0  ;;  %8753 = vmatmul.mubr.bf16.vlgmr.msra.gmra.mrb[232].mxu0 %v6150_v31 }
 0xab3   :  { %v7877_v40 = vpop.f32.mrb[147].mxu0 }
 0xab4   :  { %v7878_v35 = vadd.f32 %v7877_v40, %v7876_v9  ;;  %v5791_v19 = vadd.f32 %v7875_v49, %v12993_v12 }
 0xab6   :  { %v5794_v16 = vadd.f32 %v7878_v35, %v12993_v12 }
 0xab8   :  { %v7879_v11 = vpop.f32.mrb[148].mxu0  ;;  %v6151_v23 = vpack.c.bf16 %v5794_v16, %v5791_v19 }
 0xab9   :  { %v7880_v10 = vpop.f32.mrb[149].mxu0 }
 0xaba   :  { %v7881_v6 = vadd.f32 %v7880_v10, %v7879_v11  ;;  %v7882_v34 = vpop.f32.mrb[150].mxu0  ;;  %8756 = vmatprep.mubr.bf16.mxu0 %v6151_v23 }
 0xabb   :  { %v7883_v18 = vpop.f32.mrb[151].mxu0 }
 0xabc   :  { %v7884_v59 = vadd.f32 %v7883_v18, %v7882_v34  ;;  %v5799_v1 = vadd.f32 %v7881_v6, %v12993_v12 }
 0xabe   :  { %v5802_v17 = vadd.f32 %v7884_v59, %v12993_v12 }
 0xac0   :  { %v7885_v3 = vpop.f32.mrb[152].mxu0  ;;  %v6152_v61 = vpack.c.bf16 %v5802_v17, %v5799_v1 }
 0xac1   :  { %v7886_v26 = vpop.f32.mrb[153].mxu0 }
 0xac2   :  { %v7887_v0 = vadd.f32 %v7886_v26, %v7885_v3  ;;  %v7888_v53 = vpop.f32.mrb[154].mxu0  ;;  %8757 = vmatmul.mubr.bf16.gmra.mrb[236].mxu0 %v6152_v61 }
 0xac3   :  { %v7889_v44 = vpop.f32.mrb[155].mxu0 }
 0xac4   :  { %v7890_v37 = vadd.f32 %v7889_v44, %v7888_v53  ;;  %v5807_v21 = vadd.f32 %v7887_v0, %v12993_v12 }
 0xac6   :  { %v5810_v47 = vadd.f32 %v7890_v37, %v12993_v12 }
 0xac8   :  { %v7891_v55 = vpop.f32.mrb[156].mxu0  ;;  %v6153_v57 = vpack.c.bf16 %v5810_v47, %v5807_v21 }
 0xac9   :  { %v7892_v33 = vpop.f32.mrb[157].mxu0 }
 0xaca   :  { %v7893_v51 = vadd.f32 %v7892_v33, %v7891_v55  ;;  %v7894_v36 = vpop.f32.mrb[158].mxu0  ;;  %8760 = vmatprep.mubr.bf16.mxu0 %v6153_v57 }
 0xacb   :  { %v7895_v48 = vpop.f32.mrb[159].mxu0 }
 0xacc   :  { %v7896_v58 = vadd.f32 %v7895_v48, %v7894_v36  ;;  %v5815_v63 = vadd.f32 %v7893_v51, %v12993_v12 }
 0xace   :  { %v5818_v42 = vadd.f32 %v7896_v58, %v12993_v12 }
 0xad0   :  { %v6154_v8 = vpack.c.bf16 %v5818_v42, %v5815_v63 }
 0xad2   :  { %8761 = vmatmul.mubr.bf16.gmra.mrb[240].mxu0 %v6154_v8 }
 0xadc   :  { %v7897_v43 = vpop.f32.mrb[160].mxu0 }
 0xadd   :  { %v7898_v14 = vpop.f32.mrb[161].mxu0 }
 0xade   :  { %v7899_v46 = vadd.f32 %v7898_v14, %v7897_v43  ;;  %v7900_v27 = vpop.f32.mrb[162].mxu0 }
 0xadf   :  { %v7901_v15 = vpop.f32.mrb[163].mxu0 }
 0xae0   :  { %v7902_v41 = vadd.f32 %v7901_v15, %v7900_v27  ;;  %v5823_v24 = vadd.f32 %v7899_v46, %v12993_v12 }
 0xae2   :  { %v5826_v4 = vadd.f32 %v7902_v41, %v12993_v12 }
 0xae4   :  { %v7903_v5 = vpop.f32.mrb[164].mxu0  ;;  %v6155_v56 = vpack.c.bf16 %v5826_v4, %v5823_v24 }
 0xae5   :  { %v7904_v29 = vpop.f32.mrb[165].mxu0 }
 0xae6   :  { %v7905_v62 = vadd.f32 %v7904_v29, %v7903_v5  ;;  %v7906_v2 = vpop.f32.mrb[166].mxu0  ;;  %8764 = vmatprep.mubr.bf16.mxu0 %v6155_v56 }
 0xae7   :  { %v7907_v60 = vpop.f32.mrb[167].mxu0 }
 0xae8   :  { %v7908_v25 = vadd.f32 %v7907_v60, %v7906_v2  ;;  %v5831_v45 = vadd.f32 %v7905_v62, %v12993_v12 }
 0xaea   :  { %v5834_v52 = vadd.f32 %v7908_v25, %v12993_v12 }
 0xaec   :  { %v7909_v22 = vpop.f32.mrb[168].mxu0  ;;  %v6156_v31 = vpack.c.bf16 %v5834_v52, %v5831_v45 }
 0xaed   :  { %v7910_v30 = vpop.f32.mrb[169].mxu0 }
 0xaee   :  { %v7911_v50 = vadd.f32 %v7910_v30, %v7909_v22  ;;  %v7912_v49 = vpop.f32.mrb[170].mxu0  ;;  %8765 = vmatmul.mubr.bf16.gmra.mrb[244].mxu0 %v6156_v31 }
 0xaef   :  { %v7913_v9 = vpop.f32.mrb[171].mxu0 }
 0xaf0   :  { %v7914_v40 = vadd.f32 %v7913_v9, %v7912_v49  ;;  %v5839_v35 = vadd.f32 %v7911_v50, %v12993_v12 }
 0xaf2   :  { %v5842_v19 = vadd.f32 %v7914_v40, %v12993_v12 }
 0xaf4   :  { %v7915_v16 = vpop.f32.mrb[172].mxu0  ;;  %v6157_v11 = vpack.c.bf16 %v5842_v19, %v5839_v35 }
 0xaf5   :  { %v7916_v23 = vpop.f32.mrb[173].mxu0 }
 0xaf6   :  { %v7917_v10 = vadd.f32 %v7916_v23, %v7915_v16  ;;  %v7918_v6 = vpop.f32.mrb[174].mxu0  ;;  %8768 = vmatprep.mubr.bf16.mxu0 %v6157_v11 }
 0xaf7   :  { %v7919_v34 = vpop.f32.mrb[175].mxu0 }
 0xaf8   :  { %v7920_v18 = vadd.f32 %v7919_v34, %v7918_v6  ;;  %v5847_v59 = vadd.f32 %v7917_v10, %v12993_v12 }
 0xafa   :  { %v5850_v1 = vadd.f32 %v7920_v18, %v12993_v12 }
 0xafc   :  { %v7921_v17 = vpop.f32.mrb[176].mxu0  ;;  %v6158_v3 = vpack.c.bf16 %v5850_v1, %v5847_v59 }
 0xafd   :  { %v7922_v61 = vpop.f32.mrb[177].mxu0 }
 0xafe   :  { %v7923_v26 = vadd.f32 %v7922_v61, %v7921_v17  ;;  %v7924_v0 = vpop.f32.mrb[178].mxu0  ;;  %8769 = vmatmul.mubr.bf16.gmra.mrb[248].mxu0 %v6158_v3  ;;  %v13062_v17 = vld [vmem:[#allocation24] ss:$0 sm:$0xff] }
 0xaff   :  { %v7925_v53 = vpop.f32.mrb[179].mxu0 }
 0xb00   :  { %v7926_v44 = vadd.f32 %v7925_v53, %v7924_v0  ;;  %v13017_v37 = vadd.f32 %v7923_v26, %v12993_v12 }
 0xb02   :  { %v13020_v21 = vadd.f32 %v7926_v44, %v12993_v12 }
 0xb04   :  { %v7927_v47 = vpop.f32.mrb[180].mxu0  ;;  %v6159_v55 = vpack.c.bf16 %v13020_v21, %v13017_v37 }
 0xb05   :  { %v7928_v57 = vpop.f32.mrb[181].mxu0 }
 0xb06   :  { %v7929_v33 = vadd.f32 %v7928_v57, %v7927_v47  ;;  %v7930_v51 = vpop.f32.mrb[182].mxu0 }
 0xb07   :  { %v7931_v36 = vpop.f32.mrb[183].mxu0 }
 0xb08   :  { %v7932_v48 = vadd.f32 %v7931_v36, %v7930_v51  ;;  %v13025_v58 = vadd.f32 %v7929_v33, %v12993_v12 }
 0xb0a   :  { %v13028_v63 = vadd.f32 %v7932_v48, %v12993_v12 }
 0xb0c   :  { %v6160_v42 = vpack.c.bf16 %v13028_v63, %v13025_v58  ;;  %v7933_v43 = vpop.f32.mrb[184].mxu0 }
 0xb0d   :  { %v7934_v8 = vpop.f32.mrb[185].mxu0 }
 0xb0e   :  { %v7935_v14 = vadd.f32 %v7934_v8, %v7933_v43  ;;  %v7936_v46 = vpop.f32.mrb[186].mxu0 }
 0xb0f   :  { %v7937_v27 = vpop.f32.mrb[187].mxu0 }
 0xb10   :  { %v7938_v15 = vadd.f32 %v7937_v27, %v7936_v46  ;;  %v13033_v41 = vadd.f32 %v7935_v14, %v12993_v12 }
 0xb12   :  { %v13036_v24 = vadd.f32 %v7938_v15, %v12993_v12 }
 0xb14   :  { %v7939_v4 = vpop.f32.mrb[188].mxu0  ;;  %v6161_v5 = vpack.c.bf16 %v13036_v24, %v13033_v41 }
 0xb15   :  { %v7940_v56 = vpop.f32.mrb[189].mxu0 }
 0xb16   :  { %v7941_v29 = vadd.f32 %v7940_v56, %v7939_v4  ;;  %v7942_v62 = vpop.f32.mrb[190].mxu0 }
 0xb17   :  { %v7943_v2 = vpop.f32.mrb[191].mxu0 }
 0xb18   :  { %v7944_v60 = vadd.f32 %v7943_v2, %v7942_v62  ;;  %v13041_v25 = vadd.f32 %v7941_v29, %v12993_v12 }
 0xb1a   :  { %v13044_v45 = vadd.f32 %v7944_v60, %v12993_v12 }
 0xb1c   :  { %v7945_v52 = vpop.f32.mrb[192].mxu0  ;;  %v6162_v22 = vpack.c.bf16 %v13044_v45, %v13041_v25 }
 0xb1d   :  { %v7946_v31 = vpop.f32.mrb[193].mxu0 }
 0xb1e   :  { %v7947_v30 = vadd.f32 %v7946_v31, %v7945_v52  ;;  %v7948_v50 = vpop.f32.mrb[194].mxu0 }
 0xb1f   :  { %v7949_v49 = vpop.f32.mrb[195].mxu0 }
 0xb20   :  { %v7950_v9 = vadd.f32 %v7949_v49, %v7948_v50  ;;  %v13049_v40 = vadd.f32 %v7947_v30, %v12993_v12 }
 0xb22   :  { %v13052_v35 = vadd.f32 %v7950_v9, %v12993_v12 }
 0xb24   :  { %v7951_v19 = vpop.f32.mrb[196].mxu0  ;;  %v6163_v16 = vpack.c.bf16 %v13052_v35, %v13049_v40 }
 0xb25   :  { %v7952_v11 = vpop.f32.mrb[197].mxu0 }
 0xb26   :  { %v7953_v23 = vadd.f32 %v7952_v11, %v7951_v19  ;;  %v7954_v10 = vpop.f32.mrb[198].mxu0 }
 0xb27   :  { %v7955_v6 = vpop.f32.mrb[199].mxu0 }
 0xb28   :  { %v7956_v34 = vadd.f32 %v7955_v6, %v7954_v10  ;;  %v13057_v18 = vadd.f32 %v7953_v23, %v12993_v12 }
 0xb2a   :  { %v13060_v59 = vadd.f32 %v7956_v34, %v12993_v12 }
 0xb2c   :  { %v8658_v1 = vpop.f32.mrb[200].mxu0  ;;  %v6164_v3 = vpack.c.bf16 %v13060_v59, %v13057_v18 }
 0xb2d   :  { %v6006_v61 = vpop.f32.mrb[201].mxu0  ;;  %v6015_v0 = vadd.f32 %v8658_v1, %v13062_v17 }
 0xb2e   :  { %v8659_v26 = vpop.f32.mrb[202].mxu0  ;;  %v6007_v47 = vadd.f32 %v13062_v17, %v6006_v61 }
 0xb2f   :  { %v6018_v53 = vadd.f32 %v8659_v26, %v13062_v17  ;;  %v6009_v44 = vpop.f32.mrb[203].mxu0 }
 0xb30   :  { %v6010_v57 = vadd.f32 %v13062_v17, %v6009_v44 }
 0xb31   :  { %v6182_v33 = vpack.c.bf16 %v6018_v53, %v6015_v0 }
 0xb32   :  { %v6181_v12 = vpack.c.bf16 %v6010_v57, %v6007_v47 }
 0xb34   :  { %v8662_v51 = vpop.f32.mrb[204].mxu0  ;;  %8704 = vmatprep.mubr.bf16.mxu1 %v6181_v12 }
 0xb35   :  { %v6022_v36 = vpop.f32.mrb[205].mxu0  ;;  %8705 = vmatmul.mubr.bf16.vlgmr.msra.gmra.mrb[32].mxu1 %v6182_v33  ;;  %v6031_v43 = vadd.f32 %v8662_v51, %v13062_v17 }
 0xb36   :  { %8985 = vmatpush3.bf16.msra.mxu1 %v12924_v13  ;;  %v8663_v48 = vpop.f32.mrb[206].mxu0  ;;  %v6023_v46 = vadd.f32 %v13062_v17, %v6022_v36 }
 0xb37   :  { %v6034_v8 = vadd.f32 %v8663_v48, %v13062_v17  ;;  %v6025_v14 = vpop.f32.mrb[207].mxu0  ;;  %8978 = vmatprep.subr.bf16.mxu1 %v12949_v39 }
 0xb38   :  { %v6026_v27 = vadd.f32 %v13062_v17, %v6025_v14 }
 0xb39   :  { %v6184_v15 = vpack.c.bf16 %v6034_v8, %v6031_v43 }
 0xb3a   :  { %v6183_v4 = vpack.c.bf16 %v6026_v27, %v6023_v46  ;;  %8986 = vmatpush3.bf16.msra.mxu1 %v12949_v39 }
 0xb3b   :  { %8979 = vmatprep.subr.bf16.mxu1 %v12955_v28 }
 0xb3c   :  { %v8666_v56 = vpop.f32.mrb[208].mxu0  ;;  %8708 = vmatprep.mubr.bf16.mxu1 %v6183_v4 }
 0xb3d   :  { %v6038_v13 = vpop.f32.mrb[209].mxu0  ;;  %8709 = vmatmul.mubr.bf16.gmra.mrb[36].mxu1 %v6184_v15  ;;  %v6047_v62 = vadd.f32 %v8666_v56, %v13062_v17 }
 0xb3e   :  { %v8667_v29 = vpop.f32.mrb[210].mxu0  ;;  %8987 = vmatpush3.bf16.msra.mxu1 %v12955_v28  ;;  %v6039_v52 = vadd.f32 %v13062_v17, %v6038_v13 }
 0xb3f   :  { %v6050_v2 = vadd.f32 %v8667_v29, %v13062_v17  ;;  %v6041_v60 = vpop.f32.mrb[211].mxu0  ;;  %8980 = vmatprep.subr.bf16.mxu1 %v12959_v20 }
 0xb40   :  { %v6042_v39 = vadd.f32 %v13062_v17, %v6041_v60 }
 0xb41   :  { %v6186_v31 = vpack.c.bf16 %v6050_v2, %v6047_v62 }
 0xb42   :  { %v6185_v30 = vpack.c.bf16 %v6042_v39, %v6039_v52  ;;  %8988 = vmatpush3.bf16.msra.mxu1 %v12959_v20 }
 0xb43   :  { %8981 = vmatprep.subr.bf16.mxu1 %v12965_v38 }
 0xb44   :  { %v8670_v50 = vpop.f32.mrb[212].mxu0  ;;  %8712 = vmatprep.mubr.bf16.mxu1 %v6185_v30 }
 0xb45   :  { %v6054_v28 = vpop.f32.mrb[213].mxu0  ;;  %8713 = vmatmul.mubr.bf16.gmra.mrb[40].mxu1 %v6186_v31  ;;  %v6063_v9 = vadd.f32 %v8670_v50, %v13062_v17 }
 0xb46   :  { %v8671_v49 = vpop.f32.mrb[214].mxu0  ;;  %8989 = vmatpush3.bf16.msra.mxu1 %v12965_v38  ;;  %v6055_v23 = vadd.f32 %v13062_v17, %v6054_v28 }
 0xb47   :  { %v6066_v19 = vadd.f32 %v8671_v49, %v13062_v17  ;;  %v6057_v11 = vpop.f32.mrb[215].mxu0  ;;  %8982 = vmatprep.subr.bf16.mxu1 %v12969_v7 }
 0xb48   :  { %v6058_v20 = vadd.f32 %v13062_v17, %v6057_v11 }
 0xb49   :  { %v6188_v10 = vpack.c.bf16 %v6066_v19, %v6063_v9 }
 0xb4a   :  { %v6187_v6 = vpack.c.bf16 %v6058_v20, %v6055_v23  ;;  %8990 = vmatpush3.bf16.msra.mxu1 %v12969_v7  ;;  %v6774_v23 = vld [vmem:[%s13936_s22] sm:$0xff]  ;;  %v6775_v20 = vld [vmem:[%s13936_s22 + $0x8] sm:$0xff] }
 0xb4b   :  { %8983 = vmatprep.subr.bf16.mxu1 %v12975_v32 }
 0xb4c   :  { %v8674_v34 = vpop.f32.mrb[216].mxu0  ;;  %8716 = vmatprep.mubr.bf16.mxu1 %v6187_v6  ;;  %v14155_v6 = vmov 0.0|0.0  }
 0xb4d   :  { %v6070_v38 = vpop.f32.mrb[217].mxu0  ;;  %8717 = vmatmul.mubr.bf16.gmra.mrb[44].mxu1 %v6188_v10  ;;  %v6079_v61 = vadd.f32 %v8674_v34, %v13062_v17  ;;  %v6776_v10 = vld [vmem:[%s13936_s22 + $0x10] sm:$0xff]  ;;  %8929 = vmatprep.subr.bf16.mxu0 %v14155_v6  ;;  %v8930_v34 = vpack.c.bf16 %v6775_v20, %v6774_v23 }
 0xb4e   :  { %v8675_v1 = vpop.f32.mrb[218].mxu0  ;;  %8991 = vmatpush3.bf16.msra.mxu1 %v12975_v32  ;;  %v6071_v53 = vadd.f32 %v13062_v17, %v6070_v38  ;;  %v6777_v38 = vld [vmem:[%s13936_s22 + $0x18] sm:$0xff] }
 0xb4f   :  { %v6082_v26 = vadd.f32 %v8675_v1, %v13062_v17  ;;  %v6073_v0 = vpop.f32.mrb[219].mxu0  ;;  %8984 = vmatprep.subr.bf16.mxu1 %v12979_v54  ;;  %8931 = vmatpush3.bf16.msra.mxu0 %v8930_v34  ;;  %v8933_v1 = vpack.c.bf16 %v6777_v38, %v6776_v10 }
 0xb50   :  { %v6074_v7 = vadd.f32 %v13062_v17, %v6073_v0  ;;  %8932 = vmatprep.subr.bf16.mxu0 %v14155_v6 }
 0xb51   :  { %v6190_v44 = vpack.c.bf16 %v6082_v26, %v6079_v61  ;;  %v6778_v61 = vld [vmem:[%s13936_s22 + $0x20] sm:$0xff]  ;;  %v6779_v26 = vld [vmem:[%s13936_s22 + $0x28] sm:$0xff] }
 0xb52   :  { %v6189_v47 = vpack.c.bf16 %v6074_v7, %v6071_v53  ;;  %8992 = vmatpush3.bf16.msra.mxu1 %v12979_v54  ;;  %v8936_v0 = vpack.c.bf16 %v6779_v26, %v6778_v61  ;;  %v6780_v53 = vld [vmem:[%s13936_s22 + $0x30] sm:$0xff]  ;;  %v6781_v7 = vld [vmem:[%s13936_s22 + $0x38] sm:$0xff] }
 0xb53   :  { %8934 = vmatpush3.bf16.msra.mxu0 %v8933_v1 }
 0xb54   :  { %v8678_v57 = vpop.f32.mrb[220].mxu0  ;;  %8720 = vmatprep.mubr.bf16.mxu1 %v6189_v47  ;;  %8935 = vmatprep.subr.bf16.mxu0 %v14155_v6  ;;  %v8939_v47 = vpack.c.bf16 %v6781_v7, %v6780_v53 }
 0xb55   :  { %v6086_v33 = vpop.f32.mrb[221].mxu0  ;;  %8721 = vmatmul.mubr.bf16.gmra.mrb[48].mxu1 %v6190_v44  ;;  %v6095_v12 = vadd.f32 %v8678_v57, %v13062_v17  ;;  %v6782_v44 = vld [vmem:[%s13936_s22 + $0x40] sm:$0xff]  ;;  %v6783_v57 = vld [vmem:[%s13936_s22 + $0x48] sm:$0xff] }
 0xb56   :  { %v8679_v32 = vpop.f32.mrb[222].mxu0  ;;  %v6087_v48 = vadd.f32 %v13062_v17, %v6086_v33  ;;  %v13205_v33 = vld [vmem:[#allocation2] sm:$0xff] }
 0xb57   :  { %v6098_v51 = vadd.f32 %v8679_v32, %v13062_v17  ;;  %v6089_v36 = vpop.f32.mrb[223].mxu0  ;;  %8937 = vmatpush3.bf16.msra.mxu0 %v8936_v0  ;;  %8816 = vmatprep.mubr.msk.f32.mxu0 %vm10104_vm4, %v13205_v33  ;;  %v8942_v32 = vpack.c.bf16 %v6783_v57, %v6782_v44  ;;  %v13289_v57 = vld [vmem:[%s14321_s7 + $0x48] sm:$0xff] }
 0xb58   :  { %v6090_v43 = vadd.f32 %v13062_v17, %v6089_v36  ;;  %8938 = vmatprep.subr.bf16.mxu0 %v14155_v6 }
 0xb59   :  { %v6192_v8 = vpack.c.bf16 %v6098_v51, %v6095_v12  ;;  %v6784_v12 = vld [vmem:[%s13936_s22 + $0x50] sm:$0xff]  ;;  %v6785_v51 = vld [vmem:[%s13936_s22 + $0x58] sm:$0xff] }
 0xb5a   :  { %v6191_v14 = vpack.c.bf16 %v6090_v43, %v6087_v48  ;;  %v8945_v36 = vpack.c.bf16 %v6785_v51, %v6784_v12  ;;  %v6786_v48 = vld [vmem:[%s13936_s22 + $0x60] sm:$0xff]  ;;  %v6787_v43 = vld [vmem:[%s13936_s22 + $0x68] sm:$0xff] }
 0xb5b   :  { %8940 = vmatpush3.bf16.msra.mxu0 %v8939_v47  ;;  %v13297_v12 = vld [vmem:[%s14321_s7 + $0x8] sm:$0xff] }
 0xb5c   :  { %v8682_v46 = vpop.f32.mrb[224].mxu0  ;;  %8724 = vmatprep.mubr.bf16.mxu1 %v6191_v14  ;;  %8941 = vmatprep.subr.bf16.mxu0 %v14155_v6  ;;  %v6788_v14 = vld [vmem:[%s13936_s22 + $0x70] sm:$0xff] }
 0xb5d   :  { %v6102_v27 = vpop.f32.mrb[225].mxu0  ;;  %8725 = vmatmul.mubr.bf16.gmra.mrb[52].mxu1 %v6192_v8  ;;  %v6111_v15 = vadd.f32 %v8682_v46, %v13062_v17  ;;  %v8948_v8 = vpack.c.bf16 %v6787_v43, %v6786_v48  ;;  %v6789_v46 = vld [vmem:[%s13936_s22 + $0x78] sm:$0xff]  ;;  %v13306_v48 = vld [vmem:[%s14321_s7 + $0x40] sm:$0xff] }
 0xb5e   :  { %v8683_v54 = vpop.f32.mrb[226].mxu0  ;;  %v6103_v13 = vadd.f32 %v13062_v17, %v6102_v27  ;;  %v8951_v27 = vpack.c.bf16 %v6789_v46, %v6788_v14 }
 0xb5f   :  { %v6114_v4 = vadd.f32 %v8683_v54, %v13062_v17  ;;  %v6105_v56 = vpop.f32.mrb[227].mxu0  ;;  %8943 = vmatpush3.bf16.msra.mxu0 %v8942_v32 }
 0xb60   :  { %v6106_v29 = vadd.f32 %v13062_v17, %v6105_v56  ;;  %8944 = vmatprep.subr.bf16.mxu0 %v14155_v6 }
 0xb61   :  { %v6194_v62 = vpack.c.bf16 %v6114_v4, %v6111_v15 }
 0xb62   :  { %v6193_v2 = vpack.c.bf16 %v6106_v29, %v6103_v13 }
 0xb63   :  { %8946 = vmatpush3.bf16.msra.mxu0 %v8945_v36 }
 0xb64   :  { %v8686_v60 = vpop.f32.mrb[228].mxu0  ;;  %8728 = vmatprep.mubr.bf16.mxu1 %v6193_v2  ;;  %8947 = vmatprep.subr.bf16.mxu0 %v14155_v6 }
 0xb65   :  { %v6118_v52 = vpop.f32.mrb[229].mxu0  ;;  %8729 = vmatmul.mubr.bf16.gmra.mrb[56].mxu1 %v6194_v62  ;;  %v6127_v31 = vadd.f32 %v8686_v60, %v13062_v17 }
 0xb66   :  { %v8687_v39 = vpop.f32.mrb[230].mxu0  ;;  %v6119_v28 = vadd.f32 %v13062_v17, %v6118_v52 }
 0xb67   :  { %v6130_v30 = vadd.f32 %v8687_v39, %v13062_v17  ;;  %v6121_v50 = vpop.f32.mrb[231].mxu0  ;;  %8949 = vmatpush3.bf16.msra.mxu0 %v8948_v8 }
 0xb68   :  { %v6122_v49 = vadd.f32 %v13062_v17, %v6121_v50  ;;  %8950 = vmatprep.subr.bf16.mxu0 %v14155_v6 }
 0xb69   :  { %v6196_v9 = vpack.c.bf16 %v6130_v30, %v6127_v31 }
 0xb6a   :  { %v6195_v19 = vpack.c.bf16 %v6122_v49, %v6119_v28 }
 0xb6b   :  { %8952 = vmatpush3.bf16.msra.mxu0 %v8951_v27  ;;  %v13321_v27 = vld [vmem:[%s14321_s7] sm:$0xff] }
 0xb6c   :  { %8732 = vmatprep.mubr.bf16.mxu1 %v6195_v19  ;;  %8953 = vmatprep.subr.bf16.mxu0 %v14155_v6 }
 0xb6d   :  { %8733 = vmatmul.mubr.bf16.gmra.mrb[60].mxu1 %v6196_v9 }
 0xb6e   :  { %8772 = vmatprep.mubr.bf16.mxu1 %v6159_v55 }
 0xb75   :  { %8773 = vmatmul.mubr.bf16.vlgmr.msra.gmra.mrb[52].mxu1 %v6160_v42 }
 0xb76   :  { %8776 = vmatprep.mubr.bf16.mxu1 %v6161_v5 }
 0xb7d   :  { %8777 = vmatmul.mubr.bf16.gmra.mrb[56].mxu1 %v6162_v22 }
 0xb7e   :  { %8780 = vmatprep.mubr.bf16.mxu1 %v6163_v16 }
 0xb85   :  { %8781 = vmatmul.mubr.bf16.gmra.mrb[60].mxu1 %v6164_v3  ;;  %v13131_v37 = vpop.f32.mrb[232].mxu0 }
 0xb86   :  { %v13133_v21 = vpop.f32.mrb[233].mxu0 }
 0xb87   :  { %v13135_v55 = vpop.f32.mrb[234].mxu0 }
 0xb88   :  { %v13137_v58 = vpop.f32.mrb[235].mxu0 }
 0xb95   :  { %v13139_v63 = vpop.f32.mrb[236].mxu0 }
 0xb96   :  { %v13141_v42 = vpop.f32.mrb[237].mxu0 }
 0xb97   :  { %v13143_v41 = vpop.f32.mrb[238].mxu0 }
 0xb98   :  { %v13145_v24 = vpop.f32.mrb[239].mxu0 }
 0xba5   :  { %v13147_v5 = vpop.f32.mrb[240].mxu0 }
 0xba6   :  { %v13149_v25 = vpop.f32.mrb[241].mxu0 }
 0xba7   :  { %v13151_v45 = vpop.f32.mrb[242].mxu0 }
 0xba8   :  { %v13153_v22 = vpop.f32.mrb[243].mxu0 }
 0xbc1   :  { %v13155_v40 = vpop.f32.mrb[244].mxu0 }
 0xbc2   :  { %v13157_v35 = vpop.f32.mrb[245].mxu0 }
 0xbc3   :  { %v13159_v16 = vpop.f32.mrb[246].mxu0 }
 0xbc4   :  { %v13161_v18 = vpop.f32.mrb[247].mxu0 }
 0xbd1   :  { %v13163_v59 = vpop.f32.mrb[248].mxu0 }
 0xbd2   :  { %v13165_v17 = vpop.f32.mrb[249].mxu0 }
 0xbd3   :  { %v13167_v3 = vpop.f32.mrb[250].mxu0 }
 0xbd4   :  { %v13169_v11 = vpop.f32.mrb[251].mxu0 }
 0xc08   :  { %v8706_v54 = vpop.f32.mrb[32].mxu1 }
 0xc09   :  { %v6497_v15 = vadd.f32 %v13131_v37, %v8706_v54  ;;  %v6279_v4 = vpop.f32.mrb[33].mxu1 }
 0xc0a   :  { %v6489_v56 = vadd.f32 %v13133_v21, %v6279_v4  ;;  %v8707_v13 = vpop.f32.mrb[34].mxu1 }
 0xc0b   :  { %v6500_v29 = vadd.f32 %v13135_v55, %v8707_v13  ;;  %v6282_v62 = vpop.f32.mrb[35].mxu1 }
 0xc0c   :  { %v6492_v2 = vadd.f32 %v13137_v58, %v6282_v62 }
 0xc10   :  { %v8710_v60 = vpop.f32.mrb[36].mxu1 }
 0xc11   :  { %v13237_v52 = vadd.f32 %v13139_v63, %v8710_v60  ;;  %v6295_v39 = vpop.f32.mrb[37].mxu1  ;;  %v13341_v60 = vld [vmem:[%s14321_s7 + $0x50] sm:$0xff] }
 0xc12   :  { %v6505_v31 = vadd.f32 %v13141_v42, %v6295_v39  ;;  %v8711_v30 = vpop.f32.mrb[38].mxu1 }
 0xc13   :  { %v13241_v50 = vadd.f32 %v13143_v41, %v8711_v30  ;;  %v6298_v28 = vpop.f32.mrb[39].mxu1  ;;  %v13350_v30 = vld [vmem:[%s14321_s7 + $0x10] sm:$0xff] }
 0xc14   :  { %v13244_v49 = vadd.f32 %v13145_v24, %v6298_v28 }
 0xc18   :  { %v8714_v9 = vpop.f32.mrb[40].mxu1 }
 0xc19   :  { %v6529_v19 = vadd.f32 %v13147_v5, %v8714_v9  ;;  %v6311_v37 = vpop.f32.mrb[41].mxu1 }
 0xc1a   :  { %v6521_v21 = vadd.f32 %v13149_v25, %v6311_v37  ;;  %v8715_v55 = vpop.f32.mrb[42].mxu1 }
 0xc1b   :  { %v6532_v58 = vadd.f32 %v13151_v45, %v8715_v55  ;;  %v6314_v63 = vpop.f32.mrb[43].mxu1 }
 0xc1c   :  { %v6524_v42 = vadd.f32 %v13153_v22, %v6314_v63 }
 0xc20   :  { %v8718_v23 = vpop.f32.mrb[44].mxu1 }
 0xc21   :  { %v13251_v41 = vadd.f32 %v13155_v40, %v8718_v23  ;;  %v6327_v20 = vpop.f32.mrb[45].mxu1 }
 0xc22   :  { %v6537_v24 = vadd.f32 %v13157_v35, %v6327_v20  ;;  %v8719_v10 = vpop.f32.mrb[46].mxu1  ;;  %v13262_v35 = vld [vmem:[#allocation29] ss:$0 sm:$0xff]  ;;  %v13373_v20 = vld [vmem:[%s14321_s7 + $0x58] sm:$0xff] }
 0xc23   :  { %v13255_v34 = vadd.f32 %v13159_v16, %v8719_v10  ;;  %v6330_v5 = vpop.f32.mrb[47].mxu1  ;;  %v13265_v16 = vadd.f32 %v13262_v35, %v6524_v42  ;;  %v13268_v53 = vadd.f32 %v13262_v35, %v6492_v2  ;;  %v13283_v44 = vadd.f32 %v13262_v35, %v6497_v15  ;;  %v13381_v10 = vld [vmem:[%s14321_s7 + $0x88] sm:$0xff] }
 0xc24   :  { %v6540_v25 = vadd.f32 %v13161_v18, %v6330_v5  ;;  %v13271_v18 = vadd.f32 %v13262_v35, %v6521_v21  ;;  %v13312_v8 = vadd.f32 %v13262_v35, %v6532_v58  ;;  %v13327_v15 = vadd.f32 %v13262_v35, %v6500_v29 }
 0xc25   :  { %14583 = vst [vmem:[#allocation64_spill] sm:$0xff] %v13265_v16  ;;  %v14149_v14 = vmax.f32 %v13283_v44, 0.0  ;;  %v13336_v2 = vadd.f32 %v13262_v35, %v6505_v31  ;;  %v13368_v23 = vadd.f32 %v13262_v35, %v13244_v49  ;;  %v13389_v49 = vld [vmem:[%s14321_s7 + $0x18] sm:$0xff] }
 0xc26   :  { %14584 = vst [vmem:[#allocation69_spill] sm:$0xff] %v13271_v18  ;;  %v14144_v7 = vmax.f32 %v13271_v18, 0.0  ;;  %14586 = vst [vmem:[#allocation70_spill] sm:$0xff] %v13312_v8  ;;  %v14140_v39 = vmax.f32 %v13312_v8, 0.0  ;;  %v14148_v9 = vmax.f32 %v13327_v15, 0.0  ;;  %v13359_v21 = vadd.f32 %v13262_v35, %v6540_v25 }
 0xc27   :  { %14588 = vst [vmem:[#allocation71_spill] sm:$0xff] %v13327_v15  ;;  %14591 = vst [vmem:[#allocation74_spill] sm:$0xff] %v13336_v2  ;;  %v6688_v31 = vadd.f32 %v13350_v30, %v14149_v14  ;;  %v14147_v42 = vmax.f32 %v13336_v2, 0.0  ;;  %v6877_v15 = vld [vmem:[#allocation32 + $0x8] sm:$0xff] }
 0xc28   :  { %v8722_v38 = vpop.f32.mrb[48].mxu1  ;;  %v6694_v43 = vadd.f32 %v13306_v48, %v14144_v7  ;;  %14592 = vst [vmem:[#allocation72_spill] sm:$0xff] %v13359_v21  ;;  %14594 = vst [vmem:[#allocation81_spill] sm:$0xff] %v13368_v23  ;;  %v6689_v25 = vadd.f32 %v13389_v49, %v14148_v9 }
 0xc29   :  { %v6561_v45 = vadd.f32 %v13163_v59, %v8722_v38  ;;  %v6343_v1 = vpop.f32.mrb[49].mxu1  ;;  %v13274_v59 = vadd.f32 %v13262_v35, %v6489_v56  ;;  %v13330_v56 = vadd.f32 %v13262_v35, %v6537_v24  ;;  %v6697_v24 = vadd.f32 %v13373_v20, %v14140_v39  ;;  %v13397_v38 = vld [vmem:[%s14321_s7 + $0x60] sm:$0xff] }
 0xc2a   :  { %v6553_v22 = vadd.f32 %v13165_v17, %v6343_v1  ;;  %v8723_v61 = vpop.f32.mrb[50].mxu1  ;;  %v14142_v17 = vmax.f32 %v13265_v16, 0.0  ;;  %v13471_v39 = vadd.f32 %v13262_v35, %v13241_v50 }
 0xc2b   :  { %v6564_v40 = vadd.f32 %v13167_v3, %v8723_v61  ;;  %v6346_v26 = vpop.f32.mrb[51].mxu1  ;;  %v14150_v3 = vmax.f32 %v13268_v53, 0.0  ;;  %v14152_v47 = vmax.f32 %v13274_v59, 0.0  ;;  %14589 = vst [vmem:[#allocation75_spill] sm:$0xff] %v13330_v56  ;;  %v14139_v37 = vmax.f32 %v13330_v56, 0.0 }
 0xc2c   :  { %v6556_v0 = vadd.f32 %v13169_v11, %v6346_v26  ;;  %v13279_v11 = vadd.f32 %v13262_v35, %v6529_v19  ;;  %v6695_v32 = vadd.f32 %v13289_v57, %v14142_v17  ;;  %v13333_v13 = vadd.f32 %v13262_v35, %v6553_v22  ;;  %v13407_v26 = vld [vmem:[%s14321_s7 + $0x80] sm:$0xff]  ;;  %14601 = vst [vmem:[#allocation87_spill] sm:$0xff] %v13471_v39 }
 0xc2d   :  { %v6687_v51 = vadd.f32 %v13297_v12, %v14150_v3  ;;  %v6686_v54 = vadd.f32 %v13321_v27, %v14152_v47  ;;  %v13362_v55 = vadd.f32 %v13262_v35, %v6561_v45  ;;  %v6698_v45 = vadd.f32 %v13397_v38, %v14139_v37 }
 0xc2e   :  { %14585 = vst [vmem:[#allocation68_spill] sm:$0xff] %v13279_v11  ;;  %v14141_v36 = vmax.f32 %v13279_v11, 0.0  ;;  %v13316_v46 = vadd.f32 %v13262_v35, %v6556_v0  ;;  %v6731_v4 = vadd.f32 %v6695_v32, %v6694_v43  ;;  %14590 = vst [vmem:[#allocation73_spill] sm:$0xff] %v13333_v13  ;;  %v14137_v58 = vmax.f32 %v13333_v13, 0.0 }
 0xc2f   :  { %v6718_v62 = vadd.f32 %v6687_v51, %v6686_v54  ;;  %14593 = vst [vmem:[#allocation77_spill] sm:$0xff] %v13362_v55  ;;  %v14138_v22 = vmax.f32 %v13359_v21, 0.0  ;;  %v14136_v61 = vmax.f32 %v13362_v55, 0.0  ;;  %v13413_v32 = vadd.f32 %v13262_v35, %v6564_v40  ;;  %v13418_v51 = vld [vmem:[%s14321_s7 + $0x20] sm:$0xff] }
 0xc30   :  { %14587 = vst [vmem:[#allocation79_spill] sm:$0xff] %v13316_v46  ;;  %v6696_v29 = vadd.f32 %v13341_v60, %v14141_v36  ;;  %v14135_v28 = vmax.f32 %v13316_v46, 0.0  ;;  %v6702_v0 = vadd.f32 %v13407_v26, %v14137_v58  ;;  %v6690_v43 = vadd.f32 %v13418_v51, %v14147_v42 }
 0xc31   :  { %v6719_v63 = vadd.f32 %v6718_v62, %v6688_v31  ;;  %14595 = vst [vmem:[#allocation76_spill] sm:$0xff] %v13413_v32  ;;  %v13426_v62 = vadd.f32 %v13262_v35, %v13251_v41  ;;  %v13430_v40 = vadd.f32 %v13262_v35, %v13237_v52  ;;  %v13443_v41 = vld [vmem:[%s14321_s7 + $0x90] sm:$0xff]  ;;  %v14163_v42 = vmax.f32 %v13471_v39, 0.0 }
 0xc32   :  { %v6732_v19 = vadd.f32 %v6731_v4, %v6696_v29  ;;  %v6703_v5 = vadd.f32 %v13381_v10, %v14135_v28  ;;  %v14146_v4 = vmax.f32 %v13368_v23, 0.0  ;;  %v6704_v52 = vadd.f32 %v13443_v41, %v14136_v61 }
 0xc33   :  { %v6720_v54 = vadd.f32 %v6719_v63, %v6689_v25  ;;  %14596 = vst [vmem:[#allocation78_spill] sm:$0xff] %v13426_v62  ;;  %14597 = vst [vmem:[#allocation83_spill] sm:$0xff] %v13430_v40  ;;  %v13460_v28 = vadd.f32 %v13262_v35, %v13255_v34  ;;  %v14153_v37 = vmax.f32 %v13430_v40, 0.0  ;;  %v13476_v34 = vld [vmem:[%s14321_s7 + $0x98] sm:$0xff] }
 0xc34   :  { %v6733_v1 = vadd.f32 %v6732_v19, %v6697_v24  ;;  %v6744_v29 = vadd.f32 %v6703_v5, %v6702_v0  ;;  %v13435_v19 = vld [vmem:[%s14321_s7 + $0x68] sm:$0xff]  ;;  %v14143_v24 = vmax.f32 %v13413_v32, 0.0  ;;  %v14145_v0 = vmax.f32 %v13426_v62, 0.0 }
 0xc35   :  { %v6699_v63 = vadd.f32 %v13435_v19, %v14138_v22  ;;  %v6721_v25 = vadd.f32 %v6720_v54, %v6690_v43  ;;  %14598 = vst [vmem:[#allocation85_spill] sm:$0xff] %v13460_v28 }
 0xc36   :  { %v6734_v31 = vadd.f32 %v6733_v1, %v6698_v45  ;;  %v13452_v45 = vld [vmem:[%s14321_s7 + $0x28] sm:$0xff]  ;;  %v6745_v54 = vadd.f32 %v6744_v29, %v6704_v52 }
 0xc37   :  { %v6691_v1 = vadd.f32 %v13452_v45, %v14146_v4 }
 0xc38   :  { %v6735_v36 = vadd.f32 %v6734_v31, %v6699_v63  ;;  %v13491_v31 = vld [vmem:[%s14321_s7 + $0x70] sm:$0xff] }
 0xc39   :  { %v6722_v50 = vadd.f32 %v6721_v25, %v6691_v1  ;;  %v6700_v63 = vadd.f32 %v13491_v31, %v14145_v0  ;;  %v13510_v0 = vld [vmem:[%s14321_s7 + $0x30] sm:$0xff] }
 0xc3a   :  { %v6692_v4 = vadd.f32 %v13510_v0, %v14153_v37  ;;  %v13528_v37 = vld [vmem:[%s14321_s7 + $0x78] sm:$0xff] }
 0xc3b   :  { %v6736_v9 = vadd.f32 %v6735_v36, %v6700_v63 }
 0xc3c   :  { %v6723_v47 = vadd.f32 %v6722_v50, %v6692_v4 }
 0xc48   :  { %v8774_v5 = vpop.f32.mrb[52].mxu1 }
 0xc49   :  { %v6568_v61 = vpop.f32.mrb[53].mxu1  ;;  %v13463_v58 = vadd.f32 %v8774_v5, %v13262_v35 }
 0xc4a   :  { %v13466_v43 = vadd.f32 %v13262_v35, %v6568_v61  ;;  %v8775_v22 = vpop.f32.mrb[54].mxu1  ;;  %v6705_v61 = vadd.f32 %v13476_v34, %v14143_v24  ;;  %v14157_v24 = vmax.f32 %v13460_v28, 0.0  ;;  %v13606_v28 = vld [vmem:[%s14321_s7 + $0xd8] sm:$0xff] }
 0xc4b   :  { %14599 = vst [vmem:[#allocation82_spill] sm:$0xff] %v13463_v58  ;;  %v6571_v17 = vpop.f32.mrb[55].mxu1  ;;  %v13483_v52 = vadd.f32 %v8775_v22, %v13262_v35  ;;  %v14159_v7 = vmax.f32 %v13463_v58, 0.0  ;;  %v13501_v22 = vld [vmem:[%s14321_s7 + $0xa0] sm:$0xff] }
 0xc4c   :  { %14600 = vst [vmem:[#allocation84_spill] sm:$0xff] %v13466_v43  ;;  %v14151_v29 = vmax.f32 %v13466_v43, 0.0  ;;  %v13486_v5 = vadd.f32 %v13262_v35, %v6571_v17  ;;  %v6746_v25 = vadd.f32 %v6745_v54, %v6705_v61  ;;  %v13520_v54 = vld [vmem:[%s14321_s7 + $0xa8] sm:$0xff]  ;;  %v6701_v36 = vadd.f32 %v13528_v37, %v14157_v24  ;;  %v13550_v24 = vld [vmem:[%s14321_s7 + $0x38] sm:$0xff] }
 0xc4d   :  { %14602 = vst [vmem:[#allocation89_spill] sm:$0xff] %v13483_v52  ;;  %v6693_v3 = vadd.f32 %v13550_v24, %v14163_v42 }
 0xc4e   :  { %14603 = vst [vmem:[#allocation86_spill] sm:$0xff] %v13486_v5  ;;  %v6706_v17 = vadd.f32 %v13501_v22, %v14151_v29  ;;  %v14154_v1 = vmax.f32 %v13486_v5, 0.0  ;;  %v6737_v58 = vadd.f32 %v6736_v9, %v6701_v36 }
 0xc4f   :  { %v6724_v9 = vadd.f32 %v6723_v47, %v6693_v3  ;;  %v13584_v3 = vld [vmem:[%s14321_s7 + $0xc8] sm:$0xff] }
 0xc50   :  { %v6747_v14 = vadd.f32 %v6746_v25, %v6706_v17  ;;  %v6707_v61 = vadd.f32 %v13520_v54, %v14154_v1  ;;  %v8778_v29 = vpop.f32.mrb[56].mxu1  ;;  %v13536_v17 = vld [vmem:[%s14321_s7 + $0xb0] sm:$0xff]  ;;  %v6738_v55 = vrot.slane %v6737_v58, 4 }
 0xc51   :  { %v6584_v63 = vpop.f32.mrb[57].mxu1  ;;  %v6708_v25 = vadd.f32 %v13536_v17, %v14159_v7  ;;  %v13542_v50 = vadd.f32 %v8778_v29, %v13262_v35  ;;  %v13561_v29 = vld [vmem:[%s14321_s7 + $0xb8] sm:$0xff] }
 0xc52   :  { %v6748_v4 = vadd.f32 %v6747_v14, %v6707_v61  ;;  %v13545_v1 = vadd.f32 %v13262_v35, %v6584_v63  ;;  %v8779_v6 = vpop.f32.mrb[58].mxu1  ;;  %v14607_v61 = vmax.f32 %v13483_v52, 0.0  ;;  %v13576_v52 = vld [vmem:[%s14321_s7 + $0xc0] sm:$0xff]  ;;  %v6739_v13 = vadd.f32 %v6738_v55, %v6737_v58 }
 0xc53   :  { %14604 = vst [vmem:[#allocation88_spill] sm:$0xff] %v13542_v50  ;;  %v13556_v7 = vadd.f32 %v8779_v6, %v13262_v35  ;;  %v6587_v14 = vpop.f32.mrb[59].mxu1  ;;  %v14176_v6 = vmax.f32 %v13542_v50, 0.0 }
 0xc54   :  { %14605 = vst [vmem:[#allocation92_spill] sm:$0xff] %v13545_v1  ;;  %v6709_v63 = vadd.f32 %v13561_v29, %v14607_v61  ;;  %v6749_v5 = vadd.f32 %v6748_v4, %v6708_v25  ;;  %v14167_v43 = vmax.f32 %v13545_v1, 0.0  ;;  %v13568_v32 = vadd.f32 %v13262_v35, %v6587_v14 }
 0xc55   :  { %14606 = vst [vmem:[#allocation91_spill] sm:$0xff] %v13556_v7  ;;  %v6725_v4 = vrot.slane %v6724_v9, 4  ;;  %v14611_v62 = vmax.f32 %v13556_v7, 0.0  ;;  %v13622_v7 = vld [vmem:[%s14321_s7 + $0xe0] sm:$0xff] }
 0xc56   :  { %14608 = vst [vmem:[#allocation106_spill] sm:$0xff] %v13568_v32  ;;  %v6750_v36 = vadd.f32 %v6749_v5, %v6709_v63  ;;  %v14170_v42 = vmax.f32 %v13568_v32, 0.0  ;;  %v6710_v25 = vadd.f32 %v13576_v52, %v14167_v43  ;;  %v13592_v63 = vld [vmem:[%s14321_s7 + $0xd0] sm:$0xff] }
 0xc57   :  { %v6712_v43 = vadd.f32 %v13592_v63, %v14176_v6  ;;  %v6713_v50 = vadd.f32 %v13606_v28, %v14611_v62  ;;  %v6726_v55 = vadd.f32 %v6725_v4, %v6724_v9 }
 0xc58   :  { %v6711_v47 = vadd.f32 %v13584_v3, %v14170_v42  ;;  %v8782_v5 = vpop.f32.mrb[60].mxu1  ;;  %v6751_v14 = vrot.slane %v6750_v36, 4 }
 0xc59   :  { %v6600_v61 = vpop.f32.mrb[61].mxu1  ;;  %v13598_v1 = vadd.f32 %v8782_v5, %v13262_v35  ;;  %v6727_v4 = vrot.slane %v6726_v55, 2 }
 0xc5a   :  { %v6757_v46 = vadd.f32 %v6711_v47, %v6710_v25  ;;  %v13601_v32 = vadd.f32 %v13262_v35, %v6600_v61  ;;  %v8783_v42 = vpop.f32.mrb[62].mxu1  ;;  %v6752_v58 = vadd.f32 %v6751_v14, %v6750_v36 }
 0xc5b   :  { %14609 = vst [vmem:[#allocation107_spill] sm:$0xff] %v13598_v1  ;;  %v6603_v21 = vpop.f32.mrb[63].mxu1  ;;  %v13613_v47 = vadd.f32 %v8783_v42, %v13262_v35  ;;  %v14188_v61 = vmax.f32 %v13598_v1, 0.0 }
 0xc5c   :  { %14610 = vst [vmem:[#allocation113_spill] sm:$0xff] %v13601_v32  ;;  %v6758_v6 = vadd.f32 %v6757_v46, %v6712_v43  ;;  %v14180_v25 = vmax.f32 %v13601_v32, 0.0  ;;  %v13616_v5 = vadd.f32 %v13262_v35, %v6603_v21  ;;  %v6740_v43 = vrot.slane %v6739_v13, 2  ;;  %v13632_v21 = vld [vmem:[%s14321_s7 + $0xe8] sm:$0xff] }
 0xc5d   :  { %14612 = vst [vmem:[#allocation114_spill] sm:$0xff] %v13613_v47  ;;  %v14195_v35 = vmax.f32 %v13613_v47, 0.0  ;;  %v6753_v36 = vrot.slane %v6752_v58, 2  ;;  %v6728_v32 = vadd.f32 %v6727_v4, %v6726_v55  ;;  %v6876_v47 = vld [vmem:[#allocation32] sm:$0xff] }
 0xc5e   :  { %14613 = vst [vmem:[#allocation119_spill] sm:$0xff] %v13616_v5  ;;  %v6714_v46 = vadd.f32 %v13622_v7, %v14180_v25  ;;  %v6759_v62 = vadd.f32 %v6758_v6, %v6713_v50  ;;  %v14179_v42 = vmax.f32 %v13616_v5, 0.0  ;;  %v13640_v50 = vld [vmem:[%s14321_s7 + $0xf0] sm:$0xff]  ;;  %v8954_v55 = vpack.c.bf16 %v6877_v15, %v6876_v47  ;;  %v6882_v15 = vld [vmem:[#allocation32 + $0x30] sm:$0xff] }
 0xc5f   :  { %v6716_v6 = vadd.f32 %v13640_v50, %v14188_v61  ;;  %v6754_v5 = vadd.f32 %v6753_v36, %v6752_v58  ;;  %v6729_v18 = vrot.slane %v6728_v32, 1  ;;  %v6878_v36 = vld [vmem:[#allocation32 + $0x10] sm:$0xff] }
 0xc60   :  { %v6760_v56 = vadd.f32 %v6759_v62, %v6714_v46  ;;  %v6715_v9 = vadd.f32 %v13632_v21, %v14179_v42  ;;  %v6741_v46 = vadd.f32 %v6740_v43, %v6739_v13  ;;  %v13648_v62 = vld [vmem:[%s14321_s7 + $0xf8] sm:$0xff]  ;;  %v6965_v47 = vld [vmem:[%s14615_s10] sm:$0xff] }
 0xc61   :  { %v6717_v42 = vadd.f32 %v13648_v62, %v14195_v35  ;;  %v6755_v1 = vrot.slane %v6754_v5, 1 }
 0xc62   :  { %v6761_v14 = vadd.f32 %v6760_v56, %v6715_v9  ;;  %v6742_v11 = vrot.slane %v6741_v46, 1  ;;  %v6730_v9 = vadd.f32 %v6729_v18, %v6728_v32  ;;  %v6881_v32 = vld [vmem:[#allocation32 + $0x28] sm:$0xff] }
 0xc63   :  { %v6756_v43 = vadd.f32 %v6755_v1, %v6754_v5  ;;  %v7482_v1 = vld [vmem:[#allocation30] ss:$0 sm:$0xff]  ;;  %v6966_v5 = vld [vmem:[%s14615_s10 + $0x8] sm:$0xff] }
 0xc64   :  { %v6762_v25 = vadd.f32 %v6761_v14, %v6716_v6  ;;  %v6743_v13 = vadd.f32 %v6742_v11, %v6741_v46  ;;  %v6770_v6 = vmul.f32 0.015625, %v6730_v9  ;;  %v8966_v14 = vpack.c.bf16 %v6966_v5, %v6965_v47  ;;  %v6969_v9 = vld [vmem:[%s14615_s10 + $0x20] sm:$0xff] }
 0xc65   :  { %v6772_v2 = vmul.f32 0.015625, %v6756_v43 }
 0xc66   :  { %v6763_v8 = vadd.f32 %v6762_v25, %v6717_v42  ;;  %v6771_v23 = vmul.f32 0.015625, %v6743_v13  ;;  %v6968_v13 = vld [vmem:[%s14615_s10 + $0x18] sm:$0xff] }
 0xc68   :  { %v6764_v16 = vrot.slane %v6763_v8, 4  ;;  %v6801_v25 = vsel %vm4833_vm0, %v6771_v23, %v6770_v6  ;;  %v6970_v6 = vld [vmem:[%s14615_s10 + $0x28] sm:$0xff] }
 0xc69   :  { %v6802_v42 = vsel %vm4835_vm1, %v6772_v2, %v6801_v25  ;;  %v6883_v2 = vld [vmem:[#allocation32 + $0x38] sm:$0xff] }
 0xc6a   :  { %v6765_v61 = vadd.f32 %v6764_v16, %v6763_v8  ;;  %v6879_v16 = vld [vmem:[#allocation32 + $0x18] sm:$0xff]  ;;  %v14614_v8 = vmov 0.0|0.0   ;;  %v8963_v23 = vpack.c.bf16 %v6883_v2, %v6882_v15 }
 0xc6b   :  { %v8957_v18 = vpack.c.bf16 %v6879_v16, %v6878_v36  ;;  %v6971_v25 = vld [vmem:[%s14615_s10 + $0x30] sm:$0xff] }
 0xc6c   :  { %v6766_v56 = vrot.slane %v6765_v61, 2  ;;  %v7483_v16 = vld [vmem:[#allocation33] ss:$0 sm:$0xff] }
 0xc6e   :  { %v6767_v39 = vadd.f32 %v6766_v56, %v6765_v61  ;;  %v6967_v56 = vld [vmem:[%s14615_s10 + $0x10] sm:$0xff] }
 0xc6f   :  { %v8969_v43 = vpack.c.bf16 %v6968_v13, %v6967_v56 }
 0xc70   :  { %v6768_v40 = vrot.slane %v6767_v39, 1 }
 0xc72   :  { %v6769_v35 = vadd.f32 %v6768_v40, %v6767_v39  ;;  %v6880_v39 = vld [vmem:[#allocation32 + $0x20] sm:$0xff] }
 0xc73   :  { %v8960_v40 = vpack.c.bf16 %v6881_v32, %v6880_v39 }
 0xc74   :  { %v6773_v58 = vmul.f32 0.015625, %v6769_v35 }
 0xc76   :  { %v6803_v11 = vsel %vm4837_vm2, %v6773_v58, %v6802_v42  ;;  %v8972_v58 = vpack.c.bf16 %v6970_v6, %v6969_v9 }
 0xc77   :  { %8817 = vmatmul.mubr.f32.vlgmr.msra.gmra.mrb[252].mxu0 %v6803_v11  ;;  %v7485_v11 = vld [vmem:[#allocation35] ss:$0 sm:$0xff] }
 0xc78   :  { %8955 = vmatpush3.bf16.msra.mxu0 %v8954_v55  ;;  %8835 = vmatprep.mubr.msk.f32.mxu0 %vm10104_vm4, %v13205_v33 }
 0xc79   :  { %8956 = vmatprep.subr.bf16.mxu0 %v14614_v8 }
 0xc7c   :  { %8958 = vmatpush3.bf16.msra.mxu0 %v8957_v18 }
 0xc7d   :  { %8959 = vmatprep.subr.bf16.mxu0 %v14614_v8 }
 0xc80   :  { %8961 = vmatpush3.bf16.msra.mxu0 %v8960_v40 }
 0xc81   :  { %8962 = vmatprep.subr.bf16.mxu0 %v14614_v8 }
 0xc84   :  { %8964 = vmatpush3.bf16.msra.mxu0 %v8963_v23 }
 0xc85   :  { %8965 = vmatprep.subr.bf16.mxu0 %v14614_v8 }
 0xd4a   :  { %v6871_v61 = vpop.f32.mrb[252].mxu0 }
 0xd4b   :  { %v6872_v35 = vadd.f32 %v7482_v1, %v6871_v61  ;;  %v8818_v4 = vpop.f32.mrb[253].mxu0 }
 0xd4d   :  { %v6875_v46 = vmax.f32 %v6872_v35, 0.0 }
 0xd4f   :  { %8836 = vmatmul.mubr.msk.f32.vlgmr.msra.gmra.mrb[254].mxu0 %vm6891_vm5, %v6875_v46 }
 0xd50   :  { %8967 = vmatpush3.bf16.msra.mxu0 %v8966_v14  ;;  %8854 = vmatprep.mubr.msk.f32.mxu0 %vm10104_vm4, %v13205_v33  ;;  %v6972_v33 = vld [vmem:[%s14615_s10 + $0x38] sm:$0xff] }
 0xd51   :  { %8968 = vmatprep.subr.bf16.mxu0 %v14614_v8  ;;  %v8975_v55 = vpack.c.bf16 %v6972_v33, %v6971_v25 }
 0xd54   :  { %8970 = vmatpush3.bf16.msra.mxu0 %v8969_v43 }
 0xd55   :  { %8971 = vmatprep.subr.bf16.mxu0 %v14614_v8 }
 0xd58   :  { %8973 = vmatpush3.bf16.msra.mxu0 %v8972_v58 }
 0xd59   :  { %8974 = vmatprep.subr.bf16.mxu0 %v14614_v8 }
 0xd5c   :  { %8976 = vmatpush3.bf16.msra.mxu0 %v8975_v55 }
 0xd5f   :  { %8855 = vmatmul.mubr.msk.f32.vlgmr.msra.gmra.mrb[0].mxu0 %vm6891_vm5, %v6875_v46  ;;  %v14616_v46 = vld [vmem:[#allocation65_spill] sm:$0xff] }
 0xe22   :  { %v6961_v42 = vpop.f32.mrb[254].mxu0 }
 0xe23   :  { %v8837_v36 = vpop.f32.mrb[255].mxu0  ;;  %v6962_v39 = vadd.f32 %v7483_v16, %v6961_v42 }
 0xe24   :  { %v14617_v36 = vld [vmem:[#allocation80_spill] sm:$0xff] }
 0xe32   :  { %v7046_v18 = vpop.f32.mrb[0].mxu0 }
 0xe33   :  { %v7047_v32 = vadd.f32 %v7485_v11, %v7046_v18  ;;  %v8856_v40 = vpop.f32.mrb[1].mxu0 }
 0xe35   :  { %v7050_v15 = vmax.f32 %v6962_v39, %v7047_v32 }
 0xe37   :  { %v7051_v2 = vsub.f32 %v6962_v39, %v7050_v15  ;;  %v7054_v23 = vsub.f32 %v7047_v32, %v7050_v15 }
 0xe39   :  { %v7052_v1 = vmul.f32 1.442695, %v7051_v2  ;;  %v7055_v47 = vmul.f32 1.442695, %v7054_v23 }
 0xe3b   :  { %9524 = vpow2.f32 %v7052_v1 }
 0xe3c   :  { %9526 = vpow2.f32 %v7055_v47 }
 0xe45   :  { %v9525_v5 = vpop.eup %9524 }
 0xe46   :  { %v9527_v8 = vpop.eup %9526 }
 0xe47   :  { %v7057_v61 = vadd.f32 %v9527_v8, %v9525_v5 }
 0xe49   :  { %9528 = vrcp.f32 %v7057_v61 }
 0xe53   :  { %v9529_v35 = vpop.eup %9528 }
 0xe54   :  { %v7059_v4 = vmul.f32 %v9529_v35, %v9525_v5  ;;  %v7085_v14 = vmul.f32 %v9529_v35, %v9527_v8 }
 0xe56   :  { %v7067_v56 = vrot.slane %v7059_v4, %v14616_v46  ;;  %v7093_v13 = vrot.slane %v7085_v14, %v14616_v46 }
 0xe58   :  { %v7068_v43 = vcombine.high %v7067_v56, %v7067_v56  ;;  %v7075_v9 = vrot.slane %v7067_v56, %v14616_v46  ;;  %v7094_v6 = vcombine.high %v7093_v13, %v7093_v13  ;;  %v7101_v58 = vrot.slane %v7093_v13, %v14616_v46 }
 0xe5a   :  { %v7082_v25 = vrot.slane %v7068_v43, %v14616_v46  ;;  %v7083_v33 = vcombine.high %v7075_v9, %v7075_v9  ;;  %v7108_v55 = vrot.slane %v7094_v6, %v14616_v46  ;;  %v7109_v42 = vcombine.high %v7101_v58, %v7101_v58  ;;  %v14640_v6 = vld [vmem:[#allocation81_spill] sm:$0xff] }
 0xe5b   :  { %v7114_v16 = vrot.slane %v7075_v9, %v14617_v36  ;;  %v7166_v11 = vrot.slane %v7101_v58, %v14617_v36  ;;  %v14641_v58 = vmax.f32 %v14640_v6, 0.0 }
 0xe5c   :  { %v7084_v18 = vcombine.high %v7082_v25, %v7082_v25  ;;  %v7110_v39 = vcombine.high %v7108_v55, %v7108_v55  ;;  %v7118_v32 = vrot.slane %v7082_v25, %v14617_v36  ;;  %v7122_v40 = vrot.slane %v7083_v33, %v14617_v36  ;;  %v14642_v33 = vld [vmem:[#allocation83_spill] sm:$0xff] }
 0xe5d   :  { %v13704_v15 = vmul.f32 %v13321_v27, %v7114_v16  ;;  %v13707_v2 = vmul.f32 %v13297_v12, %v7114_v16  ;;  %v13710_v23 = vmul.f32 %v13350_v30, %v7114_v16  ;;  %v13713_v1 = vmul.f32 %v13389_v49, %v7114_v16 }
 0xe5e   :  { %v7126_v47 = vrot.slane %v7084_v18, %v14617_v36  ;;  %v13717_v5 = vmul.f32 %v13418_v51, %v7114_v16  ;;  %v13720_v8 = vmul.f32 %v13452_v45, %v7114_v16  ;;  %v13723_v27 = vmul.f32 %v13510_v0, %v7114_v16 }
 0xe5f   :  { %v13726_v12 = vmul.f32 %v13550_v24, %v7114_v16  ;;  %v13729_v30 = vmul.f32 %v13306_v48, %v7118_v32  ;;  %v13732_v49 = vmul.f32 %v13289_v57, %v7118_v32  ;;  %v13735_v61 = vmul.f32 %v13341_v60, %v7118_v32 }
 0xe60   :  { %v13738_v51 = vmul.f32 %v13373_v20, %v7118_v32  ;;  %v13741_v45 = vmul.f32 %v13397_v38, %v7118_v32  ;;  %v13744_v0 = vmul.f32 %v13435_v19, %v7118_v32  ;;  %v13747_v24 = vmul.f32 %v13491_v31, %v7118_v32 }
 0xe61   :  { %v13750_v48 = vmul.f32 %v13528_v37, %v7118_v32  ;;  %v13753_v57 = vmul.f32 %v13407_v26, %v7122_v40  ;;  %v13756_v60 = vmul.f32 %v13381_v10, %v7122_v40  ;;  %v13759_v20 = vmul.f32 %v13443_v41, %v7122_v40 }
 0xe62   :  { %v13762_v38 = vmul.f32 %v13476_v34, %v7122_v40  ;;  %v13765_v19 = vmul.f32 %v13501_v22, %v7122_v40  ;;  %v13768_v31 = vmul.f32 %v13520_v54, %v7122_v40  ;;  %v13771_v37 = vmul.f32 %v13536_v17, %v7122_v40 }
 0xe63   :  { %14618 = vst [vmem:[#allocation117_spill] sm:$0xff] %v13756_v60  ;;  %14619 = vst [vmem:[#allocation120_spill] sm:$0xff] %v13759_v20  ;;  %v13774_v26 = vmul.f32 %v13561_v29, %v7122_v40  ;;  %v13777_v10 = vmul.f32 %v13576_v52, %v7126_v47  ;;  %v13780_v41 = vmul.f32 %v13584_v3, %v7126_v47 }
 0xe64   :  { %14620 = vst [vmem:[#allocation93_spill] sm:$0xff] %v13762_v38  ;;  %14621 = vst [vmem:[#allocation66_spill] sm:$0xff] %v13765_v19  ;;  %v13783_v34 = vmul.f32 %v13592_v63, %v7126_v47  ;;  %v13786_v22 = vmul.f32 %v13606_v28, %v7126_v47  ;;  %v13789_v54 = vmul.f32 %v13622_v7, %v7126_v47  ;;  %v14633_v28 = vmax.f32 %v13274_v59, 0.0  ;;  %v14644_v59 = vld [vmem:[#allocation87_spill] sm:$0xff] }
 0xe65   :  { %14622 = vst [vmem:[#allocation90_spill] sm:$0xff] %v13768_v31  ;;  %14623 = vst [vmem:[#allocation95_spill] sm:$0xff] %v13771_v37  ;;  %v13792_v17 = vmul.f32 %v13632_v21, %v7126_v47  ;;  %v13795_v29 = vmul.f32 %v13640_v50, %v7126_v47  ;;  %v13798_v52 = vmul.f32 %v13648_v62, %v7126_v47  ;;  %v14634_v7 = vmax.f32 %v13268_v53, 0.0  ;;  %v14636_v50 = vld [vmem:[#allocation71_spill] sm:$0xff]  ;;  %v14638_v62 = vld [vmem:[#allocation74_spill] sm:$0xff] }
 0xe66   :  { %14624 = vst [vmem:[#allocation97_spill] sm:$0xff] %v13774_v26  ;;  %14625 = vst [vmem:[#allocation94_spill] sm:$0xff] %v13777_v10  ;;  %v7170_v3 = vrot.slane %v7108_v55, %v14617_v36  ;;  %v7174_v63 = vrot.slane %v7109_v42, %v14617_v36  ;;  %v7178_v35 = vrot.slane %v7110_v39, %v14617_v36  ;;  %v14635_v21 = vmax.f32 %v13283_v44, 0.0  ;;  %v14646_v53 = vld [vmem:[#allocation69_spill] sm:$0xff]  ;;  %v14648_v44 = vld [vmem:[#allocation64_spill] sm:$0xff] }
 0xe67   :  { %14626 = vst [vmem:[#allocation96_spill] sm:$0xff] %v13780_v41  ;;  %14627 = vst [vmem:[#allocation99_spill] sm:$0xff] %v13783_v34  ;;  %v7183_v4 = vmul.f32 %v7166_v11, %v14633_v28  ;;  %v7184_v14 = vmul.f32 %v7166_v11, %v14634_v7  ;;  %v14637_v56 = vmax.f32 %v14636_v50, 0.0  ;;  %v14639_v43 = vmax.f32 %v14638_v62, 0.0  ;;  %v14650_v47 = vld [vmem:[#allocation68_spill] sm:$0xff]  ;;  %v14654_v62 = vld [vmem:[#allocation75_spill] sm:$0xff] }
 0xe68   :  { %14628 = vst [vmem:[#allocation103_spill] sm:$0xff] %v13786_v22  ;;  %14629 = vst [vmem:[#allocation98_spill] sm:$0xff] %v13789_v54  ;;  %v7185_v46 = vmul.f32 %v7166_v11, %v14635_v21  ;;  %v7188_v25 = vmul.f32 %v7166_v11, %v14641_v58  ;;  %v14643_v55 = vmax.f32 %v14642_v33, 0.0  ;;  %v14645_v36 = vmax.f32 %v14644_v59, 0.0  ;;  %v14652_v21 = vld [vmem:[#allocation70_spill] sm:$0xff]  ;;  %v14656_v58 = vld [vmem:[#allocation72_spill] sm:$0xff] }
 0xe69   :  { %14630 = vst [vmem:[#allocation101_spill] sm:$0xff] %v13792_v17  ;;  %14631 = vst [vmem:[#allocation109_spill] sm:$0xff] %v13795_v29  ;;  %v7186_v13 = vmul.f32 %v7166_v11, %v14637_v56  ;;  %v7187_v9 = vmul.f32 %v7166_v11, %v14639_v43  ;;  %v14647_v18 = vmax.f32 %v14646_v53, 0.0  ;;  %v14649_v32 = vmax.f32 %v14648_v44, 0.0  ;;  %v14658_v59 = vld [vmem:[#allocation78_spill] sm:$0xff]  ;;  %v14660_v53 = vld [vmem:[#allocation85_spill] sm:$0xff] }
 0xe6a   :  { %14632 = vst [vmem:[#allocation112_spill] sm:$0xff] %v13798_v52  ;;  %v7189_v42 = vmul.f32 %v7166_v11, %v14643_v55  ;;  %v7190_v16 = vmul.f32 %v7166_v11, %v14645_v36  ;;  %v14651_v28 = vmax.f32 %v14650_v47, 0.0  ;;  %v14653_v50 = vmax.f32 %v14652_v21, 0.0  ;;  %v14662_v44 = vld [vmem:[#allocation73_spill] sm:$0xff]  ;;  %v14664_v47 = vld [vmem:[#allocation79_spill] sm:$0xff] }
 0xe6b   :  { %v7191_v39 = vmul.f32 %v7170_v3, %v14647_v18  ;;  %v7192_v40 = vmul.f32 %v7170_v3, %v14649_v32  ;;  %v14655_v43 = vmax.f32 %v14654_v62, 0.0  ;;  %v14657_v33 = vmax.f32 %v14656_v58, 0.0  ;;  %v14666_v21 = vld [vmem:[#allocation77_spill] sm:$0xff]  ;;  %v14668_v62 = vld [vmem:[#allocation76_spill] sm:$0xff] }
 0xe6c   :  { %v7193_v7 = vmul.f32 %v7170_v3, %v14651_v28  ;;  %v7194_v56 = vmul.f32 %v7170_v3, %v14653_v50  ;;  %v14659_v11 = vmax.f32 %v14658_v59, 0.0  ;;  %v14661_v18 = vmax.f32 %v14660_v53, 0.0  ;;  %v14670_v58 = vld [vmem:[#allocation84_spill] sm:$0xff]  ;;  %v14672_v59 = vld [vmem:[#allocation86_spill] sm:$0xff] }
 0xe6d   :  { %v7195_v6 = vmul.f32 %v7170_v3, %v14655_v43  ;;  %v7196_v55 = vmul.f32 %v7170_v3, %v14657_v33  ;;  %v14663_v32 = vmax.f32 %v14662_v44, 0.0  ;;  %v14665_v28 = vmax.f32 %v14664_v47, 0.0  ;;  %v14674_v53 = vld [vmem:[#allocation82_spill] sm:$0xff]  ;;  %v14676_v44 = vld [vmem:[#allocation89_spill] sm:$0xff]  ;;  %v14678_v47 = vld [vmem:[#allocation92_spill] sm:$0xff] }
 0xe6e   :  { %v7197_v36 = vmul.f32 %v7170_v3, %v14659_v11  ;;  %v7198_v52 = vmul.f32 %v7170_v3, %v14661_v18  ;;  %v14667_v50 = vmax.f32 %v14666_v21, 0.0  ;;  %v14669_v43 = vmax.f32 %v14668_v62, 0.0  ;;  %v14680_v21 = vld [vmem:[#allocation106_spill] sm:$0xff]  ;;  %v14682_v62 = vld [vmem:[#allocation88_spill] sm:$0xff] }
 0xe6f   :  { %v7199_v29 = vmul.f32 %v7174_v63, %v14663_v32  ;;  %v7200_v17 = vmul.f32 %v7174_v63, %v14665_v28  ;;  %v14671_v33 = vmax.f32 %v14670_v58, 0.0  ;;  %v14673_v11 = vmax.f32 %v14672_v59, 0.0  ;;  %v14684_v58 = vld [vmem:[#allocation91_spill] sm:$0xff]  ;;  %v14686_v59 = vld [vmem:[#allocation113_spill] sm:$0xff] }
 0xe70   :  { %v7201_v54 = vmul.f32 %v7174_v63, %v14667_v50  ;;  %v7202_v22 = vmul.f32 %v7174_v63, %v14669_v43  ;;  %v14675_v3 = vmax.f32 %v14674_v53, 0.0  ;;  %v14677_v32 = vmax.f32 %v14676_v44, 0.0  ;;  %v14688_v53 = vld [vmem:[#allocation119_spill] sm:$0xff] }
 0xe71   :  { %v7203_v34 = vmul.f32 %v7174_v63, %v14671_v33  ;;  %v7204_v41 = vmul.f32 %v7174_v63, %v14673_v11  ;;  %v14679_v28 = vmax.f32 %v14678_v47, 0.0  ;;  %v14681_v50 = vmax.f32 %v14680_v21, 0.0  ;;  %v14690_v44 = vld [vmem:[#allocation107_spill] sm:$0xff]  ;;  %v14692_v47 = vld [vmem:[#allocation114_spill] sm:$0xff] }
 0xe72   :  { %v7205_v18 = vmul.f32 %v7174_v63, %v14675_v3  ;;  %v7206_v10 = vmul.f32 %v7174_v63, %v14677_v32  ;;  %v14683_v43 = vmax.f32 %v14682_v62, 0.0  ;;  %v14685_v33 = vmax.f32 %v14684_v58, 0.0 }
 0xe73   :  { %v7207_v26 = vmul.f32 %v7178_v35, %v14679_v28  ;;  %v7208_v37 = vmul.f32 %v7178_v35, %v14681_v50  ;;  %v14687_v11 = vmax.f32 %v14686_v59, 0.0  ;;  %v14689_v3 = vmax.f32 %v14688_v53, 0.0 }
 0xe74   :  { %v7209_v31 = vmul.f32 %v7178_v35, %v14683_v43  ;;  %v7210_v19 = vmul.f32 %v7178_v35, %v14685_v33  ;;  %v14691_v63 = vmax.f32 %v14690_v44, 0.0  ;;  %v14693_v28 = vmax.f32 %v14692_v47, 0.0 }
 0xe75   :  { %v7211_v38 = vmul.f32 %v7178_v35, %v14687_v11  ;;  %v7212_v20 = vmul.f32 %v7178_v35, %v14689_v3  ;;  %v7215_v21 = vadd.f32 %v7183_v4, %v13704_v15  ;;  %v7216_v50 = vadd.f32 %v7184_v14, %v13707_v2 }
 0xe76   :  { %v7213_v32 = vmul.f32 %v7178_v35, %v14691_v63  ;;  %v7214_v60 = vmul.f32 %v7178_v35, %v14693_v28  ;;  %v7217_v62 = vadd.f32 %v7185_v46, %v13710_v23  ;;  %v7218_v43 = vadd.f32 %v7186_v13, %v13713_v1  ;;  %v14700_v46 = vld [vmem:[#allocation97_spill] sm:$0xff]  ;;  %v14703_v13 = vld [vmem:[#allocation99_spill] sm:$0xff] }
 0xe77   :  { %v7219_v58 = vadd.f32 %v7187_v9, %v13717_v5  ;;  %v7220_v33 = vadd.f32 %v7188_v25, %v13720_v8  ;;  %v7221_v59 = vadd.f32 %v7189_v42, %v13723_v27  ;;  %v7222_v11 = vadd.f32 %v7190_v16, %v13726_v12  ;;  %7247 = vst [vmem:[#allocation36] sm:$0xff] %v7215_v21  ;;  %v14694_v12 = vld [vmem:[#allocation117_spill] sm:$0xff]  ;;  %v14704_v25 = vld [vmem:[#allocation103_spill] sm:$0xff] }
 0xe78   :  { %v7223_v53 = vadd.f32 %v7191_v39, %v13729_v30  ;;  %v7224_v35 = vadd.f32 %v7192_v40, %v13732_v49  ;;  %v7225_v15 = vadd.f32 %v7193_v7, %v13735_v61  ;;  %v7226_v2 = vadd.f32 %v7194_v56, %v13738_v51  ;;  %7248 = vst [vmem:[#allocation36 + $0x8] sm:$0xff] %v7216_v50  ;;  %v14695_v49 = vld [vmem:[#allocation120_spill] sm:$0xff]  ;;  %v14696_v51 = vld [vmem:[#allocation93_spill] sm:$0xff] }
 0xe79   :  { %7249 = vst [vmem:[#allocation36 + $0x10] sm:$0xff] %v7217_v62  ;;  %7250 = vst [vmem:[#allocation36 + $0x18] sm:$0xff] %v7218_v43  ;;  %v7227_v23 = vadd.f32 %v7195_v6, %v13741_v45  ;;  %v7228_v1 = vadd.f32 %v7196_v55, %v13744_v0  ;;  %v7229_v5 = vadd.f32 %v7197_v36, %v13747_v24  ;;  %v14697_v45 = vld [vmem:[#allocation66_spill] sm:$0xff]  ;;  %v14706_v16 = vld [vmem:[#allocation101_spill] sm:$0xff] }
 0xe7a   :  { %v7230_v8 = vadd.f32 %v7198_v52, %v13750_v48  ;;  %7251 = vst [vmem:[#allocation36 + $0x20] sm:$0xff] %v7219_v58  ;;  %7252 = vst [vmem:[#allocation36 + $0x28] sm:$0xff] %v7220_v33  ;;  %v7231_v27 = vadd.f32 %v7199_v29, %v13753_v57  ;;  %v7232_v30 = vadd.f32 %v7200_v17, %v14694_v12  ;;  %v14698_v24 = vld [vmem:[#allocation90_spill] sm:$0xff]  ;;  %v14699_v52 = vld [vmem:[#allocation95_spill] sm:$0xff] }
 0xe7b   :  { %7253 = vst [vmem:[#allocation36 + $0x30] sm:$0xff] %v7221_v59  ;;  %7254 = vst [vmem:[#allocation36 + $0x38] sm:$0xff] %v7222_v11  ;;  %v7233_v61 = vadd.f32 %v7201_v54, %v14695_v49  ;;  %v7234_v4 = vadd.f32 %v7202_v22, %v14696_v51  ;;  %v7235_v0 = vadd.f32 %v7203_v34, %v14697_v45  ;;  %v14701_v54 = vld [vmem:[#allocation94_spill] sm:$0xff]  ;;  %v14702_v17 = vld [vmem:[#allocation96_spill] sm:$0xff] }
 0xe7c   :  { %7255 = vst [vmem:[#allocation36 + $0x40] sm:$0xff] %v7223_v53  ;;  %7256 = vst [vmem:[#allocation36 + $0x48] sm:$0xff] %v7224_v35  ;;  %v7236_v48 = vadd.f32 %v7204_v41, %v14698_v24  ;;  %v7237_v14 = vadd.f32 %v7205_v18, %v14699_v52  ;;  %v7238_v57 = vadd.f32 %v7206_v10, %v14700_v46  ;;  %v14705_v41 = vld [vmem:[#allocation98_spill] sm:$0xff]  ;;  %v14707_v39 = vld [vmem:[#allocation109_spill] sm:$0xff] }
 0xe7d   :  { %7257 = vst [vmem:[#allocation36 + $0x50] sm:$0xff] %v7225_v15  ;;  %7258 = vst [vmem:[#allocation36 + $0x58] sm:$0xff] %v7226_v2  ;;  %v7239_v22 = vadd.f32 %v7207_v26, %v14701_v54  ;;  %v7240_v29 = vadd.f32 %v7208_v37, %v14702_v17  ;;  %v7241_v9 = vadd.f32 %v7209_v31, %v14703_v13  ;;  %v14708_v7 = vld [vmem:[#allocation112_spill] sm:$0xff] }
 0xe7e   :  { %7259 = vst [vmem:[#allocation36 + $0x60] sm:$0xff] %v7227_v23  ;;  %7260 = vst [vmem:[#allocation36 + $0x68] sm:$0xff] %v7228_v1  ;;  %v7242_v42 = vadd.f32 %v7210_v19, %v14704_v25  ;;  %v7243_v34 = vadd.f32 %v7211_v38, %v14705_v41  ;;  %v7244_v10 = vadd.f32 %v7212_v20, %v14706_v16 }
 0xe7f   :  { %7261 = vst [vmem:[#allocation36 + $0x70] sm:$0xff] %v7229_v5  ;;  %7262 = vst [vmem:[#allocation36 + $0x78] sm:$0xff] %v7230_v8  ;;  %v7245_v40 = vadd.f32 %v7213_v32, %v14707_v39  ;;  %v7246_v56 = vadd.f32 %v7214_v60, %v14708_v7 }
 0xe80   :  { %7263 = vst [vmem:[#allocation36 + $0x80] sm:$0xff] %v7231_v27  ;;  %7264 = vst [vmem:[#allocation36 + $0x88] sm:$0xff] %v7232_v30 }
 0xe81   :  { %7265 = vst [vmem:[#allocation36 + $0x90] sm:$0xff] %v7233_v61  ;;  %7266 = vst [vmem:[#allocation36 + $0x98] sm:$0xff] %v7234_v4 }
 0xe82   :  { %7267 = vst [vmem:[#allocation36 + $0xa0] sm:$0xff] %v7235_v0  ;;  %7268 = vst [vmem:[#allocation36 + $0xa8] sm:$0xff] %v7236_v48 }
 0xe83   :  { %7269 = vst [vmem:[#allocation36 + $0xb0] sm:$0xff] %v7237_v14  ;;  %7270 = vst [vmem:[#allocation36 + $0xb8] sm:$0xff] %v7238_v57 }
 0xe84   :  { %7271 = vst [vmem:[#allocation36 + $0xc0] sm:$0xff] %v7239_v22  ;;  %7272 = vst [vmem:[#allocation36 + $0xc8] sm:$0xff] %v7240_v29 }
 0xe85   :  { %7273 = vst [vmem:[#allocation36 + $0xd0] sm:$0xff] %v7241_v9  ;;  %7274 = vst [vmem:[#allocation36 + $0xd8] sm:$0xff] %v7242_v42 }
 0xe86   :  { %7275 = vst [vmem:[#allocation36 + $0xe0] sm:$0xff] %v7243_v34  ;;  %7276 = vst [vmem:[#allocation36 + $0xe8] sm:$0xff] %v7244_v10 }
 0xe87   :  { %7277 = vst [vmem:[#allocation36 + $0xf0] sm:$0xff] %v7245_v40  ;;  %7278 = vst [vmem:[#allocation36 + $0xf8] sm:$0xff] %v7246_v56 }
 0xe88   :  { %10038 = shalt.err (!%p10035_p4)
}
 0xe89   :  { %s14709_s16 = sld [smem:[#allocation145_spill]] }
 0xe8f   :  { %s10039_s11 = scalar_lea.hbm %s14709_s16, 4096 }
 0xe90   :  { %p10040_p5 = scmp.ne.s32.totalorder %s14709_s16, %s10039_s11  ;;  %p10043_p6 = scmp.lt.u32.totalorder %s10039_s11, %s14709_s16 }
 0xe92   :  { %p10045_p7 = pnand %p10043_p6, %p10040_p5 }
 0xe94   :  { %10048 = shalt.err (!%p10045_p7)
}
 0xe95   :  { %7290 = dma.vmem_to_hbm [thread:$0]  %s7285_s12, 4096, %s14709_s16, [#allocation5], %s10079_s8, %s10079_s8, %s10080_s0  }
 0xe96   :  { %10071 = dma.done.wait [#allocation5], 4096  }
 0xe97   :  { %10072 = vsyncadd [#allocation5], 4294963200 }
 0xe98   :  { %7294 = vsyncpa [#allocation4], 1 }
 0xe99   :  { %7295 = vsyncpa [#allocation7], 1 }
 0xe9a   :  { %7296 = vsyncpa [#allocation10], 1 }
 0xe9b   :  { %7297 = vsyncpa [#allocation13], 1 }
 0xe9c   :  { %7298 = vsyncpa [#allocation16], 1 }
 0xe9d   :  { %7299 = vsyncpa [#allocation19], 1 }
 0xe9e   :  { %7300 = vsyncpa [#allocation22], 1 }
 0xe9f   :  { %7301 = vsyncpa [#allocation25], 1 }
 0xea0   :  { %7302 = vsyncpa [#allocation28], 1 }
 0xea1   :  { %7303 = vsyncpa [#allocation31], 1 }
 0xea2   :  { %7304 = vsyncpa [#allocation34], 1 }
 0xea3   :  { %7305 = vsyncpa [#allocation5], 1 }

</bundles_post_ra>
